<compile_context>
chip_gen: v7x
topology: tpu7x:2x2x1
jax: 0.10.0
libtpu: 0.0.40
codegen_flags: <defaults>
</compile_context>

<pallas_src>
import functools

import jax
import jax.numpy as jnp
from jax.experimental import pallas as pl
from jax.experimental.pallas import tpu as pltpu


# --------------------------------------------------------------------------
# Fused kernel: per-point MLP (3 -> 64 -> 128 -> 1024, BN folded), online
# max-pool over point tiles (pre-bias/pre-ReLU for conv3 -- hoisted), and the
# FC head (1024 -> 512 -> 256 -> 9) in the last-tile epilogue.
# Grid = (batch, point-tiles).  Everything channels-first.
# --------------------------------------------------------------------------
def _stn3d_kernel(x_ref, w1_ref, b1_ref, w2_ref, b2_ref, w3_ref, b3_ref,
                  w4_ref, b4_ref, w5_ref, b5_ref, w6_ref, b6_ref,
                  out_ref, maxacc_ref, *, rem):
    n = pl.program_id(1)
    nt = pl.num_programs(1)
    last = n == nt - 1

    @pl.when(n == 0)
    def _init():
        maxacc_ref[...] = jnp.full_like(maxacc_ref, -jnp.inf)

    x = x_ref[0]  # (3, TN) float32, channels-first (native PyTorch layout)

    # conv1 (kernel size 1, C_in = 3): three VPU broadcast-FMAs in f32 -- avoids
    # a degenerate K=3 MXU matmul and any in-kernel transpose of the input.
    w1 = w1_ref[...]  # (64, 3) f32
    h1 = (w1[:, 0:1] * x[0:1, :]
          + w1[:, 1:2] * x[1:2, :]
          + w1[:, 2:3] * x[2:3, :]
          + b1_ref[...])                                        # (64, TN)
    h1 = jnp.maximum(h1, 0.0)

    # conv2: (128, 64) @ (64, TN); bf16 operands, f32 MXU accumulation.
    h2 = jnp.maximum(
        jnp.dot(w2_ref[...], h1.astype(jnp.bfloat16),
                preferred_element_type=jnp.float32) + b2_ref[...], 0.0)

    # conv3: bias + ReLU are hoisted past the max-pool (max is monotone, bias is
    # per-channel), so only the raw matmul result is max-reduced per tile.
    z3 = jnp.dot(w3_ref[...], h2.astype(jnp.bfloat16),
                 preferred_element_type=jnp.float32)            # (1024, TN)

    if rem:
        # Ragged final tile: mask out-of-range lanes (last tile only).
        @pl.when(n < nt - 1)
        def _full_tiles():
            maxacc_ref[...] = jnp.maximum(
                maxacc_ref[...], jnp.max(z3, axis=1, keepdims=True))

        @pl.when(last)
        def _ragged_tile():
            lane = jax.lax.broadcasted_iota(jnp.int32, z3.shape, 1)
            zm = jnp.where(lane < rem, z3, -jnp.inf)
            maxacc_ref[...] = jnp.maximum(
                maxacc_ref[...], jnp.max(zm, axis=1, keepdims=True))
    else:
        maxacc_ref[...] = jnp.maximum(
            maxacc_ref[...], jnp.max(z3, axis=1, keepdims=True))

    @pl.when(last)
    def _head():
        # Hoisted conv3 bias + ReLU applied once on the pooled (1024, 1) vector,
        # then the FC head (channels-first matvecs on the MXU).
        f = jnp.maximum(maxacc_ref[...] + b3_ref[...], 0.0)     # (1024, 1)
        h4 = jnp.maximum(
            jnp.dot(w4_ref[...], f.astype(jnp.bfloat16),
                    preferred_element_type=jnp.float32) + b4_ref[...], 0.0)
        h5 = jnp.maximum(
            jnp.dot(w5_ref[...], h4.astype(jnp.bfloat16),
                    preferred_element_type=jnp.float32) + b5_ref[...], 0.0)
        out_ref[0] = (jnp.dot(w6_ref[...], h5.astype(jnp.bfloat16),
                              preferred_element_type=jnp.float32)
                      + b6_ref[...])                             # (9, 1)


def stn3d_forward(x_bcn, params, tile_n=1024):
    """x_bcn: (B, 3, N) float32 (native PyTorch layout). Returns (B, 3, 3)."""
    B, C, N = x_bcn.shape
    assert C == 3
    x = x_bcn.astype(jnp.float32)          # no transpose, no padding copy

    if N <= tile_n:
        TN = N                             # single tile covers the whole axis
    else:
        TN = max(128, (tile_n // 128) * 128)   # lane-aligned point tiles
    NT = pl.cdiv(N, TN)
    rem = N % TN                           # nonzero => ragged final tile

    (w1, b1, w2, b2, w3, b3, w4, b4, w5, b5, w6, b6) = params

    def _const_spec(shape):
        zeros = (0,) * len(shape)
        return pl.BlockSpec(shape, lambda b, n: zeros)

    out = pl.pallas_call(
        functools.partial(_stn3d_kernel, rem=rem),
        out_shape=jax.ShapeDtypeStruct((B, 9, 1), jnp.float32),
        grid_spec=pltpu.PrefetchScalarGridSpec(
            num_scalar_prefetch=0,
            grid=(B, NT),
            in_specs=[
                pl.BlockSpec((1, 3, TN), lambda b, n: (b, 0, n)),
                _const_spec(w1.shape), _const_spec(b1.shape),
                _const_spec(w2.shape), _const_spec(b2.shape),
                _const_spec(w3.shape), _const_spec(b3.shape),
                _const_spec(w4.shape), _const_spec(b4.shape),
                _const_spec(w5.shape), _const_spec(b5.shape),
                _const_spec(w6.shape), _const_spec(b6.shape),
            ],
            out_specs=pl.BlockSpec((1, 9, 1), lambda b, n: (b, 0, 0)),
            scratch_shapes=[pltpu.VMEM((1024, 1), jnp.float32)],
        ),
        compiler_params=pltpu.CompilerParams(
            dimension_semantics=("parallel", "arbitrary"),
            vmem_limit_bytes=32 * 1024 * 1024),
    )(x, w1, b1, w2, b2, w3, b3, w4, b4, w5, b5, w6, b6)

    return out.reshape(B, 3, 3)


# --------------------------------------------------------------------------
# Deterministic parameter construction + eval-mode BN folding (plain JAX glue).
# Weights stored channels-first (C_out, C_in); MXU weights bf16, conv1 f32;
# biases stored as (C_out, 1) f32 columns.
# --------------------------------------------------------------------------
def _fold_bn(w_cf, b, gamma, beta, mean, var, eps=1e-5):
    """w_cf: (out, in) channels-first weight; eval-mode BN fold."""
    s = gamma / jnp.sqrt(var + eps)            # (out,)
    w_eff = w_cf * s[:, None]                  # (out, in)
    b_eff = s * b + (beta - mean * s)          # (out,)
    return w_eff, b_eff[:, None]


def make_params(key):
    dims = [(3, 64), (64, 128), (128, 1024), (1024, 512), (512, 256), (256, 9)]
    keys = jax.random.split(key, 6 * 6)
    params = []
    ki = 0
    for layer_idx, (cin, cout) in enumerate(dims):
        kw, kb, kg, kbe, km, kv = keys[ki:ki + 6]
        ki += 6
        w_cf = jax.random.normal(kw, (cout, cin), jnp.float32) * (1.0 / jnp.sqrt(cin))
        b = jax.random.normal(kb, (cout,), jnp.float32) * 0.02
        if layer_idx < 5:
            # layers 0..4 are followed by BatchNorm (bn1..bn5) -> fold (eval mode)
            gamma = 1.0 + 0.1 * jax.random.normal(kg, (cout,), jnp.float32)
            beta = 0.05 * jax.random.normal(kbe, (cout,), jnp.float32)
            mean = 0.05 * jax.random.normal(km, (cout,), jnp.float32)
            var = 1.0 + 0.1 * jax.random.uniform(kv, (cout,), jnp.float32)
            w_eff, b_eff = _fold_bn(w_cf, b, gamma, beta, mean, var)
        else:
            # fc3: no BN; fold the flattened 3x3 identity into the bias
            iden = jnp.eye(3, dtype=jnp.float32).reshape(9)
            w_eff = w_cf
            b_eff = (b + iden)[:, None]
        if layer_idx == 0:
            w_eff = w_eff.astype(jnp.float32)     # conv1 runs on the VPU in f32
        else:
            w_eff = w_eff.astype(jnp.bfloat16)    # MXU operand
        params += [w_eff, b_eff.astype(jnp.float32)]
    return tuple(params)


def _reference_forward(x_bcn, params):
    """Pure-JAX reference mirroring the kernel numerics (bf16 MXU operands)."""
    (w1, b1, w2, b2, w3, b3, w4, b4, w5, b5, w6, b6) = params
    B = x_bcn.shape[0]
    x = x_bcn.astype(jnp.float32)                                       # (B, 3, N)
    h1 = jnp.maximum(jnp.einsum('oc,bcn->bon', w1, x) + b1[None], 0.0)
    h2 = jnp.maximum(
        jnp.einsum('oc,bcn->bon', w2, h1.astype(jnp.bfloat16),
                   preferred_element_type=jnp.float32) + b2[None], 0.0)
    z3 = jnp.einsum('oc,bcn->bon', w3, h2.astype(jnp.bfloat16),
                    preferred_element_type=jnp.float32)
    f = jnp.maximum(jnp.max(z3, axis=2) + b3[:, 0][None], 0.0)          # (B, 1024)
    h4 = jnp.maximum(
        jnp.einsum('oc,bc->bo', w4, f.astype(jnp.bfloat16),
                   preferred_element_type=jnp.float32) + b4[:, 0][None], 0.0)
    h5 = jnp.maximum(
        jnp.einsum('oc,bc->bo', w5, h4.astype(jnp.bfloat16),
                   preferred_element_type=jnp.float32) + b5[:, 0][None], 0.0)
    out = jnp.einsum('oc,bc->bo', w6, h5.astype(jnp.bfloat16),
                     preferred_element_type=jnp.float32) + b6[:, 0][None]
    return out.reshape(B, 3, 3)


if __name__ == "__main__":
    key = jax.random.PRNGKey(0)
    kp, kx = jax.random.split(key)
    params = make_params(kp)

    B, N = 2, 700                                        # small demo shapes
    x = jax.random.normal(kx, (B, 3, N), jnp.float32)    # PyTorch layout (B, 3, N)

    ref = _reference_forward(x, params)

    # Multi-tile path with a ragged final tile (700 = 2*256 + 188): exercises
    # the online max accumulator and the in-kernel lane masking.
    fwd_tiled = jax.jit(functools.partial(stn3d_forward, params=params, tile_n=256))
    out_tiled = jax.block_until_ready(fwd_tiled(x))

    # Single-tile path (default tile size covers all points).
    fwd_full = jax.jit(functools.partial(stn3d_forward, params=params))
    out_full = jax.block_until_ready(fwd_full(x))

    assert out_tiled.shape == (B, 3, 3)
    assert jnp.allclose(out_tiled, ref, atol=1e-2, rtol=1e-2), "tiled mismatch vs reference"
    assert jnp.allclose(out_full, ref, atol=1e-2, rtol=1e-2), "full mismatch vs reference"
    print("KERNEL_OK")
</pallas_src>

<mosaic_0001>
module attributes {stable_mosaic.version = 11 : i64} {
  func.func @_stn3d_kernel(%arg0: i32, %arg1: i32, %arg2: memref<1x3x256xf32, #tpu.memory_space<vmem>>, %arg3: memref<64x3xf32, #tpu.memory_space<vmem>>, %arg4: memref<64x1xf32, #tpu.memory_space<vmem>>, %arg5: memref<128x64xbf16, #tpu.memory_space<vmem>>, %arg6: memref<128x1xf32, #tpu.memory_space<vmem>>, %arg7: memref<1024x128xbf16, #tpu.memory_space<vmem>>, %arg8: memref<1024x1xf32, #tpu.memory_space<vmem>>, %arg9: memref<512x1024xbf16, #tpu.memory_space<vmem>>, %arg10: memref<512x1xf32, #tpu.memory_space<vmem>>, %arg11: memref<256x512xbf16, #tpu.memory_space<vmem>>, %arg12: memref<256x1xf32, #tpu.memory_space<vmem>>, %arg13: memref<9x256xbf16, #tpu.memory_space<vmem>>, %arg14: memref<9x1xf32, #tpu.memory_space<vmem>>, %arg15: memref<1x9x1xf32, #tpu.memory_space<vmem>>, %arg16: memref<1024x1xf32, #tpu.memory_space<vmem>>) attributes {dimension_semantics = [#tpu.dimension_semantics<parallel>, #tpu.dimension_semantics<arbitrary>], iteration_bounds = array<i64: 2, 3>, scalar_prefetch = 0 : i64, scratch_operands = 1 : i64, tpu.core_type = #tpu.core_type<tc>, window_params = [{transform_indices = @transform_0, window_bounds = array<i64: 1, 3, 256>}, {pipeline_mode = #tpu.pipeline_mode<synchronous>, transform_indices = @transform_1, window_bounds = array<i64: 64, 3>}, {pipeline_mode = #tpu.pipeline_mode<synchronous>, transform_indices = @transform_2, window_bounds = array<i64: 64, 1>}, {pipeline_mode = #tpu.pipeline_mode<synchronous>, transform_indices = @transform_3, window_bounds = array<i64: 128, 64>}, {pipeline_mode = #tpu.pipeline_mode<synchronous>, transform_indices = @transform_4, window_bounds = array<i64: 128, 1>}, {pipeline_mode = #tpu.pipeline_mode<synchronous>, transform_indices = @transform_5, window_bounds = array<i64: 1024, 128>}, {pipeline_mode = #tpu.pipeline_mode<synchronous>, transform_indices = @transform_6, window_bounds = array<i64: 1024, 1>}, {pipeline_mode = #tpu.pipeline_mode<synchronous>, transform_indices = @transform_7, window_bounds = array<i64: 512, 1024>}, {pipeline_mode = #tpu.pipeline_mode<synchronous>, transform_indices = @transform_8, window_bounds = array<i64: 512, 1>}, {pipeline_mode = #tpu.pipeline_mode<synchronous>, transform_indices = @transform_9, window_bounds = array<i64: 256, 512>}, {pipeline_mode = #tpu.pipeline_mode<synchronous>, transform_indices = @transform_10, window_bounds = array<i64: 256, 1>}, {pipeline_mode = #tpu.pipeline_mode<synchronous>, transform_indices = @transform_11, window_bounds = array<i64: 9, 256>}, {pipeline_mode = #tpu.pipeline_mode<synchronous>, transform_indices = @transform_12, window_bounds = array<i64: 9, 1>}, {transform_indices = @transform_13, window_bounds = array<i64: 1, 9, 1>}]} {
    %c2_i32 = arith.constant 2 : i32
    %0 = arith.cmpi eq, %arg1, %c2_i32 : i32
    %c0_i32 = arith.constant 0 : i32
    %1 = arith.cmpi eq, %arg1, %c0_i32 : i32
    %2 = arith.extui %1 : i1 to i32
    %c0_i32_0 = arith.constant 0 : i32
    %3 = arith.cmpi ne, %2, %c0_i32_0 : i32
    scf.if %3 {
      %cst_20 = arith.constant 0xFF800000 : f32
      %47 = vector.broadcast %cst_20 : f32 to vector<1024x1xf32>
      %c0_21 = arith.constant 0 : index
      %c0_22 = arith.constant 0 : index
      %48 = vector.load %arg16[%c0_21, %c0_22] : memref<1024x1xf32, #tpu.memory_space<vmem>>, vector<1024x1xf32>
      tpu.vector_store %arg16[%c0_21, %c0_22], %47 {strides = array<i32>} : memref<1024x1xf32, #tpu.memory_space<vmem>>, vector<1024x1xf32>,
    } else {
    }
    %c0 = arith.constant 0 : index
    %c0_1 = arith.constant 0 : index
    %c0_2 = arith.constant 0 : index
    %4 = vector.load %arg2[%c0, %c0_1, %c0_2] : memref<1x3x256xf32, #tpu.memory_space<vmem>>, vector<1x3x256xf32>
    %5 = vector.shape_cast %4 : vector<1x3x256xf32> to vector<3x256xf32>
    %c0_3 = arith.constant 0 : index
    %c0_4 = arith.constant 0 : index
    %6 = vector.load %arg3[%c0_3, %c0_4] : memref<64x3xf32, #tpu.memory_space<vmem>>, vector<64x3xf32>
    %7 = vector.extract_strided_slice %6 {offsets = [0, 0], sizes = [64, 1], strides = [1, 1]} : vector<64x3xf32> to vector<64x1xf32>
    %8 = vector.extract_strided_slice %5 {offsets = [0, 0], sizes = [1, 256], strides = [1, 1]} : vector<3x256xf32> to vector<1x256xf32>
    %9 = vector.broadcast %7 : vector<64x1xf32> to vector<64x256xf32>
    %10 = vector.broadcast %8 : vector<1x256xf32> to vector<64x256xf32>
    %11 = arith.mulf %9, %10 : vector<64x256xf32>
    %12 = vector.extract_strided_slice %6 {offsets = [0, 1], sizes = [64, 1], strides = [1, 1]} : vector<64x3xf32> to vector<64x1xf32>
    %13 = vector.extract_strided_slice %5 {offsets = [1, 0], sizes = [1, 256], strides = [1, 1]} : vector<3x256xf32> to vector<1x256xf32>
    %14 = vector.broadcast %12 : vector<64x1xf32> to vector<64x256xf32>
    %15 = vector.broadcast %13 : vector<1x256xf32> to vector<64x256xf32>
    %16 = arith.mulf %14, %15 : vector<64x256xf32>
    %17 = arith.addf %11, %16 : vector<64x256xf32>
    %18 = vector.extract_strided_slice %6 {offsets = [0, 2], sizes = [64, 1], strides = [1, 1]} : vector<64x3xf32> to vector<64x1xf32>
    %19 = vector.extract_strided_slice %5 {offsets = [2, 0], sizes = [1, 256], strides = [1, 1]} : vector<3x256xf32> to vector<1x256xf32>
    %20 = vector.broadcast %18 : vector<64x1xf32> to vector<64x256xf32>
    %21 = vector.broadcast %19 : vector<1x256xf32> to vector<64x256xf32>
    %22 = arith.mulf %20, %21 : vector<64x256xf32>
    %23 = arith.addf %17, %22 : vector<64x256xf32>
    %c0_5 = arith.constant 0 : index
    %c0_6 = arith.constant 0 : index
    %24 = vector.load %arg4[%c0_5, %c0_6] : memref<64x1xf32, #tpu.memory_space<vmem>>, vector<64x1xf32>
    %25 = vector.broadcast %24 : vector<64x1xf32> to vector<64x256xf32>
    %26 = arith.addf %23, %25 : vector<64x256xf32>
    %cst = arith.constant 0.000000e+00 : f32
    %27 = vector.broadcast %cst : f32 to vector<64x256xf32>
    %28 = arith.maximumf %26, %27 : vector<64x256xf32>
    %c0_7 = arith.constant 0 : index
    %c0_8 = arith.constant 0 : index
    %29 = vector.load %arg5[%c0_7, %c0_8] : memref<128x64xbf16, #tpu.memory_space<vmem>>, vector<128x64xbf16>
    %30 = arith.truncf %28 : vector<64x256xf32> to vector<64x256xbf16>
    %cst_9 = arith.constant dense<0.000000e+00> : vector<128x256xf32>
    %31 = tpu.matmul %29, %30, %cst_9 {dimension_numbers = #tpu.dot_dimension_numbers<[1], [0], [0], [1], [0, 0, 1, 1], [], []>} : vector<128x64xbf16>, vector<64x256xbf16>, vector<128x256xf32> -> vector<128x256xf32>
    %c0_10 = arith.constant 0 : index
    %c0_11 = arith.constant 0 : index
    %32 = vector.load %arg6[%c0_10, %c0_11] : memref<128x1xf32, #tpu.memory_space<vmem>>, vector<128x1xf32>
    %33 = vector.broadcast %32 : vector<128x1xf32> to vector<128x256xf32>
    %34 = arith.addf %31, %33 : vector<128x256xf32>
    %cst_12 = arith.constant 0.000000e+00 : f32
    %35 = vector.broadcast %cst_12 : f32 to vector<128x256xf32>
    %36 = arith.maximumf %34, %35 : vector<128x256xf32>
    %c0_13 = arith.constant 0 : index
    %c0_14 = arith.constant 0 : index
    %37 = vector.load %arg7[%c0_13, %c0_14] : memref<1024x128xbf16, #tpu.memory_space<vmem>>, vector<1024x128xbf16>
    %38 = arith.truncf %36 : vector<128x256xf32> to vector<128x256xbf16>
    %cst_15 = arith.constant dense<0.000000e+00> : vector<1024x256xf32>
    %39 = tpu.matmul %37, %38, %cst_15 {dimension_numbers = #tpu.dot_dimension_numbers<[1], [0], [0], [1], [0, 0, 1, 1], [], []>} : vector<1024x128xbf16>, vector<128x256xbf16>, vector<1024x256xf32> -> vector<1024x256xf32>
    %c2_i32_16 = arith.constant 2 : i32
    %40 = arith.cmpi slt, %arg1, %c2_i32_16 : i32
    %41 = arith.extui %40 : i1 to i32
    %c0_i32_17 = arith.constant 0 : i32
    %42 = arith.cmpi ne, %41, %c0_i32_17 : i32
    scf.if %42 {
      %c0_20 = arith.constant 0 : index
      %c0_21 = arith.constant 0 : index
      %47 = vector.load %arg16[%c0_20, %c0_21] : memref<1024x1xf32, #tpu.memory_space<vmem>>, vector<1024x1xf32>
      %cst_22 = arith.constant dense<0xFF800000> : vector<1024xf32>
      %48 = vector.multi_reduction <maximumf>, %39, %cst_22 [1] : vector<1024x256xf32> to vector<1024xf32>
      %49 = vector.shape_cast %48 : vector<1024xf32> to vector<1024x1xf32>
      %50 = arith.maximumf %47, %49 : vector<1024x1xf32>
      %c0_23 = arith.constant 0 : index
      %c0_24 = arith.constant 0 : index
      %51 = vector.load %arg16[%c0_23, %c0_24] : memref<1024x1xf32, #tpu.memory_space<vmem>>, vector<1024x1xf32>
      tpu.vector_store %arg16[%c0_23, %c0_24], %50 {strides = array<i32>} : memref<1024x1xf32, #tpu.memory_space<vmem>>, vector<1024x1xf32>,
    } else {
    }
    %43 = arith.extui %0 : i1 to i32
    %c0_i32_18 = arith.constant 0 : i32
    %44 = arith.cmpi ne, %43, %c0_i32_18 : i32
    scf.if %44 {
      %47 = tpu.iota {dimensions = array<i32: 1>} : vector<1024x256xi32>
      %c188_i32 = arith.constant 188 : i32
      %48 = vector.broadcast %c188_i32 : i32 to vector<1024x256xi32>
      %49 = arith.cmpi slt, %47, %48 : vector<1024x256xi32>
      %cst_20 = arith.constant 0xFF800000 : f32
      %50 = vector.broadcast %cst_20 : f32 to vector<1024x256xf32>
      %51 = arith.select %49, %39, %50 : vector<1024x256xi1>, vector<1024x256xf32>
      %c0_21 = arith.constant 0 : index
      %c0_22 = arith.constant 0 : index
      %52 = vector.load %arg16[%c0_21, %c0_22] : memref<1024x1xf32, #tpu.memory_space<vmem>>, vector<1024x1xf32>
      %cst_23 = arith.constant dense<0xFF800000> : vector<1024xf32>
      %53 = vector.multi_reduction <maximumf>, %51, %cst_23 [1] : vector<1024x256xf32> to vector<1024xf32>
      %54 = vector.shape_cast %53 : vector<1024xf32> to vector<1024x1xf32>
      %55 = arith.maximumf %52, %54 : vector<1024x1xf32>
      %c0_24 = arith.constant 0 : index
      %c0_25 = arith.constant 0 : index
      %56 = vector.load %arg16[%c0_24, %c0_25] : memref<1024x1xf32, #tpu.memory_space<vmem>>, vector<1024x1xf32>
      tpu.vector_store %arg16[%c0_24, %c0_25], %55 {strides = array<i32>} : memref<1024x1xf32, #tpu.memory_space<vmem>>, vector<1024x1xf32>,
    } else {
    }
    %45 = arith.extui %0 : i1 to i32
    %c0_i32_19 = arith.constant 0 : i32
    %46 = arith.cmpi ne, %45, %c0_i32_19 : i32
    scf.if %46 {
      %c0_20 = arith.constant 0 : index
      %c0_21 = arith.constant 0 : index
      %47 = vector.load %arg16[%c0_20, %c0_21] : memref<1024x1xf32, #tpu.memory_space<vmem>>, vector<1024x1xf32>
      %c0_22 = arith.constant 0 : index
      %c0_23 = arith.constant 0 : index
      %48 = vector.load %arg8[%c0_22, %c0_23] : memref<1024x1xf32, #tpu.memory_space<vmem>>, vector<1024x1xf32>
      %49 = arith.addf %47, %48 : vector<1024x1xf32>
      %cst_24 = arith.constant 0.000000e+00 : f32
      %50 = vector.broadcast %cst_24 : f32 to vector<1024x1xf32>
      %51 = arith.maximumf %49, %50 : vector<1024x1xf32>
      %c0_25 = arith.constant 0 : index
      %c0_26 = arith.constant 0 : index
      %52 = vector.load %arg9[%c0_25, %c0_26] : memref<512x1024xbf16, #tpu.memory_space<vmem>>, vector<512x1024xbf16>
      %53 = arith.truncf %51 : vector<1024x1xf32> to vector<1024x1xbf16>
      %cst_27 = arith.constant dense<0.000000e+00> : vector<512x1xf32>
      %54 = tpu.matmul %52, %53, %cst_27 {dimension_numbers = #tpu.dot_dimension_numbers<[1], [0], [0], [1], [0, 0, 1, 1], [], []>} : vector<512x1024xbf16>, vector<1024x1xbf16>, vector<512x1xf32> -> vector<512x1xf32>
      %c0_28 = arith.constant 0 : index
      %c0_29 = arith.constant 0 : index
      %55 = vector.load %arg10[%c0_28, %c0_29] : memref<512x1xf32, #tpu.memory_space<vmem>>, vector<512x1xf32>
      %56 = arith.addf %54, %55 : vector<512x1xf32>
      %cst_30 = arith.constant 0.000000e+00 : f32
      %57 = vector.broadcast %cst_30 : f32 to vector<512x1xf32>
      %58 = arith.maximumf %56, %57 : vector<512x1xf32>
      %c0_31 = arith.constant 0 : index
      %c0_32 = arith.constant 0 : index
      %59 = vector.load %arg11[%c0_31, %c0_32] : memref<256x512xbf16, #tpu.memory_space<vmem>>, vector<256x512xbf16>
      %60 = arith.truncf %58 : vector<512x1xf32> to vector<512x1xbf16>
      %cst_33 = arith.constant dense<0.000000e+00> : vector<256x1xf32>
      %61 = tpu.matmul %59, %60, %cst_33 {dimension_numbers = #tpu.dot_dimension_numbers<[1], [0], [0], [1], [0, 0, 1, 1], [], []>} : vector<256x512xbf16>, vector<512x1xbf16>, vector<256x1xf32> -> vector<256x1xf32>
      %c0_34 = arith.constant 0 : index
      %c0_35 = arith.constant 0 : index
      %62 = vector.load %arg12[%c0_34, %c0_35] : memref<256x1xf32, #tpu.memory_space<vmem>>, vector<256x1xf32>
      %63 = arith.addf %61, %62 : vector<256x1xf32>
      %cst_36 = arith.constant 0.000000e+00 : f32
      %64 = vector.broadcast %cst_36 : f32 to vector<256x1xf32>
      %65 = arith.maximumf %63, %64 : vector<256x1xf32>
      %c0_37 = arith.constant 0 : index
      %c0_38 = arith.constant 0 : index
      %66 = vector.load %arg13[%c0_37, %c0_38] : memref<9x256xbf16, #tpu.memory_space<vmem>>, vector<9x256xbf16>
      %67 = arith.truncf %65 : vector<256x1xf32> to vector<256x1xbf16>
      %cst_39 = arith.constant dense<0.000000e+00> : vector<9x1xf32>
      %68 = tpu.matmul %66, %67, %cst_39 {dimension_numbers = #tpu.dot_dimension_numbers<[1], [0], [0], [1], [0, 0, 1, 1], [], []>} : vector<9x256xbf16>, vector<256x1xbf16>, vector<9x1xf32> -> vector<9x1xf32>
      %c0_40 = arith.constant 0 : index
      %c0_41 = arith.constant 0 : index
      %69 = vector.load %arg14[%c0_40, %c0_41] : memref<9x1xf32, #tpu.memory_space<vmem>>, vector<9x1xf32>
      %70 = arith.addf %68, %69 : vector<9x1xf32>
      %c0_42 = arith.constant 0 : index
      %c0_43 = arith.constant 0 : index
      %c0_44 = arith.constant 0 : index
      %71 = vector.load %arg15[%c0_42, %c0_43, %c0_44] : memref<1x9x1xf32, #tpu.memory_space<vmem>>, vector<1x9x1xf32>
      %72 = vector.shape_cast %71 : vector<1x9x1xf32> to vector<9x1xf32>
      %73 = vector.shape_cast %70 : vector<9x1xf32> to vector<1x9x1xf32>
      tpu.vector_store %arg15[%c0_42, %c0_43, %c0_44], %73 {strides = array<i32>} : memref<1x9x1xf32, #tpu.memory_space<vmem>>, vector<1x9x1xf32>,
    } else {
    }
    return
  }
  func.func @transform_0(%arg0: i32, %arg1: i32) -> (i32, i32, i32) {
    %c0_i32 = arith.constant 0 : i32
    %c0_i32_0 = arith.constant 0 : i32
    return %arg0, %c0_i32, %arg1 : i32, i32, i32
  }
  func.func @transform_1(%arg0: i32, %arg1: i32) -> (i32, i32) {
    %c0_i32 = arith.constant 0 : i32
    %c0_i32_0 = arith.constant 0 : i32
    %c0_i32_1 = arith.constant 0 : i32
    return %c0_i32, %c0_i32_0 : i32, i32
  }
  func.func @transform_2(%arg0: i32, %arg1: i32) -> (i32, i32) {
    %c0_i32 = arith.constant 0 : i32
    %c0_i32_0 = arith.constant 0 : i32
    %c0_i32_1 = arith.constant 0 : i32
    return %c0_i32, %c0_i32_0 : i32, i32
  }
  func.func @transform_3(%arg0: i32, %arg1: i32) -> (i32, i32) {
    %c0_i32 = arith.constant 0 : i32
    %c0_i32_0 = arith.constant 0 : i32
    %c0_i32_1 = arith.constant 0 : i32
    return %c0_i32, %c0_i32_0 : i32, i32
  }
  func.func @transform_4(%arg0: i32, %arg1: i32) -> (i32, i32) {
    %c0_i32 = arith.constant 0 : i32
    %c0_i32_0 = arith.constant 0 : i32
    %c0_i32_1 = arith.constant 0 : i32
    return %c0_i32, %c0_i32_0 : i32, i32
  }
  func.func @transform_5(%arg0: i32, %arg1: i32) -> (i32, i32) {
    %c0_i32 = arith.constant 0 : i32
    %c0_i32_0 = arith.constant 0 : i32
    %c0_i32_1 = arith.constant 0 : i32
    return %c0_i32, %c0_i32_0 : i32, i32
  }
  func.func @transform_6(%arg0: i32, %arg1: i32) -> (i32, i32) {
    %c0_i32 = arith.constant 0 : i32
    %c0_i32_0 = arith.constant 0 : i32
    %c0_i32_1 = arith.constant 0 : i32
    return %c0_i32, %c0_i32_0 : i32, i32
  }
  func.func @transform_7(%arg0: i32, %arg1: i32) -> (i32, i32) {
    %c0_i32 = arith.constant 0 : i32
    %c0_i32_0 = arith.constant 0 : i32
    %c0_i32_1 = arith.constant 0 : i32
    return %c0_i32, %c0_i32_0 : i32, i32
  }
  func.func @transform_8(%arg0: i32, %arg1: i32) -> (i32, i32) {
    %c0_i32 = arith.constant 0 : i32
    %c0_i32_0 = arith.constant 0 : i32
    %c0_i32_1 = arith.constant 0 : i32
    return %c0_i32, %c0_i32_0 : i32, i32
  }
  func.func @transform_9(%arg0: i32, %arg1: i32) -> (i32, i32) {
    %c0_i32 = arith.constant 0 : i32
    %c0_i32_0 = arith.constant 0 : i32
    %c0_i32_1 = arith.constant 0 : i32
    return %c0_i32, %c0_i32_0 : i32, i32
  }
  func.func @transform_10(%arg0: i32, %arg1: i32) -> (i32, i32) {
    %c0_i32 = arith.constant 0 : i32
    %c0_i32_0 = arith.constant 0 : i32
    %c0_i32_1 = arith.constant 0 : i32
    return %c0_i32, %c0_i32_0 : i32, i32
  }
  func.func @transform_11(%arg0: i32, %arg1: i32) -> (i32, i32) {
    %c0_i32 = arith.constant 0 : i32
    %c0_i32_0 = arith.constant 0 : i32
    %c0_i32_1 = arith.constant 0 : i32
    return %c0_i32, %c0_i32_0 : i32, i32
  }
  func.func @transform_12(%arg0: i32, %arg1: i32) -> (i32, i32) {
    %c0_i32 = arith.constant 0 : i32
    %c0_i32_0 = arith.constant 0 : i32
    %c0_i32_1 = arith.constant 0 : i32
    return %c0_i32, %c0_i32_0 : i32, i32
  }
  func.func @transform_13(%arg0: i32, %arg1: i32) -> (i32, i32, i32) {
    %c0_i32 = arith.constant 0 : i32
    %c0_i32_0 = arith.constant 0 : i32
    %c0_i32_1 = arith.constant 0 : i32
    return %arg0, %c0_i32, %c0_i32_0 : i32, i32, i32
  }
}

</mosaic_0001>

<bundles_post_ra>
// kernel: stn3d_forward.1
= control target key start
LH: loop header
LB: loop body
LE: loop exit
PB: predicated region body
PF: predicated region fallthrough
CT: control target
= control target key end

     0   :  { %s10055_s25 = smov 0   ;;  %s10057_s26 = smov 0   ;;  %s14766_s0 = inlined_call_operand.vmem [shape: f32[2,3,700], index: 0, kind: input, shape index: {}]   ;;  %s14767_s1 = inlined_call_operand.vmem [shape: f32[64,3], index: 1, kind: input, shape index: {}]   ;;  %s14768_s2 = inlined_call_operand.vmem [shape: f32[64,1], index: 2, kind: input, shape index: {}]   ;;  %s14769_s3 = inlined_call_operand.vmem [shape: bf16[128,64], index: 3, kind: input, shape index: {}]   ;;  %s14770_s4 = inlined_call_operand.vmem [shape: f32[128,1], index: 4, kind: input, shape index: {}]   ;;  %s14771_s5 = inlined_call_operand.vmem [shape: bf16[1024,128], index: 5, kind: input, shape index: {}]   ;;  %s14772_s6 = inlined_call_operand.vmem [shape: f32[1024,1], index: 6, kind: input, shape index: {}]   ;;  %s14773_s7 = inlined_call_operand.vmem [shape: bf16[512,1024], index: 7, kind: input, shape index: {}]   ;;  %s14774_s8 = inlined_call_operand.vmem [shape: f32[512,1], index: 8, kind: input, shape index: {}]   ;;  %s14775_s9 = inlined_call_operand.vmem [shape: bf16[256,512], index: 9, kind: input, shape index: {}]   ;;  %s14776_s10 = inlined_call_operand.vmem [shape: f32[256,1], index: 10, kind: input, shape index: {}]   ;;  %s14777_s11 = inlined_call_operand.vmem [shape: bf16[9,256], index: 11, kind: input, shape index: {}]   ;;  %s14778_s12 = inlined_call_operand.vmem [shape: f32[9,1], index: 12, kind: input, shape index: {}]   ;;  %s14779_s13 = inlined_call_operand.vmem [shape: f32[2,9,1], index: 13, kind: output, shape index: {}]  }
   0x1   :  { %s10059_s27 = smov 0   ;;  %s10061_s28 = smov 0  }
   0x2   :  { %s10063_s29 = smov 0  }
   0x3 LB: > { %s32_s30 = sadd.s32 1, %s9970_s27  ;;  %s35_s14 = sadd.s32 1, %s9974_s28  ;;  %s9978_s29 = sphi %s10063_s29, %s23_s29   ;;  %s9974_s28 = sphi %s10061_s28, %s15424_s28   ;;  %s9970_s27 = sphi %s10059_s27, %s15423_s27   ;;  %s9966_s26 = sphi %s10057_s26, %s15422_s26   ;;  %s9962_s25 = sphi %s10055_s25, %s15421_s25  }
   0x4   : > { %p33_p0 = scmp.ge.s32.totalorder %s32_s30, 3  ;;  %p8617_p1 = scmp.ge.s32.totalorder %s9978_s29, 1 }
   0x5   : > { %p406_p2 = scmp.lt.s32.totalorder %s9978_s29, 7 }
   0x6   : > { %s15426_s30 = smov (%p33_p0, %s32_s30), 0  ;;  %s15428_s14 = smov (!%p33_p0, %s35_s14), %s9974_s28 }
   0x7   : > { %p407_p3 = pnand %p8617_p1, %p406_p2  ;;  %p37_p4 = scmp.ge.s32.totalorder %s15428_s14, 2 }
   0x9   : > { %s15430_s14 = smov (%p37_p4, %s15428_s14), 0  ;;  %410 = sbr.rel (%p407_p3) target bundleno = 3138 (0xc42), region = 72 }
   0xa   : > { %14795 = sst [smem:[#allocation3_spill]] %s15430_s14 }
  0x10   : > { %s8618_s15 = sshll.u32 %s9962_s25, 1  ;;  %p455_p5 = scmp.lt.s32.totalorder %s9966_s26, 1 }
  0x11   : > { %p457_p6 = scmp.lt.s32.totalorder %s8618_s15, 5  ;;  %p8622_p7 = scmp.ne.s32.totalorder %s9962_s25, 0 }
  0x12   : > { %s15432_s26 = smov (!%p455_p5, %s9966_s26), 1  ;;  %vm475_vm0 = vcmask (!%p8622_p7), 7168   ;;  %v9980_v0 = vmov (!%p8622_p7), -inf  }
  0x13   : > { %s15434_s15 = smov (!%p457_p6, %s8618_s15), 5  ;;  %s9708_s16 = smul.u32 6, %s15432_s26  ;;  %476 = vst.msk [vmem:[#allocation2] sm:$0xff] (!%p8622_p7), %vm475_vm0, %v9980_v0  ;;  %477 = vst.msk [vmem:[#allocation2 + $0x8] sm:$0xff] (!%p8622_p7), %vm475_vm0, %v9980_v0 }
  0x14   : > { %s9029_s17 = sshll.u32 %s15432_s26, 4  ;;  %474 = sbr.rel (%p8622_p7) target bundleno = 83 (0x53), region = 76  ;;  %478 = vst.msk [vmem:[#allocation2 + $0x10] sm:$0xff] (!%p8622_p7), %vm475_vm0, %v9980_v0  ;;  %479 = vst.msk [vmem:[#allocation2 + $0x18] sm:$0xff] (!%p8622_p7), %vm475_vm0, %v9980_v0 }
  0x15   : > { %s10091_s20 = scalar_lea.vmem %s14779_s13, %s9029_s17  ;;  %s460_s21 = sadd.s32 %s9708_s16, %s15434_s15  ;;  %480 = vst.msk [vmem:[#allocation2 + $0x20] sm:$0xff] (!%p8622_p7), %vm475_vm0, %v9980_v0  ;;  %481 = vst.msk [vmem:[#allocation2 + $0x28] sm:$0xff] (!%p8622_p7), %vm475_vm0, %v9980_v0 }
  0x16   : > { %s8619_s22 = sshll.u32 %s460_s21, 2  ;;  %482 = vst.msk [vmem:[#allocation2 + $0x30] sm:$0xff] (!%p8622_p7), %vm475_vm0, %v9980_v0  ;;  %483 = vst.msk [vmem:[#allocation2 + $0x38] sm:$0xff] (!%p8622_p7), %vm475_vm0, %v9980_v0 }
  0x17   : > { %s10096_s14 = scalar_lea.vmem %s14766_s0, %s8619_s22  ;;  %484 = vst.msk [vmem:[#allocation2 + $0x40] sm:$0xff] (!%p8622_p7), %vm475_vm0, %v9980_v0  ;;  %485 = vst.msk [vmem:[#allocation2 + $0x48] sm:$0xff] (!%p8622_p7), %vm475_vm0, %v9980_v0 }
  0x18   : > { %486 = vst.msk [vmem:[#allocation2 + $0x50] sm:$0xff] (!%p8622_p7), %vm475_vm0, %v9980_v0  ;;  %487 = vst.msk [vmem:[#allocation2 + $0x58] sm:$0xff] (!%p8622_p7), %vm475_vm0, %v9980_v0 }
  0x19   : > { %488 = vst.msk [vmem:[#allocation2 + $0x60] sm:$0xff] (!%p8622_p7), %vm475_vm0, %v9980_v0  ;;  %489 = vst.msk [vmem:[#allocation2 + $0x68] sm:$0xff] (!%p8622_p7), %vm475_vm0, %v9980_v0 }
  0x1a   : > { %490 = vst.msk [vmem:[#allocation2 + $0x70] sm:$0xff] (!%p8622_p7), %vm475_vm0, %v9980_v0  ;;  %491 = vst.msk [vmem:[#allocation2 + $0x78] sm:$0xff] (!%p8622_p7), %vm475_vm0, %v9980_v0 }
  0x1b   : > { %492 = vst.msk [vmem:[#allocation2 + $0x80] sm:$0xff] %vm475_vm0, %v9980_v0  ;;  %493 = vst.msk [vmem:[#allocation2 + $0x88] sm:$0xff] %vm475_vm0, %v9980_v0 }
  0x1c   : > { %494 = vst.msk [vmem:[#allocation2 + $0x90] sm:$0xff] %vm475_vm0, %v9980_v0  ;;  %495 = vst.msk [vmem:[#allocation2 + $0x98] sm:$0xff] %vm475_vm0, %v9980_v0 }
  0x1d   : > { %496 = vst.msk [vmem:[#allocation2 + $0xa0] sm:$0xff] %vm475_vm0, %v9980_v0  ;;  %497 = vst.msk [vmem:[#allocation2 + $0xa8] sm:$0xff] %vm475_vm0, %v9980_v0 }
  0x1e   : > { %498 = vst.msk [vmem:[#allocation2 + $0xb0] sm:$0xff] %vm475_vm0, %v9980_v0  ;;  %499 = vst.msk [vmem:[#allocation2 + $0xb8] sm:$0xff] %vm475_vm0, %v9980_v0 }
  0x1f   : > { %500 = vst.msk [vmem:[#allocation2 + $0xc0] sm:$0xff] %vm475_vm0, %v9980_v0  ;;  %501 = vst.msk [vmem:[#allocation2 + $0xc8] sm:$0xff] %vm475_vm0, %v9980_v0 }
  0x20   : > { %502 = vst.msk [vmem:[#allocation2 + $0xd0] sm:$0xff] %vm475_vm0, %v9980_v0  ;;  %503 = vst.msk [vmem:[#allocation2 + $0xd8] sm:$0xff] %vm475_vm0, %v9980_v0 }
  0x21   : > { %504 = vst.msk [vmem:[#allocation2 + $0xe0] sm:$0xff] %vm475_vm0, %v9980_v0  ;;  %505 = vst.msk [vmem:[#allocation2 + $0xe8] sm:$0xff] %vm475_vm0, %v9980_v0 }
  0x22   : > { %506 = vst.msk [vmem:[#allocation2 + $0xf0] sm:$0xff] %vm475_vm0, %v9980_v0  ;;  %507 = vst.msk [vmem:[#allocation2 + $0xf8] sm:$0xff] %vm475_vm0, %v9980_v0 }
  0x23   : > { %508 = vst.msk [vmem:[#allocation2 + $0x100] sm:$0xff] %vm475_vm0, %v9980_v0  ;;  %509 = vst.msk [vmem:[#allocation2 + $0x108] sm:$0xff] %vm475_vm0, %v9980_v0 }
  0x24   : > { %510 = vst.msk [vmem:[#allocation2 + $0x110] sm:$0xff] %vm475_vm0, %v9980_v0  ;;  %511 = vst.msk [vmem:[#allocation2 + $0x118] sm:$0xff] %vm475_vm0, %v9980_v0 }
  0x25   : > { %512 = vst.msk [vmem:[#allocation2 + $0x120] sm:$0xff] %vm475_vm0, %v9980_v0  ;;  %513 = vst.msk [vmem:[#allocation2 + $0x128] sm:$0xff] %vm475_vm0, %v9980_v0 }
  0x26   : > { %514 = vst.msk [vmem:[#allocation2 + $0x130] sm:$0xff] %vm475_vm0, %v9980_v0  ;;  %515 = vst.msk [vmem:[#allocation2 + $0x138] sm:$0xff] %vm475_vm0, %v9980_v0 }
  0x27   : > { %516 = vst.msk [vmem:[#allocation2 + $0x140] sm:$0xff] %vm475_vm0, %v9980_v0  ;;  %517 = vst.msk [vmem:[#allocation2 + $0x148] sm:$0xff] %vm475_vm0, %v9980_v0 }
  0x28   : > { %518 = vst.msk [vmem:[#allocation2 + $0x150] sm:$0xff] %vm475_vm0, %v9980_v0  ;;  %519 = vst.msk [vmem:[#allocation2 + $0x158] sm:$0xff] %vm475_vm0, %v9980_v0 }
  0x29   : > { %520 = vst.msk [vmem:[#allocation2 + $0x160] sm:$0xff] %vm475_vm0, %v9980_v0  ;;  %521 = vst.msk [vmem:[#allocation2 + $0x168] sm:$0xff] %vm475_vm0, %v9980_v0 }
  0x2a   : > { %522 = vst.msk [vmem:[#allocation2 + $0x170] sm:$0xff] %vm475_vm0, %v9980_v0  ;;  %523 = vst.msk [vmem:[#allocation2 + $0x178] sm:$0xff] %vm475_vm0, %v9980_v0 }
  0x2b   : > { %524 = vst.msk [vmem:[#allocation2 + $0x180] sm:$0xff] %vm475_vm0, %v9980_v0  ;;  %525 = vst.msk [vmem:[#allocation2 + $0x188] sm:$0xff] %vm475_vm0, %v9980_v0 }
  0x2c   : > { %526 = vst.msk [vmem:[#allocation2 + $0x190] sm:$0xff] %vm475_vm0, %v9980_v0  ;;  %527 = vst.msk [vmem:[#allocation2 + $0x198] sm:$0xff] %vm475_vm0, %v9980_v0 }
  0x2d   : > { %528 = vst.msk [vmem:[#allocation2 + $0x1a0] sm:$0xff] %vm475_vm0, %v9980_v0  ;;  %529 = vst.msk [vmem:[#allocation2 + $0x1a8] sm:$0xff] %vm475_vm0, %v9980_v0 }
  0x2e   : > { %530 = vst.msk [vmem:[#allocation2 + $0x1b0] sm:$0xff] %vm475_vm0, %v9980_v0  ;;  %531 = vst.msk [vmem:[#allocation2 + $0x1b8] sm:$0xff] %vm475_vm0, %v9980_v0 }
  0x2f   : > { %532 = vst.msk [vmem:[#allocation2 + $0x1c0] sm:$0xff] %vm475_vm0, %v9980_v0  ;;  %533 = vst.msk [vmem:[#allocation2 + $0x1c8] sm:$0xff] %vm475_vm0, %v9980_v0 }
  0x30   : > { %534 = vst.msk [vmem:[#allocation2 + $0x1d0] sm:$0xff] %vm475_vm0, %v9980_v0  ;;  %535 = vst.msk [vmem:[#allocation2 + $0x1d8] sm:$0xff] %vm475_vm0, %v9980_v0 }
  0x31   : > { %536 = vst.msk [vmem:[#allocation2 + $0x1e0] sm:$0xff] %vm475_vm0, %v9980_v0  ;;  %537 = vst.msk [vmem:[#allocation2 + $0x1e8] sm:$0xff] %vm475_vm0, %v9980_v0 }
  0x32   : > { %538 = vst.msk [vmem:[#allocation2 + $0x1f0] sm:$0xff] %vm475_vm0, %v9980_v0  ;;  %539 = vst.msk [vmem:[#allocation2 + $0x1f8] sm:$0xff] %vm475_vm0, %v9980_v0 }
  0x33   : > { %540 = vst.msk [vmem:[#allocation2 + $0x200] sm:$0xff] %vm475_vm0, %v9980_v0  ;;  %541 = vst.msk [vmem:[#allocation2 + $0x208] sm:$0xff] %vm475_vm0, %v9980_v0 }
  0x34   : > { %542 = vst.msk [vmem:[#allocation2 + $0x210] sm:$0xff] %vm475_vm0, %v9980_v0  ;;  %543 = vst.msk [vmem:[#allocation2 + $0x218] sm:$0xff] %vm475_vm0, %v9980_v0 }
  0x35   : > { %544 = vst.msk [vmem:[#allocation2 + $0x220] sm:$0xff] %vm475_vm0, %v9980_v0  ;;  %545 = vst.msk [vmem:[#allocation2 + $0x228] sm:$0xff] %vm475_vm0, %v9980_v0 }
  0x36   : > { %546 = vst.msk [vmem:[#allocation2 + $0x230] sm:$0xff] %vm475_vm0, %v9980_v0  ;;  %547 = vst.msk [vmem:[#allocation2 + $0x238] sm:$0xff] %vm475_vm0, %v9980_v0 }
  0x37   : > { %548 = vst.msk [vmem:[#allocation2 + $0x240] sm:$0xff] %vm475_vm0, %v9980_v0  ;;  %549 = vst.msk [vmem:[#allocation2 + $0x248] sm:$0xff] %vm475_vm0, %v9980_v0 }
  0x38   : > { %550 = vst.msk [vmem:[#allocation2 + $0x250] sm:$0xff] %vm475_vm0, %v9980_v0  ;;  %551 = vst.msk [vmem:[#allocation2 + $0x258] sm:$0xff] %vm475_vm0, %v9980_v0 }
  0x39   : > { %552 = vst.msk [vmem:[#allocation2 + $0x260] sm:$0xff] %vm475_vm0, %v9980_v0  ;;  %553 = vst.msk [vmem:[#allocation2 + $0x268] sm:$0xff] %vm475_vm0, %v9980_v0 }
  0x3a   : > { %554 = vst.msk [vmem:[#allocation2 + $0x270] sm:$0xff] %vm475_vm0, %v9980_v0  ;;  %555 = vst.msk [vmem:[#allocation2 + $0x278] sm:$0xff] %vm475_vm0, %v9980_v0 }
  0x3b   : > { %556 = vst.msk [vmem:[#allocation2 + $0x280] sm:$0xff] %vm475_vm0, %v9980_v0  ;;  %557 = vst.msk [vmem:[#allocation2 + $0x288] sm:$0xff] %vm475_vm0, %v9980_v0 }
  0x3c   : > { %558 = vst.msk [vmem:[#allocation2 + $0x290] sm:$0xff] %vm475_vm0, %v9980_v0  ;;  %559 = vst.msk [vmem:[#allocation2 + $0x298] sm:$0xff] %vm475_vm0, %v9980_v0 }
  0x3d   : > { %560 = vst.msk [vmem:[#allocation2 + $0x2a0] sm:$0xff] %vm475_vm0, %v9980_v0  ;;  %561 = vst.msk [vmem:[#allocation2 + $0x2a8] sm:$0xff] %vm475_vm0, %v9980_v0 }
  0x3e   : > { %562 = vst.msk [vmem:[#allocation2 + $0x2b0] sm:$0xff] %vm475_vm0, %v9980_v0  ;;  %563 = vst.msk [vmem:[#allocation2 + $0x2b8] sm:$0xff] %vm475_vm0, %v9980_v0 }
  0x3f   : > { %564 = vst.msk [vmem:[#allocation2 + $0x2c0] sm:$0xff] %vm475_vm0, %v9980_v0  ;;  %565 = vst.msk [vmem:[#allocation2 + $0x2c8] sm:$0xff] %vm475_vm0, %v9980_v0 }
  0x40   : > { %566 = vst.msk [vmem:[#allocation2 + $0x2d0] sm:$0xff] %vm475_vm0, %v9980_v0  ;;  %567 = vst.msk [vmem:[#allocation2 + $0x2d8] sm:$0xff] %vm475_vm0, %v9980_v0 }
  0x41   : > { %568 = vst.msk [vmem:[#allocation2 + $0x2e0] sm:$0xff] %vm475_vm0, %v9980_v0  ;;  %569 = vst.msk [vmem:[#allocation2 + $0x2e8] sm:$0xff] %vm475_vm0, %v9980_v0 }
  0x42   : > { %570 = vst.msk [vmem:[#allocation2 + $0x2f0] sm:$0xff] %vm475_vm0, %v9980_v0  ;;  %571 = vst.msk [vmem:[#allocation2 + $0x2f8] sm:$0xff] %vm475_vm0, %v9980_v0 }
  0x43   : > { %572 = vst.msk [vmem:[#allocation2 + $0x300] sm:$0xff] %vm475_vm0, %v9980_v0  ;;  %573 = vst.msk [vmem:[#allocation2 + $0x308] sm:$0xff] %vm475_vm0, %v9980_v0 }
  0x44   : > { %574 = vst.msk [vmem:[#allocation2 + $0x310] sm:$0xff] %vm475_vm0, %v9980_v0  ;;  %575 = vst.msk [vmem:[#allocation2 + $0x318] sm:$0xff] %vm475_vm0, %v9980_v0 }
  0x45   : > { %576 = vst.msk [vmem:[#allocation2 + $0x320] sm:$0xff] %vm475_vm0, %v9980_v0  ;;  %577 = vst.msk [vmem:[#allocation2 + $0x328] sm:$0xff] %vm475_vm0, %v9980_v0 }
  0x46   : > { %578 = vst.msk [vmem:[#allocation2 + $0x330] sm:$0xff] %vm475_vm0, %v9980_v0  ;;  %579 = vst.msk [vmem:[#allocation2 + $0x338] sm:$0xff] %vm475_vm0, %v9980_v0 }
  0x47   : > { %580 = vst.msk [vmem:[#allocation2 + $0x340] sm:$0xff] %vm475_vm0, %v9980_v0  ;;  %581 = vst.msk [vmem:[#allocation2 + $0x348] sm:$0xff] %vm475_vm0, %v9980_v0 }
  0x48   : > { %582 = vst.msk [vmem:[#allocation2 + $0x350] sm:$0xff] %vm475_vm0, %v9980_v0  ;;  %583 = vst.msk [vmem:[#allocation2 + $0x358] sm:$0xff] %vm475_vm0, %v9980_v0 }
  0x49   : > { %584 = vst.msk [vmem:[#allocation2 + $0x360] sm:$0xff] %vm475_vm0, %v9980_v0  ;;  %585 = vst.msk [vmem:[#allocation2 + $0x368] sm:$0xff] %vm475_vm0, %v9980_v0 }
  0x4a   : > { %586 = vst.msk [vmem:[#allocation2 + $0x370] sm:$0xff] %vm475_vm0, %v9980_v0  ;;  %587 = vst.msk [vmem:[#allocation2 + $0x378] sm:$0xff] %vm475_vm0, %v9980_v0 }
  0x4b   : > { %588 = vst.msk [vmem:[#allocation2 + $0x380] sm:$0xff] %vm475_vm0, %v9980_v0  ;;  %589 = vst.msk [vmem:[#allocation2 + $0x388] sm:$0xff] %vm475_vm0, %v9980_v0 }
  0x4c   : > { %590 = vst.msk [vmem:[#allocation2 + $0x390] sm:$0xff] %vm475_vm0, %v9980_v0  ;;  %591 = vst.msk [vmem:[#allocation2 + $0x398] sm:$0xff] %vm475_vm0, %v9980_v0 }
  0x4d   : > { %592 = vst.msk [vmem:[#allocation2 + $0x3a0] sm:$0xff] %vm475_vm0, %v9980_v0  ;;  %593 = vst.msk [vmem:[#allocation2 + $0x3a8] sm:$0xff] %vm475_vm0, %v9980_v0 }
  0x4e   : > { %594 = vst.msk [vmem:[#allocation2 + $0x3b0] sm:$0xff] %vm475_vm0, %v9980_v0  ;;  %595 = vst.msk [vmem:[#allocation2 + $0x3b8] sm:$0xff] %vm475_vm0, %v9980_v0 }
  0x4f   : > { %596 = vst.msk [vmem:[#allocation2 + $0x3c0] sm:$0xff] %vm475_vm0, %v9980_v0  ;;  %597 = vst.msk [vmem:[#allocation2 + $0x3c8] sm:$0xff] %vm475_vm0, %v9980_v0 }
  0x50   : > { %598 = vst.msk [vmem:[#allocation2 + $0x3d0] sm:$0xff] %vm475_vm0, %v9980_v0  ;;  %599 = vst.msk [vmem:[#allocation2 + $0x3d8] sm:$0xff] %vm475_vm0, %v9980_v0 }
  0x51   : > { %600 = vst.msk [vmem:[#allocation2 + $0x3e0] sm:$0xff] %vm475_vm0, %v9980_v0  ;;  %601 = vst.msk [vmem:[#allocation2 + $0x3e8] sm:$0xff] %vm475_vm0, %v9980_v0 }
  0x52   : > { %602 = vst.msk [vmem:[#allocation2 + $0x3f0] sm:$0xff] %vm475_vm0, %v9980_v0  ;;  %603 = vst.msk [vmem:[#allocation2 + $0x3f8] sm:$0xff] %vm475_vm0, %v9980_v0 }
  0x53 PF: > { %v605_v1 = vld [vmem:[%s14767_s1] sm:$0xff]  ;;  %v9981_v2 = vmov 2   ;;  %v9982_v3 = vmov 1   ;;  %v607_v4 = vld [vmem:[%s14767_s1 + $0x10] sm:$0xff]  ;;  %v606_v5 = vld [vmem:[%s14767_s1 + $0x8] sm:$0xff]  ;;  %v9983_v6 = vmov 0   ;;  %v14780_v40 = vlaneseq }
  0x54   : > { %9755 = vset.pattern.permute.xlu0 %v9981_v2  ;;  %9754 = vset.pattern.permute.xlu1 %v9982_v3  ;;  %v610_v7 = vld [vmem:[%s14767_s1 + $0x28] sm:$0xff]  ;;  %v609_v8 = vld [vmem:[%s14767_s1 + $0x20] sm:$0xff]  ;;  %v612_v9 = vld [vmem:[%s14767_s1 + $0x38] sm:$0xff]  ;;  %vm1092_vm1 = vcmask 523264   ;;  %p8703_p8 = scmp.ge.s32.totalorder %s9962_s25, 2 }
  0x55   : > { %771 = vperm.xlu0 %9755, %v605_v1   ;;  %689 = vperm.xlu1 %9754, %v605_v1   ;;  %v608_v10 = vld [vmem:[%s14767_s1 + $0x18] sm:$0xff]  ;;  %v852_v11 = vld [vmem:[%s14768_s2] sm:$0xff]  ;;  %v853_v12 = vld [vmem:[%s14768_s2 + $0x8] sm:$0xff]  ;;  %v655_v43 = vshrl.u32 %v14780_v40, 7  ;;  %vm3107_vm2 = vcmask (!%p8703_p8), 7168  }
  0x56   : > { %1149 = vmatprep.mubr.bf16.mxu0 %v9983_v6  ;;  %2112 = vmatprep.mubr.bf16.mxu1 %v9983_v6  ;;  %v611_v13 = vld [vmem:[%s14767_s1 + $0x30] sm:$0xff]  ;;  %v856_v14 = vld [vmem:[%s14768_s2 + $0x20] sm:$0xff]  ;;  %v859_v15 = vld [vmem:[%s14768_s2 + $0x38] sm:$0xff] }
  0x57   : > { %v957_v16 = vld [vmem:[%s14770_s4 + $0x8] sm:$0xff]  ;;  %v959_v17 = vld [vmem:[%s14770_s4 + $0x18] sm:$0xff]  ;;  %v854_v18 = vld [vmem:[%s14768_s2 + $0x10] sm:$0xff]  ;;  %v722_v45 = vsub.s32 1, %v655_v43  ;;  %v726_v46 = vsub.s32 5, %v655_v43  ;;  %v656_v47 = vsub.s32 0, %v655_v43 }
  0x58   : > { %v961_v19 = vld [vmem:[%s14770_s4 + $0x28] sm:$0xff]  ;;  %v855_v20 = vld [vmem:[%s14768_s2 + $0x18] sm:$0xff]  ;;  %v858_v27 = vld [vmem:[%s14768_s2 + $0x30] sm:$0xff]  ;;  %v660_v48 = vsub.s32 4, %v655_v43  ;;  %v804_v51 = vsub.s32 2, %v655_v43  ;;  %v808_v52 = vsub.s32 6, %v655_v43 }
  0x59   : > { %779 = vperm.xlu0 %9755, %v607_v4   ;;  %693 = vperm.xlu1 %9754, %v606_v5   ;;  %v963_v21 = vld [vmem:[%s14770_s4 + $0x38] sm:$0xff]  ;;  %v965_v22 = vld [vmem:[%s14770_s4 + $0x48] sm:$0xff]  ;;  %v956_v28 = vld [vmem:[%s14770_s4] sm:$0xff] }
  0x5a   : > { %v967_v23 = vld [vmem:[%s14770_s4 + $0x58] sm:$0xff]  ;;  %v969_v24 = vld [vmem:[%s14770_s4 + $0x68] sm:$0xff]  ;;  %v958_v29 = vld [vmem:[%s14770_s4 + $0x10] sm:$0xff] }
  0x5b   : > { %v971_v25 = vld [vmem:[%s14770_s4 + $0x78] sm:$0xff]  ;;  %v857_v26 = vld [vmem:[%s14768_s2 + $0x28] sm:$0xff]  ;;  %v960_v30 = vld [vmem:[%s14770_s4 + $0x20] sm:$0xff] }
  0x5c   : > { %v962_v31 = vld [vmem:[%s14770_s4 + $0x30] sm:$0xff]  ;;  %v964_v32 = vld [vmem:[%s14770_s4 + $0x40] sm:$0xff] }
  0x5d   : > { %791 = vperm.xlu0 %9755, %v610_v7   ;;  %9756 = vset.pattern.permute.xlu1 %v9981_v2  ;;  %v966_v33 = vld [vmem:[%s14770_s4 + $0x50] sm:$0xff]  ;;  %v968_v34 = vld [vmem:[%s14770_s4 + $0x60] sm:$0xff] }
  0x5e   : > { %775 = vperm.xlu1 %9756, %v606_v5   ;;  %v970_v35 = vld [vmem:[%s14770_s4 + $0x70] sm:$0xff]  ;;  %v604_v50 = vld [vmem:[%s10096_s14] sm:$0x77] }
  0x5f   : > { %v723_v54 = vrot.slane %v604_v50, %v722_v45  ;;  %v727_v55 = vrot.slane %v604_v50, %v726_v46  ;;  %v657_v56 = vrot.slane %v604_v50, %v656_v47  ;;  %v661_v57 = vrot.slane %v604_v50, %v660_v48 }
  0x60   : > { %v805_v59 = vrot.slane %v604_v50, %v804_v51  ;;  %v809_v60 = vrot.slane %v604_v50, %v808_v52 }
  0x61   : > { %9763 = vset.pattern.permute.xlu0 %v9982_v3  ;;  %v10480_v61 = vrot.slane %v723_v54, %v722_v45  ;;  %v10482_v62 = vrot.slane %v727_v55, %v722_v45  ;;  %v10484_v63 = vrot.slane %v657_v56, %v656_v47  ;;  %v10486_v0 = vrot.slane %v661_v57, %v656_v47 }
  0x62   : > { %705 = vperm.xlu0 %9763, %v609_v8   ;;  %9757 = vset.pattern.permute.xlu1 %v9983_v6 }
  0x63   : > { %625 = vperm.xlu1 %9757, %v607_v4  }
  0x66   : > { %717 = vperm.xlu0 %9763, %v612_v9  }
  0x67   : > { %9758 = vset.pattern.permute.xlu1 %v9982_v3 }
  0x68   : > { %697 = vperm.xlu1 %9758, %v607_v4  }
  0x6a   : > { %9766 = vset.pattern.permute.xlu0 %v9983_v6 }
  0x6b   : > { %615 = vperm.xlu0 %9766, %v605_v1  }
  0x6c   : > { %701 = vperm.xlu1 %9758, %v608_v10  }
  0x6f   : > { %620 = vperm.xlu0 %9766, %v606_v5  }
  0x70   : > { %9759 = vset.pattern.permute.xlu1 %v9981_v2 }
  0x71   : > { %783 = vperm.xlu1 %9759, %v608_v10  }
  0x73   : > { %630 = vperm.xlu0 %9766, %v608_v10  }
  0x75   : > { %9760 = vset.pattern.permute.xlu1 %v9983_v6 }
  0x76   : > { %862 = vperm.xlu1 %9760, %v852_v11  }
  0x77   : > { %867 = vperm.xlu0 %9766, %v853_v12  }
  0x7a   : > { %635 = vperm.xlu1 %9760, %v609_v8  }
  0x7b   : > { %645 = vperm.xlu0 %9766, %v611_v13  }
  0x7e   : > { %640 = vperm.xlu1 %9760, %v610_v7  }
  0x7f   : > { %882 = vperm.xlu0 %9766, %v856_v14  }
  0x82   : > { %9761 = vset.pattern.permute.xlu1 %v9982_v3 }
  0x83   : > { %897 = vperm.xlu0 %9766, %v859_v15   ;;  %709 = vperm.xlu1 %9761, %v610_v7  }
  0x87   : > { %979 = vperm.xlu0 %9766, %v957_v16   ;;  %9762 = vset.pattern.permute.xlu1 %v9981_v2 }
  0x88   : > { %787 = vperm.xlu1 %9762, %v609_v8   ;;  %v10492_v8 = vrot.slane %v805_v59, %v804_v51 }
  0x8b   : > { %989 = vperm.xlu0 %9766, %v959_v17  }
  0x8c   : > { %9764 = vset.pattern.permute.xlu1 %v9983_v6 }
  0x8d   : > { %872 = vperm.xlu1 %9764, %v854_v18  }
  0x8f   : > { %999 = vperm.xlu0 %9766, %v961_v19  }
  0x91   : > { %877 = vperm.xlu1 %9764, %v855_v20  }
  0x93   : > { %1009 = vperm.xlu0 %9766, %v963_v21  }
  0x95   : > { %650 = vperm.xlu1 %9764, %v612_v9  }
  0x97   : > { %1019 = vperm.xlu0 %9766, %v965_v22  }
  0x99   : > { %9765 = vset.pattern.permute.xlu1 %v9982_v3 }
  0x9a   : > { %713 = vperm.xlu1 %9765, %v611_v13  }
  0x9b   : > { %1029 = vperm.xlu0 %9766, %v967_v23  }
  0x9e   : > { %9767 = vset.pattern.permute.xlu1 %v9981_v2 }
  0x9f   : > { %1039 = vperm.xlu0 %9766, %v969_v24   ;;  %795 = vperm.xlu1 %9767, %v611_v13  }
  0xa3   : > { %1049 = vperm.xlu0 %9766, %v971_v25   ;;  %799 = vperm.xlu1 %9767, %v612_v9   ;;  %v10494_v9 = vrot.slane %v809_v60, %v804_v51 }
  0xa7   : > { %9768 = vset.pattern.permute.xlu1 %v9983_v6 }
  0xa8   : > { %887 = vperm.xlu1 %9768, %v857_v26  }
  0xac   : > { %892 = vperm.xlu1 %9768, %v858_v27  }
  0xb0   : > { %974 = vperm.xlu1 %9768, %v956_v28  }
  0xb4   : > { %984 = vperm.xlu1 %9768, %v958_v29  }
  0xb8   : > { %994 = vperm.xlu1 %9768, %v960_v30  }
  0xbc   : > { %1004 = vperm.xlu1 %9768, %v962_v31  }
  0xc0   : > { %1014 = vperm.xlu1 %9768, %v964_v32  }
  0xc4   : > { %1024 = vperm.xlu1 %9768, %v966_v33  }
  0xc8   : > { %1034 = vperm.xlu1 %9768, %v968_v34  }
  0xcc   : > { %1044 = vperm.xlu1 %9768, %v970_v35  }
  0xd4   : > { %v690_v36 = vpop.permute.xlu1 %689  ;;  %v772_v37 = vpop.permute.xlu0 %771 }
  0xd5   : > { %v738_v5 = vmul.f32 %v10480_v61, %v690_v36  ;;  %v739_v7 = vmul.f32 %v10482_v62, %v690_v36  ;;  %v820_v15 = vmul.f32 %v10492_v8, %v772_v37  ;;  %v821_v16 = vmul.f32 %v10494_v9, %v772_v37 }
  0xd8   : > { %v694_v38 = vpop.permute.xlu1 %693  ;;  %v10468_v39 = vpop.permute.xlu0 %779 }
  0xd9   : > { %v740_v11 = vmul.f32 %v10480_v61, %v694_v38  ;;  %v741_v12 = vmul.f32 %v10482_v62, %v694_v38  ;;  %v824_v57 = vmul.f32 %v10492_v8, %v10468_v39  ;;  %v825_v59 = vmul.f32 %v10494_v9, %v10468_v39 }
  0xdc   : > { %v10470_v41 = vpop.permute.xlu0 %791 }
  0xdd   : > { %v776_v42 = vpop.permute.xlu1 %775 }
  0xde   : > { %v822_v23 = vmul.f32 %v10492_v8, %v776_v42  ;;  %v823_v24 = vmul.f32 %v10494_v9, %v776_v42 }
  0xe1   : > { %v10473_v44 = vpop.permute.xlu0 %705 }
  0xe2   : > { %v10475_v49 = vpop.permute.xlu1 %625 }
  0xe3   : > { %v676_v51 = vmul.f32 %v10484_v63, %v10475_v49  ;;  %v677_v52 = vmul.f32 %v10486_v0, %v10475_v49 }
  0xe5   : > { %v10478_v53 = vpop.permute.xlu0 %717 }
  0xe7   : > { %v698_v58 = vpop.permute.xlu1 %697 }
  0xe8   : > { %v742_v48 = vmul.f32 %v10480_v61, %v698_v58  ;;  %v743_v50 = vmul.f32 %v10482_v62, %v698_v58 }
  0xea   : > { %v616_v1 = vpop.permute.xlu0 %615  ;;  %v758_v60 = vadd.f32 %v742_v48, %v676_v51  ;;  %v831_v48 = vmul.f32 %v10494_v9, %v10470_v41 }
  0xeb   : > { %v702_v2 = vpop.permute.xlu1 %701  ;;  %v672_v3 = vmul.f32 %v10484_v63, %v616_v1  ;;  %v673_v4 = vmul.f32 %v10486_v0, %v616_v1  ;;  %v759_v1 = vadd.f32 %v743_v50, %v677_v52  ;;  %v753_v52 = vmul.f32 %v10482_v62, %v10478_v53 }
  0xec   : > { %v744_v58 = vmul.f32 %v10480_v61, %v702_v2 }
  0xed   : > { %v754_v17 = vadd.f32 %v738_v5, %v672_v3  ;;  %v755_v18 = vadd.f32 %v739_v7, %v673_v4  ;;  %v745_v3 = vmul.f32 %v10482_v62, %v702_v2 }
  0xee   : > { %v621_v10 = vpop.permute.xlu0 %620 }
  0xef   : > { %v674_v13 = vmul.f32 %v10484_v63, %v621_v10  ;;  %v675_v14 = vmul.f32 %v10486_v0, %v621_v10  ;;  %v836_v25 = vadd.f32 %v820_v15, %v754_v17  ;;  %v837_v26 = vadd.f32 %v821_v16, %v755_v18 }
  0xf0   : > { %v784_v19 = vpop.permute.xlu1 %783 }
  0xf1   : > { %v756_v20 = vadd.f32 %v740_v11, %v674_v13  ;;  %v757_v21 = vadd.f32 %v741_v12, %v675_v14  ;;  %v826_v7 = vmul.f32 %v10492_v8, %v784_v19  ;;  %v827_v10 = vmul.f32 %v10494_v9, %v784_v19 }
  0xf2   : > { %v631_v22 = vpop.permute.xlu0 %630  ;;  %v840_v11 = vadd.f32 %v824_v57, %v758_v60  ;;  %v841_v12 = vadd.f32 %v825_v59, %v759_v1  ;;  %v746_v19 = vmul.f32 %v10480_v61, %v10473_v44 }
  0xf3   : > { %v838_v28 = vadd.f32 %v822_v23, %v756_v20  ;;  %v839_v29 = vadd.f32 %v823_v24, %v757_v21  ;;  %v678_v54 = vmul.f32 %v10484_v63, %v631_v22  ;;  %v679_v55 = vmul.f32 %v10486_v0, %v631_v22 }
  0xf5   : > { %v863_v27 = vpop.permute.xlu1 %862  ;;  %v760_v4 = vadd.f32 %v744_v58, %v678_v54  ;;  %v761_v5 = vadd.f32 %v745_v3, %v679_v55 }
  0xf6   : > { %v900_v30 = vadd.f32 %v863_v27, %v836_v25  ;;  %v901_v31 = vadd.f32 %v863_v27, %v837_v26  ;;  %v868_v32 = vpop.permute.xlu0 %867  ;;  %v747_v27 = vmul.f32 %v10482_v62, %v10473_v44 }
  0xf7   : > { %v902_v33 = vadd.f32 %v868_v32, %v838_v28  ;;  %v903_v34 = vadd.f32 %v868_v32, %v839_v29  ;;  %v842_v15 = vadd.f32 %v826_v7, %v760_v4  ;;  %v843_v16 = vadd.f32 %v827_v10, %v761_v5 }
  0xf8   : > { %v916_v35 = vmax.f32 %v900_v30, 0.0  ;;  %v917_v36 = vmax.f32 %v901_v31, 0.0 }
  0xf9   : > { %v918_v37 = vmax.f32 %v902_v33, 0.0  ;;  %v636_v38 = vpop.permute.xlu1 %635  ;;  %v919_v43 = vmax.f32 %v903_v34, 0.0 }
  0xfa   : > { %v680_v28 = vmul.f32 %v10484_v63, %v636_v38  ;;  %v681_v29 = vmul.f32 %v10486_v0, %v636_v38  ;;  %v646_v30 = vpop.permute.xlu0 %645 }
  0xfb   : > { %v949_v45 = vpack.c.bf16 %v919_v43, %v917_v36  ;;  %v948_v46 = vpack.c.bf16 %v918_v37, %v916_v35  ;;  %v684_v1 = vmul.f32 %v10484_v63, %v646_v30  ;;  %v685_v58 = vmul.f32 %v10486_v0, %v646_v30 }
  0xfc   : > { %v762_v36 = vadd.f32 %v746_v19, %v680_v28  ;;  %v763_v37 = vadd.f32 %v747_v27, %v681_v29 }
  0xfd   : > { %v641_v47 = vpop.permute.xlu1 %640  ;;  %1117 = vmatprep.subr.bf16.mxu0 %v949_v45 }
  0xfe   : > { %1118 = vmatpush1.bf16.msra.mxu0 %v948_v46  ;;  %v682_v43 = vmul.f32 %v10484_v63, %v641_v47  ;;  %v683_v44 = vmul.f32 %v10486_v0, %v641_v47  ;;  %v830_v46 = vmul.f32 %v10492_v8, %v10470_v41 }
 0x102   : > { %v710_v42 = vpop.permute.xlu1 %709 }
 0x103   : > { %v748_v33 = vmul.f32 %v10480_v61, %v710_v42  ;;  %v749_v34 = vmul.f32 %v10482_v62, %v710_v42  ;;  %v752_v42 = vmul.f32 %v10480_v61, %v10478_v53 }
 0x105   : > { %v764_v54 = vadd.f32 %v748_v33, %v682_v43  ;;  %v765_v47 = vadd.f32 %v749_v34, %v683_v44  ;;  %v9771_v33 = vld [vmem:[%s14769_s3 + $0x10] sm:$0xff]   ;;  %v9772_v34 = vld [vmem:[%s14769_s3 + $0x18] sm:$0xff]  }
 0x106   : > { %v9776_v43 = vld [vmem:[%s14769_s3 + $0x38] sm:$0xff]  }
 0x107   : > { %v788_v56 = vpop.permute.xlu1 %787 }
 0x108   : > { %v828_v31 = vmul.f32 %v10492_v8, %v788_v56  ;;  %v829_v32 = vmul.f32 %v10494_v9, %v788_v56  ;;  %v883_v56 = vpop.permute.xlu0 %882 }
 0x10a   : > { %v844_v50 = vadd.f32 %v828_v31, %v762_v36  ;;  %v845_v51 = vadd.f32 %v829_v32, %v763_v37  ;;  %v9769_v31 = vld [vmem:[%s14769_s3] sm:$0xff]   ;;  %v9770_v32 = vld [vmem:[%s14769_s3 + $0x8] sm:$0xff]   ;;  %v9775_v37 = vld [vmem:[%s14769_s3 + $0x30] sm:$0xff]  }
 0x10b   : > { %v9774_v36 = vld [vmem:[%s14769_s3 + $0x28] sm:$0xff]  }
 0x10c   : > { %v873_v49 = vpop.permute.xlu1 %872  ;;  %v908_v5 = vadd.f32 %v883_v56, %v844_v50  ;;  %v909_v53 = vadd.f32 %v883_v56, %v845_v51 }
 0x10d   : > { %v904_v13 = vadd.f32 %v873_v49, %v840_v11  ;;  %v905_v14 = vadd.f32 %v873_v49, %v841_v12  ;;  %v846_v11 = vadd.f32 %v830_v46, %v764_v54 }
 0x10f   : > { %v920_v20 = vmax.f32 %v904_v13, 0.0  ;;  %v921_v21 = vmax.f32 %v905_v14, 0.0 }
 0x110   : > { %v878_v39 = vpop.permute.xlu1 %877 }
 0x111   : > { %v906_v17 = vadd.f32 %v878_v39, %v842_v15  ;;  %v907_v18 = vadd.f32 %v878_v39, %v843_v16 }
 0x113   : > { %v922_v22 = vmax.f32 %v906_v17, 0.0  ;;  %v923_v2 = vmax.f32 %v907_v18, 0.0  ;;  %v925_v17 = vmax.f32 %v909_v53, 0.0  ;;  %v924_v18 = vmax.f32 %v908_v5, 0.0 }
 0x114   : > { %v651_v23 = vpop.permute.xlu1 %650 }
 0x115   : > { %v951_v24 = vpack.c.bf16 %v923_v2, %v921_v21  ;;  %v950_v25 = vpack.c.bf16 %v922_v22, %v920_v20  ;;  %v686_v45 = vmul.f32 %v10484_v63, %v651_v23  ;;  %v687_v38 = vmul.f32 %v10486_v0, %v651_v23  ;;  %v898_v63 = vpop.permute.xlu0 %897 }
 0x117   : > { %1119 = vmatprep.subr.bf16.mxu0 %v951_v24  ;;  %v768_v3 = vadd.f32 %v752_v42, %v686_v45  ;;  %v769_v4 = vadd.f32 %v753_v52, %v687_v38 }
 0x118   : > { %1120 = vmatpush1.bf16.msra.mxu0 %v950_v25 }
 0x119   : > { %v714_v26 = vpop.permute.xlu1 %713 }
 0x11a   : > { %v750_v57 = vmul.f32 %v10480_v61, %v714_v26  ;;  %v751_v59 = vmul.f32 %v10482_v62, %v714_v26  ;;  %v847_v62 = vadd.f32 %v831_v48, %v765_v47  ;;  %v980_v48 = vpop.permute.xlu0 %979 }
 0x11c   : > { %v766_v12 = vadd.f32 %v750_v57, %v684_v1  ;;  %v767_v13 = vadd.f32 %v751_v59, %v685_v58 }
 0x11e   : > { %v796_v35 = vpop.permute.xlu1 %795 }
 0x11f   : > { %v832_v49 = vmul.f32 %v10492_v8, %v796_v35  ;;  %v833_v7 = vmul.f32 %v10494_v9, %v796_v35  ;;  %v9773_v35 = vld [vmem:[%s14769_s3 + $0x20] sm:$0xff]  }
 0x121   : > { %v848_v39 = vadd.f32 %v832_v49, %v766_v12  ;;  %v849_v0 = vadd.f32 %v833_v7, %v767_v13 }
 0x122   : > { %v800_v55 = vpop.permute.xlu1 %799 }
 0x123   : > { %v834_v60 = vmul.f32 %v10492_v8, %v800_v55  ;;  %v835_v41 = vmul.f32 %v10494_v9, %v800_v55 }
 0x125   : > { %v850_v10 = vadd.f32 %v834_v60, %v768_v3  ;;  %v851_v61 = vadd.f32 %v835_v41, %v769_v4  ;;  %v990_v4 = vpop.permute.xlu0 %989 }
 0x127   : > { %v888_v14 = vpop.permute.xlu1 %887  ;;  %v914_v20 = vadd.f32 %v898_v63, %v850_v10  ;;  %v915_v21 = vadd.f32 %v898_v63, %v851_v61 }
 0x128   : > { %v910_v15 = vadd.f32 %v888_v14, %v846_v11  ;;  %v911_v16 = vadd.f32 %v888_v14, %v847_v62 }
 0x129   : > { %v931_v27 = vmax.f32 %v915_v21, 0.0  ;;  %v930_v28 = vmax.f32 %v914_v20, 0.0 }
 0x12a   : > { %v926_v22 = vmax.f32 %v910_v15, 0.0  ;;  %v927_v8 = vmax.f32 %v911_v16, 0.0 }
 0x12b   : > { %v893_v2 = vpop.permute.xlu1 %892 }
 0x12c   : > { %v912_v9 = vadd.f32 %v893_v2, %v848_v39  ;;  %v913_v23 = vadd.f32 %v893_v2, %v849_v0  ;;  %v953_v24 = vpack.c.bf16 %v927_v8, %v925_v17  ;;  %v952_v25 = vpack.c.bf16 %v926_v22, %v924_v18  ;;  %v1000_v0 = vpop.permute.xlu0 %999 }
 0x12e   : > { %v928_v26 = vmax.f32 %v912_v9, 0.0  ;;  %v929_v19 = vmax.f32 %v913_v23, 0.0  ;;  %1121 = vmatprep.subr.bf16.mxu0 %v953_v24 }
 0x12f   : > { %1122 = vmatpush1.bf16.msra.mxu0 %v952_v25  ;;  %v975_v44 = vpop.permute.xlu1 %974 }
 0x130   : > { %v955_v29 = vpack.c.bf16 %v931_v27, %v929_v19  ;;  %v954_v30 = vpack.c.bf16 %v930_v28, %v928_v26 }
 0x132   : > { %1123 = vmatprep.subr.bf16.mxu0 %v955_v29  ;;  %v1010_v29 = vpop.permute.xlu0 %1009 }
 0x133   : > { %1124 = vmatpush1.bf16.msra.mxu0 %v954_v30  ;;  %v985_v60 = vpop.permute.xlu1 %984 }
 0x136   : > { %8631 = vmatmul.mubr.msk.bf16.vlgmr.msra.gmra.mrb[0].mxu0 %vm1092_vm1, %v9769_v31 }
 0x137   : > { %1159 = vmatprep.mubr.bf16.mxu0 %v9983_v6  ;;  %v995_v14 = vpop.permute.xlu1 %994 }
 0x13b   : > { %v1005_v25 = vpop.permute.xlu1 %1004 }
 0x13e   : > { %8632 = vmatmul.mubr.msk.bf16.gmra.mrb[4].mxu0 %vm1092_vm1, %v9770_v32 }
 0x13f   : > { %1169 = vmatprep.mubr.bf16.mxu0 %v9983_v6 }
 0x146   : > { %8633 = vmatmul.mubr.msk.bf16.gmra.mrb[8].mxu0 %vm1092_vm1, %v9771_v33 }
 0x147   : > { %1179 = vmatprep.mubr.bf16.mxu0 %v9983_v6 }
 0x14e   : > { %8634 = vmatmul.mubr.msk.bf16.gmra.mrb[12].mxu0 %vm1092_vm1, %v9772_v34 }
 0x14f   : > { %1189 = vmatprep.mubr.bf16.mxu0 %v9983_v6 }
 0x156   : > { %8635 = vmatmul.mubr.msk.bf16.gmra.mrb[16].mxu0 %vm1092_vm1, %v9773_v35 }
 0x157   : > { %1199 = vmatprep.mubr.bf16.mxu0 %v9983_v6 }
 0x15e   : > { %8636 = vmatmul.mubr.msk.bf16.gmra.mrb[20].mxu0 %vm1092_vm1, %v9774_v36 }
 0x15f   : > { %1209 = vmatprep.mubr.bf16.mxu0 %v9983_v6 }
 0x166   : > { %8637 = vmatmul.mubr.msk.bf16.gmra.mrb[24].mxu0 %vm1092_vm1, %v9775_v37 }
 0x167   : > { %1219 = vmatprep.mubr.bf16.mxu0 %v9983_v6 }
 0x16e   : > { %8638 = vmatmul.mubr.msk.bf16.gmra.mrb[28].mxu0 %vm1092_vm1, %v9776_v43 }
 0x16f   : > { %1822 = vmatprep.mubr.bf16.mxu0 %v9983_v6 }
 0x209   : > { %v1151_v45 = vpop.f32.mrb[0].mxu0 }
 0x20a   : > { %v1152_v38 = vadd.f32 %v1151_v45, %v975_v44  ;;  %v1153_v46 = vpop.f32.mrb[1].mxu0  ;;  %v1015_v45 = vpop.permute.xlu1 %1014 }
 0x20b   : > { %v1154_v50 = vadd.f32 %v1153_v46, %v975_v44  ;;  %v1155_v51 = vpop.f32.mrb[2].mxu0 }
 0x20c   : > { %v1156_v42 = vadd.f32 %v1155_v51, %v980_v48  ;;  %v1157_v52 = vpop.f32.mrb[3].mxu0  ;;  %v1230_v47 = vmax.f32 %v1152_v38, 0.0  ;;  %v1020_v51 = vpop.permute.xlu0 %1019 }
 0x20d   : > { %v1158_v54 = vadd.f32 %v1157_v52, %v980_v48  ;;  %v1231_v56 = vmax.f32 %v1154_v50, 0.0 }
 0x20e   : > { %v1232_v55 = vmax.f32 %v1156_v42, 0.0 }
 0x20f   : > { %v1233_v57 = vmax.f32 %v1158_v54, 0.0 }
 0x210   : > { %v1390_v59 = vpack.c.bf16 %v1232_v55, %v1230_v47 }
 0x211   : > { %v1391_v41 = vpack.c.bf16 %v1233_v57, %v1231_v56  ;;  %v1161_v1 = vpop.f32.mrb[4].mxu0 }
 0x212   : > { %v1162_v58 = vadd.f32 %v1161_v1, %v985_v60  ;;  %v1163_v3 = vpop.f32.mrb[5].mxu0  ;;  %v1025_v1 = vpop.permute.xlu1 %1024 }
 0x213   : > { %v1164_v5 = vadd.f32 %v1163_v3, %v985_v60  ;;  %v1165_v53 = vpop.f32.mrb[6].mxu0  ;;  %1790 = vmatprep.subr.bf16.mxu0 %v1391_v41  ;;  %9276 = vmatprep.subr.bf16.mxu1 %v1391_v41 }
 0x214   : > { %v1166_v49 = vadd.f32 %v1165_v53, %v990_v4  ;;  %v1167_v7 = vpop.f32.mrb[7].mxu0  ;;  %1791 = vmatpush1.bf16.msra.mxu0 %v1390_v59  ;;  %9284 = vmatpush1.bf16.msra.mxu1 %v1390_v59  ;;  %v1234_v61 = vmax.f32 %v1162_v58, 0.0  ;;  %v1030_v53 = vpop.permute.xlu0 %1029 }
 0x215   : > { %v1168_v10 = vadd.f32 %v1167_v7, %v990_v4  ;;  %v1235_v62 = vmax.f32 %v1164_v5, 0.0 }
 0x216   : > { %v1236_v11 = vmax.f32 %v1166_v49, 0.0 }
 0x217   : > { %v1237_v12 = vmax.f32 %v1168_v10, 0.0 }
 0x218   : > { %v1392_v13 = vpack.c.bf16 %v1236_v11, %v1234_v61 }
 0x219   : > { %v1393_v15 = vpack.c.bf16 %v1237_v12, %v1235_v62  ;;  %v1171_v16 = vpop.f32.mrb[8].mxu0 }
 0x21a   : > { %v1172_v63 = vadd.f32 %v1171_v16, %v995_v14  ;;  %v1173_v39 = vpop.f32.mrb[9].mxu0  ;;  %v1035_v16 = vpop.permute.xlu1 %1034 }
 0x21b   : > { %v1174_v17 = vadd.f32 %v1173_v39, %v995_v14  ;;  %v1175_v18 = vpop.f32.mrb[10].mxu0  ;;  %1792 = vmatprep.subr.bf16.mxu0 %v1393_v15  ;;  %9277 = vmatprep.subr.bf16.mxu1 %v1393_v15 }
 0x21c   : > { %v1176_v20 = vadd.f32 %v1175_v18, %v1000_v0  ;;  %v1177_v21 = vpop.f32.mrb[11].mxu0  ;;  %1793 = vmatpush1.bf16.msra.mxu0 %v1392_v13  ;;  %9285 = vmatpush1.bf16.msra.mxu1 %v1392_v13  ;;  %v1238_v8 = vmax.f32 %v1172_v63, 0.0  ;;  %v1040_v18 = vpop.permute.xlu0 %1039 }
 0x21d   : > { %v1178_v22 = vadd.f32 %v1177_v21, %v1000_v0  ;;  %v1239_v9 = vmax.f32 %v1174_v17, 0.0 }
 0x21e   : > { %v1240_v2 = vmax.f32 %v1176_v20, 0.0 }
 0x21f   : > { %v1241_v23 = vmax.f32 %v1178_v22, 0.0 }
 0x220   : > { %v1394_v24 = vpack.c.bf16 %v1240_v2, %v1238_v8 }
 0x221   : > { %v1395_v26 = vpack.c.bf16 %v1241_v23, %v1239_v9  ;;  %v1181_v19 = vpop.f32.mrb[12].mxu0 }
 0x222   : > { %v1182_v27 = vadd.f32 %v1181_v19, %v1005_v25  ;;  %v1183_v28 = vpop.f32.mrb[13].mxu0  ;;  %v1045_v19 = vpop.permute.xlu1 %1044 }
 0x223   : > { %v1184_v30 = vadd.f32 %v1183_v28, %v1005_v25  ;;  %v1185_v31 = vpop.f32.mrb[14].mxu0  ;;  %1794 = vmatprep.subr.bf16.mxu0 %v1395_v26  ;;  %9278 = vmatprep.subr.bf16.mxu1 %v1395_v26 }
 0x224   : > { %v1186_v32 = vadd.f32 %v1185_v31, %v1010_v29  ;;  %v1187_v33 = vpop.f32.mrb[15].mxu0  ;;  %1795 = vmatpush1.bf16.msra.mxu0 %v1394_v24  ;;  %9286 = vmatpush1.bf16.msra.mxu1 %v1394_v24  ;;  %v1242_v35 = vmax.f32 %v1182_v27, 0.0  ;;  %v1050_v31 = vpop.permute.xlu0 %1049 }
 0x225   : > { %v1188_v34 = vadd.f32 %v1187_v33, %v1010_v29  ;;  %v1243_v37 = vmax.f32 %v1184_v30, 0.0 }
 0x226   : > { %v1244_v36 = vmax.f32 %v1186_v32, 0.0 }
 0x227   : > { %v1245_v43 = vmax.f32 %v1188_v34, 0.0 }
 0x228   : > { %v1396_v44 = vpack.c.bf16 %v1244_v36, %v1242_v35 }
 0x229   : > { %v1397_v38 = vpack.c.bf16 %v1245_v43, %v1243_v37  ;;  %v1191_v46 = vpop.f32.mrb[16].mxu0 }
 0x22a   : > { %v1192_v48 = vadd.f32 %v1191_v46, %v1015_v45  ;;  %v1193_v50 = vpop.f32.mrb[17].mxu0 }
 0x22b   : > { %v1194_v42 = vadd.f32 %v1193_v50, %v1015_v45  ;;  %v1195_v52 = vpop.f32.mrb[18].mxu0  ;;  %1796 = vmatprep.subr.bf16.mxu0 %v1397_v38  ;;  %9279 = vmatprep.subr.bf16.mxu1 %v1397_v38  ;;  %v9783_v50 = vld [vmem:[%s14771_s5] sm:$0xff]  }
 0x22c   : > { %v1196_v54 = vadd.f32 %v1195_v52, %v1020_v51  ;;  %v1197_v47 = vpop.f32.mrb[19].mxu0  ;;  %1797 = vmatpush1.bf16.msra.mxu0 %v1396_v44  ;;  %9287 = vmatpush1.bf16.msra.mxu1 %v1396_v44  ;;  %v1246_v56 = vmax.f32 %v1192_v48, 0.0  ;;  %v9777_v48 = vld [vmem:[%s14771_s5 + $0xe8] sm:$0xff]   ;;  %v9779_v52 = vld [vmem:[%s14771_s5 + $0xf8] sm:$0xff]  }
 0x22d   : > { %v1198_v55 = vadd.f32 %v1197_v47, %v1020_v51  ;;  %v1247_v59 = vmax.f32 %v1194_v42, 0.0  ;;  %v9778_v51 = vld [vmem:[%s14771_s5 + $0xf0] sm:$0xff]   ;;  %v9785_v42 = vld [vmem:[%s14771_s5 + $0x8] sm:$0xff]   ;;  %v9780_v47 = vld [vmem:[%s14771_s5 + $0x100] sm:$0xff]  }
 0x22e   : > { %v1248_v57 = vmax.f32 %v1196_v54, 0.0  ;;  %v9787_v54 = vld [vmem:[%s14771_s5 + $0x10] sm:$0xff]  }
 0x22f   : > { %v1249_v60 = vmax.f32 %v1198_v55, 0.0  ;;  %v9789_v55 = vld [vmem:[%s14771_s5 + $0x18] sm:$0xff]  }
 0x230   : > { %v1398_v41 = vpack.c.bf16 %v1248_v57, %v1246_v56  ;;  %v9781_v56 = vld [vmem:[%s14771_s5 + $0x108] sm:$0xff]   ;;  %v9791_v57 = vld [vmem:[%s14771_s5 + $0x20] sm:$0xff]  }
 0x231   : > { %v1399_v58 = vpack.c.bf16 %v1249_v60, %v1247_v59  ;;  %v1201_v3 = vpop.f32.mrb[20].mxu0  ;;  %v9782_v59 = vld [vmem:[%s14771_s5 + $0x110] sm:$0xff]   ;;  %v9793_v60 = vld [vmem:[%s14771_s5 + $0x28] sm:$0xff]  }
 0x232   : > { %v1202_v4 = vadd.f32 %v1201_v3, %v1025_v1  ;;  %v1203_v5 = vpop.f32.mrb[21].mxu0  ;;  %v9797_v3 = vld [vmem:[%s14771_s5 + $0x38] sm:$0xff]  }
 0x233   : > { %v1204_v49 = vadd.f32 %v1203_v5, %v1025_v1  ;;  %v1205_v7 = vpop.f32.mrb[22].mxu0  ;;  %1798 = vmatprep.subr.bf16.mxu0 %v1399_v58  ;;  %9280 = vmatprep.subr.bf16.mxu1 %v1399_v58  ;;  %v9795_v1 = vld [vmem:[%s14771_s5 + $0x30] sm:$0xff]   ;;  %v9786_v58 = vld [vmem:[%s14771_s5 + $0x120] sm:$0xff]  }
 0x234   : > { %v1206_v10 = vadd.f32 %v1205_v7, %v1030_v53  ;;  %v1207_v61 = vpop.f32.mrb[23].mxu0  ;;  %1799 = vmatpush1.bf16.msra.mxu0 %v1398_v41  ;;  %9288 = vmatpush1.bf16.msra.mxu1 %v1398_v41  ;;  %v1250_v62 = vmax.f32 %v1202_v4, 0.0  ;;  %v9784_v41 = vld [vmem:[%s14771_s5 + $0x118] sm:$0xff]   ;;  %v9788_v4 = vld [vmem:[%s14771_s5 + $0x128] sm:$0xff]   ;;  %v9799_v5 = vld [vmem:[%s14771_s5 + $0x40] sm:$0xff]  }
 0x235   : > { %v1208_v11 = vadd.f32 %v1207_v61, %v1030_v53  ;;  %v1251_v13 = vmax.f32 %v1204_v49, 0.0  ;;  %v9790_v53 = vld [vmem:[%s14771_s5 + $0x130] sm:$0xff]   ;;  %v9801_v49 = vld [vmem:[%s14771_s5 + $0x48] sm:$0xff]   ;;  %v9792_v7 = vld [vmem:[%s14771_s5 + $0x138] sm:$0xff]  }
 0x236   : > { %v1252_v12 = vmax.f32 %v1206_v10, 0.0  ;;  %v9803_v10 = vld [vmem:[%s14771_s5 + $0x50] sm:$0xff]   ;;  %v9794_v61 = vld [vmem:[%s14771_s5 + $0x140] sm:$0xff]  }
 0x237   : > { %v1253_v14 = vmax.f32 %v1208_v11, 0.0  ;;  %v9805_v11 = vld [vmem:[%s14771_s5 + $0x58] sm:$0xff]  }
 0x238   : > { %v1400_v15 = vpack.c.bf16 %v1252_v12, %v1250_v62  ;;  %v9796_v62 = vld [vmem:[%s14771_s5 + $0x148] sm:$0xff]   ;;  %v9807_v12 = vld [vmem:[%s14771_s5 + $0x60] sm:$0xff]  }
 0x239   : > { %v1401_v63 = vpack.c.bf16 %v1253_v14, %v1251_v13  ;;  %v1211_v39 = vpop.f32.mrb[24].mxu0  ;;  %v9798_v13 = vld [vmem:[%s14771_s5 + $0x150] sm:$0xff]   ;;  %v9809_v14 = vld [vmem:[%s14771_s5 + $0x68] sm:$0xff]  }
 0x23a   : > { %v1212_v0 = vadd.f32 %v1211_v39, %v1035_v16  ;;  %v1213_v17 = vpop.f32.mrb[25].mxu0  ;;  %v9813_v39 = vld [vmem:[%s14771_s5 + $0x78] sm:$0xff]  }
 0x23b   : > { %v1214_v20 = vadd.f32 %v1213_v17, %v1035_v16  ;;  %v1215_v21 = vpop.f32.mrb[26].mxu0  ;;  %1800 = vmatprep.subr.bf16.mxu0 %v1401_v63  ;;  %9281 = vmatprep.subr.bf16.mxu1 %v1401_v63  ;;  %v9811_v16 = vld [vmem:[%s14771_s5 + $0x70] sm:$0xff]   ;;  %v9802_v63 = vld [vmem:[%s14771_s5 + $0x160] sm:$0xff]  }
 0x23c   : > { %v1216_v22 = vadd.f32 %v1215_v21, %v1040_v18  ;;  %v1217_v8 = vpop.f32.mrb[27].mxu0  ;;  %1801 = vmatpush1.bf16.msra.mxu0 %v1400_v15  ;;  %9289 = vmatpush1.bf16.msra.mxu1 %v1400_v15  ;;  %v1254_v9 = vmax.f32 %v1212_v0, 0.0  ;;  %v9800_v15 = vld [vmem:[%s14771_s5 + $0x158] sm:$0xff]   ;;  %v9804_v0 = vld [vmem:[%s14771_s5 + $0x168] sm:$0xff]   ;;  %v9815_v17 = vld [vmem:[%s14771_s5 + $0x80] sm:$0xff]  }
 0x23d   : > { %v1218_v2 = vadd.f32 %v1217_v8, %v1040_v18  ;;  %v1255_v24 = vmax.f32 %v1214_v20, 0.0  ;;  %v9806_v18 = vld [vmem:[%s14771_s5 + $0x170] sm:$0xff]   ;;  %v9817_v20 = vld [vmem:[%s14771_s5 + $0x88] sm:$0xff]   ;;  %v9808_v21 = vld [vmem:[%s14771_s5 + $0x178] sm:$0xff]  }
 0x23e   : > { %v1256_v23 = vmax.f32 %v1216_v22, 0.0  ;;  %v9819_v22 = vld [vmem:[%s14771_s5 + $0x90] sm:$0xff]   ;;  %v9810_v8 = vld [vmem:[%s14771_s5 + $0x180] sm:$0xff]  }
 0x23f   : > { %v1257_v25 = vmax.f32 %v1218_v2, 0.0  ;;  %v9821_v2 = vld [vmem:[%s14771_s5 + $0x98] sm:$0xff]  }
 0x240   : > { %v1402_v26 = vpack.c.bf16 %v1256_v23, %v1254_v9  ;;  %v9812_v9 = vld [vmem:[%s14771_s5 + $0x188] sm:$0xff]   ;;  %v9823_v23 = vld [vmem:[%s14771_s5 + $0xa0] sm:$0xff]  }
 0x241   : > { %v1403_v27 = vpack.c.bf16 %v1257_v25, %v1255_v24  ;;  %v1221_v28 = vpop.f32.mrb[28].mxu0  ;;  %v9814_v24 = vld [vmem:[%s14771_s5 + $0x190] sm:$0xff]   ;;  %v9825_v25 = vld [vmem:[%s14771_s5 + $0xa8] sm:$0xff]  }
 0x242   : > { %v1222_v29 = vadd.f32 %v1221_v28, %v1045_v19  ;;  %v1223_v30 = vpop.f32.mrb[29].mxu0  ;;  %v9829_v28 = vld [vmem:[%s14771_s5 + $0xb8] sm:$0xff]  }
 0x243   : > { %v1224_v32 = vadd.f32 %v1223_v30, %v1045_v19  ;;  %v1225_v33 = vpop.f32.mrb[30].mxu0  ;;  %1802 = vmatprep.subr.bf16.mxu0 %v1403_v27  ;;  %9282 = vmatprep.subr.bf16.mxu1 %v1403_v27  ;;  %v9827_v19 = vld [vmem:[%s14771_s5 + $0xb0] sm:$0xff]   ;;  %v9818_v27 = vld [vmem:[%s14771_s5 + $0x1a0] sm:$0xff]  }
 0x244   : > { %v1226_v34 = vadd.f32 %v1225_v33, %v1050_v31  ;;  %v1227_v35 = vpop.f32.mrb[31].mxu0  ;;  %1803 = vmatpush1.bf16.msra.mxu0 %v1402_v26  ;;  %9290 = vmatpush1.bf16.msra.mxu1 %v1402_v26  ;;  %v1258_v37 = vmax.f32 %v1222_v29, 0.0  ;;  %v9816_v26 = vld [vmem:[%s14771_s5 + $0x198] sm:$0xff]   ;;  %v9820_v29 = vld [vmem:[%s14771_s5 + $0x1a8] sm:$0xff]   ;;  %v9831_v30 = vld [vmem:[%s14771_s5 + $0xc0] sm:$0xff]  }
 0x245   : > { %v1228_v36 = vadd.f32 %v1227_v35, %v1050_v31  ;;  %v1259_v44 = vmax.f32 %v1224_v32, 0.0  ;;  %v9822_v31 = vld [vmem:[%s14771_s5 + $0x1b0] sm:$0xff]   ;;  %v9833_v32 = vld [vmem:[%s14771_s5 + $0xc8] sm:$0xff]   ;;  %v9824_v33 = vld [vmem:[%s14771_s5 + $0x1b8] sm:$0xff]  }
 0x246   : > { %v1260_v43 = vmax.f32 %v1226_v34, 0.0  ;;  %v9835_v34 = vld [vmem:[%s14771_s5 + $0xd0] sm:$0xff]  }
 0x247   : > { %v1261_v45 = vmax.f32 %v1228_v36, 0.0 }
 0x248   : > { %v1404_v38 = vpack.c.bf16 %v1260_v43, %v1258_v37  ;;  %v9826_v43 = vld [vmem:[%s14771_s5 + $0x1c0] sm:$0xff]  }
 0x249   : > { %v1405_v46 = vpack.c.bf16 %v1261_v45, %v1259_v44  ;;  %v9837_v45 = vld [vmem:[%s14771_s5 + $0xd8] sm:$0xff]  }
 0x24b   : > { %1804 = vmatprep.subr.bf16.mxu0 %v1405_v46  ;;  %9283 = vmatprep.subr.bf16.mxu1 %v1405_v46 }
 0x24c   : > { %1805 = vmatpush1.bf16.msra.mxu0 %v1404_v38  ;;  %9291 = vmatpush1.bf16.msra.mxu1 %v1404_v38 }
 0x24f   : > { %2113 = vmatmul.mubr.bf16.vlgmr.msra.gmra.mrb[0].mxu1 %v9777_v48  ;;  %1823 = vmatmul.mubr.bf16.vlgmr.msra.gmra.mrb[32].mxu0 %v9783_v50 }
 0x250   : > { %2122 = vmatprep.mubr.bf16.mxu1 %v9983_v6  ;;  %1832 = vmatprep.mubr.bf16.mxu0 %v9983_v6 }
 0x257   : > { %2123 = vmatmul.mubr.bf16.gmra.mrb[4].mxu1 %v9778_v51  ;;  %1833 = vmatmul.mubr.bf16.gmra.mrb[36].mxu0 %v9785_v42 }
 0x258   : > { %2132 = vmatprep.mubr.bf16.mxu1 %v9983_v6  ;;  %1842 = vmatprep.mubr.bf16.mxu0 %v9983_v6 }
 0x25f   : > { %2133 = vmatmul.mubr.bf16.gmra.mrb[8].mxu1 %v9779_v52  ;;  %1843 = vmatmul.mubr.bf16.gmra.mrb[40].mxu0 %v9787_v54  ;;  %v9828_v54 = vld [vmem:[%s14771_s5 + $0x1c8] sm:$0xff]  }
 0x260   : > { %2142 = vmatprep.mubr.bf16.mxu1 %v9983_v6  ;;  %1852 = vmatprep.mubr.bf16.mxu0 %v9983_v6 }
 0x267   : > { %2143 = vmatmul.mubr.bf16.gmra.mrb[12].mxu1 %v9780_v47  ;;  %1853 = vmatmul.mubr.bf16.gmra.mrb[44].mxu0 %v9789_v55  ;;  %v9839_v55 = vld [vmem:[%s14771_s5 + $0xe0] sm:$0xff]  }
 0x268   : > { %2152 = vmatprep.mubr.bf16.mxu1 %v9983_v6  ;;  %1862 = vmatprep.mubr.bf16.mxu0 %v9983_v6 }
 0x26f   : > { %2153 = vmatmul.mubr.bf16.gmra.mrb[16].mxu1 %v9781_v56  ;;  %1863 = vmatmul.mubr.bf16.gmra.mrb[48].mxu0 %v9791_v57 }
 0x270   : > { %2162 = vmatprep.mubr.bf16.mxu1 %v9983_v6  ;;  %1872 = vmatprep.mubr.bf16.mxu0 %v9983_v6 }
 0x277   : > { %2163 = vmatmul.mubr.bf16.gmra.mrb[20].mxu1 %v9782_v59  ;;  %1873 = vmatmul.mubr.bf16.gmra.mrb[52].mxu0 %v9793_v60 }
 0x278   : > { %2172 = vmatprep.mubr.bf16.mxu1 %v9983_v6  ;;  %1882 = vmatprep.mubr.bf16.mxu0 %v9983_v6 }
 0x27f   : > { %2173 = vmatmul.mubr.bf16.gmra.mrb[24].mxu1 %v9784_v41  ;;  %1883 = vmatmul.mubr.bf16.gmra.mrb[56].mxu0 %v9795_v1 }
 0x280   : > { %2182 = vmatprep.mubr.bf16.mxu1 %v9983_v6  ;;  %1892 = vmatprep.mubr.bf16.mxu0 %v9983_v6 }
 0x287   : > { %2183 = vmatmul.mubr.bf16.gmra.mrb[28].mxu1 %v9786_v58  ;;  %1893 = vmatmul.mubr.bf16.gmra.mrb[60].mxu0 %v9797_v3  ;;  %v9830_v3 = vld [vmem:[%s14771_s5 + $0x1d0] sm:$0xff]  }
 0x288   : > { %2192 = vmatprep.mubr.bf16.mxu1 %v9983_v6  ;;  %1902 = vmatprep.mubr.bf16.mxu0 %v9983_v6 }
 0x28f   : > { %2193 = vmatmul.mubr.bf16.gmra.mrb[32].mxu1 %v9788_v4  ;;  %1903 = vmatmul.mubr.bf16.gmra.mrb[64].mxu0 %v9799_v5 }
 0x290   : > { %2202 = vmatprep.mubr.bf16.mxu1 %v9983_v6  ;;  %1912 = vmatprep.mubr.bf16.mxu0 %v9983_v6 }
 0x297   : > { %2203 = vmatmul.mubr.bf16.gmra.mrb[36].mxu1 %v9790_v53  ;;  %1913 = vmatmul.mubr.bf16.gmra.mrb[68].mxu0 %v9801_v49 }
 0x298   : > { %2212 = vmatprep.mubr.bf16.mxu1 %v9983_v6  ;;  %1922 = vmatprep.mubr.bf16.mxu0 %v9983_v6 }
 0x29f   : > { %2213 = vmatmul.mubr.bf16.gmra.mrb[40].mxu1 %v9792_v7  ;;  %1923 = vmatmul.mubr.bf16.gmra.mrb[72].mxu0 %v9803_v10 }
 0x2a0   : > { %2222 = vmatprep.mubr.bf16.mxu1 %v9983_v6  ;;  %1932 = vmatprep.mubr.bf16.mxu0 %v9983_v6 }
 0x2a7   : > { %2223 = vmatmul.mubr.bf16.gmra.mrb[44].mxu1 %v9794_v61  ;;  %1933 = vmatmul.mubr.bf16.gmra.mrb[76].mxu0 %v9805_v11 }
 0x2a8   : > { %2232 = vmatprep.mubr.bf16.mxu1 %v9983_v6  ;;  %1942 = vmatprep.mubr.bf16.mxu0 %v9983_v6 }
 0x2af   : > { %2233 = vmatmul.mubr.bf16.gmra.mrb[48].mxu1 %v9796_v62  ;;  %1943 = vmatmul.mubr.bf16.gmra.mrb[80].mxu0 %v9807_v12  ;;  %v9832_v62 = vld [vmem:[%s14771_s5 + $0x1d8] sm:$0xff]  }
 0x2b0   : > { %2242 = vmatprep.mubr.bf16.mxu1 %v9983_v6  ;;  %1952 = vmatprep.mubr.bf16.mxu0 %v9983_v6 }
 0x2b7   : > { %2243 = vmatmul.mubr.bf16.gmra.mrb[52].mxu1 %v9798_v13  ;;  %1953 = vmatmul.mubr.bf16.gmra.mrb[84].mxu0 %v9809_v14 }
 0x2b8   : > { %2252 = vmatprep.mubr.bf16.mxu1 %v9983_v6  ;;  %1962 = vmatprep.mubr.bf16.mxu0 %v9983_v6 }
 0x2bf   : > { %2253 = vmatmul.mubr.bf16.gmra.mrb[56].mxu1 %v9800_v15  ;;  %1963 = vmatmul.mubr.bf16.gmra.mrb[88].mxu0 %v9811_v16 }
 0x2c0   : > { %2262 = vmatprep.mubr.bf16.mxu1 %v9983_v6  ;;  %1972 = vmatprep.mubr.bf16.mxu0 %v9983_v6 }
 0x2c7   : > { %2263 = vmatmul.mubr.bf16.gmra.mrb[60].mxu1 %v9802_v63  ;;  %1973 = vmatmul.mubr.bf16.gmra.mrb[92].mxu0 %v9813_v39 }
 0x2c8   : > { %2272 = vmatprep.mubr.bf16.mxu1 %v9983_v6  ;;  %1982 = vmatprep.mubr.bf16.mxu0 %v9983_v6 }
 0x2cf   : > { %2273 = vmatmul.mubr.bf16.gmra.mrb[64].mxu1 %v9804_v0  ;;  %1983 = vmatmul.mubr.bf16.gmra.mrb[96].mxu0 %v9815_v17  ;;  %v9834_v17 = vld [vmem:[%s14771_s5 + $0x1e0] sm:$0xff]  }
 0x2d0   : > { %2282 = vmatprep.mubr.bf16.mxu1 %v9983_v6  ;;  %1992 = vmatprep.mubr.bf16.mxu0 %v9983_v6 }
 0x2d7   : > { %2283 = vmatmul.mubr.bf16.gmra.mrb[68].mxu1 %v9806_v18  ;;  %1993 = vmatmul.mubr.bf16.gmra.mrb[100].mxu0 %v9817_v20 }
 0x2d8   : > { %2292 = vmatprep.mubr.bf16.mxu1 %v9983_v6  ;;  %2002 = vmatprep.mubr.bf16.mxu0 %v9983_v6 }
 0x2df   : > { %2293 = vmatmul.mubr.bf16.gmra.mrb[72].mxu1 %v9808_v21  ;;  %2003 = vmatmul.mubr.bf16.gmra.mrb[104].mxu0 %v9819_v22 }
 0x2e0   : > { %2302 = vmatprep.mubr.bf16.mxu1 %v9983_v6  ;;  %2012 = vmatprep.mubr.bf16.mxu0 %v9983_v6 }
 0x2e7   : > { %2303 = vmatmul.mubr.bf16.gmra.mrb[76].mxu1 %v9810_v8  ;;  %2013 = vmatmul.mubr.bf16.gmra.mrb[108].mxu0 %v9821_v2 }
 0x2e8   : > { %2312 = vmatprep.mubr.bf16.mxu1 %v9983_v6  ;;  %2022 = vmatprep.mubr.bf16.mxu0 %v9983_v6 }
 0x2ef   : > { %2313 = vmatmul.mubr.bf16.gmra.mrb[80].mxu1 %v9812_v9  ;;  %2023 = vmatmul.mubr.bf16.gmra.mrb[112].mxu0 %v9823_v23 }
 0x2f0   : > { %2322 = vmatprep.mubr.bf16.mxu1 %v9983_v6  ;;  %2032 = vmatprep.mubr.bf16.mxu0 %v9983_v6 }
 0x2f7   : > { %2323 = vmatmul.mubr.bf16.gmra.mrb[84].mxu1 %v9814_v24  ;;  %2033 = vmatmul.mubr.bf16.gmra.mrb[116].mxu0 %v9825_v25  ;;  %v9836_v24 = vld [vmem:[%s14771_s5 + $0x1e8] sm:$0xff]  }
 0x2f8   : > { %2332 = vmatprep.mubr.bf16.mxu1 %v9983_v6  ;;  %2042 = vmatprep.mubr.bf16.mxu0 %v9983_v6 }
 0x2ff   : > { %2333 = vmatmul.mubr.bf16.gmra.mrb[88].mxu1 %v9816_v26  ;;  %2043 = vmatmul.mubr.bf16.gmra.mrb[120].mxu0 %v9827_v19 }
 0x300   : > { %2342 = vmatprep.mubr.bf16.mxu1 %v9983_v6  ;;  %2052 = vmatprep.mubr.bf16.mxu0 %v9983_v6 }
 0x307   : > { %2343 = vmatmul.mubr.bf16.gmra.mrb[92].mxu1 %v9818_v27  ;;  %2053 = vmatmul.mubr.bf16.gmra.mrb[124].mxu0 %v9829_v28 }
 0x308   : > { %2352 = vmatprep.mubr.bf16.mxu1 %v9983_v6  ;;  %2062 = vmatprep.mubr.bf16.mxu0 %v9983_v6 }
 0x30f   : > { %2353 = vmatmul.mubr.bf16.gmra.mrb[96].mxu1 %v9820_v29  ;;  %2063 = vmatmul.mubr.bf16.gmra.mrb[128].mxu0 %v9831_v30 }
 0x310   : > { %2362 = vmatprep.mubr.bf16.mxu1 %v9983_v6  ;;  %2072 = vmatprep.mubr.bf16.mxu0 %v9983_v6 }
 0x317   : > { %2363 = vmatmul.mubr.bf16.gmra.mrb[100].mxu1 %v9822_v31  ;;  %2073 = vmatmul.mubr.bf16.gmra.mrb[132].mxu0 %v9833_v32  ;;  %v9838_v32 = vld [vmem:[%s14771_s5 + $0x1f0] sm:$0xff]  }
 0x318   : > { %2372 = vmatprep.mubr.bf16.mxu1 %v9983_v6  ;;  %2082 = vmatprep.mubr.bf16.mxu0 %v9983_v6 }
 0x31f   : > { %2373 = vmatmul.mubr.bf16.gmra.mrb[104].mxu1 %v9824_v33  ;;  %2083 = vmatmul.mubr.bf16.gmra.mrb[136].mxu0 %v9835_v34 }
 0x320   : > { %2382 = vmatprep.mubr.bf16.mxu1 %v9983_v6  ;;  %2092 = vmatprep.mubr.bf16.mxu0 %v9983_v6 }
 0x322   : > { %v10806_v35 = vpop.f32.mrb[0].mxu1  ;;  %v10808_v36 = vpop.f32.mrb[32].mxu0 }
 0x323   : > { %14796 = vst [vmem:[#allocation4_spill] sm:$0xff] %v10806_v35  ;;  %v10810_v37 = vpop.f32.mrb[1].mxu1  ;;  %v10815_v44 = vpop.f32.mrb[33].mxu0 }
 0x324   : > { %14797 = vst [vmem:[#allocation5_spill] sm:$0xff] %v10810_v37  ;;  %v10820_v38 = vpop.f32.mrb[2].mxu1  ;;  %v10822_v46 = vpop.f32.mrb[34].mxu0 }
 0x325   : > { %14798 = vst [vmem:[#allocation6_spill] sm:$0xff] %v10820_v38  ;;  %v10824_v48 = vpop.f32.mrb[3].mxu1  ;;  %v10826_v50 = vpop.f32.mrb[35].mxu0 }
 0x326   : > { %14799 = vst [vmem:[#allocation7_spill] sm:$0xff] %v10824_v48 }
 0x327   : > { %2383 = vmatmul.mubr.bf16.gmra.mrb[108].mxu1 %v9826_v43  ;;  %2093 = vmatmul.mubr.bf16.gmra.mrb[140].mxu0 %v9837_v45 }
 0x328   : > { %2392 = vmatprep.mubr.bf16.mxu1 %v9983_v6  ;;  %2102 = vmatprep.mubr.bf16.mxu0 %v9983_v6 }
 0x32a   : > { %v10830_v51 = vpop.f32.mrb[4].mxu1  ;;  %v10832_v42 = vpop.f32.mrb[36].mxu0 }
 0x32b   : > { %14800 = vst [vmem:[#allocation8_spill] sm:$0xff] %v10830_v51  ;;  %v10834_v52 = vpop.f32.mrb[5].mxu1  ;;  %v10839_v47 = vpop.f32.mrb[37].mxu0 }
 0x32c   : > { %14801 = vst [vmem:[#allocation9_spill] sm:$0xff] %v10834_v52  ;;  %v10844_v56 = vpop.f32.mrb[6].mxu1  ;;  %v10846_v57 = vpop.f32.mrb[38].mxu0 }
 0x32d   : > { %14802 = vst [vmem:[#allocation10_spill] sm:$0xff] %v10844_v56  ;;  %v10848_v59 = vpop.f32.mrb[7].mxu1  ;;  %v10850_v60 = vpop.f32.mrb[39].mxu0 }
 0x32e   : > { %14803 = vst [vmem:[#allocation11_spill] sm:$0xff] %v10848_v59 }
 0x32f   : > { %2393 = vmatmul.mubr.bf16.gmra.mrb[112].mxu1 %v9828_v54  ;;  %2103 = vmatmul.mubr.bf16.gmra.mrb[144].mxu0 %v9839_v55 }
 0x330   : > { %2402 = vmatprep.mubr.bf16.mxu1 %v9983_v6 }
 0x332   : > { %v10853_v41 = vpop.f32.mrb[8].mxu1  ;;  %v10855_v1 = vpop.f32.mrb[40].mxu0 }
 0x333   : > { %14804 = vst [vmem:[#allocation12_spill] sm:$0xff] %v10853_v41  ;;  %v10857_v58 = vpop.f32.mrb[9].mxu1  ;;  %v10862_v4 = vpop.f32.mrb[41].mxu0 }
 0x334   : > { %14805 = vst [vmem:[#allocation13_spill] sm:$0xff] %v10857_v58  ;;  %v10864_v5 = vpop.f32.mrb[10].mxu1  ;;  %v10866_v53 = vpop.f32.mrb[42].mxu0 }
 0x335   : > { %14806 = vst [vmem:[#allocation14_spill] sm:$0xff] %v10864_v5  ;;  %v10868_v49 = vpop.f32.mrb[11].mxu1  ;;  %v10870_v7 = vpop.f32.mrb[43].mxu0 }
 0x336   : > { %14807 = vst [vmem:[#allocation15_spill] sm:$0xff] %v10868_v49 }
 0x337   : > { %2403 = vmatmul.mubr.bf16.gmra.mrb[116].mxu1 %v9830_v3 }
 0x338   : > { %2412 = vmatprep.mubr.bf16.mxu1 %v9983_v6 }
 0x33a   : > { %v10873_v10 = vpop.f32.mrb[12].mxu1  ;;  %v10875_v61 = vpop.f32.mrb[44].mxu0 }
 0x33b   : > { %14808 = vst [vmem:[#allocation16_spill] sm:$0xff] %v10873_v10  ;;  %v10877_v11 = vpop.f32.mrb[13].mxu1  ;;  %v10882_v12 = vpop.f32.mrb[45].mxu0 }
 0x33c   : > { %14809 = vst [vmem:[#allocation17_spill] sm:$0xff] %v10877_v11  ;;  %v10884_v13 = vpop.f32.mrb[14].mxu1  ;;  %v10886_v14 = vpop.f32.mrb[46].mxu0 }
 0x33d   : > { %14810 = vst [vmem:[#allocation18_spill] sm:$0xff] %v10884_v13  ;;  %v10888_v15 = vpop.f32.mrb[15].mxu1  ;;  %v10890_v16 = vpop.f32.mrb[47].mxu0 }
 0x33e   : > { %14811 = vst [vmem:[#allocation19_spill] sm:$0xff] %v10888_v15 }
 0x33f   : > { %2413 = vmatmul.mubr.bf16.gmra.mrb[120].mxu1 %v9832_v62 }
 0x340   : > { %2422 = vmatprep.mubr.bf16.mxu1 %v9983_v6 }
 0x342   : > { %v10893_v63 = vpop.f32.mrb[16].mxu1  ;;  %v10895_v39 = vpop.f32.mrb[48].mxu0 }
 0x343   : > { %14812 = vst [vmem:[#allocation20_spill] sm:$0xff] %v10893_v63  ;;  %v10897_v0 = vpop.f32.mrb[17].mxu1  ;;  %v10902_v18 = vpop.f32.mrb[49].mxu0 }
 0x344   : > { %14813 = vst [vmem:[#allocation21_spill] sm:$0xff] %v10897_v0  ;;  %v10904_v20 = vpop.f32.mrb[18].mxu1  ;;  %v10906_v21 = vpop.f32.mrb[50].mxu0 }
 0x345   : > { %14814 = vst [vmem:[#allocation22_spill] sm:$0xff] %v10904_v20  ;;  %v10908_v22 = vpop.f32.mrb[19].mxu1  ;;  %v10910_v8 = vpop.f32.mrb[51].mxu0 }
 0x346   : > { %14815 = vst [vmem:[#allocation23_spill] sm:$0xff] %v10908_v22 }
 0x347   : > { %2423 = vmatmul.mubr.bf16.gmra.mrb[124].mxu1 %v9834_v17  ;;  %v9840_v17 = vld [vmem:[%s14771_s5 + $0x1f8] sm:$0xff]  }
 0x348   : > { %2432 = vmatprep.mubr.bf16.mxu1 %v9983_v6 }
 0x34a   : > { %v10913_v2 = vpop.f32.mrb[20].mxu1  ;;  %v10915_v9 = vpop.f32.mrb[52].mxu0 }
 0x34b   : > { %14816 = vst [vmem:[#allocation24_spill] sm:$0xff] %v10913_v2  ;;  %v10917_v23 = vpop.f32.mrb[21].mxu1  ;;  %v10922_v25 = vpop.f32.mrb[53].mxu0 }
 0x34c   : > { %14817 = vst [vmem:[#allocation25_spill] sm:$0xff] %v10917_v23  ;;  %v10924_v26 = vpop.f32.mrb[22].mxu1  ;;  %v10926_v19 = vpop.f32.mrb[54].mxu0 }
 0x34d   : > { %14818 = vst [vmem:[#allocation26_spill] sm:$0xff] %v10924_v26  ;;  %v10928_v27 = vpop.f32.mrb[23].mxu1  ;;  %v10930_v28 = vpop.f32.mrb[55].mxu0 }
 0x34e   : > { %14819 = vst [vmem:[#allocation27_spill] sm:$0xff] %v10928_v27 }
 0x34f   : > { %2433 = vmatmul.mubr.bf16.gmra.mrb[128].mxu1 %v9836_v24 }
 0x350   : > { %2442 = vmatprep.mubr.bf16.mxu1 %v9983_v6 }
 0x352   : > { %v10933_v29 = vpop.f32.mrb[24].mxu1  ;;  %v10935_v30 = vpop.f32.mrb[56].mxu0 }
 0x353   : > { %14820 = vst [vmem:[#allocation28_spill] sm:$0xff] %v10933_v29  ;;  %v10937_v31 = vpop.f32.mrb[25].mxu1  ;;  %v10942_v33 = vpop.f32.mrb[57].mxu0 }
 0x354   : > { %14821 = vst [vmem:[#allocation29_spill] sm:$0xff] %v10937_v31  ;;  %v10944_v34 = vpop.f32.mrb[26].mxu1  ;;  %v10946_v43 = vpop.f32.mrb[58].mxu0 }
 0x355   : > { %14822 = vst [vmem:[#allocation30_spill] sm:$0xff] %v10944_v34  ;;  %v10948_v45 = vpop.f32.mrb[27].mxu1  ;;  %v10950_v54 = vpop.f32.mrb[59].mxu0 }
 0x356   : > { %14823 = vst [vmem:[#allocation31_spill] sm:$0xff] %v10948_v45 }
 0x357   : > { %2443 = vmatmul.mubr.bf16.gmra.mrb[132].mxu1 %v9838_v32 }
 0x358   : > { %2452 = vmatprep.mubr.bf16.mxu1 %v9983_v6 }
 0x35a   : > { %v10953_v55 = vpop.f32.mrb[28].mxu1  ;;  %v10955_v3 = vpop.f32.mrb[60].mxu0 }
 0x35b   : > { %14824 = vst [vmem:[#allocation32_spill] sm:$0xff] %v10953_v55  ;;  %v10957_v62 = vpop.f32.mrb[29].mxu1  ;;  %v10962_v24 = vpop.f32.mrb[61].mxu0 }
 0x35c   : > { %14825 = vst [vmem:[#allocation33_spill] sm:$0xff] %v10957_v62  ;;  %v10964_v40 = vpop.f32.mrb[30].mxu1  ;;  %v10966_v29 = vpop.f32.mrb[62].mxu0 }
 0x35d   : > { %14826 = vst [vmem:[#allocation34_spill] sm:$0xff] %v10964_v40  ;;  %v10968_v31 = vpop.f32.mrb[31].mxu1  ;;  %v10970_v32 = vpop.f32.mrb[63].mxu0 }
 0x35e   : > { %14827 = vst [vmem:[#allocation35_spill] sm:$0xff] %v10968_v31 }
 0x35f   : > { %2453 = vmatmul.mubr.bf16.gmra.mrb[136].mxu1 %v9840_v17 }
 0x362   : > { %v10972_v6 = vpop.f32.mrb[32].mxu1  ;;  %v10974_v55 = vpop.f32.mrb[64].mxu0 }
 0x363   : > { %14828 = vst [vmem:[#allocation36_spill] sm:$0xff] %v10972_v6  ;;  %v10976_v62 = vpop.f32.mrb[33].mxu1  ;;  %v10978_v34 = vpop.f32.mrb[65].mxu0 }
 0x364   : > { %14829 = vst [vmem:[#allocation37_spill] sm:$0xff] %v10976_v62  ;;  %v10980_v45 = vpop.f32.mrb[34].mxu1  ;;  %v10982_v2 = vpop.f32.mrb[66].mxu0 }
 0x365   : > { %14830 = vst [vmem:[#allocation38_spill] sm:$0xff] %v10980_v45  ;;  %v10984_v40 = vpop.f32.mrb[35].mxu1  ;;  %v10986_v23 = vpop.f32.mrb[67].mxu0 }
 0x366   : > { %14831 = vst [vmem:[#allocation39_spill] sm:$0xff] %v10984_v40 }
 0x36a   : > { %v10988_v31 = vpop.f32.mrb[36].mxu1  ;;  %v10990_v26 = vpop.f32.mrb[68].mxu0 }
 0x36b   : > { %14832 = vst [vmem:[#allocation40_spill] sm:$0xff] %v10988_v31  ;;  %14833 = vst [vmem:[#allocation41_spill] sm:$0xff] %v10990_v26  ;;  %v10992_v17 = vpop.f32.mrb[37].mxu1  ;;  %v10994_v6 = vpop.f32.mrb[69].mxu0 }
 0x36c   : > { %14834 = vst [vmem:[#allocation42_spill] sm:$0xff] %v10992_v17  ;;  %v10996_v27 = vpop.f32.mrb[38].mxu1  ;;  %v10998_v62 = vpop.f32.mrb[70].mxu0 }
 0x36d   : > { %14835 = vst [vmem:[#allocation43_spill] sm:$0xff] %v10996_v27  ;;  %v11000_v63 = vpop.f32.mrb[39].mxu1  ;;  %v11002_v45 = vpop.f32.mrb[71].mxu0 }
 0x36e   : > { %14836 = vst [vmem:[#allocation44_spill] sm:$0xff] %v11000_v63 }
 0x372   : > { %v11004_v0 = vpop.f32.mrb[40].mxu1  ;;  %v11006_v40 = vpop.f32.mrb[72].mxu0 }
 0x373   : > { %14837 = vst [vmem:[#allocation45_spill] sm:$0xff] %v11004_v0  ;;  %14838 = vst [vmem:[#allocation46_spill] sm:$0xff] %v11006_v40  ;;  %v11008_v20 = vpop.f32.mrb[41].mxu1  ;;  %v11010_v31 = vpop.f32.mrb[73].mxu0 }
 0x374   : > { %14839 = vst [vmem:[#allocation47_spill] sm:$0xff] %v11008_v20  ;;  %14840 = vst [vmem:[#allocation48_spill] sm:$0xff] %v11010_v31  ;;  %v11012_v22 = vpop.f32.mrb[42].mxu1  ;;  %v11014_v17 = vpop.f32.mrb[74].mxu0 }
 0x375   : > { %14841 = vst [vmem:[#allocation49_spill] sm:$0xff] %v11012_v22  ;;  %14842 = vst [vmem:[#allocation50_spill] sm:$0xff] %v11014_v17  ;;  %v11016_v10 = vpop.f32.mrb[43].mxu1  ;;  %v11018_v27 = vpop.f32.mrb[75].mxu0 }
 0x376   : > { %14843 = vst [vmem:[#allocation51_spill] sm:$0xff] %v11016_v10  ;;  %14844 = vst [vmem:[#allocation52_spill] sm:$0xff] %v11018_v27 }
 0x37a   : > { %v11020_v11 = vpop.f32.mrb[44].mxu1  ;;  %v11022_v63 = vpop.f32.mrb[76].mxu0 }
 0x37b   : > { %14845 = vst [vmem:[#allocation53_spill] sm:$0xff] %v11020_v11  ;;  %14846 = vst [vmem:[#allocation54_spill] sm:$0xff] %v11022_v63  ;;  %v11024_v13 = vpop.f32.mrb[45].mxu1  ;;  %v11026_v0 = vpop.f32.mrb[77].mxu0 }
 0x37c   : > { %14847 = vst [vmem:[#allocation55_spill] sm:$0xff] %v11024_v13  ;;  %14848 = vst [vmem:[#allocation56_spill] sm:$0xff] %v11026_v0  ;;  %v11028_v15 = vpop.f32.mrb[46].mxu1  ;;  %v11030_v20 = vpop.f32.mrb[78].mxu0 }
 0x37d   : > { %14849 = vst [vmem:[#allocation57_spill] sm:$0xff] %v11028_v15  ;;  %14850 = vst [vmem:[#allocation58_spill] sm:$0xff] %v11030_v20  ;;  %v11032_v41 = vpop.f32.mrb[47].mxu1  ;;  %v11034_v22 = vpop.f32.mrb[79].mxu0 }
 0x37e   : > { %14851 = vst [vmem:[#allocation59_spill] sm:$0xff] %v11032_v41  ;;  %14852 = vst [vmem:[#allocation60_spill] sm:$0xff] %v11034_v22 }
 0x382   : > { %v11036_v58 = vpop.f32.mrb[48].mxu1  ;;  %v11038_v10 = vpop.f32.mrb[80].mxu0 }
 0x383   : > { %14853 = vst [vmem:[#allocation61_spill] sm:$0xff] %v11036_v58  ;;  %14854 = vst [vmem:[#allocation62_spill] sm:$0xff] %v11038_v10  ;;  %v11040_v5 = vpop.f32.mrb[49].mxu1  ;;  %v11042_v11 = vpop.f32.mrb[81].mxu0 }
 0x384   : > { %14855 = vst [vmem:[#allocation63_spill] sm:$0xff] %v11040_v5  ;;  %14856 = vst [vmem:[#allocation64_spill] sm:$0xff] %v11042_v11  ;;  %v11044_v49 = vpop.f32.mrb[50].mxu1  ;;  %v11046_v13 = vpop.f32.mrb[82].mxu0 }
 0x385   : > { %14857 = vst [vmem:[#allocation65_spill] sm:$0xff] %v11044_v49  ;;  %14858 = vst [vmem:[#allocation66_spill] sm:$0xff] %v11046_v13  ;;  %v11048_v51 = vpop.f32.mrb[51].mxu1  ;;  %v11050_v15 = vpop.f32.mrb[83].mxu0 }
 0x386   : > { %14859 = vst [vmem:[#allocation67_spill] sm:$0xff] %v11048_v51  ;;  %14860 = vst [vmem:[#allocation68_spill] sm:$0xff] %v11050_v15 }
 0x38a   : > { %v11052_v52 = vpop.f32.mrb[52].mxu1  ;;  %v11054_v41 = vpop.f32.mrb[84].mxu0 }
 0x38b   : > { %14861 = vst [vmem:[#allocation69_spill] sm:$0xff] %v11052_v52  ;;  %14862 = vst [vmem:[#allocation70_spill] sm:$0xff] %v11054_v41  ;;  %v11056_v56 = vpop.f32.mrb[53].mxu1  ;;  %v11058_v58 = vpop.f32.mrb[85].mxu0 }
 0x38c   : > { %14863 = vst [vmem:[#allocation71_spill] sm:$0xff] %v11056_v56  ;;  %14864 = vst [vmem:[#allocation72_spill] sm:$0xff] %v11058_v58  ;;  %v11060_v59 = vpop.f32.mrb[54].mxu1  ;;  %v11062_v5 = vpop.f32.mrb[86].mxu0 }
 0x38d   : > { %14865 = vst [vmem:[#allocation73_spill] sm:$0xff] %v11060_v59  ;;  %14866 = vst [vmem:[#allocation74_spill] sm:$0xff] %v11062_v5  ;;  %v11064_v35 = vpop.f32.mrb[55].mxu1  ;;  %v11066_v49 = vpop.f32.mrb[87].mxu0 }
 0x38e   : > { %14867 = vst [vmem:[#allocation75_spill] sm:$0xff] %v11064_v35  ;;  %14868 = vst [vmem:[#allocation76_spill] sm:$0xff] %v11066_v49 }
 0x392   : > { %v11068_v37 = vpop.f32.mrb[56].mxu1  ;;  %v11070_v51 = vpop.f32.mrb[88].mxu0 }
 0x393   : > { %14869 = vst [vmem:[#allocation77_spill] sm:$0xff] %v11068_v37  ;;  %14870 = vst [vmem:[#allocation78_spill] sm:$0xff] %v11070_v51  ;;  %v11072_v38 = vpop.f32.mrb[57].mxu1  ;;  %v11074_v52 = vpop.f32.mrb[89].mxu0 }
 0x394   : > { %14871 = vst [vmem:[#allocation79_spill] sm:$0xff] %v11072_v38  ;;  %14872 = vst [vmem:[#allocation80_spill] sm:$0xff] %v11074_v52  ;;  %v11076_v48 = vpop.f32.mrb[58].mxu1  ;;  %v11078_v56 = vpop.f32.mrb[90].mxu0 }
 0x395   : > { %14873 = vst [vmem:[#allocation81_spill] sm:$0xff] %v11076_v48  ;;  %14874 = vst [vmem:[#allocation82_spill] sm:$0xff] %v11078_v56  ;;  %v11080_v41 = vpop.f32.mrb[59].mxu1  ;;  %v11082_v59 = vpop.f32.mrb[91].mxu0 }
 0x396   : > { %14875 = vst [vmem:[#allocation83_spill] sm:$0xff] %v11080_v41  ;;  %14876 = vst [vmem:[#allocation84_spill] sm:$0xff] %v11082_v59 }
 0x39a   : > { %v11084_v58 = vpop.f32.mrb[60].mxu1  ;;  %v11086_v35 = vpop.f32.mrb[92].mxu0 }
 0x39b   : > { %14877 = vst [vmem:[#allocation85_spill] sm:$0xff] %v11084_v58  ;;  %14878 = vst [vmem:[#allocation86_spill] sm:$0xff] %v11086_v35  ;;  %v11088_v5 = vpop.f32.mrb[61].mxu1  ;;  %v11090_v37 = vpop.f32.mrb[93].mxu0 }
 0x39c   : > { %14879 = vst [vmem:[#allocation87_spill] sm:$0xff] %v11088_v5  ;;  %14880 = vst [vmem:[#allocation88_spill] sm:$0xff] %v11090_v37  ;;  %v11092_v51 = vpop.f32.mrb[62].mxu1  ;;  %v11094_v38 = vpop.f32.mrb[94].mxu0 }
 0x39d   : > { %14881 = vst [vmem:[#allocation89_spill] sm:$0xff] %v11092_v51  ;;  %14882 = vst [vmem:[#allocation90_spill] sm:$0xff] %v11094_v38  ;;  %v11096_v52 = vpop.f32.mrb[63].mxu1  ;;  %v11098_v48 = vpop.f32.mrb[95].mxu0 }
 0x39e   : > { %14883 = vst [vmem:[#allocation91_spill] sm:$0xff] %v11096_v52  ;;  %14884 = vst [vmem:[#allocation92_spill] sm:$0xff] %v11098_v48 }
 0x3a2   : > { %v11100_v56 = vpop.f32.mrb[64].mxu1  ;;  %v11102_v41 = vpop.f32.mrb[96].mxu0 }
 0x3a3   : > { %14885 = vst [vmem:[#allocation93_spill] sm:$0xff] %v11100_v56  ;;  %14886 = vst [vmem:[#allocation94_spill] sm:$0xff] %v11102_v41  ;;  %v11104_v59 = vpop.f32.mrb[65].mxu1  ;;  %v11106_v58 = vpop.f32.mrb[97].mxu0 }
 0x3a4   : > { %14887 = vst [vmem:[#allocation95_spill] sm:$0xff] %v11104_v59  ;;  %14888 = vst [vmem:[#allocation96_spill] sm:$0xff] %v11106_v58  ;;  %v11108_v35 = vpop.f32.mrb[66].mxu1  ;;  %v11110_v5 = vpop.f32.mrb[98].mxu0 }
 0x3a5   : > { %14889 = vst [vmem:[#allocation97_spill] sm:$0xff] %v11108_v35  ;;  %14890 = vst [vmem:[#allocation98_spill] sm:$0xff] %v11110_v5  ;;  %v11112_v37 = vpop.f32.mrb[67].mxu1  ;;  %v11114_v51 = vpop.f32.mrb[99].mxu0 }
 0x3a6   : > { %14891 = vst [vmem:[#allocation99_spill] sm:$0xff] %v11112_v37  ;;  %14892 = vst [vmem:[#allocation100_spill] sm:$0xff] %v11114_v51 }
 0x3aa   : > { %v11116_v38 = vpop.f32.mrb[68].mxu1  ;;  %v11118_v52 = vpop.f32.mrb[100].mxu0 }
 0x3ab   : > { %14893 = vst [vmem:[#allocation101_spill] sm:$0xff] %v11116_v38  ;;  %14894 = vst [vmem:[#allocation102_spill] sm:$0xff] %v11118_v52  ;;  %v11120_v48 = vpop.f32.mrb[69].mxu1  ;;  %v11122_v56 = vpop.f32.mrb[101].mxu0 }
 0x3ac   : > { %14895 = vst [vmem:[#allocation103_spill] sm:$0xff] %v11120_v48  ;;  %14896 = vst [vmem:[#allocation104_spill] sm:$0xff] %v11122_v56  ;;  %v11124_v41 = vpop.f32.mrb[70].mxu1  ;;  %v11126_v59 = vpop.f32.mrb[102].mxu0 }
 0x3ad   : > { %14897 = vst [vmem:[#allocation105_spill] sm:$0xff] %v11124_v41  ;;  %14898 = vst [vmem:[#allocation106_spill] sm:$0xff] %v11126_v59  ;;  %v11128_v58 = vpop.f32.mrb[71].mxu1  ;;  %v11130_v35 = vpop.f32.mrb[103].mxu0 }
 0x3ae   : > { %14899 = vst [vmem:[#allocation107_spill] sm:$0xff] %v11128_v58  ;;  %14900 = vst [vmem:[#allocation108_spill] sm:$0xff] %v11130_v35 }
 0x3b2   : > { %v11132_v5 = vpop.f32.mrb[72].mxu1  ;;  %v11134_v37 = vpop.f32.mrb[104].mxu0 }
 0x3b3   : > { %14901 = vst [vmem:[#allocation109_spill] sm:$0xff] %v11132_v5  ;;  %14902 = vst [vmem:[#allocation110_spill] sm:$0xff] %v11134_v37  ;;  %v11136_v51 = vpop.f32.mrb[73].mxu1  ;;  %v11138_v38 = vpop.f32.mrb[105].mxu0 }
 0x3b4   : > { %14903 = vst [vmem:[#allocation111_spill] sm:$0xff] %v11136_v51  ;;  %14904 = vst [vmem:[#allocation112_spill] sm:$0xff] %v11138_v38  ;;  %v11140_v52 = vpop.f32.mrb[74].mxu1  ;;  %v11142_v48 = vpop.f32.mrb[106].mxu0 }
 0x3b5   : > { %14905 = vst [vmem:[#allocation113_spill] sm:$0xff] %v11140_v52  ;;  %14906 = vst [vmem:[#allocation114_spill] sm:$0xff] %v11142_v48  ;;  %v11144_v56 = vpop.f32.mrb[75].mxu1  ;;  %v11146_v41 = vpop.f32.mrb[107].mxu0 }
 0x3b6   : > { %14907 = vst [vmem:[#allocation115_spill] sm:$0xff] %v11144_v56  ;;  %14908 = vst [vmem:[#allocation116_spill] sm:$0xff] %v11146_v41 }
 0x3ba   : > { %v11148_v59 = vpop.f32.mrb[76].mxu1  ;;  %v11150_v58 = vpop.f32.mrb[108].mxu0 }
 0x3bb   : > { %14909 = vst [vmem:[#allocation117_spill] sm:$0xff] %v11148_v59  ;;  %14910 = vst [vmem:[#allocation118_spill] sm:$0xff] %v11150_v58  ;;  %v11152_v35 = vpop.f32.mrb[77].mxu1  ;;  %v11154_v5 = vpop.f32.mrb[109].mxu0 }
 0x3bc   : > { %14911 = vst [vmem:[#allocation119_spill] sm:$0xff] %v11152_v35  ;;  %14912 = vst [vmem:[#allocation120_spill] sm:$0xff] %v11154_v5  ;;  %v11156_v37 = vpop.f32.mrb[78].mxu1  ;;  %v11158_v51 = vpop.f32.mrb[110].mxu0 }
 0x3bd   : > { %14913 = vst [vmem:[#allocation121_spill] sm:$0xff] %v11156_v37  ;;  %14914 = vst [vmem:[#allocation122_spill] sm:$0xff] %v11158_v51  ;;  %v11160_v38 = vpop.f32.mrb[79].mxu1  ;;  %v11162_v52 = vpop.f32.mrb[111].mxu0 }
 0x3be   : > { %14915 = vst [vmem:[#allocation123_spill] sm:$0xff] %v11160_v38  ;;  %14916 = vst [vmem:[#allocation124_spill] sm:$0xff] %v11162_v52 }
 0x3c2   : > { %v11164_v48 = vpop.f32.mrb[80].mxu1  ;;  %v11166_v56 = vpop.f32.mrb[112].mxu0 }
 0x3c3   : > { %14917 = vst [vmem:[#allocation125_spill] sm:$0xff] %v11164_v48  ;;  %14918 = vst [vmem:[#allocation126_spill] sm:$0xff] %v11166_v56  ;;  %v11168_v41 = vpop.f32.mrb[81].mxu1  ;;  %v11170_v59 = vpop.f32.mrb[113].mxu0 }
 0x3c4   : > { %14919 = vst [vmem:[#allocation127_spill] sm:$0xff] %v11168_v41  ;;  %14920 = vst [vmem:[#allocation128_spill] sm:$0xff] %v11170_v59  ;;  %v11172_v58 = vpop.f32.mrb[82].mxu1  ;;  %v11174_v35 = vpop.f32.mrb[114].mxu0 }
 0x3c5   : > { %14921 = vst [vmem:[#allocation129_spill] sm:$0xff] %v11172_v58  ;;  %14922 = vst [vmem:[#allocation130_spill] sm:$0xff] %v11174_v35  ;;  %v11176_v5 = vpop.f32.mrb[83].mxu1  ;;  %v11178_v37 = vpop.f32.mrb[115].mxu0 }
 0x3c6   : > { %14923 = vst [vmem:[#allocation131_spill] sm:$0xff] %v11176_v5  ;;  %14924 = vst [vmem:[#allocation132_spill] sm:$0xff] %v11178_v37 }
 0x3ca   : > { %v11180_v51 = vpop.f32.mrb[84].mxu1  ;;  %v11182_v38 = vpop.f32.mrb[116].mxu0 }
 0x3cb   : > { %14925 = vst [vmem:[#allocation133_spill] sm:$0xff] %v11180_v51  ;;  %14926 = vst [vmem:[#allocation134_spill] sm:$0xff] %v11182_v38  ;;  %v11184_v52 = vpop.f32.mrb[85].mxu1  ;;  %v11186_v48 = vpop.f32.mrb[117].mxu0 }
 0x3cc   : > { %14927 = vst [vmem:[#allocation135_spill] sm:$0xff] %v11184_v52  ;;  %14928 = vst [vmem:[#allocation136_spill] sm:$0xff] %v11186_v48  ;;  %v11188_v56 = vpop.f32.mrb[86].mxu1  ;;  %v11190_v41 = vpop.f32.mrb[118].mxu0 }
 0x3cd   : > { %14929 = vst [vmem:[#allocation137_spill] sm:$0xff] %v11188_v56  ;;  %14930 = vst [vmem:[#allocation138_spill] sm:$0xff] %v11190_v41  ;;  %v11192_v59 = vpop.f32.mrb[87].mxu1  ;;  %v11194_v58 = vpop.f32.mrb[119].mxu0 }
 0x3ce   : > { %14931 = vst [vmem:[#allocation139_spill] sm:$0xff] %v11192_v59  ;;  %14932 = vst [vmem:[#allocation140_spill] sm:$0xff] %v11194_v58 }
 0x3d2   : > { %v11196_v35 = vpop.f32.mrb[88].mxu1  ;;  %v11198_v5 = vpop.f32.mrb[120].mxu0 }
 0x3d3   : > { %14933 = vst [vmem:[#allocation141_spill] sm:$0xff] %v11196_v35  ;;  %14934 = vst [vmem:[#allocation142_spill] sm:$0xff] %v11198_v5  ;;  %v11200_v37 = vpop.f32.mrb[89].mxu1  ;;  %v11202_v51 = vpop.f32.mrb[121].mxu0 }
 0x3d4   : > { %14935 = vst [vmem:[#allocation143_spill] sm:$0xff] %v11200_v37  ;;  %14936 = vst [vmem:[#allocation144_spill] sm:$0xff] %v11202_v51  ;;  %v11204_v38 = vpop.f32.mrb[90].mxu1  ;;  %v11206_v52 = vpop.f32.mrb[122].mxu0 }
 0x3d5   : > { %14937 = vst [vmem:[#allocation145_spill] sm:$0xff] %v11204_v38  ;;  %14938 = vst [vmem:[#allocation146_spill] sm:$0xff] %v11206_v52  ;;  %v11208_v48 = vpop.f32.mrb[91].mxu1  ;;  %v11210_v56 = vpop.f32.mrb[123].mxu0 }
 0x3d6   : > { %14939 = vst [vmem:[#allocation147_spill] sm:$0xff] %v11208_v48  ;;  %14940 = vst [vmem:[#allocation148_spill] sm:$0xff] %v11210_v56 }
 0x3da   : > { %v11212_v41 = vpop.f32.mrb[92].mxu1  ;;  %v11214_v59 = vpop.f32.mrb[124].mxu0 }
 0x3db   : > { %14941 = vst [vmem:[#allocation149_spill] sm:$0xff] %v11212_v41  ;;  %14942 = vst [vmem:[#allocation150_spill] sm:$0xff] %v11214_v59  ;;  %v11216_v58 = vpop.f32.mrb[93].mxu1  ;;  %v11218_v35 = vpop.f32.mrb[125].mxu0 }
 0x3dc   : > { %14943 = vst [vmem:[#allocation151_spill] sm:$0xff] %v11216_v58  ;;  %14944 = vst [vmem:[#allocation152_spill] sm:$0xff] %v11218_v35  ;;  %v11220_v5 = vpop.f32.mrb[94].mxu1  ;;  %v11222_v37 = vpop.f32.mrb[126].mxu0 }
 0x3dd   : > { %14945 = vst [vmem:[#allocation153_spill] sm:$0xff] %v11220_v5  ;;  %14946 = vst [vmem:[#allocation154_spill] sm:$0xff] %v11222_v37  ;;  %v11224_v51 = vpop.f32.mrb[95].mxu1  ;;  %v11226_v38 = vpop.f32.mrb[127].mxu0 }
 0x3de   : > { %14947 = vst [vmem:[#allocation155_spill] sm:$0xff] %v11224_v51  ;;  %14948 = vst [vmem:[#allocation156_spill] sm:$0xff] %v11226_v38 }
 0x3e2   : > { %v11228_v52 = vpop.f32.mrb[96].mxu1  ;;  %v11230_v48 = vpop.f32.mrb[128].mxu0 }
 0x3e3   : > { %14949 = vst [vmem:[#allocation157_spill] sm:$0xff] %v11228_v52  ;;  %14950 = vst [vmem:[#allocation158_spill] sm:$0xff] %v11230_v48  ;;  %v11232_v56 = vpop.f32.mrb[97].mxu1  ;;  %v11234_v41 = vpop.f32.mrb[129].mxu0 }
 0x3e4   : > { %14951 = vst [vmem:[#allocation159_spill] sm:$0xff] %v11232_v56  ;;  %14952 = vst [vmem:[#allocation160_spill] sm:$0xff] %v11234_v41  ;;  %v11236_v59 = vpop.f32.mrb[98].mxu1  ;;  %v11238_v58 = vpop.f32.mrb[130].mxu0 }
 0x3e5   : > { %14953 = vst [vmem:[#allocation161_spill] sm:$0xff] %v11236_v59  ;;  %14954 = vst [vmem:[#allocation162_spill] sm:$0xff] %v11238_v58  ;;  %v11240_v35 = vpop.f32.mrb[99].mxu1  ;;  %v11242_v5 = vpop.f32.mrb[131].mxu0 }
 0x3e6   : > { %14955 = vst [vmem:[#allocation163_spill] sm:$0xff] %v11240_v35  ;;  %14956 = vst [vmem:[#allocation164_spill] sm:$0xff] %v11242_v5 }
 0x3ea   : > { %v11244_v37 = vpop.f32.mrb[100].mxu1  ;;  %v11246_v51 = vpop.f32.mrb[132].mxu0 }
 0x3eb   : > { %14957 = vst [vmem:[#allocation165_spill] sm:$0xff] %v11244_v37  ;;  %14958 = vst [vmem:[#allocation166_spill] sm:$0xff] %v11246_v51  ;;  %v11248_v38 = vpop.f32.mrb[101].mxu1  ;;  %v11250_v52 = vpop.f32.mrb[133].mxu0 }
 0x3ec   : > { %14959 = vst [vmem:[#allocation167_spill] sm:$0xff] %v11248_v38  ;;  %14960 = vst [vmem:[#allocation168_spill] sm:$0xff] %v11250_v52  ;;  %v11252_v48 = vpop.f32.mrb[102].mxu1  ;;  %v11254_v56 = vpop.f32.mrb[134].mxu0 }
 0x3ed   : > { %14961 = vst [vmem:[#allocation169_spill] sm:$0xff] %v11252_v48  ;;  %14962 = vst [vmem:[#allocation170_spill] sm:$0xff] %v11254_v56  ;;  %v11256_v41 = vpop.f32.mrb[103].mxu1  ;;  %v11258_v59 = vpop.f32.mrb[135].mxu0 }
 0x3ee   : > { %14963 = vst [vmem:[#allocation171_spill] sm:$0xff] %v11256_v41  ;;  %14964 = vst [vmem:[#allocation172_spill] sm:$0xff] %v11258_v59 }
 0x3f2   : > { %v11260_v58 = vpop.f32.mrb[104].mxu1  ;;  %v11262_v35 = vpop.f32.mrb[136].mxu0 }
 0x3f3   : > { %14965 = vst [vmem:[#allocation173_spill] sm:$0xff] %v11260_v58  ;;  %14966 = vst [vmem:[#allocation174_spill] sm:$0xff] %v11262_v35  ;;  %v11264_v5 = vpop.f32.mrb[105].mxu1  ;;  %v11266_v37 = vpop.f32.mrb[137].mxu0 }
 0x3f4   : > { %14967 = vst [vmem:[#allocation175_spill] sm:$0xff] %v11264_v5  ;;  %14968 = vst [vmem:[#allocation176_spill] sm:$0xff] %v11266_v37  ;;  %v11268_v51 = vpop.f32.mrb[106].mxu1  ;;  %v11270_v38 = vpop.f32.mrb[138].mxu0 }
 0x3f5   : > { %14969 = vst [vmem:[#allocation177_spill] sm:$0xff] %v11268_v51  ;;  %14970 = vst [vmem:[#allocation178_spill] sm:$0xff] %v11270_v38  ;;  %v11272_v52 = vpop.f32.mrb[107].mxu1  ;;  %v11274_v48 = vpop.f32.mrb[139].mxu0 }
 0x3f6   : > { %14971 = vst [vmem:[#allocation179_spill] sm:$0xff] %v11272_v52  ;;  %14972 = vst [vmem:[#allocation180_spill] sm:$0xff] %v11274_v48 }
 0x3fa   : > { %v11276_v56 = vpop.f32.mrb[108].mxu1  ;;  %v11278_v41 = vpop.f32.mrb[140].mxu0 }
 0x3fb   : > { %14973 = vst [vmem:[#allocation181_spill] sm:$0xff] %v11276_v56  ;;  %14974 = vst [vmem:[#allocation182_spill] sm:$0xff] %v11278_v41  ;;  %v11280_v59 = vpop.f32.mrb[109].mxu1  ;;  %v11282_v58 = vpop.f32.mrb[141].mxu0 }
 0x3fc   : > { %14975 = vst [vmem:[#allocation183_spill] sm:$0xff] %v11280_v59  ;;  %14976 = vst [vmem:[#allocation184_spill] sm:$0xff] %v11282_v58  ;;  %v11284_v35 = vpop.f32.mrb[110].mxu1  ;;  %v11286_v5 = vpop.f32.mrb[142].mxu0 }
 0x3fd   : > { %14977 = vst [vmem:[#allocation185_spill] sm:$0xff] %v11284_v35  ;;  %14978 = vst [vmem:[#allocation186_spill] sm:$0xff] %v11286_v5  ;;  %v11288_v37 = vpop.f32.mrb[111].mxu1  ;;  %v11290_v51 = vpop.f32.mrb[143].mxu0 }
 0x3fe   : > { %14979 = vst [vmem:[#allocation187_spill] sm:$0xff] %v11288_v37  ;;  %14980 = vst [vmem:[#allocation188_spill] sm:$0xff] %v11290_v51 }
 0x402   : > { %v11292_v38 = vpop.f32.mrb[112].mxu1  ;;  %v11294_v52 = vpop.f32.mrb[144].mxu0 }
 0x403   : > { %14981 = vst [vmem:[#allocation189_spill] sm:$0xff] %v11292_v38  ;;  %14982 = vst [vmem:[#allocation190_spill] sm:$0xff] %v11294_v52  ;;  %v11296_v48 = vpop.f32.mrb[113].mxu1  ;;  %v11298_v56 = vpop.f32.mrb[145].mxu0 }
 0x404   : > { %14983 = vst [vmem:[#allocation191_spill] sm:$0xff] %v11296_v48  ;;  %14984 = vst [vmem:[#allocation192_spill] sm:$0xff] %v11298_v56  ;;  %v11300_v41 = vpop.f32.mrb[114].mxu1  ;;  %v11302_v59 = vpop.f32.mrb[146].mxu0 }
 0x405   : > { %14985 = vst [vmem:[#allocation193_spill] sm:$0xff] %v11300_v41  ;;  %14986 = vst [vmem:[#allocation194_spill] sm:$0xff] %v11302_v59  ;;  %v11304_v58 = vpop.f32.mrb[115].mxu1  ;;  %v11306_v35 = vpop.f32.mrb[147].mxu0 }
 0x406   : > { %14987 = vst [vmem:[#allocation195_spill] sm:$0xff] %v11304_v58  ;;  %14988 = vst [vmem:[#allocation196_spill] sm:$0xff] %v11306_v35 }
 0x40a   : > { %v11308_v5 = vpop.f32.mrb[116].mxu1 }
 0x40b   : > { %14989 = vst [vmem:[#allocation197_spill] sm:$0xff] %v11308_v5  ;;  %v11310_v37 = vpop.f32.mrb[117].mxu1 }
 0x40c   : > { %14990 = vst [vmem:[#allocation198_spill] sm:$0xff] %v11310_v37  ;;  %v11312_v51 = vpop.f32.mrb[118].mxu1 }
 0x40d   : > { %14991 = vst [vmem:[#allocation199_spill] sm:$0xff] %v11312_v51  ;;  %v11314_v38 = vpop.f32.mrb[119].mxu1 }
 0x40e   : > { %14992 = vst [vmem:[#allocation200_spill] sm:$0xff] %v11314_v38 }
 0x412   : > { %v11316_v52 = vpop.f32.mrb[120].mxu1 }
 0x413   : > { %14993 = vst [vmem:[#allocation201_spill] sm:$0xff] %v11316_v52  ;;  %v11318_v48 = vpop.f32.mrb[121].mxu1 }
 0x414   : > { %14994 = vst [vmem:[#allocation202_spill] sm:$0xff] %v11318_v48  ;;  %v11320_v56 = vpop.f32.mrb[122].mxu1 }
 0x415   : > { %14995 = vst [vmem:[#allocation203_spill] sm:$0xff] %v11320_v56  ;;  %v11322_v41 = vpop.f32.mrb[123].mxu1 }
 0x416   : > { %14996 = vst [vmem:[#allocation204_spill] sm:$0xff] %v11322_v41 }
 0x41a   : > { %v11324_v59 = vpop.f32.mrb[124].mxu1 }
 0x41b   : > { %14997 = vst [vmem:[#allocation205_spill] sm:$0xff] %v11324_v59  ;;  %v11326_v58 = vpop.f32.mrb[125].mxu1 }
 0x41c   : > { %14998 = vst [vmem:[#allocation206_spill] sm:$0xff] %v11326_v58  ;;  %v11328_v35 = vpop.f32.mrb[126].mxu1 }
 0x41d   : > { %14999 = vst [vmem:[#allocation207_spill] sm:$0xff] %v11328_v35  ;;  %v11330_v5 = vpop.f32.mrb[127].mxu1 }
 0x41e   : > { %15000 = vst [vmem:[#allocation208_spill] sm:$0xff] %v11330_v5 }
 0x422   : > { %v11332_v37 = vpop.f32.mrb[128].mxu1 }
 0x423   : > { %15001 = vst [vmem:[#allocation209_spill] sm:$0xff] %v11332_v37  ;;  %v11334_v51 = vpop.f32.mrb[129].mxu1 }
 0x424   : > { %v11336_v38 = vpop.f32.mrb[130].mxu1 }
 0x425   : > { %v11338_v52 = vpop.f32.mrb[131].mxu1 }
 0x42a   : > { %v11340_v48 = vpop.f32.mrb[132].mxu1 }
 0x42b   : > { %15002 = vst [vmem:[#allocation210_spill] sm:$0xff] %v11340_v48  ;;  %v11342_v56 = vpop.f32.mrb[133].mxu1  ;;  %v2601_v48 = vmax.f32 (!%p8703_p8), %v10832_v42, %v10839_v47 }
 0x42c   : > { %15003 = vst [vmem:[#allocation211_spill] sm:$0xff] %v11342_v56  ;;  %v11344_v41 = vpop.f32.mrb[134].mxu1  ;;  %v2595_v56 = vmax.f32 (!%p8703_p8), %v10808_v36, %v10815_v44 }
 0x42d   : > { %v11346_v59 = vpop.f32.mrb[135].mxu1  ;;  %2602 = vmax.xlane.f32.xlu1 (!%p8703_p8), %v2601_v48  ;;  %v2616_v48 = vmax.f32 (!%p8703_p8), %v10886_v14, %v10890_v16 }
 0x42e   : > { %2596 = vmax.xlane.f32.xlu0 (!%p8703_p8), %v2595_v56  ;;  %v2613_v56 = vmax.f32 (!%p8703_p8), %v10875_v61, %v10882_v12 }
 0x430   : > { %2466 = sbr.rel (%p8703_p8) target bundleno = 1471 (0x5bf), region = 80 }
 0x432   : > { %v11348_v58 = vpop.f32.mrb[136].mxu1 }
 0x433   : > { %15004 = vst [vmem:[#allocation212_spill] sm:$0xff] %v11348_v58  ;;  %v11350_v35 = vpop.f32.mrb[137].mxu1  ;;  %v2604_v58 = vmax.f32 (!%p8703_p8), %v10846_v57, %v10850_v60 }
 0x434   : > { %15005 = vst [vmem:[#allocation213_spill] sm:$0xff] %v11350_v35  ;;  %v11352_v5 = vpop.f32.mrb[138].mxu1  ;;  %v2598_v35 = vmax.f32 (!%p8703_p8), %v10822_v46, %v10826_v50 }
 0x435   : > { %15006 = vst [vmem:[#allocation214_spill] sm:$0xff] %v11352_v5  ;;  %v11354_v37 = vpop.f32.mrb[139].mxu1  ;;  %2605 = vmax.xlane.f32.xlu1 (!%p8703_p8), %v2604_v58  ;;  %v2610_v5 = vmax.f32 (!%p8703_p8), %v10866_v53, %v10870_v7  ;;  %v2622_v58 = vmax.f32 (!%p8703_p8), %v10906_v21, %v10910_v8 }
 0x436   : > { %15007 = vst [vmem:[#allocation215_spill] sm:$0xff] %v11354_v37  ;;  %2599 = vmax.xlane.f32.xlu0 (!%p8703_p8), %v2598_v35  ;;  %v2607_v37 = vmax.f32 (!%p8703_p8), %v10855_v1, %v10862_v4  ;;  %v2619_v35 = vmax.f32 (!%p8703_p8), %v10895_v39, %v10902_v18 }
 0x439   : > { %2611 = vmax.xlane.f32.xlu1 %v2610_v5  ;;  %v2628_v5 = vmax.f32 %v10926_v19, %v10930_v28 }
 0x43a   : > { %2608 = vmax.xlane.f32.xlu0 %v2607_v37  ;;  %v2625_v37 = vmax.f32 %v10915_v9, %v10922_v25 }
 0x43d   : > { %2617 = vmax.xlane.f32.xlu1 %v2616_v48  ;;  %v2634_v48 = vmax.f32 %v10946_v43, %v10950_v54 }
 0x43e   : > { %2614 = vmax.xlane.f32.xlu0 %v2613_v56  ;;  %v2631_v56 = vmax.f32 %v10935_v30, %v10942_v33 }
 0x441   : > { %2623 = vmax.xlane.f32.xlu1 %v2622_v58  ;;  %v2640_v58 = vmax.f32 %v10966_v29, %v10970_v32 }
 0x442   : > { %2620 = vmax.xlane.f32.xlu0 %v2619_v35  ;;  %v2637_v35 = vmax.f32 %v10955_v3, %v10962_v24 }
 0x445   : > { %2629 = vmax.xlane.f32.xlu1 %v2628_v5  ;;  %v2646_v5 = vmax.f32 %v10982_v2, %v10986_v23 }
 0x446   : > { %2626 = vmax.xlane.f32.xlu0 %v2625_v37  ;;  %v2643_v37 = vmax.f32 %v10974_v55, %v10978_v34 }
 0x449   : > { %2635 = vmax.xlane.f32.xlu1 %v2634_v48  ;;  %v2652_v48 = vmax.f32 %v10998_v62, %v11002_v45 }
 0x44a   : > { %2632 = vmax.xlane.f32.xlu0 %v2631_v56  ;;  %v2649_v56 = vmax.f32 %v10990_v26, %v10994_v6 }
 0x44d   : > { %2641 = vmax.xlane.f32.xlu1 %v2640_v58  ;;  %v2658_v58 = vmax.f32 %v11014_v17, %v11018_v27  ;;  %v15010_v17 = vld [vmem:[#allocation70_spill] sm:$0xff]  ;;  %v2470_v27 = vld [vmem:[#allocation2 + $0x18] sm:$0xff] }
 0x44e   : > { %2638 = vmax.xlane.f32.xlu0 %v2637_v35  ;;  %v2655_v35 = vmax.f32 %v11006_v40, %v11010_v31  ;;  %v15008_v40 = vld [vmem:[#allocation74_spill] sm:$0xff] }
 0x451   : > { %2647 = vmax.xlane.f32.xlu1 %v2646_v5  ;;  %v2664_v5 = vmax.f32 %v11030_v20, %v11034_v22  ;;  %v15011_v20 = vld [vmem:[#allocation84_spill] sm:$0xff] }
 0x452   : > { %2644 = vmax.xlane.f32.xlu0 %v2643_v37  ;;  %v2661_v37 = vmax.f32 %v11022_v63, %v11026_v0  ;;  %v15012_v63 = vld [vmem:[#allocation82_spill] sm:$0xff] }
 0x453   : > { %v15014_v0 = vld [vmem:[#allocation78_spill] sm:$0xff] }
 0x455   : > { %2653 = vmax.xlane.f32.xlu1 %v2652_v48  ;;  %v2670_v48 = vmax.f32 %v11046_v13, %v11050_v15  ;;  %v15015_v13 = vld [vmem:[#allocation92_spill] sm:$0xff] }
 0x456   : > { %2650 = vmax.xlane.f32.xlu0 %v2649_v56  ;;  %v2667_v56 = vmax.f32 %v11038_v10, %v11042_v11  ;;  %v15016_v10 = vld [vmem:[#allocation90_spill] sm:$0xff] }
 0x457   : > { %v15018_v11 = vld [vmem:[#allocation86_spill] sm:$0xff] }
 0x459   : > { %2659 = vmax.xlane.f32.xlu1 %v2658_v58  ;;  %v2676_v58 = vmax.f32 %v15008_v40, %v11066_v49  ;;  %v15019_v40 = vld [vmem:[#allocation100_spill] sm:$0xff] }
 0x45a   : > { %2656 = vmax.xlane.f32.xlu0 %v2655_v35  ;;  %v15009_v35 = vld [vmem:[#allocation72_spill] sm:$0xff] }
 0x45b   : > { %v2673_v31 = vmax.f32 %v15010_v17, %v15009_v35  ;;  %v15020_v17 = vld [vmem:[#allocation98_spill] sm:$0xff] }
 0x45c   : > { %v15022_v35 = vld [vmem:[#allocation94_spill] sm:$0xff] }
 0x45d   : > { %2665 = vmax.xlane.f32.xlu1 %v2664_v5  ;;  %v2682_v5 = vmax.f32 %v15012_v63, %v15011_v20  ;;  %v15023_v63 = vld [vmem:[#allocation108_spill] sm:$0xff] }
 0x45e   : > { %2662 = vmax.xlane.f32.xlu0 %v2661_v37  ;;  %v15013_v37 = vld [vmem:[#allocation80_spill] sm:$0xff] }
 0x45f   : > { %v2679_v22 = vmax.f32 %v15014_v0, %v15013_v37  ;;  %v15024_v0 = vld [vmem:[#allocation106_spill] sm:$0xff] }
 0x460   : > { %v2700_v20 = vmax.f32 %v15024_v0, %v15023_v63  ;;  %v15035_v63 = vld [vmem:[#allocation132_spill] sm:$0xff]  ;;  %v15036_v0 = vld [vmem:[#allocation130_spill] sm:$0xff] }
 0x461   : > { %2671 = vmax.xlane.f32.xlu1 %v2670_v48  ;;  %v2688_v48 = vmax.f32 %v15016_v10, %v15015_v13  ;;  %v15027_v10 = vld [vmem:[#allocation116_spill] sm:$0xff] }
 0x462   : > { %2668 = vmax.xlane.f32.xlu0 %v2667_v56  ;;  %v15017_v56 = vld [vmem:[#allocation88_spill] sm:$0xff] }
 0x463   : > { %v2685_v15 = vmax.f32 %v15018_v11, %v15017_v56  ;;  %v15028_v11 = vld [vmem:[#allocation114_spill] sm:$0xff] }
 0x464   : > { %v2706_v13 = vmax.f32 %v15028_v11, %v15027_v10  ;;  %v15039_v10 = vld [vmem:[#allocation140_spill] sm:$0xff]  ;;  %v15040_v11 = vld [vmem:[#allocation138_spill] sm:$0xff] }
 0x465   : > { %2677 = vmax.xlane.f32.xlu1 %v2676_v58  ;;  %v2694_v58 = vmax.f32 %v15020_v17, %v15019_v40  ;;  %v15031_v40 = vld [vmem:[#allocation124_spill] sm:$0xff]  ;;  %v15032_v17 = vld [vmem:[#allocation122_spill] sm:$0xff] }
 0x466   : > { %2674 = vmax.xlane.f32.xlu0 %v2673_v31  ;;  %v15021_v31 = vld [vmem:[#allocation96_spill] sm:$0xff] }
 0x467   : > { %v2691_v49 = vmax.f32 %v15022_v35, %v15021_v31  ;;  %v15034_v31 = vld [vmem:[#allocation118_spill] sm:$0xff] }
 0x469   : > { %2683 = vmax.xlane.f32.xlu1 %v2682_v5  ;;  %v15026_v5 = vld [vmem:[#allocation102_spill] sm:$0xff] }
 0x46a   : > { %2680 = vmax.xlane.f32.xlu0 %v2679_v22  ;;  %v15025_v22 = vld [vmem:[#allocation104_spill] sm:$0xff] }
 0x46b   : > { %v2697_v37 = vmax.f32 %v15026_v5, %v15025_v22  ;;  %v15037_v22 = vld [vmem:[#allocation128_spill] sm:$0xff]  ;;  %v15038_v5 = vld [vmem:[#allocation126_spill] sm:$0xff] }
 0x46d   : > { %2689 = vmax.xlane.f32.xlu1 %v2688_v48  ;;  %v15030_v48 = vld [vmem:[#allocation110_spill] sm:$0xff] }
 0x46e   : > { %2686 = vmax.xlane.f32.xlu0 %v2685_v15  ;;  %v15029_v15 = vld [vmem:[#allocation112_spill] sm:$0xff] }
 0x46f   : > { %v2703_v56 = vmax.f32 %v15030_v48, %v15029_v15  ;;  %v15041_v15 = vld [vmem:[#allocation136_spill] sm:$0xff]  ;;  %v15042_v48 = vld [vmem:[#allocation134_spill] sm:$0xff] }
 0x471   : > { %2695 = vmax.xlane.f32.xlu1 %v2694_v58  ;;  %v2712_v58 = vmax.f32 %v15032_v17, %v15031_v40  ;;  %v15043_v40 = vld [vmem:[#allocation148_spill] sm:$0xff]  ;;  %v15044_v17 = vld [vmem:[#allocation146_spill] sm:$0xff] }
 0x472   : > { %2692 = vmax.xlane.f32.xlu0 %v2691_v49  ;;  %v15033_v49 = vld [vmem:[#allocation120_spill] sm:$0xff] }
 0x473   : > { %v2709_v35 = vmax.f32 %v15034_v31, %v15033_v49  ;;  %v15045_v49 = vld [vmem:[#allocation144_spill] sm:$0xff]  ;;  %v15046_v31 = vld [vmem:[#allocation142_spill] sm:$0xff] }
 0x475   : > { %2701 = vmax.xlane.f32.xlu1 %v2700_v20  ;;  %v2718_v20 = vmax.f32 %v15036_v0, %v15035_v63  ;;  %v15047_v63 = vld [vmem:[#allocation156_spill] sm:$0xff]  ;;  %v15048_v0 = vld [vmem:[#allocation154_spill] sm:$0xff] }
 0x476   : > { %2698 = vmax.xlane.f32.xlu0 %v2697_v37  ;;  %v2715_v37 = vmax.f32 %v15038_v5, %v15037_v22  ;;  %v15049_v22 = vld [vmem:[#allocation152_spill] sm:$0xff]  ;;  %v15050_v5 = vld [vmem:[#allocation150_spill] sm:$0xff] }
 0x479   : > { %2707 = vmax.xlane.f32.xlu1 %v2706_v13  ;;  %v2724_v13 = vmax.f32 %v15040_v11, %v15039_v10  ;;  %v15051_v10 = vld [vmem:[#allocation164_spill] sm:$0xff]  ;;  %v15052_v11 = vld [vmem:[#allocation162_spill] sm:$0xff] }
 0x47a   : > { %2704 = vmax.xlane.f32.xlu0 %v2703_v56  ;;  %v2721_v56 = vmax.f32 %v15042_v48, %v15041_v15  ;;  %v15053_v15 = vld [vmem:[#allocation160_spill] sm:$0xff]  ;;  %v15054_v48 = vld [vmem:[#allocation158_spill] sm:$0xff] }
 0x47d   : > { %2713 = vmax.xlane.f32.xlu1 %v2712_v58  ;;  %v2730_v58 = vmax.f32 %v15044_v17, %v15043_v40  ;;  %v15055_v40 = vld [vmem:[#allocation172_spill] sm:$0xff]  ;;  %v15056_v17 = vld [vmem:[#allocation170_spill] sm:$0xff] }
 0x47e   : > { %2710 = vmax.xlane.f32.xlu0 %v2709_v35  ;;  %v2727_v35 = vmax.f32 %v15046_v31, %v15045_v49  ;;  %v15057_v49 = vld [vmem:[#allocation168_spill] sm:$0xff]  ;;  %v15058_v31 = vld [vmem:[#allocation166_spill] sm:$0xff] }
 0x481   : > { %2719 = vmax.xlane.f32.xlu1 %v2718_v20  ;;  %v2736_v20 = vmax.f32 %v15048_v0, %v15047_v63  ;;  %v15059_v63 = vld [vmem:[#allocation180_spill] sm:$0xff]  ;;  %v15060_v0 = vld [vmem:[#allocation178_spill] sm:$0xff] }
 0x482   : > { %2716 = vmax.xlane.f32.xlu0 %v2715_v37  ;;  %v2733_v37 = vmax.f32 %v15050_v5, %v15049_v22  ;;  %v15061_v22 = vld [vmem:[#allocation176_spill] sm:$0xff]  ;;  %v15062_v5 = vld [vmem:[#allocation174_spill] sm:$0xff] }
 0x485   : > { %2725 = vmax.xlane.f32.xlu1 %v2724_v13  ;;  %v2742_v13 = vmax.f32 %v15052_v11, %v15051_v10  ;;  %v15063_v10 = vld [vmem:[#allocation188_spill] sm:$0xff]  ;;  %v15064_v11 = vld [vmem:[#allocation186_spill] sm:$0xff] }
 0x486   : > { %2722 = vmax.xlane.f32.xlu0 %v2721_v56  ;;  %v2739_v56 = vmax.f32 %v15054_v48, %v15053_v15  ;;  %v15065_v15 = vld [vmem:[#allocation184_spill] sm:$0xff]  ;;  %v15066_v48 = vld [vmem:[#allocation182_spill] sm:$0xff] }
 0x489   : > { %2731 = vmax.xlane.f32.xlu1 %v2730_v58  ;;  %v2748_v58 = vmax.f32 %v15056_v17, %v15055_v40  ;;  %v15067_v40 = vld [vmem:[#allocation196_spill] sm:$0xff]  ;;  %v15068_v17 = vld [vmem:[#allocation194_spill] sm:$0xff] }
 0x48a   : > { %2728 = vmax.xlane.f32.xlu0 %v2727_v35  ;;  %v2745_v35 = vmax.f32 %v15058_v31, %v15057_v49  ;;  %v15069_v49 = vld [vmem:[#allocation192_spill] sm:$0xff]  ;;  %v15070_v31 = vld [vmem:[#allocation190_spill] sm:$0xff] }
 0x48d   : > { %2737 = vmax.xlane.f32.xlu1 %v2736_v20  ;;  %v2754_v20 = vmax.f32 %v15060_v0, %v15059_v63  ;;  %v15071_v63 = vld [vmem:[#allocation7_spill] sm:$0xff]  ;;  %v15072_v0 = vld [vmem:[#allocation6_spill] sm:$0xff] }
 0x48e   : > { %2734 = vmax.xlane.f32.xlu0 %v2733_v37  ;;  %v2751_v37 = vmax.f32 %v15062_v5, %v15061_v22  ;;  %v15073_v22 = vld [vmem:[#allocation5_spill] sm:$0xff]  ;;  %v15074_v5 = vld [vmem:[#allocation4_spill] sm:$0xff] }
 0x491   : > { %2743 = vmax.xlane.f32.xlu1 %v2742_v13  ;;  %v2760_v13 = vmax.f32 %v15064_v11, %v15063_v10  ;;  %v15075_v10 = vld [vmem:[#allocation11_spill] sm:$0xff]  ;;  %v15076_v11 = vld [vmem:[#allocation10_spill] sm:$0xff] }
 0x492   : > { %2740 = vmax.xlane.f32.xlu0 %v2739_v56  ;;  %v2757_v56 = vmax.f32 %v15066_v48, %v15065_v15  ;;  %v15077_v15 = vld [vmem:[#allocation9_spill] sm:$0xff]  ;;  %v15078_v48 = vld [vmem:[#allocation8_spill] sm:$0xff] }
 0x495   : > { %2749 = vmax.xlane.f32.xlu1 %v2748_v58  ;;  %v2766_v58 = vmax.f32 %v15068_v17, %v15067_v40  ;;  %v15079_v40 = vld [vmem:[#allocation15_spill] sm:$0xff]  ;;  %v15080_v17 = vld [vmem:[#allocation14_spill] sm:$0xff] }
 0x496   : > { %2746 = vmax.xlane.f32.xlu0 %v2745_v35  ;;  %v2763_v35 = vmax.f32 %v15070_v31, %v15069_v49  ;;  %v15081_v49 = vld [vmem:[#allocation13_spill] sm:$0xff]  ;;  %v15082_v31 = vld [vmem:[#allocation12_spill] sm:$0xff] }
 0x499   : > { %2755 = vmax.xlane.f32.xlu1 %v2754_v20  ;;  %v2772_v20 = vmax.f32 %v15072_v0, %v15071_v63  ;;  %v15083_v63 = vld [vmem:[#allocation19_spill] sm:$0xff]  ;;  %v15084_v0 = vld [vmem:[#allocation18_spill] sm:$0xff] }
 0x49a   : > { %2752 = vmax.xlane.f32.xlu0 %v2751_v37  ;;  %v2769_v37 = vmax.f32 %v15074_v5, %v15073_v22  ;;  %v15085_v22 = vld [vmem:[#allocation17_spill] sm:$0xff]  ;;  %v15086_v5 = vld [vmem:[#allocation16_spill] sm:$0xff] }
 0x49d   : > { %2761 = vmax.xlane.f32.xlu1 %v2760_v13  ;;  %v2778_v13 = vmax.f32 %v15076_v11, %v15075_v10  ;;  %v15087_v10 = vld [vmem:[#allocation23_spill] sm:$0xff]  ;;  %v15088_v11 = vld [vmem:[#allocation22_spill] sm:$0xff] }
 0x49e   : > { %2758 = vmax.xlane.f32.xlu0 %v2757_v56  ;;  %v2775_v56 = vmax.f32 %v15078_v48, %v15077_v15  ;;  %v15089_v15 = vld [vmem:[#allocation21_spill] sm:$0xff]  ;;  %v15090_v48 = vld [vmem:[#allocation20_spill] sm:$0xff] }
 0x4a1   : > { %2767 = vmax.xlane.f32.xlu1 %v2766_v58  ;;  %v2784_v58 = vmax.f32 %v15080_v17, %v15079_v40  ;;  %v15091_v40 = vld [vmem:[#allocation27_spill] sm:$0xff]  ;;  %v15092_v17 = vld [vmem:[#allocation26_spill] sm:$0xff] }
 0x4a2   : > { %2764 = vmax.xlane.f32.xlu0 %v2763_v35  ;;  %v2781_v35 = vmax.f32 %v15082_v31, %v15081_v49  ;;  %v15093_v49 = vld [vmem:[#allocation25_spill] sm:$0xff]  ;;  %v15094_v31 = vld [vmem:[#allocation24_spill] sm:$0xff] }
 0x4a5   : > { %2773 = vmax.xlane.f32.xlu1 %v2772_v20  ;;  %v2790_v20 = vmax.f32 %v15084_v0, %v15083_v63  ;;  %v15095_v63 = vld [vmem:[#allocation31_spill] sm:$0xff]  ;;  %v15096_v0 = vld [vmem:[#allocation30_spill] sm:$0xff] }
 0x4a6   : > { %2770 = vmax.xlane.f32.xlu0 %v2769_v37  ;;  %v2787_v37 = vmax.f32 %v15086_v5, %v15085_v22  ;;  %v15097_v22 = vld [vmem:[#allocation29_spill] sm:$0xff]  ;;  %v15098_v5 = vld [vmem:[#allocation28_spill] sm:$0xff] }
 0x4a9   : > { %2779 = vmax.xlane.f32.xlu1 %v2778_v13  ;;  %v2796_v13 = vmax.f32 %v15088_v11, %v15087_v10  ;;  %v2469_v10 = vld [vmem:[#allocation2 + $0x10] sm:$0xff]  ;;  %v2467_v11 = vld [vmem:[#allocation2] sm:$0xff] }
 0x4aa   : > { %2776 = vmax.xlane.f32.xlu0 %v2775_v56  ;;  %v2793_v56 = vmax.f32 %v15090_v48, %v15089_v15  ;;  %v15100_v15 = vld [vmem:[#allocation34_spill] sm:$0xff] }
 0x4ad   : > { %2785 = vmax.xlane.f32.xlu1 %v2784_v58  ;;  %v2802_v58 = vmax.f32 %v15092_v17, %v15091_v40  ;;  %v15102_v40 = vld [vmem:[#allocation32_spill] sm:$0xff] }
 0x4ae   : > { %2782 = vmax.xlane.f32.xlu0 %v2781_v35  ;;  %v2799_v35 = vmax.f32 %v15094_v31, %v15093_v49 }
 0x4b1   : > { %2791 = vmax.xlane.f32.xlu1 %v2790_v20  ;;  %v2808_v20 = vmax.f32 %v15096_v0, %v15095_v63  ;;  %v2468_v63 = vld [vmem:[#allocation2 + $0x8] sm:$0xff]  ;;  %v15103_v0 = vld [vmem:[#allocation39_spill] sm:$0xff] }
 0x4b2   : > { %2788 = vmax.xlane.f32.xlu0 %v2787_v37  ;;  %v2805_v37 = vmax.f32 %v15098_v5, %v15097_v22  ;;  %v15105_v5 = vld [vmem:[#allocation37_spill] sm:$0xff] }
 0x4b5   : > { %2797 = vmax.xlane.f32.xlu1 %v2796_v13  ;;  %v15099_v13 = vld [vmem:[#allocation35_spill] sm:$0xff] }
 0x4b6   : > { %2794 = vmax.xlane.f32.xlu0 %v2793_v56  ;;  %v2814_v48 = vmax.f32 %v15100_v15, %v15099_v13  ;;  %v15101_v56 = vld [vmem:[#allocation33_spill] sm:$0xff] }
 0x4b7   : > { %v2811_v17 = vmax.f32 %v15102_v40, %v15101_v56 }
 0x4b9   : > { %2803 = vmax.xlane.f32.xlu1 %v2802_v58 }
 0x4ba   : > { %2800 = vmax.xlane.f32.xlu0 %v2799_v35  ;;  %v2603_v49 = vpop.xlane.xlu1 %2602 }
 0x4bb   : > { %v2597_v58 = vpop.xlane.xlu0 %2596  ;;  %v2981_v31 = vmax.f32 %v2469_v10, %v2603_v49  ;;  %v2472_v10 = vld [vmem:[#allocation2 + $0x28] sm:$0xff] }
 0x4bc   : > { %v2979_v35 = vmax.f32 %v2467_v11, %v2597_v58  ;;  %v2471_v11 = vld [vmem:[#allocation2 + $0x20] sm:$0xff]  ;;  %v15109_v58 = vld [vmem:[#allocation42_spill] sm:$0xff] }
 0x4bd   : > { %2809 = vmax.xlane.f32.xlu1 %v2808_v20  ;;  %3110 = vst.msk [vmem:[#allocation2 + $0x10] sm:$0xff] %vm3107_vm2, %v2981_v31  ;;  %v15104_v20 = vld [vmem:[#allocation38_spill] sm:$0xff]  ;;  %v15110_v31 = vld [vmem:[#allocation40_spill] sm:$0xff] }
 0x4be   : > { %2806 = vmax.xlane.f32.xlu0 %v2805_v37  ;;  %3108 = vst.msk [vmem:[#allocation2] sm:$0xff] %vm3107_vm2, %v2979_v35  ;;  %v2820_v22 = vmax.f32 %v15104_v20, %v15103_v0  ;;  %v15106_v37 = vld [vmem:[#allocation36_spill] sm:$0xff]  ;;  %v2823_v35 = vmax.f32 %v15110_v31, %v15109_v58 }
 0x4bf   : > { %v2817_v13 = vmax.f32 %v15106_v37, %v15105_v5 }
 0x4c1   : > { %2815 = vmax.xlane.f32.xlu1 %v2814_v48  ;;  %v15107_v48 = vld [vmem:[#allocation44_spill] sm:$0xff] }
 0x4c2   : > { %2812 = vmax.xlane.f32.xlu0 %v2811_v17  ;;  %v2606_v15 = vpop.xlane.xlu1 %2605  ;;  %v15108_v17 = vld [vmem:[#allocation43_spill] sm:$0xff] }
 0x4c3   : > { %v2600_v56 = vpop.xlane.xlu0 %2599  ;;  %v2982_v40 = vmax.f32 %v2470_v27, %v2606_v15  ;;  %v2826_v49 = vmax.f32 %v15108_v17, %v15107_v48  ;;  %v2474_v27 = vld [vmem:[#allocation2 + $0x38] sm:$0xff] }
 0x4c4   : > { %v2980_v26 = vmax.f32 %v2468_v63, %v2600_v56  ;;  %v2473_v63 = vld [vmem:[#allocation2 + $0x30] sm:$0xff]  ;;  %v15113_v15 = vld [vmem:[#allocation47_spill] sm:$0xff]  ;;  %v15114_v56 = vld [vmem:[#allocation45_spill] sm:$0xff] }
 0x4c5   : > { %3111 = vst.msk [vmem:[#allocation2 + $0x18] sm:$0xff] %vm3107_vm2, %v2982_v40  ;;  %2821 = vmax.xlane.f32.xlu1 %v2820_v22  ;;  %v15112_v22 = vld [vmem:[#allocation49_spill] sm:$0xff]  ;;  %v2829_v40 = vmax.f32 %v15114_v56, %v15113_v15 }
 0x4c6   : > { %3109 = vst.msk [vmem:[#allocation2 + $0x8] sm:$0xff] %vm3107_vm2, %v2980_v26  ;;  %2818 = vmax.xlane.f32.xlu0 %v2817_v13  ;;  %v2612_v0 = vpop.xlane.xlu1 %2611  ;;  %v15111_v26 = vld [vmem:[#allocation51_spill] sm:$0xff] }
 0x4c7   : > { %v2609_v20 = vpop.xlane.xlu0 %2608  ;;  %v2984_v5 = vmax.f32 %v2472_v10, %v2612_v0  ;;  %v2832_v13 = vmax.f32 %v15112_v22, %v15111_v26  ;;  %v2476_v10 = vld [vmem:[#allocation2 + $0x48] sm:$0xff] }
 0x4c8   : > { %v2983_v37 = vmax.f32 %v2471_v11, %v2609_v20  ;;  %v2475_v11 = vld [vmem:[#allocation2 + $0x40] sm:$0xff]  ;;  %v15117_v20 = vld [vmem:[#allocation55_spill] sm:$0xff] }
 0x4c9   : > { %3113 = vst.msk [vmem:[#allocation2 + $0x28] sm:$0xff] %vm3107_vm2, %v2984_v5  ;;  %2827 = vmax.xlane.f32.xlu1 %v2826_v49  ;;  %v15115_v49 = vld [vmem:[#allocation59_spill] sm:$0xff]  ;;  %v15118_v5 = vld [vmem:[#allocation53_spill] sm:$0xff] }
 0x4ca   : > { %3112 = vst.msk [vmem:[#allocation2 + $0x20] sm:$0xff] %vm3107_vm2, %v2983_v37  ;;  %2824 = vmax.xlane.f32.xlu0 %v2823_v35  ;;  %v2618_v48 = vpop.xlane.xlu1 %2617  ;;  %v15116_v35 = vld [vmem:[#allocation57_spill] sm:$0xff]  ;;  %v2835_v37 = vmax.f32 %v15118_v5, %v15117_v20 }
 0x4cb   : > { %v2615_v17 = vpop.xlane.xlu0 %2614  ;;  %v2986_v58 = vmax.f32 %v2474_v27, %v2618_v48  ;;  %v2838_v0 = vmax.f32 %v15116_v35, %v15115_v49  ;;  %v2478_v27 = vld [vmem:[#allocation2 + $0x58] sm:$0xff] }
 0x4cc   : > { %v2985_v31 = vmax.f32 %v2473_v63, %v2615_v17  ;;  %v2477_v63 = vld [vmem:[#allocation2 + $0x50] sm:$0xff]  ;;  %v15121_v17 = vld [vmem:[#allocation63_spill] sm:$0xff] }
 0x4cd   : > { %3115 = vst.msk [vmem:[#allocation2 + $0x38] sm:$0xff] %vm3107_vm2, %v2986_v58  ;;  %2833 = vmax.xlane.f32.xlu1 %v2832_v13  ;;  %v15119_v13 = vld [vmem:[#allocation67_spill] sm:$0xff]  ;;  %v15122_v58 = vld [vmem:[#allocation61_spill] sm:$0xff] }
 0x4ce   : > { %3114 = vst.msk [vmem:[#allocation2 + $0x30] sm:$0xff] %vm3107_vm2, %v2985_v31  ;;  %2830 = vmax.xlane.f32.xlu0 %v2829_v40  ;;  %v2624_v26 = vpop.xlane.xlu1 %2623  ;;  %v15120_v40 = vld [vmem:[#allocation65_spill] sm:$0xff]  ;;  %v2841_v31 = vmax.f32 %v15122_v58, %v15121_v17 }
 0x4cf   : > { %v2621_v22 = vpop.xlane.xlu0 %2620  ;;  %v2988_v15 = vmax.f32 %v2476_v10, %v2624_v26  ;;  %v2844_v48 = vmax.f32 %v15120_v40, %v15119_v13  ;;  %v2480_v10 = vld [vmem:[#allocation2 + $0x68] sm:$0xff] }
 0x4d0   : > { %v2987_v56 = vmax.f32 %v2475_v11, %v2621_v22  ;;  %v2479_v11 = vld [vmem:[#allocation2 + $0x60] sm:$0xff]  ;;  %v15125_v22 = vld [vmem:[#allocation71_spill] sm:$0xff] }
 0x4d1   : > { %3117 = vst.msk [vmem:[#allocation2 + $0x48] sm:$0xff] %vm3107_vm2, %v2988_v15  ;;  %2839 = vmax.xlane.f32.xlu1 %v2838_v0  ;;  %v15123_v0 = vld [vmem:[#allocation75_spill] sm:$0xff]  ;;  %v15126_v15 = vld [vmem:[#allocation69_spill] sm:$0xff] }
 0x4d2   : > { %3116 = vst.msk [vmem:[#allocation2 + $0x40] sm:$0xff] %vm3107_vm2, %v2987_v56  ;;  %2836 = vmax.xlane.f32.xlu0 %v2835_v37  ;;  %v2630_v49 = vpop.xlane.xlu1 %2629  ;;  %v15124_v37 = vld [vmem:[#allocation73_spill] sm:$0xff]  ;;  %v2847_v56 = vmax.f32 %v15126_v15, %v15125_v22 }
 0x4d3   : > { %v2627_v35 = vpop.xlane.xlu0 %2626  ;;  %v2990_v20 = vmax.f32 %v2478_v27, %v2630_v49  ;;  %v2850_v26 = vmax.f32 %v15124_v37, %v15123_v0  ;;  %v2482_v27 = vld [vmem:[#allocation2 + $0x78] sm:$0xff] }
 0x4d4   : > { %v2989_v5 = vmax.f32 %v2477_v63, %v2627_v35  ;;  %v2481_v63 = vld [vmem:[#allocation2 + $0x70] sm:$0xff]  ;;  %v15129_v35 = vld [vmem:[#allocation79_spill] sm:$0xff] }
 0x4d5   : > { %3119 = vst.msk [vmem:[#allocation2 + $0x58] sm:$0xff] %vm3107_vm2, %v2990_v20  ;;  %2845 = vmax.xlane.f32.xlu1 %v2844_v48  ;;  %v15127_v48 = vld [vmem:[#allocation83_spill] sm:$0xff]  ;;  %v15130_v20 = vld [vmem:[#allocation77_spill] sm:$0xff] }
 0x4d6   : > { %3118 = vst.msk [vmem:[#allocation2 + $0x50] sm:$0xff] %vm3107_vm2, %v2989_v5  ;;  %2842 = vmax.xlane.f32.xlu0 %v2841_v31  ;;  %v2636_v13 = vpop.xlane.xlu1 %2635  ;;  %v15128_v31 = vld [vmem:[#allocation81_spill] sm:$0xff]  ;;  %v2853_v5 = vmax.f32 %v15130_v20, %v15129_v35 }
 0x4d7   : > { %v2633_v40 = vpop.xlane.xlu0 %2632  ;;  %v2992_v17 = vmax.f32 %v2480_v10, %v2636_v13  ;;  %v2856_v49 = vmax.f32 %v15128_v31, %v15127_v48  ;;  %v2484_v10 = vld [vmem:[#allocation2 + $0x88] sm:$0xff] }
 0x4d8   : > { %v2991_v58 = vmax.f32 %v2479_v11, %v2633_v40  ;;  %v2483_v11 = vld [vmem:[#allocation2 + $0x80] sm:$0xff]  ;;  %v15133_v40 = vld [vmem:[#allocation87_spill] sm:$0xff] }
 0x4d9   : > { %3121 = vst.msk [vmem:[#allocation2 + $0x68] sm:$0xff] %vm3107_vm2, %v2992_v17  ;;  %2851 = vmax.xlane.f32.xlu1 %v2850_v26  ;;  %v15131_v26 = vld [vmem:[#allocation91_spill] sm:$0xff]  ;;  %v15134_v17 = vld [vmem:[#allocation85_spill] sm:$0xff] }
 0x4da   : > { %3120 = vst.msk [vmem:[#allocation2 + $0x60] sm:$0xff] %vm3107_vm2, %v2991_v58  ;;  %2848 = vmax.xlane.f32.xlu0 %v2847_v56  ;;  %v2642_v0 = vpop.xlane.xlu1 %2641  ;;  %v15132_v56 = vld [vmem:[#allocation89_spill] sm:$0xff]  ;;  %v2859_v58 = vmax.f32 %v15134_v17, %v15133_v40 }
 0x4db   : > { %v2639_v37 = vpop.xlane.xlu0 %2638  ;;  %v2994_v22 = vmax.f32 %v2482_v27, %v2642_v0  ;;  %v2862_v13 = vmax.f32 %v15132_v56, %v15131_v26  ;;  %v2486_v27 = vld [vmem:[#allocation2 + $0x98] sm:$0xff] }
 0x4dc   : > { %v2993_v15 = vmax.f32 %v2481_v63, %v2639_v37  ;;  %v2485_v63 = vld [vmem:[#allocation2 + $0x90] sm:$0xff]  ;;  %v15137_v37 = vld [vmem:[#allocation95_spill] sm:$0xff] }
 0x4dd   : > { %3123 = vst.msk [vmem:[#allocation2 + $0x78] sm:$0xff] %vm3107_vm2, %v2994_v22  ;;  %2857 = vmax.xlane.f32.xlu1 %v2856_v49  ;;  %v15135_v49 = vld [vmem:[#allocation99_spill] sm:$0xff]  ;;  %v15138_v22 = vld [vmem:[#allocation93_spill] sm:$0xff] }
 0x4de   : > { %3122 = vst.msk [vmem:[#allocation2 + $0x70] sm:$0xff] %vm3107_vm2, %v2993_v15  ;;  %2854 = vmax.xlane.f32.xlu0 %v2853_v5  ;;  %v2648_v48 = vpop.xlane.xlu1 %2647  ;;  %v15136_v5 = vld [vmem:[#allocation97_spill] sm:$0xff]  ;;  %v2865_v15 = vmax.f32 %v15138_v22, %v15137_v37 }
 0x4df   : > { %v2645_v31 = vpop.xlane.xlu0 %2644  ;;  %v2996_v35 = vmax.f32 %v2484_v10, %v2648_v48  ;;  %v2868_v0 = vmax.f32 %v15136_v5, %v15135_v49  ;;  %v2488_v10 = vld [vmem:[#allocation2 + $0xa8] sm:$0xff] }
 0x4e0   : > { %v2995_v20 = vmax.f32 %v2483_v11, %v2645_v31  ;;  %v2487_v11 = vld [vmem:[#allocation2 + $0xa0] sm:$0xff]  ;;  %v15141_v31 = vld [vmem:[#allocation103_spill] sm:$0xff] }
 0x4e1   : > { %3125 = vst.msk [vmem:[#allocation2 + $0x88] sm:$0xff] %vm3107_vm2, %v2996_v35  ;;  %2863 = vmax.xlane.f32.xlu1 %v2862_v13  ;;  %v15139_v13 = vld [vmem:[#allocation107_spill] sm:$0xff]  ;;  %v15142_v35 = vld [vmem:[#allocation101_spill] sm:$0xff] }
 0x4e2   : > { %3124 = vst.msk [vmem:[#allocation2 + $0x80] sm:$0xff] %vm3107_vm2, %v2995_v20  ;;  %2860 = vmax.xlane.f32.xlu0 %v2859_v58  ;;  %v2654_v26 = vpop.xlane.xlu1 %2653  ;;  %v15140_v58 = vld [vmem:[#allocation105_spill] sm:$0xff]  ;;  %v2871_v20 = vmax.f32 %v15142_v35, %v15141_v31 }
 0x4e3   : > { %v2651_v56 = vpop.xlane.xlu0 %2650  ;;  %v2998_v40 = vmax.f32 %v2486_v27, %v2654_v26  ;;  %v2874_v48 = vmax.f32 %v15140_v58, %v15139_v13  ;;  %v2490_v27 = vld [vmem:[#allocation2 + $0xb8] sm:$0xff] }
 0x4e4   : > { %v2997_v17 = vmax.f32 %v2485_v63, %v2651_v56  ;;  %v2489_v63 = vld [vmem:[#allocation2 + $0xb0] sm:$0xff]  ;;  %v15145_v56 = vld [vmem:[#allocation111_spill] sm:$0xff] }
 0x4e5   : > { %3127 = vst.msk [vmem:[#allocation2 + $0x98] sm:$0xff] %vm3107_vm2, %v2998_v40  ;;  %2869 = vmax.xlane.f32.xlu1 %v2868_v0  ;;  %v15143_v0 = vld [vmem:[#allocation115_spill] sm:$0xff]  ;;  %v15146_v40 = vld [vmem:[#allocation109_spill] sm:$0xff] }
 0x4e6   : > { %3126 = vst.msk [vmem:[#allocation2 + $0x90] sm:$0xff] %vm3107_vm2, %v2997_v17  ;;  %2866 = vmax.xlane.f32.xlu0 %v2865_v15  ;;  %v2660_v49 = vpop.xlane.xlu1 %2659  ;;  %v15144_v15 = vld [vmem:[#allocation113_spill] sm:$0xff]  ;;  %v2877_v17 = vmax.f32 %v15146_v40, %v15145_v56 }
 0x4e7   : > { %v2657_v5 = vpop.xlane.xlu0 %2656  ;;  %v3000_v37 = vmax.f32 %v2488_v10, %v2660_v49  ;;  %v2880_v26 = vmax.f32 %v15144_v15, %v15143_v0  ;;  %v2492_v10 = vld [vmem:[#allocation2 + $0xc8] sm:$0xff] }
 0x4e8   : > { %v2999_v22 = vmax.f32 %v2487_v11, %v2657_v5  ;;  %v2491_v11 = vld [vmem:[#allocation2 + $0xc0] sm:$0xff]  ;;  %v15149_v5 = vld [vmem:[#allocation119_spill] sm:$0xff] }
 0x4e9   : > { %3129 = vst.msk [vmem:[#allocation2 + $0xa8] sm:$0xff] %vm3107_vm2, %v3000_v37  ;;  %2875 = vmax.xlane.f32.xlu1 %v2874_v48  ;;  %v15147_v48 = vld [vmem:[#allocation123_spill] sm:$0xff]  ;;  %v15150_v37 = vld [vmem:[#allocation117_spill] sm:$0xff] }
 0x4ea   : > { %3128 = vst.msk [vmem:[#allocation2 + $0xa0] sm:$0xff] %vm3107_vm2, %v2999_v22  ;;  %2872 = vmax.xlane.f32.xlu0 %v2871_v20  ;;  %v2666_v13 = vpop.xlane.xlu1 %2665  ;;  %v15148_v20 = vld [vmem:[#allocation121_spill] sm:$0xff]  ;;  %v2883_v22 = vmax.f32 %v15150_v37, %v15149_v5 }
 0x4eb   : > { %v2663_v58 = vpop.xlane.xlu0 %2662  ;;  %v3002_v31 = vmax.f32 %v2490_v27, %v2666_v13  ;;  %v2886_v49 = vmax.f32 %v15148_v20, %v15147_v48  ;;  %v2494_v27 = vld [vmem:[#allocation2 + $0xd8] sm:$0xff] }
 0x4ec   : > { %v3001_v35 = vmax.f32 %v2489_v63, %v2663_v58  ;;  %v2493_v63 = vld [vmem:[#allocation2 + $0xd0] sm:$0xff]  ;;  %v15153_v58 = vld [vmem:[#allocation127_spill] sm:$0xff] }
 0x4ed   : > { %3131 = vst.msk [vmem:[#allocation2 + $0xb8] sm:$0xff] %vm3107_vm2, %v3002_v31  ;;  %2881 = vmax.xlane.f32.xlu1 %v2880_v26  ;;  %v15151_v26 = vld [vmem:[#allocation131_spill] sm:$0xff]  ;;  %v15154_v31 = vld [vmem:[#allocation125_spill] sm:$0xff] }
 0x4ee   : > { %3130 = vst.msk [vmem:[#allocation2 + $0xb0] sm:$0xff] %vm3107_vm2, %v3001_v35  ;;  %2878 = vmax.xlane.f32.xlu0 %v2877_v17  ;;  %v2672_v0 = vpop.xlane.xlu1 %2671  ;;  %v15152_v17 = vld [vmem:[#allocation129_spill] sm:$0xff]  ;;  %v2889_v35 = vmax.f32 %v15154_v31, %v15153_v58 }
 0x4ef   : > { %v2669_v15 = vpop.xlane.xlu0 %2668  ;;  %v3004_v56 = vmax.f32 %v2492_v10, %v2672_v0  ;;  %v2892_v13 = vmax.f32 %v15152_v17, %v15151_v26  ;;  %v2496_v10 = vld [vmem:[#allocation2 + $0xe8] sm:$0xff] }
 0x4f0   : > { %v3003_v40 = vmax.f32 %v2491_v11, %v2669_v15  ;;  %v2495_v11 = vld [vmem:[#allocation2 + $0xe0] sm:$0xff]  ;;  %v15157_v15 = vld [vmem:[#allocation135_spill] sm:$0xff] }
 0x4f1   : > { %3133 = vst.msk [vmem:[#allocation2 + $0xc8] sm:$0xff] %vm3107_vm2, %v3004_v56  ;;  %2887 = vmax.xlane.f32.xlu1 %v2886_v49  ;;  %v15155_v49 = vld [vmem:[#allocation139_spill] sm:$0xff]  ;;  %v15158_v56 = vld [vmem:[#allocation133_spill] sm:$0xff] }
 0x4f2   : > { %3132 = vst.msk [vmem:[#allocation2 + $0xc0] sm:$0xff] %vm3107_vm2, %v3003_v40  ;;  %2884 = vmax.xlane.f32.xlu0 %v2883_v22  ;;  %v2678_v48 = vpop.xlane.xlu1 %2677  ;;  %v15156_v22 = vld [vmem:[#allocation137_spill] sm:$0xff]  ;;  %v2895_v40 = vmax.f32 %v15158_v56, %v15157_v15 }
 0x4f3   : > { %v2675_v20 = vpop.xlane.xlu0 %2674  ;;  %v3006_v5 = vmax.f32 %v2494_v27, %v2678_v48  ;;  %v2898_v0 = vmax.f32 %v15156_v22, %v15155_v49  ;;  %v2498_v27 = vld [vmem:[#allocation2 + $0xf8] sm:$0xff] }
 0x4f4   : > { %v3005_v37 = vmax.f32 %v2493_v63, %v2675_v20  ;;  %v2497_v63 = vld [vmem:[#allocation2 + $0xf0] sm:$0xff]  ;;  %v15161_v20 = vld [vmem:[#allocation143_spill] sm:$0xff] }
 0x4f5   : > { %3135 = vst.msk [vmem:[#allocation2 + $0xd8] sm:$0xff] %vm3107_vm2, %v3006_v5  ;;  %2893 = vmax.xlane.f32.xlu1 %v2892_v13  ;;  %v15159_v13 = vld [vmem:[#allocation147_spill] sm:$0xff]  ;;  %v15162_v5 = vld [vmem:[#allocation141_spill] sm:$0xff] }
 0x4f6   : > { %3134 = vst.msk [vmem:[#allocation2 + $0xd0] sm:$0xff] %vm3107_vm2, %v3005_v37  ;;  %2890 = vmax.xlane.f32.xlu0 %v2889_v35  ;;  %v2684_v26 = vpop.xlane.xlu1 %2683  ;;  %v15160_v35 = vld [vmem:[#allocation145_spill] sm:$0xff]  ;;  %v2901_v37 = vmax.f32 %v15162_v5, %v15161_v20 }
 0x4f7   : > { %v2681_v17 = vpop.xlane.xlu0 %2680  ;;  %v3008_v58 = vmax.f32 %v2496_v10, %v2684_v26  ;;  %v2904_v48 = vmax.f32 %v15160_v35, %v15159_v13  ;;  %v2500_v10 = vld [vmem:[#allocation2 + $0x108] sm:$0xff] }
 0x4f8   : > { %v3007_v31 = vmax.f32 %v2495_v11, %v2681_v17  ;;  %v2499_v11 = vld [vmem:[#allocation2 + $0x100] sm:$0xff]  ;;  %v15165_v17 = vld [vmem:[#allocation151_spill] sm:$0xff] }
 0x4f9   : > { %3137 = vst.msk [vmem:[#allocation2 + $0xe8] sm:$0xff] %vm3107_vm2, %v3008_v58  ;;  %2899 = vmax.xlane.f32.xlu1 %v2898_v0  ;;  %v15163_v0 = vld [vmem:[#allocation155_spill] sm:$0xff]  ;;  %v15166_v58 = vld [vmem:[#allocation149_spill] sm:$0xff] }
 0x4fa   : > { %3136 = vst.msk [vmem:[#allocation2 + $0xe0] sm:$0xff] %vm3107_vm2, %v3007_v31  ;;  %2896 = vmax.xlane.f32.xlu0 %v2895_v40  ;;  %v2690_v49 = vpop.xlane.xlu1 %2689  ;;  %v15164_v40 = vld [vmem:[#allocation153_spill] sm:$0xff]  ;;  %v2907_v31 = vmax.f32 %v15166_v58, %v15165_v17 }
 0x4fb   : > { %v2687_v22 = vpop.xlane.xlu0 %2686  ;;  %v3010_v15 = vmax.f32 %v2498_v27, %v2690_v49  ;;  %v2910_v26 = vmax.f32 %v15164_v40, %v15163_v0  ;;  %v2502_v27 = vld [vmem:[#allocation2 + $0x118] sm:$0xff] }
 0x4fc   : > { %v3009_v56 = vmax.f32 %v2497_v63, %v2687_v22  ;;  %v2501_v63 = vld [vmem:[#allocation2 + $0x110] sm:$0xff]  ;;  %v15169_v22 = vld [vmem:[#allocation159_spill] sm:$0xff] }
 0x4fd   : > { %3139 = vst.msk [vmem:[#allocation2 + $0xf8] sm:$0xff] %vm3107_vm2, %v3010_v15  ;;  %2905 = vmax.xlane.f32.xlu1 %v2904_v48  ;;  %v15167_v48 = vld [vmem:[#allocation163_spill] sm:$0xff]  ;;  %v15170_v15 = vld [vmem:[#allocation157_spill] sm:$0xff] }
 0x4fe   : > { %3138 = vst.msk [vmem:[#allocation2 + $0xf0] sm:$0xff] %vm3107_vm2, %v3009_v56  ;;  %2902 = vmax.xlane.f32.xlu0 %v2901_v37  ;;  %v2696_v13 = vpop.xlane.xlu1 %2695  ;;  %v15168_v37 = vld [vmem:[#allocation161_spill] sm:$0xff]  ;;  %v2913_v56 = vmax.f32 %v15170_v15, %v15169_v22 }
 0x4ff   : > { %v2693_v35 = vpop.xlane.xlu0 %2692  ;;  %v3012_v20 = vmax.f32 %v2500_v10, %v2696_v13  ;;  %v2916_v49 = vmax.f32 %v15168_v37, %v15167_v48  ;;  %v2504_v10 = vld [vmem:[#allocation2 + $0x128] sm:$0xff] }
 0x500   : > { %v3011_v5 = vmax.f32 %v2499_v11, %v2693_v35  ;;  %v2503_v11 = vld [vmem:[#allocation2 + $0x120] sm:$0xff]  ;;  %v15173_v35 = vld [vmem:[#allocation167_spill] sm:$0xff] }
 0x501   : > { %3141 = vst.msk [vmem:[#allocation2 + $0x108] sm:$0xff] %vm3107_vm2, %v3012_v20  ;;  %2911 = vmax.xlane.f32.xlu1 %v2910_v26  ;;  %v15171_v26 = vld [vmem:[#allocation171_spill] sm:$0xff]  ;;  %v15174_v20 = vld [vmem:[#allocation165_spill] sm:$0xff] }
 0x502   : > { %3140 = vst.msk [vmem:[#allocation2 + $0x100] sm:$0xff] %vm3107_vm2, %v3011_v5  ;;  %2908 = vmax.xlane.f32.xlu0 %v2907_v31  ;;  %v2702_v0 = vpop.xlane.xlu1 %2701  ;;  %v15172_v31 = vld [vmem:[#allocation169_spill] sm:$0xff]  ;;  %v2919_v5 = vmax.f32 %v15174_v20, %v15173_v35 }
 0x503   : > { %v2699_v40 = vpop.xlane.xlu0 %2698  ;;  %v3014_v17 = vmax.f32 %v2502_v27, %v2702_v0  ;;  %v2922_v13 = vmax.f32 %v15172_v31, %v15171_v26  ;;  %v2506_v27 = vld [vmem:[#allocation2 + $0x138] sm:$0xff] }
 0x504   : > { %v3013_v58 = vmax.f32 %v2501_v63, %v2699_v40  ;;  %v2505_v63 = vld [vmem:[#allocation2 + $0x130] sm:$0xff]  ;;  %v15177_v40 = vld [vmem:[#allocation175_spill] sm:$0xff] }
 0x505   : > { %3143 = vst.msk [vmem:[#allocation2 + $0x118] sm:$0xff] %vm3107_vm2, %v3014_v17  ;;  %2917 = vmax.xlane.f32.xlu1 %v2916_v49  ;;  %v15175_v49 = vld [vmem:[#allocation179_spill] sm:$0xff]  ;;  %v15178_v17 = vld [vmem:[#allocation173_spill] sm:$0xff] }
 0x506   : > { %3142 = vst.msk [vmem:[#allocation2 + $0x110] sm:$0xff] %vm3107_vm2, %v3013_v58  ;;  %2914 = vmax.xlane.f32.xlu0 %v2913_v56  ;;  %v2708_v48 = vpop.xlane.xlu1 %2707  ;;  %v15176_v56 = vld [vmem:[#allocation177_spill] sm:$0xff]  ;;  %v2925_v58 = vmax.f32 %v15178_v17, %v15177_v40 }
 0x507   : > { %v2705_v37 = vpop.xlane.xlu0 %2704  ;;  %v3016_v22 = vmax.f32 %v2504_v10, %v2708_v48  ;;  %v2928_v0 = vmax.f32 %v15176_v56, %v15175_v49  ;;  %v2508_v10 = vld [vmem:[#allocation2 + $0x148] sm:$0xff] }
 0x508   : > { %v3015_v15 = vmax.f32 %v2503_v11, %v2705_v37  ;;  %v2507_v11 = vld [vmem:[#allocation2 + $0x140] sm:$0xff]  ;;  %v15181_v37 = vld [vmem:[#allocation183_spill] sm:$0xff] }
 0x509   : > { %3145 = vst.msk [vmem:[#allocation2 + $0x128] sm:$0xff] %vm3107_vm2, %v3016_v22  ;;  %2923 = vmax.xlane.f32.xlu1 %v2922_v13  ;;  %v15179_v13 = vld [vmem:[#allocation187_spill] sm:$0xff]  ;;  %v15182_v22 = vld [vmem:[#allocation181_spill] sm:$0xff] }
 0x50a   : > { %3144 = vst.msk [vmem:[#allocation2 + $0x120] sm:$0xff] %vm3107_vm2, %v3015_v15  ;;  %2920 = vmax.xlane.f32.xlu0 %v2919_v5  ;;  %v2714_v26 = vpop.xlane.xlu1 %2713  ;;  %v15180_v5 = vld [vmem:[#allocation185_spill] sm:$0xff]  ;;  %v2931_v15 = vmax.f32 %v15182_v22, %v15181_v37 }
 0x50b   : > { %v2711_v31 = vpop.xlane.xlu0 %2710  ;;  %v3018_v35 = vmax.f32 %v2506_v27, %v2714_v26  ;;  %v2934_v48 = vmax.f32 %v15180_v5, %v15179_v13  ;;  %v2510_v27 = vld [vmem:[#allocation2 + $0x158] sm:$0xff] }
 0x50c   : > { %v3017_v20 = vmax.f32 %v2505_v63, %v2711_v31  ;;  %v2509_v63 = vld [vmem:[#allocation2 + $0x150] sm:$0xff]  ;;  %v15185_v31 = vld [vmem:[#allocation191_spill] sm:$0xff] }
 0x50d   : > { %3147 = vst.msk [vmem:[#allocation2 + $0x138] sm:$0xff] %vm3107_vm2, %v3018_v35  ;;  %2929 = vmax.xlane.f32.xlu1 %v2928_v0  ;;  %v15183_v0 = vld [vmem:[#allocation195_spill] sm:$0xff]  ;;  %v15186_v35 = vld [vmem:[#allocation189_spill] sm:$0xff] }
 0x50e   : > { %3146 = vst.msk [vmem:[#allocation2 + $0x130] sm:$0xff] %vm3107_vm2, %v3017_v20  ;;  %2926 = vmax.xlane.f32.xlu0 %v2925_v58  ;;  %v2720_v49 = vpop.xlane.xlu1 %2719  ;;  %v15184_v58 = vld [vmem:[#allocation193_spill] sm:$0xff]  ;;  %v2937_v20 = vmax.f32 %v15186_v35, %v15185_v31 }
 0x50f   : > { %v2717_v56 = vpop.xlane.xlu0 %2716  ;;  %v3020_v40 = vmax.f32 %v2508_v10, %v2720_v49  ;;  %v2940_v26 = vmax.f32 %v15184_v58, %v15183_v0  ;;  %v2512_v10 = vld [vmem:[#allocation2 + $0x168] sm:$0xff] }
 0x510   : > { %v3019_v17 = vmax.f32 %v2507_v11, %v2717_v56  ;;  %v2511_v11 = vld [vmem:[#allocation2 + $0x160] sm:$0xff]  ;;  %v15189_v56 = vld [vmem:[#allocation198_spill] sm:$0xff] }
 0x511   : > { %3149 = vst.msk [vmem:[#allocation2 + $0x148] sm:$0xff] %vm3107_vm2, %v3020_v40  ;;  %2935 = vmax.xlane.f32.xlu1 %v2934_v48  ;;  %v15187_v48 = vld [vmem:[#allocation200_spill] sm:$0xff]  ;;  %v15190_v40 = vld [vmem:[#allocation197_spill] sm:$0xff] }
 0x512   : > { %3148 = vst.msk [vmem:[#allocation2 + $0x140] sm:$0xff] %vm3107_vm2, %v3019_v17  ;;  %2932 = vmax.xlane.f32.xlu0 %v2931_v15  ;;  %v2726_v13 = vpop.xlane.xlu1 %2725  ;;  %v15188_v15 = vld [vmem:[#allocation199_spill] sm:$0xff]  ;;  %v2943_v17 = vmax.f32 %v15190_v40, %v15189_v56 }
 0x513   : > { %v2723_v5 = vpop.xlane.xlu0 %2722  ;;  %v3022_v37 = vmax.f32 %v2510_v27, %v2726_v13  ;;  %v2946_v49 = vmax.f32 %v15188_v15, %v15187_v48  ;;  %v2514_v27 = vld [vmem:[#allocation2 + $0x178] sm:$0xff] }
 0x514   : > { %v3021_v22 = vmax.f32 %v2509_v63, %v2723_v5  ;;  %v2513_v63 = vld [vmem:[#allocation2 + $0x170] sm:$0xff] }
 0x515   : > { %3151 = vst.msk [vmem:[#allocation2 + $0x158] sm:$0xff] %vm3107_vm2, %v3022_v37  ;;  %2941 = vmax.xlane.f32.xlu1 %v2940_v26  ;;  %v15191_v26 = vld [vmem:[#allocation204_spill] sm:$0xff]  ;;  %v15193_v5 = vld [vmem:[#allocation202_spill] sm:$0xff]  ;;  %v15194_v37 = vld [vmem:[#allocation201_spill] sm:$0xff] }
 0x516   : > { %3150 = vst.msk [vmem:[#allocation2 + $0x150] sm:$0xff] %vm3107_vm2, %v3021_v22  ;;  %2938 = vmax.xlane.f32.xlu0 %v2937_v20  ;;  %v2732_v0 = vpop.xlane.xlu1 %2731  ;;  %v15192_v20 = vld [vmem:[#allocation203_spill] sm:$0xff]  ;;  %v2949_v22 = vmax.f32 %v15194_v37, %v15193_v5 }
 0x517   : > { %v2729_v58 = vpop.xlane.xlu0 %2728  ;;  %v3024_v31 = vmax.f32 %v2512_v10, %v2732_v0  ;;  %v2952_v13 = vmax.f32 %v15192_v20, %v15191_v26  ;;  %v2516_v10 = vld [vmem:[#allocation2 + $0x188] sm:$0xff] }
 0x518   : > { %v3023_v35 = vmax.f32 %v2511_v11, %v2729_v58  ;;  %v2515_v11 = vld [vmem:[#allocation2 + $0x180] sm:$0xff]  ;;  %v15197_v58 = vld [vmem:[#allocation206_spill] sm:$0xff] }
 0x519   : > { %3153 = vst.msk [vmem:[#allocation2 + $0x168] sm:$0xff] %vm3107_vm2, %v3024_v31  ;;  %2947 = vmax.xlane.f32.xlu1 %v2946_v49  ;;  %v15195_v49 = vld [vmem:[#allocation208_spill] sm:$0xff]  ;;  %v15198_v31 = vld [vmem:[#allocation205_spill] sm:$0xff] }
 0x51a   : > { %3152 = vst.msk [vmem:[#allocation2 + $0x160] sm:$0xff] %vm3107_vm2, %v3023_v35  ;;  %2944 = vmax.xlane.f32.xlu0 %v2943_v17  ;;  %v2738_v48 = vpop.xlane.xlu1 %2737  ;;  %v15196_v17 = vld [vmem:[#allocation207_spill] sm:$0xff]  ;;  %v2955_v35 = vmax.f32 %v15198_v31, %v15197_v58  ;;  %v15201_v58 = vld [vmem:[#allocation210_spill] sm:$0xff] }
 0x51b   : > { %v2735_v15 = vpop.xlane.xlu0 %2734  ;;  %v3026_v56 = vmax.f32 %v2514_v27, %v2738_v48  ;;  %v2958_v0 = vmax.f32 %v15196_v17, %v15195_v49  ;;  %v2518_v27 = vld [vmem:[#allocation2 + $0x198] sm:$0xff]  ;;  %v2970_v17 = vmax.f32 %v11344_v41, %v11346_v59 }
 0x51c   : > { %v3025_v40 = vmax.f32 %v2513_v63, %v2735_v15  ;;  %v2517_v63 = vld [vmem:[#allocation2 + $0x190] sm:$0xff] }
 0x51d   : > { %3155 = vst.msk [vmem:[#allocation2 + $0x178] sm:$0xff] %vm3107_vm2, %v3026_v56  ;;  %2953 = vmax.xlane.f32.xlu1 %v2952_v13  ;;  %v2964_v13 = vmax.f32 %v11336_v38, %v11338_v52 }
 0x51e   : > { %3154 = vst.msk [vmem:[#allocation2 + $0x170] sm:$0xff] %vm3107_vm2, %v3025_v40  ;;  %2950 = vmax.xlane.f32.xlu0 %v2949_v22  ;;  %v2744_v26 = vpop.xlane.xlu1 %2743  ;;  %v15199_v22 = vld [vmem:[#allocation209_spill] sm:$0xff] }
 0x51f   : > { %v2741_v20 = vpop.xlane.xlu0 %2740  ;;  %v3028_v5 = vmax.f32 %v2516_v10, %v2744_v26  ;;  %v2961_v48 = vmax.f32 %v15199_v22, %v11334_v51  ;;  %v2520_v10 = vld [vmem:[#allocation2 + $0x1a8] sm:$0xff] }
 0x520   : > { %v3027_v37 = vmax.f32 %v2515_v11, %v2741_v20  ;;  %v2519_v11 = vld [vmem:[#allocation2 + $0x1a0] sm:$0xff] }
 0x521   : > { %3157 = vst.msk [vmem:[#allocation2 + $0x188] sm:$0xff] %vm3107_vm2, %v3028_v5  ;;  %2959 = vmax.xlane.f32.xlu1 %v2958_v0  ;;  %v15200_v0 = vld [vmem:[#allocation211_spill] sm:$0xff] }
 0x522   : > { %3156 = vst.msk [vmem:[#allocation2 + $0x180] sm:$0xff] %vm3107_vm2, %v3027_v37  ;;  %2956 = vmax.xlane.f32.xlu0 %v2955_v35  ;;  %v2750_v15 = vpop.xlane.xlu1 %2749  ;;  %v2967_v31 = vmax.f32 %v15201_v58, %v15200_v0  ;;  %v2522_v37 = vld [vmem:[#allocation2 + $0x1b8] sm:$0xff] }
 0x523   : > { %v2747_v56 = vpop.xlane.xlu0 %2746  ;;  %v3030_v40 = vmax.f32 %v2518_v27, %v2750_v15  ;;  %v2521_v27 = vld [vmem:[#allocation2 + $0x1b0] sm:$0xff]  ;;  %v15205_v15 = vld [vmem:[#allocation212_spill] sm:$0xff] }
 0x524   : > { %v3029_v49 = vmax.f32 %v2517_v63, %v2747_v56  ;;  %v15202_v63 = vld [vmem:[#allocation215_spill] sm:$0xff] }
 0x525   : > { %3159 = vst.msk [vmem:[#allocation2 + $0x198] sm:$0xff] %vm3107_vm2, %v3030_v40  ;;  %2965 = vmax.xlane.f32.xlu1 %v2964_v13  ;;  %v15203_v13 = vld [vmem:[#allocation214_spill] sm:$0xff] }
 0x526   : > { %3158 = vst.msk [vmem:[#allocation2 + $0x190] sm:$0xff] %vm3107_vm2, %v3029_v49  ;;  %2962 = vmax.xlane.f32.xlu0 %v2961_v48  ;;  %v2756_v35 = vpop.xlane.xlu1 %2755  ;;  %v2976_v22 = vmax.f32 %v15203_v13, %v15202_v63  ;;  %v15204_v48 = vld [vmem:[#allocation213_spill] sm:$0xff] }
 0x527   : > { %v2753_v26 = vpop.xlane.xlu0 %2752  ;;  %v3032_v20 = vmax.f32 %v2520_v10, %v2756_v35  ;;  %v2973_v56 = vmax.f32 %v15205_v15, %v15204_v48  ;;  %v2524_v10 = vld [vmem:[#allocation2 + $0x1c8] sm:$0xff]  ;;  %v2527_v15 = vld [vmem:[#allocation2 + $0x1e0] sm:$0xff] }
 0x528   : > { %v3031_v5 = vmax.f32 %v2519_v11, %v2753_v26  ;;  %v2523_v11 = vld [vmem:[#allocation2 + $0x1c0] sm:$0xff]  ;;  %v2528_v48 = vld [vmem:[#allocation2 + $0x1e8] sm:$0xff] }
 0x529   : > { %3161 = vst.msk [vmem:[#allocation2 + $0x1a8] sm:$0xff] %vm3107_vm2, %v3032_v20  ;;  %2971 = vmax.xlane.f32.xlu1 %v2970_v17  ;;  %v2526_v20 = vld [vmem:[#allocation2 + $0x1d8] sm:$0xff] }
 0x52a   : > { %3160 = vst.msk [vmem:[#allocation2 + $0x1a0] sm:$0xff] %vm3107_vm2, %v3031_v5  ;;  %2968 = vmax.xlane.f32.xlu0 %v2967_v31  ;;  %v2762_v40 = vpop.xlane.xlu1 %2761  ;;  %v2525_v5 = vld [vmem:[#allocation2 + $0x1d0] sm:$0xff] }
 0x52b   : > { %v2759_v49 = vpop.xlane.xlu0 %2758  ;;  %v3034_v0 = vmax.f32 %v2522_v37, %v2762_v40 }
 0x52c   : > { %v3033_v58 = vmax.f32 %v2521_v27, %v2759_v49 }
 0x52d   : > { %3163 = vst.msk [vmem:[#allocation2 + $0x1b8] sm:$0xff] %vm3107_vm2, %v3034_v0  ;;  %2977 = vmax.xlane.f32.xlu1 %v2976_v22  ;;  %v2530_v0 = vld [vmem:[#allocation2 + $0x1f8] sm:$0xff] }
 0x52e   : > { %3162 = vst.msk [vmem:[#allocation2 + $0x1b0] sm:$0xff] %vm3107_vm2, %v3033_v58  ;;  %2974 = vmax.xlane.f32.xlu0 %v2973_v56  ;;  %v2768_v17 = vpop.xlane.xlu1 %2767  ;;  %v2529_v58 = vld [vmem:[#allocation2 + $0x1f0] sm:$0xff] }
 0x52f   : > { %v2765_v31 = vpop.xlane.xlu0 %2764  ;;  %v3036_v35 = vmax.f32 %v2524_v10, %v2768_v17 }
 0x530   : > { %v3035_v26 = vmax.f32 %v2523_v11, %v2765_v31 }
 0x531   : > { %3165 = vst.msk [vmem:[#allocation2 + $0x1c8] sm:$0xff] %vm3107_vm2, %v3036_v35  ;;  %v2532_v35 = vld [vmem:[#allocation2 + $0x208] sm:$0xff] }
 0x532   : > { %3164 = vst.msk [vmem:[#allocation2 + $0x1c0] sm:$0xff] %vm3107_vm2, %v3035_v26  ;;  %v2774_v37 = vpop.xlane.xlu1 %2773  ;;  %v2531_v26 = vld [vmem:[#allocation2 + $0x200] sm:$0xff] }
 0x533   : > { %v2771_v27 = vpop.xlane.xlu0 %2770  ;;  %v3038_v63 = vmax.f32 %v2526_v20, %v2774_v37 }
 0x534   : > { %v3037_v13 = vmax.f32 %v2525_v5, %v2771_v27 }
 0x535   : > { %3167 = vst.msk [vmem:[#allocation2 + $0x1d8] sm:$0xff] %vm3107_vm2, %v3038_v63  ;;  %v2534_v63 = vld [vmem:[#allocation2 + $0x218] sm:$0xff] }
 0x536   : > { %3166 = vst.msk [vmem:[#allocation2 + $0x1d0] sm:$0xff] %vm3107_vm2, %v3037_v13  ;;  %v2780_v22 = vpop.xlane.xlu1 %2779  ;;  %v2533_v13 = vld [vmem:[#allocation2 + $0x210] sm:$0xff] }
 0x537   : > { %v2777_v56 = vpop.xlane.xlu0 %2776  ;;  %v3040_v40 = vmax.f32 %v2528_v48, %v2780_v22 }
 0x538   : > { %v3039_v49 = vmax.f32 %v2527_v15, %v2777_v56 }
 0x539   : > { %3169 = vst.msk [vmem:[#allocation2 + $0x1e8] sm:$0xff] %vm3107_vm2, %v3040_v40  ;;  %v2536_v40 = vld [vmem:[#allocation2 + $0x228] sm:$0xff] }
 0x53a   : > { %3168 = vst.msk [vmem:[#allocation2 + $0x1e0] sm:$0xff] %vm3107_vm2, %v3039_v49  ;;  %v2786_v10 = vpop.xlane.xlu1 %2785  ;;  %v2535_v49 = vld [vmem:[#allocation2 + $0x220] sm:$0xff] }
 0x53b   : > { %v2783_v11 = vpop.xlane.xlu0 %2782  ;;  %v3042_v17 = vmax.f32 %v2530_v0, %v2786_v10 }
 0x53c   : > { %v3041_v31 = vmax.f32 %v2529_v58, %v2783_v11 }
 0x53d   : > { %3171 = vst.msk [vmem:[#allocation2 + $0x1f8] sm:$0xff] %vm3107_vm2, %v3042_v17  ;;  %v2538_v17 = vld [vmem:[#allocation2 + $0x238] sm:$0xff] }
 0x53e   : > { %3170 = vst.msk [vmem:[#allocation2 + $0x1f0] sm:$0xff] %vm3107_vm2, %v3041_v31  ;;  %v2792_v20 = vpop.xlane.xlu1 %2791  ;;  %v2537_v31 = vld [vmem:[#allocation2 + $0x230] sm:$0xff] }
 0x53f   : > { %v2789_v5 = vpop.xlane.xlu0 %2788  ;;  %v3044_v37 = vmax.f32 %v2532_v35, %v2792_v20 }
 0x540   : > { %v3043_v27 = vmax.f32 %v2531_v26, %v2789_v5 }
 0x541   : > { %3173 = vst.msk [vmem:[#allocation2 + $0x208] sm:$0xff] %vm3107_vm2, %v3044_v37  ;;  %v2540_v37 = vld [vmem:[#allocation2 + $0x248] sm:$0xff] }
 0x542   : > { %3172 = vst.msk [vmem:[#allocation2 + $0x200] sm:$0xff] %vm3107_vm2, %v3043_v27  ;;  %v2798_v48 = vpop.xlane.xlu1 %2797  ;;  %v2539_v27 = vld [vmem:[#allocation2 + $0x240] sm:$0xff] }
 0x543   : > { %v2795_v15 = vpop.xlane.xlu0 %2794  ;;  %v3046_v22 = vmax.f32 %v2534_v63, %v2798_v48 }
 0x544   : > { %v3045_v56 = vmax.f32 %v2533_v13, %v2795_v15 }
 0x545   : > { %3175 = vst.msk [vmem:[#allocation2 + $0x218] sm:$0xff] %vm3107_vm2, %v3046_v22  ;;  %v2542_v22 = vld [vmem:[#allocation2 + $0x258] sm:$0xff] }
 0x546   : > { %3174 = vst.msk [vmem:[#allocation2 + $0x210] sm:$0xff] %vm3107_vm2, %v3045_v56  ;;  %v2804_v0 = vpop.xlane.xlu1 %2803  ;;  %v2541_v56 = vld [vmem:[#allocation2 + $0x250] sm:$0xff] }
 0x547   : > { %v2801_v58 = vpop.xlane.xlu0 %2800  ;;  %v3048_v10 = vmax.f32 %v2536_v40, %v2804_v0 }
 0x548   : > { %v3047_v11 = vmax.f32 %v2535_v49, %v2801_v58 }
 0x549   : > { %3177 = vst.msk [vmem:[#allocation2 + $0x228] sm:$0xff] %vm3107_vm2, %v3048_v10  ;;  %v2544_v10 = vld [vmem:[#allocation2 + $0x268] sm:$0xff] }
 0x54a   : > { %3176 = vst.msk [vmem:[#allocation2 + $0x220] sm:$0xff] %vm3107_vm2, %v3047_v11  ;;  %v2810_v35 = vpop.xlane.xlu1 %2809  ;;  %v2543_v11 = vld [vmem:[#allocation2 + $0x260] sm:$0xff] }
 0x54b   : > { %v2807_v26 = vpop.xlane.xlu0 %2806  ;;  %v3050_v20 = vmax.f32 %v2538_v17, %v2810_v35 }
 0x54c   : > { %v3049_v5 = vmax.f32 %v2537_v31, %v2807_v26 }
 0x54d   : > { %3179 = vst.msk [vmem:[#allocation2 + $0x238] sm:$0xff] %vm3107_vm2, %v3050_v20  ;;  %v2546_v20 = vld [vmem:[#allocation2 + $0x278] sm:$0xff] }
 0x54e   : > { %3178 = vst.msk [vmem:[#allocation2 + $0x230] sm:$0xff] %vm3107_vm2, %v3049_v5  ;;  %v2816_v63 = vpop.xlane.xlu1 %2815  ;;  %v2545_v5 = vld [vmem:[#allocation2 + $0x270] sm:$0xff] }
 0x54f   : > { %v2813_v13 = vpop.xlane.xlu0 %2812  ;;  %v3052_v48 = vmax.f32 %v2540_v37, %v2816_v63 }
 0x550   : > { %v3051_v15 = vmax.f32 %v2539_v27, %v2813_v13 }
 0x551   : > { %3181 = vst.msk [vmem:[#allocation2 + $0x248] sm:$0xff] %vm3107_vm2, %v3052_v48  ;;  %v2548_v48 = vld [vmem:[#allocation2 + $0x288] sm:$0xff] }
 0x552   : > { %3180 = vst.msk [vmem:[#allocation2 + $0x240] sm:$0xff] %vm3107_vm2, %v3051_v15  ;;  %v2822_v40 = vpop.xlane.xlu1 %2821  ;;  %v2547_v15 = vld [vmem:[#allocation2 + $0x280] sm:$0xff] }
 0x553   : > { %v2819_v49 = vpop.xlane.xlu0 %2818  ;;  %v3054_v0 = vmax.f32 %v2542_v22, %v2822_v40 }
 0x554   : > { %v3053_v58 = vmax.f32 %v2541_v56, %v2819_v49 }
 0x555   : > { %3183 = vst.msk [vmem:[#allocation2 + $0x258] sm:$0xff] %vm3107_vm2, %v3054_v0  ;;  %v2550_v0 = vld [vmem:[#allocation2 + $0x298] sm:$0xff] }
 0x556   : > { %3182 = vst.msk [vmem:[#allocation2 + $0x250] sm:$0xff] %vm3107_vm2, %v3053_v58  ;;  %v2828_v17 = vpop.xlane.xlu1 %2827  ;;  %v2549_v58 = vld [vmem:[#allocation2 + $0x290] sm:$0xff] }
 0x557   : > { %v2825_v31 = vpop.xlane.xlu0 %2824  ;;  %v3056_v35 = vmax.f32 %v2544_v10, %v2828_v17 }
 0x558   : > { %v3055_v26 = vmax.f32 %v2543_v11, %v2825_v31 }
 0x559   : > { %3185 = vst.msk [vmem:[#allocation2 + $0x268] sm:$0xff] %vm3107_vm2, %v3056_v35  ;;  %v2552_v35 = vld [vmem:[#allocation2 + $0x2a8] sm:$0xff] }
 0x55a   : > { %3184 = vst.msk [vmem:[#allocation2 + $0x260] sm:$0xff] %vm3107_vm2, %v3055_v26  ;;  %v2834_v37 = vpop.xlane.xlu1 %2833  ;;  %v2551_v26 = vld [vmem:[#allocation2 + $0x2a0] sm:$0xff] }
 0x55b   : > { %v2831_v27 = vpop.xlane.xlu0 %2830  ;;  %v3058_v63 = vmax.f32 %v2546_v20, %v2834_v37 }
 0x55c   : > { %v3057_v13 = vmax.f32 %v2545_v5, %v2831_v27 }
 0x55d   : > { %3187 = vst.msk [vmem:[#allocation2 + $0x278] sm:$0xff] %vm3107_vm2, %v3058_v63  ;;  %v2554_v63 = vld [vmem:[#allocation2 + $0x2b8] sm:$0xff] }
 0x55e   : > { %3186 = vst.msk [vmem:[#allocation2 + $0x270] sm:$0xff] %vm3107_vm2, %v3057_v13  ;;  %v2840_v22 = vpop.xlane.xlu1 %2839  ;;  %v2553_v13 = vld [vmem:[#allocation2 + $0x2b0] sm:$0xff] }
 0x55f   : > { %v2837_v56 = vpop.xlane.xlu0 %2836  ;;  %v3060_v40 = vmax.f32 %v2548_v48, %v2840_v22 }
 0x560   : > { %v3059_v49 = vmax.f32 %v2547_v15, %v2837_v56 }
 0x561   : > { %3189 = vst.msk [vmem:[#allocation2 + $0x288] sm:$0xff] %vm3107_vm2, %v3060_v40  ;;  %v2556_v40 = vld [vmem:[#allocation2 + $0x2c8] sm:$0xff] }
 0x562   : > { %3188 = vst.msk [vmem:[#allocation2 + $0x280] sm:$0xff] %vm3107_vm2, %v3059_v49  ;;  %v2846_v10 = vpop.xlane.xlu1 %2845  ;;  %v2555_v49 = vld [vmem:[#allocation2 + $0x2c0] sm:$0xff] }
 0x563   : > { %v2843_v11 = vpop.xlane.xlu0 %2842  ;;  %v3062_v17 = vmax.f32 %v2550_v0, %v2846_v10 }
 0x564   : > { %v3061_v31 = vmax.f32 %v2549_v58, %v2843_v11 }
 0x565   : > { %3191 = vst.msk [vmem:[#allocation2 + $0x298] sm:$0xff] %vm3107_vm2, %v3062_v17  ;;  %v2558_v17 = vld [vmem:[#allocation2 + $0x2d8] sm:$0xff] }
 0x566   : > { %3190 = vst.msk [vmem:[#allocation2 + $0x290] sm:$0xff] %vm3107_vm2, %v3061_v31  ;;  %v2852_v20 = vpop.xlane.xlu1 %2851  ;;  %v2557_v31 = vld [vmem:[#allocation2 + $0x2d0] sm:$0xff] }
 0x567   : > { %v2849_v5 = vpop.xlane.xlu0 %2848  ;;  %v3064_v37 = vmax.f32 %v2552_v35, %v2852_v20 }
 0x568   : > { %v3063_v27 = vmax.f32 %v2551_v26, %v2849_v5 }
 0x569   : > { %3193 = vst.msk [vmem:[#allocation2 + $0x2a8] sm:$0xff] %vm3107_vm2, %v3064_v37  ;;  %v2560_v37 = vld [vmem:[#allocation2 + $0x2e8] sm:$0xff] }
 0x56a   : > { %3192 = vst.msk [vmem:[#allocation2 + $0x2a0] sm:$0xff] %vm3107_vm2, %v3063_v27  ;;  %v2858_v48 = vpop.xlane.xlu1 %2857  ;;  %v2559_v27 = vld [vmem:[#allocation2 + $0x2e0] sm:$0xff] }
 0x56b   : > { %v2855_v15 = vpop.xlane.xlu0 %2854  ;;  %v3066_v22 = vmax.f32 %v2554_v63, %v2858_v48 }
 0x56c   : > { %v3065_v56 = vmax.f32 %v2553_v13, %v2855_v15 }
 0x56d   : > { %3195 = vst.msk [vmem:[#allocation2 + $0x2b8] sm:$0xff] %vm3107_vm2, %v3066_v22  ;;  %v2562_v22 = vld [vmem:[#allocation2 + $0x2f8] sm:$0xff] }
 0x56e   : > { %3194 = vst.msk [vmem:[#allocation2 + $0x2b0] sm:$0xff] %vm3107_vm2, %v3065_v56  ;;  %v2864_v0 = vpop.xlane.xlu1 %2863  ;;  %v2561_v56 = vld [vmem:[#allocation2 + $0x2f0] sm:$0xff] }
 0x56f   : > { %v2861_v58 = vpop.xlane.xlu0 %2860  ;;  %v3068_v10 = vmax.f32 %v2556_v40, %v2864_v0 }
 0x570   : > { %v3067_v11 = vmax.f32 %v2555_v49, %v2861_v58 }
 0x571   : > { %3197 = vst.msk [vmem:[#allocation2 + $0x2c8] sm:$0xff] %vm3107_vm2, %v3068_v10  ;;  %v2564_v10 = vld [vmem:[#allocation2 + $0x308] sm:$0xff] }
 0x572   : > { %3196 = vst.msk [vmem:[#allocation2 + $0x2c0] sm:$0xff] %vm3107_vm2, %v3067_v11  ;;  %v2870_v35 = vpop.xlane.xlu1 %2869  ;;  %v2563_v11 = vld [vmem:[#allocation2 + $0x300] sm:$0xff] }
 0x573   : > { %v2867_v26 = vpop.xlane.xlu0 %2866  ;;  %v3070_v20 = vmax.f32 %v2558_v17, %v2870_v35 }
 0x574   : > { %v3069_v5 = vmax.f32 %v2557_v31, %v2867_v26 }
 0x575   : > { %3199 = vst.msk [vmem:[#allocation2 + $0x2d8] sm:$0xff] %vm3107_vm2, %v3070_v20  ;;  %v2566_v20 = vld [vmem:[#allocation2 + $0x318] sm:$0xff] }
 0x576   : > { %3198 = vst.msk [vmem:[#allocation2 + $0x2d0] sm:$0xff] %vm3107_vm2, %v3069_v5  ;;  %v2876_v63 = vpop.xlane.xlu1 %2875  ;;  %v2565_v5 = vld [vmem:[#allocation2 + $0x310] sm:$0xff] }
 0x577   : > { %v2873_v13 = vpop.xlane.xlu0 %2872  ;;  %v3072_v48 = vmax.f32 %v2560_v37, %v2876_v63 }
 0x578   : > { %v3071_v15 = vmax.f32 %v2559_v27, %v2873_v13 }
 0x579   : > { %3201 = vst.msk [vmem:[#allocation2 + $0x2e8] sm:$0xff] %vm3107_vm2, %v3072_v48  ;;  %v2568_v48 = vld [vmem:[#allocation2 + $0x328] sm:$0xff] }
 0x57a   : > { %3200 = vst.msk [vmem:[#allocation2 + $0x2e0] sm:$0xff] %vm3107_vm2, %v3071_v15  ;;  %v2882_v40 = vpop.xlane.xlu1 %2881  ;;  %v2567_v15 = vld [vmem:[#allocation2 + $0x320] sm:$0xff] }
 0x57b   : > { %v2879_v49 = vpop.xlane.xlu0 %2878  ;;  %v3074_v0 = vmax.f32 %v2562_v22, %v2882_v40 }
 0x57c   : > { %v3073_v58 = vmax.f32 %v2561_v56, %v2879_v49 }
 0x57d   : > { %3203 = vst.msk [vmem:[#allocation2 + $0x2f8] sm:$0xff] %vm3107_vm2, %v3074_v0  ;;  %v2570_v0 = vld [vmem:[#allocation2 + $0x338] sm:$0xff] }
 0x57e   : > { %3202 = vst.msk [vmem:[#allocation2 + $0x2f0] sm:$0xff] %vm3107_vm2, %v3073_v58  ;;  %v2888_v17 = vpop.xlane.xlu1 %2887  ;;  %v2569_v58 = vld [vmem:[#allocation2 + $0x330] sm:$0xff] }
 0x57f   : > { %v2885_v31 = vpop.xlane.xlu0 %2884  ;;  %v3076_v35 = vmax.f32 %v2564_v10, %v2888_v17 }
 0x580   : > { %v3075_v26 = vmax.f32 %v2563_v11, %v2885_v31 }
 0x581   : > { %3205 = vst.msk [vmem:[#allocation2 + $0x308] sm:$0xff] %vm3107_vm2, %v3076_v35  ;;  %v2572_v35 = vld [vmem:[#allocation2 + $0x348] sm:$0xff] }
 0x582   : > { %3204 = vst.msk [vmem:[#allocation2 + $0x300] sm:$0xff] %vm3107_vm2, %v3075_v26  ;;  %v2894_v37 = vpop.xlane.xlu1 %2893  ;;  %v2571_v26 = vld [vmem:[#allocation2 + $0x340] sm:$0xff] }
 0x583   : > { %v2891_v27 = vpop.xlane.xlu0 %2890  ;;  %v3078_v63 = vmax.f32 %v2566_v20, %v2894_v37 }
 0x584   : > { %v3077_v13 = vmax.f32 %v2565_v5, %v2891_v27 }
 0x585   : > { %3207 = vst.msk [vmem:[#allocation2 + $0x318] sm:$0xff] %vm3107_vm2, %v3078_v63  ;;  %v2574_v63 = vld [vmem:[#allocation2 + $0x358] sm:$0xff] }
 0x586   : > { %3206 = vst.msk [vmem:[#allocation2 + $0x310] sm:$0xff] %vm3107_vm2, %v3077_v13  ;;  %v2900_v22 = vpop.xlane.xlu1 %2899  ;;  %v2573_v13 = vld [vmem:[#allocation2 + $0x350] sm:$0xff] }
 0x587   : > { %v2897_v56 = vpop.xlane.xlu0 %2896  ;;  %v3080_v40 = vmax.f32 %v2568_v48, %v2900_v22 }
 0x588   : > { %v3079_v49 = vmax.f32 %v2567_v15, %v2897_v56 }
 0x589   : > { %3209 = vst.msk [vmem:[#allocation2 + $0x328] sm:$0xff] %vm3107_vm2, %v3080_v40  ;;  %v2576_v40 = vld [vmem:[#allocation2 + $0x368] sm:$0xff] }
 0x58a   : > { %3208 = vst.msk [vmem:[#allocation2 + $0x320] sm:$0xff] %vm3107_vm2, %v3079_v49  ;;  %v2906_v10 = vpop.xlane.xlu1 %2905  ;;  %v2575_v49 = vld [vmem:[#allocation2 + $0x360] sm:$0xff] }
 0x58b   : > { %v2903_v11 = vpop.xlane.xlu0 %2902  ;;  %v3082_v17 = vmax.f32 %v2570_v0, %v2906_v10 }
 0x58c   : > { %v3081_v31 = vmax.f32 %v2569_v58, %v2903_v11 }
 0x58d   : > { %3211 = vst.msk [vmem:[#allocation2 + $0x338] sm:$0xff] %vm3107_vm2, %v3082_v17  ;;  %v2578_v17 = vld [vmem:[#allocation2 + $0x378] sm:$0xff] }
 0x58e   : > { %3210 = vst.msk [vmem:[#allocation2 + $0x330] sm:$0xff] %vm3107_vm2, %v3081_v31  ;;  %v2912_v20 = vpop.xlane.xlu1 %2911  ;;  %v2577_v31 = vld [vmem:[#allocation2 + $0x370] sm:$0xff] }
 0x58f   : > { %v2909_v5 = vpop.xlane.xlu0 %2908  ;;  %v3084_v37 = vmax.f32 %v2572_v35, %v2912_v20 }
 0x590   : > { %v3083_v27 = vmax.f32 %v2571_v26, %v2909_v5 }
 0x591   : > { %3213 = vst.msk [vmem:[#allocation2 + $0x348] sm:$0xff] %vm3107_vm2, %v3084_v37  ;;  %v2580_v37 = vld [vmem:[#allocation2 + $0x388] sm:$0xff] }
 0x592   : > { %3212 = vst.msk [vmem:[#allocation2 + $0x340] sm:$0xff] %vm3107_vm2, %v3083_v27  ;;  %v2918_v48 = vpop.xlane.xlu1 %2917  ;;  %v2579_v27 = vld [vmem:[#allocation2 + $0x380] sm:$0xff] }
 0x593   : > { %v2915_v15 = vpop.xlane.xlu0 %2914  ;;  %v3086_v22 = vmax.f32 %v2574_v63, %v2918_v48 }
 0x594   : > { %v3085_v56 = vmax.f32 %v2573_v13, %v2915_v15 }
 0x595   : > { %3215 = vst.msk [vmem:[#allocation2 + $0x358] sm:$0xff] %vm3107_vm2, %v3086_v22  ;;  %v2582_v22 = vld [vmem:[#allocation2 + $0x398] sm:$0xff] }
 0x596   : > { %3214 = vst.msk [vmem:[#allocation2 + $0x350] sm:$0xff] %vm3107_vm2, %v3085_v56  ;;  %v2924_v0 = vpop.xlane.xlu1 %2923  ;;  %v2581_v56 = vld [vmem:[#allocation2 + $0x390] sm:$0xff] }
 0x597   : > { %v2921_v58 = vpop.xlane.xlu0 %2920  ;;  %v3088_v10 = vmax.f32 %v2576_v40, %v2924_v0 }
 0x598   : > { %v3087_v11 = vmax.f32 %v2575_v49, %v2921_v58 }
 0x599   : > { %3217 = vst.msk [vmem:[#allocation2 + $0x368] sm:$0xff] %vm3107_vm2, %v3088_v10  ;;  %v2584_v10 = vld [vmem:[#allocation2 + $0x3a8] sm:$0xff] }
 0x59a   : > { %3216 = vst.msk [vmem:[#allocation2 + $0x360] sm:$0xff] %vm3107_vm2, %v3087_v11  ;;  %v2930_v35 = vpop.xlane.xlu1 %2929  ;;  %v2583_v11 = vld [vmem:[#allocation2 + $0x3a0] sm:$0xff] }
 0x59b   : > { %v2927_v26 = vpop.xlane.xlu0 %2926  ;;  %v3090_v20 = vmax.f32 %v2578_v17, %v2930_v35 }
 0x59c   : > { %v3089_v5 = vmax.f32 %v2577_v31, %v2927_v26 }
 0x59d   : > { %3219 = vst.msk [vmem:[#allocation2 + $0x378] sm:$0xff] %vm3107_vm2, %v3090_v20  ;;  %v2586_v20 = vld [vmem:[#allocation2 + $0x3b8] sm:$0xff] }
 0x59e   : > { %3218 = vst.msk [vmem:[#allocation2 + $0x370] sm:$0xff] %vm3107_vm2, %v3089_v5  ;;  %v2936_v63 = vpop.xlane.xlu1 %2935  ;;  %v2585_v5 = vld [vmem:[#allocation2 + $0x3b0] sm:$0xff] }
 0x59f   : > { %v2933_v13 = vpop.xlane.xlu0 %2932  ;;  %v3092_v48 = vmax.f32 %v2580_v37, %v2936_v63 }
 0x5a0   : > { %v3091_v15 = vmax.f32 %v2579_v27, %v2933_v13 }
 0x5a1   : > { %3221 = vst.msk [vmem:[#allocation2 + $0x388] sm:$0xff] %vm3107_vm2, %v3092_v48  ;;  %v2588_v48 = vld [vmem:[#allocation2 + $0x3c8] sm:$0xff] }
 0x5a2   : > { %3220 = vst.msk [vmem:[#allocation2 + $0x380] sm:$0xff] %vm3107_vm2, %v3091_v15  ;;  %v2942_v40 = vpop.xlane.xlu1 %2941  ;;  %v2587_v15 = vld [vmem:[#allocation2 + $0x3c0] sm:$0xff] }
 0x5a3   : > { %v2939_v49 = vpop.xlane.xlu0 %2938  ;;  %v3094_v0 = vmax.f32 %v2582_v22, %v2942_v40 }
 0x5a4   : > { %v3093_v58 = vmax.f32 %v2581_v56, %v2939_v49 }
 0x5a5   : > { %3223 = vst.msk [vmem:[#allocation2 + $0x398] sm:$0xff] %vm3107_vm2, %v3094_v0  ;;  %v2590_v0 = vld [vmem:[#allocation2 + $0x3d8] sm:$0xff] }
 0x5a6   : > { %3222 = vst.msk [vmem:[#allocation2 + $0x390] sm:$0xff] %vm3107_vm2, %v3093_v58  ;;  %v2948_v17 = vpop.xlane.xlu1 %2947  ;;  %v2589_v58 = vld [vmem:[#allocation2 + $0x3d0] sm:$0xff] }
 0x5a7   : > { %v2945_v31 = vpop.xlane.xlu0 %2944  ;;  %v3096_v35 = vmax.f32 %v2584_v10, %v2948_v17 }
 0x5a8   : > { %v3095_v26 = vmax.f32 %v2583_v11, %v2945_v31 }
 0x5a9   : > { %3225 = vst.msk [vmem:[#allocation2 + $0x3a8] sm:$0xff] %vm3107_vm2, %v3096_v35  ;;  %v2592_v35 = vld [vmem:[#allocation2 + $0x3e8] sm:$0xff] }
 0x5aa   : > { %3224 = vst.msk [vmem:[#allocation2 + $0x3a0] sm:$0xff] %vm3107_vm2, %v3095_v26  ;;  %v2954_v37 = vpop.xlane.xlu1 %2953  ;;  %v2591_v26 = vld [vmem:[#allocation2 + $0x3e0] sm:$0xff] }
 0x5ab   : > { %v2951_v27 = vpop.xlane.xlu0 %2950  ;;  %v3098_v63 = vmax.f32 %v2586_v20, %v2954_v37 }
 0x5ac   : > { %v3097_v13 = vmax.f32 %v2585_v5, %v2951_v27 }
 0x5ad   : > { %3227 = vst.msk [vmem:[#allocation2 + $0x3b8] sm:$0xff] %vm3107_vm2, %v3098_v63  ;;  %v2594_v63 = vld [vmem:[#allocation2 + $0x3f8] sm:$0xff] }
 0x5ae   : > { %3226 = vst.msk [vmem:[#allocation2 + $0x3b0] sm:$0xff] %vm3107_vm2, %v3097_v13  ;;  %v2960_v22 = vpop.xlane.xlu1 %2959  ;;  %v2593_v13 = vld [vmem:[#allocation2 + $0x3f0] sm:$0xff] }
 0x5af   : > { %v2957_v56 = vpop.xlane.xlu0 %2956  ;;  %v3100_v40 = vmax.f32 %v2588_v48, %v2960_v22 }
 0x5b0   : > { %v3099_v49 = vmax.f32 %v2587_v15, %v2957_v56 }
 0x5b1   : > { %3229 = vst.msk [vmem:[#allocation2 + $0x3c8] sm:$0xff] %vm3107_vm2, %v3100_v40 }
 0x5b2   : > { %3228 = vst.msk [vmem:[#allocation2 + $0x3c0] sm:$0xff] %vm3107_vm2, %v3099_v49  ;;  %v2966_v10 = vpop.xlane.xlu1 %2965 }
 0x5b3   : > { %v2963_v11 = vpop.xlane.xlu0 %2962  ;;  %v3102_v17 = vmax.f32 %v2590_v0, %v2966_v10 }
 0x5b4   : > { %v3101_v31 = vmax.f32 %v2589_v58, %v2963_v11 }
 0x5b5   : > { %3231 = vst.msk [vmem:[#allocation2 + $0x3d8] sm:$0xff] %vm3107_vm2, %v3102_v17 }
 0x5b6   : > { %3230 = vst.msk [vmem:[#allocation2 + $0x3d0] sm:$0xff] %vm3107_vm2, %v3101_v31  ;;  %v2972_v20 = vpop.xlane.xlu1 %2971 }
 0x5b7   : > { %v2969_v5 = vpop.xlane.xlu0 %2968  ;;  %v3104_v37 = vmax.f32 %v2592_v35, %v2972_v20 }
 0x5b8   : > { %v3103_v27 = vmax.f32 %v2591_v26, %v2969_v5 }
 0x5b9   : > { %3233 = vst.msk [vmem:[#allocation2 + $0x3e8] sm:$0xff] %vm3107_vm2, %v3104_v37 }
 0x5ba   : > { %3232 = vst.msk [vmem:[#allocation2 + $0x3e0] sm:$0xff] %vm3107_vm2, %v3103_v27  ;;  %v2978_v48 = vpop.xlane.xlu1 %2977 }
 0x5bb   : > { %v2975_v15 = vpop.xlane.xlu0 %2974  ;;  %v3106_v22 = vmax.f32 %v2594_v63, %v2978_v48 }
 0x5bc   : > { %v3105_v56 = vmax.f32 %v2593_v13, %v2975_v15 }
 0x5bd   : > { %3235 = vst.msk [vmem:[#allocation2 + $0x3f8] sm:$0xff] %vm3107_vm2, %v3106_v22 }
 0x5be   : > { %3234 = vst.msk [vmem:[#allocation2 + $0x3f0] sm:$0xff] %vm3107_vm2, %v3105_v56 }
 0x5bf PF: > { %p8704_p9 = scmp.ne.s32.totalorder %s9962_s25, 2 }
 0x5c0   : > { %v15206_v40 = vlaneseq (!%p8704_p9)  ;;  %v15207_v58 = vld [vmem:[#allocation104_spill] sm:$0xff] (!%p8704_p9)  ;;  %v15211_v5 = vld [vmem:[#allocation102_spill] sm:$0xff] (!%p8704_p9)  ;;  %vm4140_vm4 = vcmask (!%p8704_p9), 7168   ;;  %vm8539_vm5 = vcmask (!%p8704_p9), 0  }
 0x5c1   : > { %3238 = sbr.rel (%p8704_p9) target bundleno = 3138 (0xc42), region = 84  ;;  %v15208_v11 = vld [vmem:[#allocation96_spill] sm:$0xff] (!%p8704_p9)  ;;  %v15212_v27 = vld [vmem:[#allocation94_spill] sm:$0xff] (!%p8704_p9) }
 0x5c2   : > { %v3240_v49 = vand.u32 (!%p8704_p9), 127, %v15206_v40  ;;  %v15209_v31 = vld [vmem:[#allocation108_spill] sm:$0xff] (!%p8704_p9)  ;;  %v15213_v13 = vld [vmem:[#allocation106_spill] sm:$0xff] (!%p8704_p9) }
 0x5c3   : > { %v15210_v26 = vld [vmem:[#allocation100_spill] sm:$0xff] (!%p8704_p9)  ;;  %v15214_v15 = vld [vmem:[#allocation98_spill] sm:$0xff] (!%p8704_p9) }
 0x5c4   : > { %v11743_v0 = vadd.s32 (!%p8704_p9), 128, %v3240_v49  ;;  %v15215_v56 = vld [vmem:[#allocation116_spill] sm:$0xff] (!%p8704_p9) }
 0x5c5   : > { %v15216_v49 = vld [vmem:[#allocation112_spill] sm:$0xff] (!%p8704_p9) }
 0x5c6   : > { %vm3243_vm3 = vcmp.lt.s32.totalorder (!%p8704_p9), %v11743_v0, 188 }
 0x5c7   : > { %v3313_v10 = vsel (!%p8704_p9), %vm3243_vm3, %v15207_v58, -inf  ;;  %v3309_v17 = vsel (!%p8704_p9), %vm3243_vm3, %v15208_v11, -inf  ;;  %v3315_v35 = vsel (!%p8704_p9), %vm3243_vm3, %v15209_v31, -inf  ;;  %v3311_v20 = vsel (!%p8704_p9), %vm3243_vm3, %v15210_v26, -inf  ;;  %v15217_v11 = vld [vmem:[#allocation114_spill] sm:$0xff] (!%p8704_p9)  ;;  %v15219_v26 = vld [vmem:[#allocation124_spill] sm:$0xff] (!%p8704_p9) }
 0x5c8   : > { %v3730_v37 = vmax.f32 %v15211_v5, %v3313_v10  ;;  %v3724_v63 = vmax.f32 %v15212_v27, %v3309_v17  ;;  %v3733_v48 = vmax.f32 %v15213_v13, %v3315_v35  ;;  %v3727_v22 = vmax.f32 %v15214_v15, %v3311_v20  ;;  %v15218_v31 = vld [vmem:[#allocation110_spill] sm:$0xff]  ;;  %v15220_v5 = vld [vmem:[#allocation120_spill] sm:$0xff] }
 0x5c9   : > { %v3319_v40 = vsel %vm3243_vm3, %v15215_v56, -inf  ;;  %v3317_v58 = vsel %vm3243_vm3, %v15216_v49, -inf  ;;  %v3323_v35 = vsel %vm3243_vm3, %v15219_v26, -inf  ;;  %v3321_v20 = vsel %vm3243_vm3, %v15220_v5, -inf }
 0x5ca   : > { %3731 = vmax.xlane.f32.xlu1 %v3730_v37  ;;  %3725 = vmax.xlane.f32.xlu0 %v3724_v63  ;;  %v3739_v10 = vmax.f32 %v15217_v11, %v3319_v40  ;;  %v3736_v17 = vmax.f32 %v15218_v31, %v3317_v58  ;;  %v15221_v37 = vld [vmem:[#allocation122_spill] sm:$0xff] }
 0x5cb   : > { %v3745_v27 = vmax.f32 %v15221_v37, %v3323_v35  ;;  %v15222_v63 = vld [vmem:[#allocation118_spill] sm:$0xff] }
 0x5cc   : > { %v3742_v13 = vmax.f32 %v15222_v63, %v3321_v20  ;;  %v15225_v40 = vld [vmem:[#allocation130_spill] sm:$0xff] }
 0x5cd   : > { %v15226_v58 = vld [vmem:[#allocation126_spill] sm:$0xff] }
 0x5ce   : > { %3734 = vmax.xlane.f32.xlu1 %v3733_v48  ;;  %3728 = vmax.xlane.f32.xlu0 %v3727_v22  ;;  %v15223_v48 = vld [vmem:[#allocation132_spill] sm:$0xff]  ;;  %v15229_v35 = vld [vmem:[#allocation138_spill] sm:$0xff] }
 0x5cf   : > { %v3327_v15 = vsel %vm3243_vm3, %v15223_v48, -inf  ;;  %v15224_v22 = vld [vmem:[#allocation128_spill] sm:$0xff]  ;;  %v15230_v20 = vld [vmem:[#allocation134_spill] sm:$0xff] }
 0x5d0   : > { %v3325_v56 = vsel %vm3243_vm3, %v15224_v22, -inf  ;;  %v3751_v49 = vmax.f32 %v15225_v40, %v3327_v15  ;;  %v15233_v15 = vld [vmem:[#allocation146_spill] sm:$0xff] }
 0x5d1   : > { %v3748_v11 = vmax.f32 %v15226_v58, %v3325_v56  ;;  %v15234_v56 = vld [vmem:[#allocation142_spill] sm:$0xff] }
 0x5d2   : > { %3740 = vmax.xlane.f32.xlu1 %v3739_v10  ;;  %3737 = vmax.xlane.f32.xlu0 %v3736_v17  ;;  %v15227_v10 = vld [vmem:[#allocation140_spill] sm:$0xff] }
 0x5d3   : > { %v3331_v31 = vsel %vm3243_vm3, %v15227_v10, -inf  ;;  %v15228_v17 = vld [vmem:[#allocation136_spill] sm:$0xff] }
 0x5d4   : > { %v3329_v26 = vsel %vm3243_vm3, %v15228_v17, -inf  ;;  %v3757_v5 = vmax.f32 %v15229_v35, %v3331_v31  ;;  %v15237_v31 = vld [vmem:[#allocation154_spill] sm:$0xff] }
 0x5d5   : > { %v3754_v37 = vmax.f32 %v15230_v20, %v3329_v26  ;;  %v15238_v26 = vld [vmem:[#allocation150_spill] sm:$0xff] }
 0x5d6   : > { %3746 = vmax.xlane.f32.xlu1 %v3745_v27  ;;  %3743 = vmax.xlane.f32.xlu0 %v3742_v13  ;;  %v15231_v27 = vld [vmem:[#allocation148_spill] sm:$0xff] }
 0x5d7   : > { %v3335_v63 = vsel %vm3243_vm3, %v15231_v27, -inf  ;;  %v15232_v13 = vld [vmem:[#allocation144_spill] sm:$0xff] }
 0x5d8   : > { %v3333_v48 = vsel %vm3243_vm3, %v15232_v13, -inf  ;;  %v3763_v22 = vmax.f32 %v15233_v15, %v3335_v63  ;;  %v15241_v63 = vld [vmem:[#allocation162_spill] sm:$0xff] }
 0x5d9   : > { %v3760_v40 = vmax.f32 %v15234_v56, %v3333_v48  ;;  %v15242_v48 = vld [vmem:[#allocation158_spill] sm:$0xff] }
 0x5da   : > { %3752 = vmax.xlane.f32.xlu1 %v3751_v49  ;;  %3749 = vmax.xlane.f32.xlu0 %v3748_v11  ;;  %v15235_v49 = vld [vmem:[#allocation156_spill] sm:$0xff] }
 0x5db   : > { %v3339_v58 = vsel %vm3243_vm3, %v15235_v49, -inf  ;;  %v15236_v11 = vld [vmem:[#allocation152_spill] sm:$0xff] }
 0x5dc   : > { %v3337_v10 = vsel %vm3243_vm3, %v15236_v11, -inf  ;;  %v3769_v17 = vmax.f32 %v15237_v31, %v3339_v58  ;;  %v15245_v58 = vld [vmem:[#allocation170_spill] sm:$0xff] }
 0x5dd   : > { %v3766_v35 = vmax.f32 %v15238_v26, %v3337_v10  ;;  %v15246_v10 = vld [vmem:[#allocation166_spill] sm:$0xff] }
 0x5de   : > { %3758 = vmax.xlane.f32.xlu1 %v3757_v5  ;;  %3755 = vmax.xlane.f32.xlu0 %v3754_v37  ;;  %v15239_v5 = vld [vmem:[#allocation164_spill] sm:$0xff] }
 0x5df   : > { %v3343_v20 = vsel %vm3243_vm3, %v15239_v5, -inf  ;;  %v15240_v37 = vld [vmem:[#allocation160_spill] sm:$0xff] }
 0x5e0   : > { %v3341_v27 = vsel %vm3243_vm3, %v15240_v37, -inf  ;;  %v3775_v13 = vmax.f32 %v15241_v63, %v3343_v20  ;;  %v15249_v20 = vld [vmem:[#allocation178_spill] sm:$0xff] }
 0x5e1   : > { %v3772_v15 = vmax.f32 %v15242_v48, %v3341_v27  ;;  %v15250_v27 = vld [vmem:[#allocation174_spill] sm:$0xff] }
 0x5e2   : > { %3764 = vmax.xlane.f32.xlu1 %v3763_v22  ;;  %3761 = vmax.xlane.f32.xlu0 %v3760_v40  ;;  %v15243_v22 = vld [vmem:[#allocation172_spill] sm:$0xff] }
 0x5e3   : > { %v3347_v56 = vsel %vm3243_vm3, %v15243_v22, -inf  ;;  %v15244_v40 = vld [vmem:[#allocation168_spill] sm:$0xff] }
 0x5e4   : > { %v3345_v49 = vsel %vm3243_vm3, %v15244_v40, -inf  ;;  %v3781_v11 = vmax.f32 %v15245_v58, %v3347_v56  ;;  %v9984_v56 = vmov 0   ;;  %v15253_v40 = vld [vmem:[#allocation186_spill] sm:$0xff] }
 0x5e5   : > { %v3778_v31 = vmax.f32 %v15246_v10, %v3345_v49  ;;  %6734 = vmatprep.subr.bf16.mxu0 %v9984_v56  ;;  %6445 = vmatprep.subr.bf16.mxu1 %v9984_v56  ;;  %v15254_v58 = vld [vmem:[#allocation182_spill] sm:$0xff]  ;;  %v15255_v10 = vld [vmem:[#allocation196_spill] sm:$0xff] }
 0x5e6   : > { %3770 = vmax.xlane.f32.xlu1 %v3769_v17  ;;  %3767 = vmax.xlane.f32.xlu0 %v3766_v35  ;;  %v15247_v17 = vld [vmem:[#allocation180_spill] sm:$0xff] }
 0x5e7   : > { %v3351_v26 = vsel %vm3243_vm3, %v15247_v17, -inf  ;;  %v15248_v35 = vld [vmem:[#allocation176_spill] sm:$0xff] }
 0x5e8   : > { %v3349_v5 = vsel %vm3243_vm3, %v15248_v35, -inf  ;;  %v3787_v37 = vmax.f32 %v15249_v20, %v3351_v26  ;;  %v15256_v17 = vld [vmem:[#allocation192_spill] sm:$0xff]  ;;  %v15257_v35 = vld [vmem:[#allocation194_spill] sm:$0xff] }
 0x5e9   : > { %v3784_v63 = vmax.f32 %v15250_v27, %v3349_v5  ;;  %v3357_v26 = vsel %vm3243_vm3, %v15256_v17, -inf  ;;  %v15258_v20 = vld [vmem:[#allocation190_spill] sm:$0xff] }
 0x5ea   : > { %3776 = vmax.xlane.f32.xlu1 %v3775_v13  ;;  %3773 = vmax.xlane.f32.xlu0 %v3772_v15  ;;  %v15251_v13 = vld [vmem:[#allocation188_spill] sm:$0xff]  ;;  %v3796_v27 = vmax.f32 %v15258_v20, %v3357_v26  ;;  %v15265_v17 = vld [vmem:[#allocation10_spill] sm:$0xff] }
 0x5eb   : > { %v3355_v48 = vsel %vm3243_vm3, %v15251_v13, -inf  ;;  %v15252_v15 = vld [vmem:[#allocation184_spill] sm:$0xff]  ;;  %v15260_v13 = vld [vmem:[#allocation5_spill] sm:$0xff] }
 0x5ec   : > { %v3353_v22 = vsel %vm3243_vm3, %v15252_v15, -inf  ;;  %v3793_v49 = vmax.f32 %v15253_v40, %v3355_v48  ;;  %v3361_v48 = vsel %vm3243_vm3, %v15260_v13, -inf  ;;  %v15261_v15 = vld [vmem:[#allocation6_spill] sm:$0xff]  ;;  %v15262_v40 = vld [vmem:[#allocation4_spill] sm:$0xff] }
 0x5ed   : > { %v15269_v13 = vld [vmem:[#allocation14_spill] sm:$0xff] }
 0x5ee   : > { %3782 = vmax.xlane.f32.xlu1 %v3781_v11  ;;  %3779 = vmax.xlane.f32.xlu0 %v3778_v31  ;;  %v3790_v11 = vmax.f32 %v15254_v58, %v3353_v22  ;;  %v3359_v31 = vsel %vm3243_vm3, %v15255_v10, -inf  ;;  %v3802_v58 = vmax.f32 %v15262_v40, %v3361_v48  ;;  %v15264_v10 = vld [vmem:[#allocation9_spill] sm:$0xff] }
 0x5ef   : > { %v3799_v5 = vmax.f32 %v15257_v35, %v3359_v31  ;;  %v3365_v31 = vsel %vm3243_vm3, %v15264_v10, -inf  ;;  %v15266_v35 = vld [vmem:[#allocation8_spill] sm:$0xff]  ;;  %v15273_v10 = vld [vmem:[#allocation18_spill] sm:$0xff] }
 0x5f0   : > { %v3808_v20 = vmax.f32 %v15266_v35, %v3365_v31 }
 0x5f2   : > { %3788 = vmax.xlane.f32.xlu1 %v3787_v37  ;;  %3785 = vmax.xlane.f32.xlu0 %v3784_v63  ;;  %v15259_v37 = vld [vmem:[#allocation7_spill] sm:$0xff] }
 0x5f3   : > { %v3363_v63 = vsel %vm3243_vm3, %v15259_v37, -inf  ;;  %v15268_v37 = vld [vmem:[#allocation13_spill] sm:$0xff] }
 0x5f4   : > { %v3805_v22 = vmax.f32 %v15261_v15, %v3363_v63  ;;  %v3369_v63 = vsel %vm3243_vm3, %v15268_v37, -inf  ;;  %v15270_v15 = vld [vmem:[#allocation12_spill] sm:$0xff]  ;;  %v15277_v37 = vld [vmem:[#allocation22_spill] sm:$0xff] }
 0x5f5   : > { %v3814_v40 = vmax.f32 %v15270_v15, %v3369_v63 }
 0x5f6   : > { %3794 = vmax.xlane.f32.xlu1 %v3793_v49  ;;  %3791 = vmax.xlane.f32.xlu0 %v3790_v11  ;;  %v15263_v49 = vld [vmem:[#allocation11_spill] sm:$0xff] }
 0x5f7   : > { %v3367_v11 = vsel %vm3243_vm3, %v15263_v49, -inf  ;;  %v15272_v49 = vld [vmem:[#allocation17_spill] sm:$0xff] }
 0x5f8   : > { %v3811_v26 = vmax.f32 %v15265_v17, %v3367_v11  ;;  %v3373_v11 = vsel %vm3243_vm3, %v15272_v49, -inf  ;;  %v15274_v17 = vld [vmem:[#allocation16_spill] sm:$0xff]  ;;  %v15281_v49 = vld [vmem:[#allocation26_spill] sm:$0xff] }
 0x5f9   : > { %v3820_v35 = vmax.f32 %v15274_v17, %v3373_v11 }
 0x5fa   : > { %3800 = vmax.xlane.f32.xlu1 %v3799_v5  ;;  %3797 = vmax.xlane.f32.xlu0 %v3796_v27  ;;  %v15267_v5 = vld [vmem:[#allocation15_spill] sm:$0xff] }
 0x5fb   : > { %v3371_v27 = vsel %vm3243_vm3, %v15267_v5, -inf  ;;  %v15276_v5 = vld [vmem:[#allocation21_spill] sm:$0xff] }
 0x5fc   : > { %v3817_v48 = vmax.f32 %v15269_v13, %v3371_v27  ;;  %v3377_v27 = vsel %vm3243_vm3, %v15276_v5, -inf  ;;  %v15278_v13 = vld [vmem:[#allocation20_spill] sm:$0xff]  ;;  %v15285_v5 = vld [vmem:[#allocation30_spill] sm:$0xff] }
 0x5fd   : > { %v3826_v15 = vmax.f32 %v15278_v13, %v3377_v27 }
 0x5fe   : > { %3806 = vmax.xlane.f32.xlu1 %v3805_v22  ;;  %3803 = vmax.xlane.f32.xlu0 %v3802_v58  ;;  %v15271_v22 = vld [vmem:[#allocation19_spill] sm:$0xff] }
 0x5ff   : > { %v3375_v58 = vsel %vm3243_vm3, %v15271_v22, -inf  ;;  %v15280_v22 = vld [vmem:[#allocation25_spill] sm:$0xff] }
 0x600   : > { %v3823_v31 = vmax.f32 %v15273_v10, %v3375_v58  ;;  %v3381_v58 = vsel %vm3243_vm3, %v15280_v22, -inf  ;;  %v15282_v10 = vld [vmem:[#allocation24_spill] sm:$0xff]  ;;  %v15289_v22 = vld [vmem:[#allocation34_spill] sm:$0xff] }
 0x601   : > { %v3832_v17 = vmax.f32 %v15282_v10, %v3381_v58 }
 0x602   : > { %3812 = vmax.xlane.f32.xlu1 %v3811_v26  ;;  %3809 = vmax.xlane.f32.xlu0 %v3808_v20  ;;  %v15275_v26 = vld [vmem:[#allocation23_spill] sm:$0xff] }
 0x603   : > { %v3379_v20 = vsel %vm3243_vm3, %v15275_v26, -inf  ;;  %v15284_v26 = vld [vmem:[#allocation29_spill] sm:$0xff] }
 0x604   : > { %v3829_v63 = vmax.f32 %v15277_v37, %v3379_v20  ;;  %v3385_v20 = vsel %vm3243_vm3, %v15284_v26, -inf  ;;  %v15286_v37 = vld [vmem:[#allocation28_spill] sm:$0xff]  ;;  %v15293_v26 = vld [vmem:[#allocation38_spill] sm:$0xff] }
 0x605   : > { %v3838_v13 = vmax.f32 %v15286_v37, %v3385_v20 }
 0x606   : > { %3818 = vmax.xlane.f32.xlu1 %v3817_v48  ;;  %3815 = vmax.xlane.f32.xlu0 %v3814_v40  ;;  %v15279_v48 = vld [vmem:[#allocation27_spill] sm:$0xff] }
 0x607   : > { %v3383_v40 = vsel %vm3243_vm3, %v15279_v48, -inf  ;;  %v15288_v48 = vld [vmem:[#allocation33_spill] sm:$0xff] }
 0x608   : > { %v3835_v11 = vmax.f32 %v15281_v49, %v3383_v40  ;;  %v3389_v40 = vsel %vm3243_vm3, %v15288_v48, -inf  ;;  %v15290_v49 = vld [vmem:[#allocation32_spill] sm:$0xff]  ;;  %v15297_v48 = vld [vmem:[#allocation43_spill] sm:$0xff] }
 0x609   : > { %v3844_v10 = vmax.f32 %v15290_v49, %v3389_v40 }
 0x60a   : > { %3824 = vmax.xlane.f32.xlu1 %v3823_v31  ;;  %3821 = vmax.xlane.f32.xlu0 %v3820_v35  ;;  %v15283_v31 = vld [vmem:[#allocation31_spill] sm:$0xff] }
 0x60b   : > { %v3387_v35 = vsel %vm3243_vm3, %v15283_v31, -inf  ;;  %v15292_v31 = vld [vmem:[#allocation37_spill] sm:$0xff] }
 0x60c   : > { %v3841_v27 = vmax.f32 %v15285_v5, %v3387_v35  ;;  %v3393_v35 = vsel %vm3243_vm3, %v15292_v31, -inf  ;;  %v15294_v5 = vld [vmem:[#allocation36_spill] sm:$0xff]  ;;  %v15301_v31 = vld [vmem:[#allocation49_spill] sm:$0xff] }
 0x60d   : > { %v3850_v37 = vmax.f32 %v15294_v5, %v3393_v35 }
 0x60e   : > { %3830 = vmax.xlane.f32.xlu1 %v3829_v63  ;;  %3827 = vmax.xlane.f32.xlu0 %v3826_v15  ;;  %v15287_v63 = vld [vmem:[#allocation35_spill] sm:$0xff] }
 0x60f   : > { %v3391_v15 = vsel %vm3243_vm3, %v15287_v63, -inf  ;;  %v15296_v63 = vld [vmem:[#allocation42_spill] sm:$0xff] }
 0x610   : > { %v3847_v58 = vmax.f32 %v15289_v22, %v3391_v15  ;;  %v3397_v15 = vsel %vm3243_vm3, %v15296_v63, -inf  ;;  %v15298_v22 = vld [vmem:[#allocation40_spill] sm:$0xff]  ;;  %v15305_v63 = vld [vmem:[#allocation57_spill] sm:$0xff] }
 0x611   : > { %v3856_v49 = vmax.f32 %v15298_v22, %v3397_v15 }
 0x612   : > { %3836 = vmax.xlane.f32.xlu1 %v3835_v11  ;;  %3833 = vmax.xlane.f32.xlu0 %v3832_v17  ;;  %v15291_v11 = vld [vmem:[#allocation39_spill] sm:$0xff] }
 0x613   : > { %v3395_v17 = vsel %vm3243_vm3, %v15291_v11, -inf  ;;  %v15300_v11 = vld [vmem:[#allocation47_spill] sm:$0xff] }
 0x614   : > { %v3853_v20 = vmax.f32 %v15293_v26, %v3395_v17  ;;  %v3401_v17 = vsel %vm3243_vm3, %v15300_v11, -inf  ;;  %v15302_v26 = vld [vmem:[#allocation45_spill] sm:$0xff] }
 0x615   : > { %v3862_v5 = vmax.f32 %v15302_v26, %v3401_v17  ;;  %v11957_v11 = vld [vmem:[%s14773_s7 + $0x8] sm:$0xff] }
 0x616   : > { %3842 = vmax.xlane.f32.xlu1 %v3841_v27  ;;  %3839 = vmax.xlane.f32.xlu0 %v3838_v13  ;;  %v15295_v27 = vld [vmem:[#allocation44_spill] sm:$0xff]  ;;  %v11962_v17 = vld [vmem:[%s14773_s7 + $0x28] sm:$0xff] }
 0x617   : > { %v3399_v13 = vsel %vm3243_vm3, %v15295_v27, -inf  ;;  %v15304_v27 = vld [vmem:[#allocation55_spill] sm:$0xff]  ;;  %v15309_v26 = vld [vmem:[#allocation65_spill] sm:$0xff] }
 0x618   : > { %v3859_v40 = vmax.f32 %v15297_v48, %v3399_v13  ;;  %v3405_v13 = vsel %vm3243_vm3, %v15304_v27, -inf  ;;  %v15306_v48 = vld [vmem:[#allocation53_spill] sm:$0xff]  ;;  %v15311_v27 = vld [vmem:[#allocation75_spill] sm:$0xff] }
 0x619   : > { %v3868_v22 = vmax.f32 %v15306_v48, %v3405_v13  ;;  %v3415_v13 = vsel %vm3243_vm3, %v15311_v27, -inf }
 0x61a   : > { %3848 = vmax.xlane.f32.xlu1 %v3847_v58  ;;  %3845 = vmax.xlane.f32.xlu0 %v3844_v10  ;;  %v15299_v58 = vld [vmem:[#allocation51_spill] sm:$0xff] }
 0x61b   : > { %v3403_v10 = vsel %vm3243_vm3, %v15299_v58, -inf  ;;  %v15308_v58 = vld [vmem:[#allocation63_spill] sm:$0xff] }
 0x61c   : > { %v3865_v35 = vmax.f32 %v15301_v31, %v3403_v10  ;;  %v3409_v10 = vsel %vm3243_vm3, %v15308_v58, -inf  ;;  %v8708_v31 = vcombine.high %v11957_v11, %v11962_v17 }
 0x61e   : > { %3854 = vmax.xlane.f32.xlu1 %v3853_v20  ;;  %3851 = vmax.xlane.f32.xlu0 %v3850_v37  ;;  %v15303_v20 = vld [vmem:[#allocation59_spill] sm:$0xff] }
 0x61f   : > { %v3407_v37 = vsel %vm3243_vm3, %v15303_v20, -inf  ;;  %v15310_v20 = vld [vmem:[#allocation61_spill] sm:$0xff]  ;;  %6766 = vmatprep.mubr.bf16.mxu0 %v8708_v31 }
 0x620   : > { %v3871_v15 = vmax.f32 %v15305_v63, %v3407_v37  ;;  %v3874_v37 = vmax.f32 %v15310_v20, %v3409_v10  ;;  %v15312_v63 = vld [vmem:[#allocation71_spill] sm:$0xff]  ;;  %v15317_v20 = vld [vmem:[#allocation81_spill] sm:$0xff] }
 0x621   : > { %v3413_v48 = vsel %vm3243_vm3, %v15312_v63, -inf  ;;  %v15316_v10 = vld [vmem:[#allocation79_spill] sm:$0xff]  ;;  %v15318_v63 = vld [vmem:[#allocation77_spill] sm:$0xff] }
 0x622   : > { %3860 = vmax.xlane.f32.xlu1 %v3859_v40  ;;  %3857 = vmax.xlane.f32.xlu0 %v3856_v49  ;;  %v15307_v40 = vld [vmem:[#allocation67_spill] sm:$0xff] }
 0x623   : > { %v3411_v49 = vsel %vm3243_vm3, %v15307_v40, -inf  ;;  %v15313_v40 = vld [vmem:[#allocation73_spill] sm:$0xff] }
 0x624   : > { %v3883_v58 = vmax.f32 %v15313_v40, %v3415_v13  ;;  %v15320_v13 = vld [vmem:[#allocation87_spill] sm:$0xff] }
 0x626   : > { %3866 = vmax.xlane.f32.xlu1 %v3865_v35  ;;  %3863 = vmax.xlane.f32.xlu0 %v3862_v5  ;;  %v3877_v5 = vmax.f32 %v15309_v26, %v3411_v49  ;;  %v15314_v35 = vld [vmem:[#allocation69_spill] sm:$0xff]  ;;  %v3417_v26 = vsel %vm3243_vm3, %v15316_v10, -inf }
 0x627   : > { %v3886_v31 = vmax.f32 %v15318_v63, %v3417_v26 }
 0x62a   : > { %3872 = vmax.xlane.f32.xlu1 %v3871_v15  ;;  %3869 = vmax.xlane.f32.xlu0 %v3868_v22  ;;  %v3880_v15 = vmax.f32 %v15314_v35, %v3413_v48  ;;  %v15315_v22 = vld [vmem:[#allocation83_spill] sm:$0xff]  ;;  %v3421_v35 = vsel %vm3243_vm3, %v15320_v13, -inf  ;;  %v15321_v48 = vld [vmem:[#allocation89_spill] sm:$0xff] }
 0x62b   : > { %v3419_v49 = vsel %vm3243_vm3, %v15315_v22, -inf  ;;  %v15322_v22 = vld [vmem:[#allocation85_spill] sm:$0xff] }
 0x62c   : > { %v3889_v27 = vmax.f32 %v15317_v20, %v3419_v49  ;;  %v3892_v10 = vmax.f32 %v15322_v22, %v3421_v35  ;;  %v15324_v49 = vld [vmem:[#allocation95_spill] sm:$0xff]  ;;  %v15325_v20 = vld [vmem:[#allocation97_spill] sm:$0xff] }
 0x62d   : > { %v3425_v26 = vsel %vm3243_vm3, %v15324_v49, -inf }
 0x62e   : > { %3878 = vmax.xlane.f32.xlu1 %v3877_v5  ;;  %3875 = vmax.xlane.f32.xlu0 %v3874_v37  ;;  %v15319_v5 = vld [vmem:[#allocation91_spill] sm:$0xff] }
 0x62f   : > { %v3423_v37 = vsel %vm3243_vm3, %v15319_v5, -inf  ;;  %v15326_v5 = vld [vmem:[#allocation93_spill] sm:$0xff] }
 0x630   : > { %v3895_v40 = vmax.f32 %v15321_v48, %v3423_v37  ;;  %v3898_v13 = vmax.f32 %v15326_v5, %v3425_v26  ;;  %v15328_v37 = vld [vmem:[#allocation103_spill] sm:$0xff]  ;;  %v15329_v48 = vld [vmem:[#allocation105_spill] sm:$0xff] }
 0x631   : > { %v3429_v35 = vsel %vm3243_vm3, %v15328_v37, -inf }
 0x632   : > { %3884 = vmax.xlane.f32.xlu1 %v3883_v58  ;;  %3881 = vmax.xlane.f32.xlu0 %v3880_v15  ;;  %v15323_v58 = vld [vmem:[#allocation99_spill] sm:$0xff] }
 0x633   : > { %v3427_v15 = vsel %vm3243_vm3, %v15323_v58, -inf  ;;  %v15330_v58 = vld [vmem:[#allocation101_spill] sm:$0xff] }
 0x634   : > { %v3901_v63 = vmax.f32 %v15325_v20, %v3427_v15  ;;  %v3904_v49 = vmax.f32 %v15330_v58, %v3429_v35  ;;  %v15332_v15 = vld [vmem:[#allocation111_spill] sm:$0xff]  ;;  %v15333_v20 = vld [vmem:[#allocation113_spill] sm:$0xff]  ;;  %v3534_v58 = vld [vmem:[#allocation2 + $0x110] sm:$0xff] }
 0x635   : > { %v3433_v26 = vsel %vm3243_vm3, %v15332_v15, -inf  ;;  %v3535_v15 = vld [vmem:[#allocation2 + $0x118] sm:$0xff] }
 0x636   : > { %3890 = vmax.xlane.f32.xlu1 %v3889_v27  ;;  %3887 = vmax.xlane.f32.xlu0 %v3886_v31  ;;  %v15327_v27 = vld [vmem:[#allocation107_spill] sm:$0xff] }
 0x637   : > { %v3431_v31 = vsel %vm3243_vm3, %v15327_v27, -inf  ;;  %v15334_v27 = vld [vmem:[#allocation109_spill] sm:$0xff] }
 0x638   : > { %v3907_v22 = vmax.f32 %v15329_v48, %v3431_v31  ;;  %v3910_v37 = vmax.f32 %v15334_v27, %v3433_v26  ;;  %v3251_v48 = vsel %vm3243_vm3, %v10850_v60, -inf  ;;  %v3533_v26 = vld [vmem:[#allocation2 + $0x108] sm:$0xff] }
 0x63a   : > { %3896 = vmax.xlane.f32.xlu1 %v3895_v40  ;;  %3893 = vmax.xlane.f32.xlu0 %v3892_v10  ;;  %v15331_v40 = vld [vmem:[#allocation115_spill] sm:$0xff] }
 0x63b   : > { %v3435_v10 = vsel %vm3243_vm3, %v15331_v40, -inf }
 0x63c   : > { %v3913_v5 = vmax.f32 %v15333_v20, %v3435_v10 }
 0x63e   : > { %3902 = vmax.xlane.f32.xlu1 %v3901_v63  ;;  %3899 = vmax.xlane.f32.xlu0 %v3898_v13  ;;  %v3247_v63 = vsel %vm3243_vm3, %v10826_v50, -inf  ;;  %v3245_v13 = vsel %vm3243_vm3, %v10815_v44, -inf  ;;  %v3637_v50 = vmax.f32 %v10846_v57, %v3251_v48  ;;  %v3259_v57 = vsel %vm3243_vm3, %v10890_v16, -inf  ;;  %v3532_v16 = vld [vmem:[#allocation2 + $0x100] sm:$0xff] }
 0x63f   : > { %v3631_v31 = vmax.f32 %v10822_v46, %v3247_v63  ;;  %v3628_v35 = vmax.f32 %v10808_v36, %v3245_v13  ;;  %v3255_v46 = vsel %vm3243_vm3, %v10870_v7, -inf  ;;  %v3253_v36 = vsel %vm3243_vm3, %v10862_v4, -inf  ;;  %v3537_v63 = vld [vmem:[#allocation2 + $0x128] sm:$0xff]  ;;  %v3536_v13 = vld [vmem:[#allocation2 + $0x120] sm:$0xff] }
 0x640   : > { %v3643_v60 = vmax.f32 %v10866_v53, %v3255_v46  ;;  %v3649_v7 = vmax.f32 %v10886_v14, %v3259_v57  ;;  %v3263_v53 = vsel %vm3243_vm3, %v10910_v8, -inf  ;;  %v3265_v8 = vsel %vm3243_vm3, %v10922_v25, -inf }
 0x641   : > { %v3271_v25 = vsel %vm3243_vm3, %v10950_v54, -inf }
 0x642   : > { %3908 = vmax.xlane.f32.xlu1 %v3907_v22  ;;  %3905 = vmax.xlane.f32.xlu0 %v3904_v49  ;;  %v3249_v22 = vsel %vm3243_vm3, %v10839_v47, -inf  ;;  %v3640_v47 = vmax.f32 %v10855_v1, %v3253_v36  ;;  %v3261_v1 = vsel %vm3243_vm3, %v10902_v18, -inf  ;;  %v3277_v36 = vsel %vm3243_vm3, %v10978_v34, -inf  ;;  %v3540_v34 = vld [vmem:[#allocation2 + $0x140] sm:$0xff] }
 0x643   : > { %v3634_v44 = vmax.f32 %v10832_v42, %v3249_v22  ;;  %v3257_v42 = vsel %vm3243_vm3, %v10882_v12, -inf  ;;  %v3655_v12 = vmax.f32 %v10906_v21, %v3263_v53  ;;  %v3652_v49 = vmax.f32 %v10895_v39, %v3261_v1 }
 0x644   : > { %v3646_v4 = vmax.f32 %v10875_v61, %v3257_v42  ;;  %v3267_v61 = vsel %vm3243_vm3, %v10930_v28, -inf  ;;  %v3658_v21 = vmax.f32 %v10915_v9, %v3265_v8  ;;  %v3667_v9 = vmax.f32 %v10946_v43, %v3271_v25  ;;  %v3538_v43 = vld [vmem:[#allocation2 + $0x130] sm:$0xff] }
 0x645   : > { %v3661_v39 = vmax.f32 %v10926_v19, %v3267_v61 }
 0x646   : > { %3914 = vmax.xlane.f32.xlu1 %v3913_v5  ;;  %3911 = vmax.xlane.f32.xlu0 %v3910_v37  ;;  %v3269_v5 = vsel %vm3243_vm3, %v10942_v33, -inf  ;;  %v3275_v33 = vsel %vm3243_vm3, %v10970_v32, -inf }
 0x647   : > { %v3664_v19 = vmax.f32 %v10935_v30, %v3269_v5  ;;  %v3673_v30 = vmax.f32 %v10966_v29, %v3275_v33  ;;  %v4431_v29 = vld [vmem:[%s14772_s6 + $0x110] sm:$0xff]  ;;  %v15336_v5 = vld [vmem:[#allocation52_spill] sm:$0xff] }
 0x64a   : > { %3632 = vmax.xlane.f32.xlu1 %v3631_v31  ;;  %3629 = vmax.xlane.f32.xlu0 %v3628_v35  ;;  %v3273_v35 = vsel %vm3243_vm3, %v10962_v24, -inf  ;;  %v3279_v24 = vsel %vm3243_vm3, %v10986_v23, -inf }
 0x64b   : > { %v3670_v32 = vmax.f32 %v10955_v3, %v3273_v35  ;;  %v4432_v3 = vld [vmem:[%s14772_s6 + $0x118] sm:$0xff]  ;;  %v3679_v1 = vmax.f32 %v10982_v2, %v3279_v24  ;;  %v15338_v24 = vld [vmem:[#allocation50_spill] sm:$0xff] }
 0x64e   : > { %3638 = vmax.xlane.f32.xlu1 %v3637_v50  ;;  %3635 = vmax.xlane.f32.xlu0 %v3634_v44  ;;  %v4429_v50 = vld [vmem:[%s14772_s6 + $0x100] sm:$0xff]  ;;  %v3539_v44 = vld [vmem:[#allocation2 + $0x138] sm:$0xff] }
 0x652   : > { %3644 = vmax.xlane.f32.xlu1 %v3643_v60  ;;  %3641 = vmax.xlane.f32.xlu0 %v3640_v47  ;;  %v4430_v60 = vld [vmem:[%s14772_s6 + $0x108] sm:$0xff] }
 0x656   : > { %3650 = vmax.xlane.f32.xlu1 %v3649_v7  ;;  %3647 = vmax.xlane.f32.xlu0 %v3646_v4  ;;  %v3541_v4 = vld [vmem:[#allocation2 + $0x148] sm:$0xff] }
 0x657   : > { %v3732_v14 = vpop.xlane.xlu1 %3731  ;;  %v3726_v40 = vpop.xlane.xlu0 %3725 }
 0x658   : > { %v4046_v18 = vmax.f32 %v3534_v58, %v3732_v14  ;;  %v4044_v10 = vmax.f32 %v3532_v16, %v3726_v40  ;;  %v3676_v58 = vmax.f32 %v10974_v55, %v3277_v36  ;;  %v3281_v40 = vsel %vm3243_vm3, %v10994_v6, -inf }
 0x65a   : > { %4175 = vst.msk [vmem:[#allocation2 + $0x110] sm:$0xff] %vm4140_vm4, %v4046_v18  ;;  %4173 = vst.msk [vmem:[#allocation2 + $0x100] sm:$0xff] %vm4140_vm4, %v4044_v10  ;;  %3656 = vmax.xlane.f32.xlu1 %v3655_v12  ;;  %3653 = vmax.xlane.f32.xlu0 %v3652_v49  ;;  %v3283_v12 = vsel %vm3243_vm3, %v11002_v45, -inf  ;;  %v4433_v45 = vld [vmem:[%s14772_s6 + $0x120] sm:$0xff] }
 0x65b   : > { %v3735_v20 = vpop.xlane.xlu1 %3734  ;;  %v3729_v28 = vpop.xlane.xlu0 %3728  ;;  %v3685_v6 = vmax.f32 %v10998_v62, %v3283_v12 }
 0x65c   : > { %v4047_v27 = vmax.f32 %v3535_v15, %v3735_v20  ;;  %v4045_v37 = vmax.f32 %v3533_v26, %v3729_v28  ;;  %v3543_v15 = vld [vmem:[#allocation2 + $0x158] sm:$0xff]  ;;  %v3542_v20 = vld [vmem:[#allocation2 + $0x150] sm:$0xff]  ;;  %v15335_v28 = vld [vmem:[#allocation41_spill] sm:$0xff] }
 0x65d   : > { %v3682_v25 = vmax.f32 %v15335_v28, %v3281_v40 }
 0x65e   : > { %4176 = vst.msk [vmem:[#allocation2 + $0x118] sm:$0xff] %vm4140_vm4, %v4047_v27  ;;  %4174 = vst.msk [vmem:[#allocation2 + $0x108] sm:$0xff] %vm4140_vm4, %v4045_v37  ;;  %3662 = vmax.xlane.f32.xlu1 %v3661_v39  ;;  %3659 = vmax.xlane.f32.xlu0 %v3658_v21  ;;  %v4434_v21 = vld [vmem:[%s14772_s6 + $0x128] sm:$0xff]  ;;  %v3287_v27 = vsel %vm3243_vm3, %v15336_v5, -inf  ;;  %v15337_v37 = vld [vmem:[#allocation48_spill] sm:$0xff] }
 0x65f   : > { %v3741_v31 = vpop.xlane.xlu1 %3740  ;;  %v3738_v54 = vpop.xlane.xlu0 %3737  ;;  %v3691_v36 = vmax.f32 %v15338_v24, %v3287_v27  ;;  %v15348_v24 = vld [vmem:[#allocation76_spill] sm:$0xff] }
 0x660   : > { %v4049_v48 = vmax.f32 %v3537_v63, %v3741_v31  ;;  %v4048_v22 = vmax.f32 %v3536_v13, %v3738_v54  ;;  %v3285_v63 = vsel %vm3243_vm3, %v15337_v37, -inf }
 0x661   : > { %v4301_v46 = vld [vmem:[#allocation2 + $0x100] sm:$0xff]  ;;  %v4303_v42 = vld [vmem:[#allocation2 + $0x110] sm:$0xff] }
 0x662   : > { %4178 = vst.msk [vmem:[#allocation2 + $0x128] sm:$0xff] %vm4140_vm4, %v4049_v48  ;;  %4177 = vst.msk [vmem:[#allocation2 + $0x120] sm:$0xff] %vm4140_vm4, %v4048_v22  ;;  %3668 = vmax.xlane.f32.xlu1 %v3667_v9  ;;  %3665 = vmax.xlane.f32.xlu0 %v3664_v19  ;;  %v4557_v53 = vadd.f32 %v4429_v50, %v4301_v46  ;;  %v4559_v2 = vadd.f32 %v4431_v29, %v4303_v42  ;;  %v4435_v22 = vld [vmem:[%s14772_s6 + $0x130] sm:$0xff]  ;;  %v4436_v50 = vld [vmem:[%s14772_s6 + $0x138] sm:$0xff] }
 0x663   : > { %v3747_v47 = vpop.xlane.xlu1 %3746  ;;  %v3744_v57 = vpop.xlane.xlu0 %3743  ;;  %v3545_v46 = vld [vmem:[#allocation2 + $0x168] sm:$0xff] }
 0x664   : > { %v4051_v23 = vmax.f32 %v3539_v44, %v3747_v47  ;;  %v4050_v7 = vmax.f32 %v3538_v43, %v3744_v57  ;;  %v4685_v26 = vmax.f32 %v4557_v53, 0.0  ;;  %v4687_v62 = vmax.f32 %v4559_v2, 0.0 }
 0x665   : > { %v4302_v16 = vld [vmem:[#allocation2 + $0x108] sm:$0xff]  ;;  %v4304_v49 = vld [vmem:[#allocation2 + $0x118] sm:$0xff] }
 0x666   : > { %4180 = vst.msk [vmem:[#allocation2 + $0x138] sm:$0xff] %vm4140_vm4, %v4051_v23  ;;  %4179 = vst.msk [vmem:[#allocation2 + $0x130] sm:$0xff] %vm4140_vm4, %v4050_v7  ;;  %3674 = vmax.xlane.f32.xlu1 %v3673_v30  ;;  %3671 = vmax.xlane.f32.xlu0 %v3670_v32  ;;  %v4558_v14 = vadd.f32 %v4430_v60, %v4302_v16  ;;  %v4560_v61 = vadd.f32 %v4432_v3, %v4304_v49  ;;  %v3544_v32 = vld [vmem:[#allocation2 + $0x160] sm:$0xff]  ;;  %v15339_v60 = vld [vmem:[#allocation46_spill] sm:$0xff] }
 0x667   : > { %v3753_v55 = vpop.xlane.xlu1 %3752  ;;  %v3750_v8 = vpop.xlane.xlu0 %3749  ;;  %v3688_v47 = vmax.f32 %v15339_v60, %v3285_v63  ;;  %v15340_v23 = vld [vmem:[#allocation60_spill] sm:$0xff] }
 0x668   : > { %v4053_v18 = vmax.f32 %v3541_v4, %v3753_v55  ;;  %v4052_v10 = vmax.f32 %v3540_v34, %v3750_v8  ;;  %v4686_v39 = vmax.f32 %v4558_v14, 0.0  ;;  %v4688_v31 = vmax.f32 %v4560_v61, 0.0  ;;  %v15341_v16 = vld [vmem:[#allocation56_spill] sm:$0xff]  ;;  %v4438_v14 = vld [vmem:[%s14772_s6 + $0x148] sm:$0xff]  ;;  %v3547_v61 = vld [vmem:[#allocation2 + $0x178] sm:$0xff] }
 0x669   : > { %v4305_v13 = vld [vmem:[#allocation2 + $0x120] sm:$0xff]  ;;  %v4306_v9 = vld [vmem:[#allocation2 + $0x128] sm:$0xff]  ;;  %v3291_v7 = vsel %vm3243_vm3, %v15340_v23, -inf  ;;  %v3289_v12 = vsel %vm3243_vm3, %v15341_v16, -inf  ;;  %v3551_v16 = vld [vmem:[#allocation2 + $0x198] sm:$0xff] }
 0x66a   : > { %4182 = vst.msk [vmem:[#allocation2 + $0x148] sm:$0xff] %vm4140_vm4, %v4053_v18  ;;  %4181 = vst.msk [vmem:[#allocation2 + $0x140] sm:$0xff] %vm4140_vm4, %v4052_v10  ;;  %3680 = vmax.xlane.f32.xlu1 %v3679_v1  ;;  %3677 = vmax.xlane.f32.xlu0 %v3676_v58  ;;  %v12132_v19 = vpack.c.bf16 %v4686_v39, %v4685_v26  ;;  %v4561_v54 = vadd.f32 %v4433_v45, %v4305_v13  ;;  %v4437_v49 = vld [vmem:[%s14772_s6 + $0x140] sm:$0xff]  ;;  %v3546_v45 = vld [vmem:[#allocation2 + $0x170] sm:$0xff] }
 0x66b   : > { %v3759_v33 = vpop.xlane.xlu1 %3758  ;;  %v3756_v35 = vpop.xlane.xlu0 %3755  ;;  %v4562_v48 = vadd.f32 %v4434_v21, %v4306_v9  ;;  %v12146_v3 = vpack.c.bf16 %v4688_v31, %v4687_v62  ;;  %v15342_v18 = vld [vmem:[#allocation58_spill] sm:$0xff]  ;;  %v15345_v63 = vld [vmem:[#allocation64_spill] sm:$0xff]  ;;  %v4440_v62 = vld [vmem:[%s14772_s6 + $0x158] sm:$0xff] }
 0x66c   : > { %v4055_v44 = vmax.f32 %v3543_v15, %v3759_v33  ;;  %v4054_v43 = vmax.f32 %v3542_v20, %v3756_v35  ;;  %6735 = vmatpush1.bf16.msra.mxu0 %v12132_v19  ;;  %v4689_v30 = vmax.f32 %v4561_v54, 0.0  ;;  %v3697_v10 = vmax.f32 %v15342_v18, %v3291_v7  ;;  %v15343_v39 = vld [vmem:[#allocation54_spill] sm:$0xff]  ;;  %v15344_v20 = vld [vmem:[#allocation68_spill] sm:$0xff]  ;;  %v3549_v33 = vld [vmem:[#allocation2 + $0x188] sm:$0xff] }
 0x66d   : > { %6736 = vmatprep.subr.bf16.mxu0 %v9984_v56  ;;  %v4690_v57 = vmax.f32 %v4562_v48, 0.0  ;;  %v4307_v42 = vld [vmem:[#allocation2 + $0x130] sm:$0xff]  ;;  %v4308_v29 = vld [vmem:[#allocation2 + $0x138] sm:$0xff]  ;;  %v3694_v21 = vmax.f32 %v15343_v39, %v3289_v12  ;;  %v3293_v13 = vsel %vm3243_vm3, %v15345_v63, -inf  ;;  %v15349_v23 = vld [vmem:[#allocation72_spill] sm:$0xff] }
 0x66e   : > { %4184 = vst.msk [vmem:[#allocation2 + $0x158] sm:$0xff] %vm4140_vm4, %v4055_v44  ;;  %4183 = vst.msk [vmem:[#allocation2 + $0x150] sm:$0xff] %vm4140_vm4, %v4054_v43  ;;  %3686 = vmax.xlane.f32.xlu1 %v3685_v6  ;;  %3683 = vmax.xlane.f32.xlu0 %v3682_v25  ;;  %v4563_v4 = vadd.f32 %v4435_v22, %v4307_v42  ;;  %v4564_v53 = vadd.f32 %v4436_v50, %v4308_v29  ;;  %v3295_v6 = vsel %vm3243_vm3, %v15344_v20, -inf  ;;  %v4439_v9 = vld [vmem:[%s14772_s6 + $0x150] sm:$0xff]  ;;  %v3548_v22 = vld [vmem:[#allocation2 + $0x180] sm:$0xff] }
 0x66f   : > { %v3765_v34 = vpop.xlane.xlu1 %3764  ;;  %v3762_v1 = vpop.xlane.xlu0 %3761  ;;  %v12151_v58 = vpack.c.bf16 %v4690_v57, %v4689_v30  ;;  %v15346_v50 = vld [vmem:[#allocation66_spill] sm:$0xff]  ;;  %v3297_v7 = vsel %vm3243_vm3, %v15349_v23, -inf  ;;  %v15352_v18 = vld [vmem:[#allocation84_spill] sm:$0xff] }
 0x670   : > { %v4057_v40 = vmax.f32 %v3545_v46, %v3765_v34  ;;  %v4056_v2 = vmax.f32 %v3544_v32, %v3762_v1  ;;  %6737 = vmatpush1.bf16.msra.mxu0 %v12146_v3  ;;  %v4691_v55 = vmax.f32 %v4563_v4, 0.0  ;;  %v4692_v8 = vmax.f32 %v4564_v53, 0.0  ;;  %v15347_v30 = vld [vmem:[#allocation62_spill] sm:$0xff]  ;;  %v4441_v4 = vld [vmem:[%s14772_s6 + $0x160] sm:$0xff]  ;;  %v4442_v53 = vld [vmem:[%s14772_s6 + $0x168] sm:$0xff] }
 0x671   : > { %6738 = vmatprep.subr.bf16.mxu0 %v9984_v56  ;;  %v4309_v15 = vld [vmem:[#allocation2 + $0x140] sm:$0xff]  ;;  %v4310_v26 = vld [vmem:[#allocation2 + $0x148] sm:$0xff]  ;;  %v3703_v44 = vmax.f32 %v15346_v50, %v3295_v6  ;;  %v3700_v32 = vmax.f32 %v15347_v30, %v3293_v13 }
 0x672   : > { %4186 = vst.msk [vmem:[#allocation2 + $0x168] sm:$0xff] %vm4140_vm4, %v4057_v40  ;;  %4185 = vst.msk [vmem:[#allocation2 + $0x160] sm:$0xff] %vm4140_vm4, %v4056_v2  ;;  %3692 = vmax.xlane.f32.xlu1 %v3691_v36  ;;  %3689 = vmax.xlane.f32.xlu0 %v3688_v47  ;;  %v4565_v28 = vadd.f32 %v4437_v49, %v4309_v15  ;;  %v4566_v25 = vadd.f32 %v4438_v14, %v4310_v26  ;;  %v3299_v36 = vsel %vm3243_vm3, %v15348_v24, -inf  ;;  %v3550_v14 = vld [vmem:[#allocation2 + $0x190] sm:$0xff]  ;;  %v15353_v6 = vld [vmem:[#allocation80_spill] sm:$0xff] }
 0x673   : > { %v3771_v5 = vpop.xlane.xlu1 %3770  ;;  %v3768_v27 = vpop.xlane.xlu0 %3767  ;;  %v12171_v37 = vpack.c.bf16 %v4692_v8, %v4691_v55  ;;  %v15350_v40 = vld [vmem:[#allocation74_spill] sm:$0xff]  ;;  %v3553_v13 = vld [vmem:[#allocation2 + $0x1a8] sm:$0xff] }
 0x674   : > { %v4059_v31 = vmax.f32 %v3547_v61, %v3771_v5  ;;  %v4058_v54 = vmax.f32 %v3546_v45, %v3768_v27  ;;  %6739 = vmatpush1.bf16.msra.mxu0 %v12151_v58  ;;  %v4693_v35 = vmax.f32 %v4565_v28, 0.0  ;;  %v4694_v48 = vmax.f32 %v4566_v25, 0.0  ;;  %v15351_v8 = vld [vmem:[#allocation70_spill] sm:$0xff]  ;;  %v4444_v5 = vld [vmem:[%s14772_s6 + $0x178] sm:$0xff] }
 0x675   : > { %6740 = vmatprep.subr.bf16.mxu0 %v9984_v56  ;;  %v4311_v43 = vld [vmem:[#allocation2 + $0x150] sm:$0xff]  ;;  %v4312_v46 = vld [vmem:[#allocation2 + $0x158] sm:$0xff]  ;;  %v3709_v2 = vmax.f32 %v15350_v40, %v3299_v36  ;;  %v3706_v45 = vmax.f32 %v15351_v8, %v3297_v7  ;;  %v3301_v28 = vsel %vm3243_vm3, %v15353_v6, -inf }
 0x676   : > { %4188 = vst.msk [vmem:[#allocation2 + $0x178] sm:$0xff] %vm4140_vm4, %v4059_v31  ;;  %4187 = vst.msk [vmem:[#allocation2 + $0x170] sm:$0xff] %vm4140_vm4, %v4058_v54  ;;  %3698 = vmax.xlane.f32.xlu1 %v3697_v10  ;;  %3695 = vmax.xlane.f32.xlu0 %v3694_v21  ;;  %v4567_v60 = vadd.f32 %v4439_v9, %v4311_v43  ;;  %v4568_v47 = vadd.f32 %v4440_v62, %v4312_v46  ;;  %v3303_v10 = vsel %vm3243_vm3, %v15352_v18, -inf  ;;  %v4443_v25 = vld [vmem:[%s14772_s6 + $0x170] sm:$0xff]  ;;  %v3552_v31 = vld [vmem:[#allocation2 + $0x1a0] sm:$0xff] }
 0x677   : > { %v3777_v57 = vpop.xlane.xlu1 %3776  ;;  %v3774_v42 = vpop.xlane.xlu0 %3773  ;;  %v12191_v29 = vpack.c.bf16 %v4694_v48, %v4693_v35  ;;  %v15354_v54 = vld [vmem:[#allocation82_spill] sm:$0xff]  ;;  %v15360_v8 = vld [vmem:[#allocation123_spill] sm:$0xff] }
 0x678   : > { %v4061_v34 = vmax.f32 %v3549_v33, %v3777_v57  ;;  %v4060_v1 = vmax.f32 %v3548_v22, %v3774_v42  ;;  %6741 = vmatpush1.bf16.msra.mxu0 %v12171_v37  ;;  %v4695_v12 = vmax.f32 %v4567_v60, 0.0  ;;  %v4696_v49 = vmax.f32 %v4568_v47, 0.0  ;;  %v15355_v22 = vld [vmem:[#allocation78_spill] sm:$0xff]  ;;  %v15357_v60 = vld [vmem:[#allocation88_spill] sm:$0xff]  ;;  %v4446_v42 = vld [vmem:[%s14772_s6 + $0x188] sm:$0xff] }
 0x679   : > { %6742 = vmatprep.subr.bf16.mxu0 %v9984_v56  ;;  %v4313_v61 = vld [vmem:[#allocation2 + $0x160] sm:$0xff]  ;;  %v4314_v55 = vld [vmem:[#allocation2 + $0x168] sm:$0xff]  ;;  %v3715_v33 = vmax.f32 %v15354_v54, %v3303_v10  ;;  %v3712_v50 = vmax.f32 %v15355_v22, %v3301_v28  ;;  %v3305_v47 = vsel %vm3243_vm3, %v15357_v60, -inf  ;;  %v15359_v40 = vld [vmem:[#allocation86_spill] sm:$0xff] }
 0x67a   : > { %4190 = vst.msk [vmem:[#allocation2 + $0x188] sm:$0xff] %vm4140_vm4, %v4061_v34  ;;  %4189 = vst.msk [vmem:[#allocation2 + $0x180] sm:$0xff] %vm4140_vm4, %v4060_v1  ;;  %3704 = vmax.xlane.f32.xlu1 %v3703_v44  ;;  %3701 = vmax.xlane.f32.xlu0 %v3700_v32  ;;  %v4569_v15 = vadd.f32 %v4441_v4, %v4313_v61  ;;  %v4570_v26 = vadd.f32 %v4442_v53, %v4314_v55  ;;  %v15356_v44 = vld [vmem:[#allocation92_spill] sm:$0xff]  ;;  %v3555_v4 = vld [vmem:[#allocation2 + $0x1b8] sm:$0xff] }
 0x67b   : > { %v3783_v39 = vpop.xlane.xlu1 %3782  ;;  %v3780_v21 = vpop.xlane.xlu0 %3779  ;;  %v12211_v20 = vpack.c.bf16 %v4696_v49, %v4695_v12  ;;  %v3307_v43 = vsel %vm3243_vm3, %v15356_v44, -inf  ;;  %v4445_v57 = vld [vmem:[%s14772_s6 + $0x180] sm:$0xff]  ;;  %v3554_v1 = vld [vmem:[#allocation2 + $0x1b0] sm:$0xff]  ;;  %v15365_v60 = vld [vmem:[#allocation127_spill] sm:$0xff] }
 0x67c   : > { %v4063_v27 = vmax.f32 %v3551_v16, %v3783_v39  ;;  %v4062_v63 = vmax.f32 %v3550_v14, %v3780_v21  ;;  %6743 = vmatpush1.bf16.msra.mxu0 %v12191_v29  ;;  %v4697_v9 = vmax.f32 %v4569_v15, 0.0  ;;  %v4698_v62 = vmax.f32 %v4570_v26, 0.0  ;;  %v15358_v16 = vld [vmem:[#allocation90_spill] sm:$0xff]  ;;  %v4448_v39 = vld [vmem:[%s14772_s6 + $0x198] sm:$0xff] }
 0x67d   : > { %6744 = vmatprep.subr.bf16.mxu0 %v9984_v56  ;;  %v4315_v35 = vld [vmem:[#allocation2 + $0x170] sm:$0xff]  ;;  %v4316_v48 = vld [vmem:[#allocation2 + $0x178] sm:$0xff]  ;;  %v3721_v12 = vmax.f32 %v15358_v16, %v3307_v43  ;;  %v15366_v16 = vld [vmem:[#allocation129_spill] sm:$0xff] }
 0x67e   : > { %4192 = vst.msk [vmem:[#allocation2 + $0x198] sm:$0xff] %vm4140_vm4, %v4063_v27  ;;  %4191 = vst.msk [vmem:[#allocation2 + $0x190] sm:$0xff] %vm4140_vm4, %v4062_v63  ;;  %3710 = vmax.xlane.f32.xlu1 %v3709_v2  ;;  %3707 = vmax.xlane.f32.xlu0 %v3706_v45  ;;  %v4571_v46 = vadd.f32 %v4443_v25, %v4315_v35  ;;  %v4572_v30 = vadd.f32 %v4444_v5, %v4316_v48  ;;  %v3439_v45 = vsel %vm3243_vm3, %v15360_v8, -inf  ;;  %v4447_v26 = vld [vmem:[%s14772_s6 + $0x190] sm:$0xff]  ;;  %v15361_v21 = vld [vmem:[#allocation119_spill] sm:$0xff] }
 0x67f   : > { %v3789_v32 = vpop.xlane.xlu1 %3788  ;;  %v3786_v24 = vpop.xlane.xlu0 %3785  ;;  %v12231_v36 = vpack.c.bf16 %v4698_v62, %v4697_v9  ;;  %v3718_v2 = vmax.f32 %v15359_v40, %v3305_v47  ;;  %v3437_v6 = vsel %vm3243_vm3, %v15361_v21, -inf  ;;  %v3557_v5 = vld [vmem:[#allocation2 + $0x1c8] sm:$0xff]  ;;  %v3441_v47 = vsel %vm3243_vm3, %v15365_v60, -inf  ;;  %v15373_v60 = vld [vmem:[#allocation143_spill] sm:$0xff] }
 0x680   : > { %v4065_v23 = vmax.f32 %v3553_v13, %v3789_v32  ;;  %v4064_v7 = vmax.f32 %v3552_v31, %v3786_v24  ;;  %6745 = vmatpush1.bf16.msra.mxu0 %v12211_v20  ;;  %v4699_v53 = vmax.f32 %v4571_v46, 0.0  ;;  %v4700_v34 = vmax.f32 %v4572_v30, 0.0  ;;  %v3556_v13 = vld [vmem:[#allocation2 + $0x1c0] sm:$0xff]  ;;  %v15362_v31 = vld [vmem:[#allocation121_spill] sm:$0xff] }
 0x681   : > { %6746 = vmatprep.subr.bf16.mxu0 %v9984_v56  ;;  %v4317_v49 = vld [vmem:[#allocation2 + $0x180] sm:$0xff]  ;;  %v4318_v14 = vld [vmem:[#allocation2 + $0x188] sm:$0xff]  ;;  %v3919_v54 = vmax.f32 %v15362_v31, %v3439_v45 }
 0x682   : > { %4194 = vst.msk [vmem:[#allocation2 + $0x1a8] sm:$0xff] %vm4140_vm4, %v4065_v23  ;;  %4193 = vst.msk [vmem:[#allocation2 + $0x1a0] sm:$0xff] %vm4140_vm4, %v4064_v7  ;;  %3716 = vmax.xlane.f32.xlu1 %v3715_v33  ;;  %3713 = vmax.xlane.f32.xlu0 %v3712_v50  ;;  %v4573_v61 = vadd.f32 %v4445_v57, %v4317_v49  ;;  %v4574_v55 = vadd.f32 %v4446_v42, %v4318_v14  ;;  %v15363_v48 = vld [vmem:[#allocation117_spill] sm:$0xff]  ;;  %v15364_v50 = vld [vmem:[#allocation131_spill] sm:$0xff] }
 0x683   : > { %v3795_v18 = vpop.xlane.xlu1 %3794  ;;  %v3792_v10 = vpop.xlane.xlu0 %3791  ;;  %v12251_v15 = vpack.c.bf16 %v4700_v34, %v4699_v53  ;;  %v3916_v22 = vmax.f32 %v15363_v48, %v3437_v6  ;;  %v3443_v44 = vsel %vm3243_vm3, %v15364_v50, -inf  ;;  %v4449_v32 = vld [vmem:[%s14772_s6 + $0x1a0] sm:$0xff]  ;;  %v4450_v24 = vld [vmem:[%s14772_s6 + $0x1a8] sm:$0xff]  ;;  %v3559_v23 = vld [vmem:[#allocation2 + $0x1d8] sm:$0xff] }
 0x684   : > { %v4067_v28 = vmax.f32 %v3555_v4, %v3795_v18  ;;  %v4066_v25 = vmax.f32 %v3554_v1, %v3792_v10  ;;  %6747 = vmatpush1.bf16.msra.mxu0 %v12231_v36  ;;  %v4701_v27 = vmax.f32 %v4573_v61, 0.0  ;;  %v4702_v63 = vmax.f32 %v4574_v55, 0.0  ;;  %v3558_v53 = vld [vmem:[#allocation2 + $0x1d0] sm:$0xff]  ;;  %v15367_v40 = vld [vmem:[#allocation125_spill] sm:$0xff]  ;;  %v15368_v61 = vld [vmem:[#allocation139_spill] sm:$0xff] }
 0x685   : > { %6748 = vmatprep.subr.bf16.mxu0 %v9984_v56  ;;  %v4319_v9 = vld [vmem:[#allocation2 + $0x190] sm:$0xff]  ;;  %v4320_v62 = vld [vmem:[#allocation2 + $0x198] sm:$0xff]  ;;  %v3447_v55 = vsel %vm3243_vm3, %v15368_v61, -inf }
 0x686   : > { %4196 = vst.msk [vmem:[#allocation2 + $0x1b8] sm:$0xff] %vm4140_vm4, %v4067_v28  ;;  %4195 = vst.msk [vmem:[#allocation2 + $0x1b0] sm:$0xff] %vm4140_vm4, %v4066_v25  ;;  %3722 = vmax.xlane.f32.xlu1 %v3721_v12  ;;  %3719 = vmax.xlane.f32.xlu0 %v3718_v2  ;;  %v4575_v33 = vadd.f32 %v4447_v26, %v4319_v9  ;;  %v4576_v35 = vadd.f32 %v4448_v39, %v4320_v62  ;;  %v4451_v10 = vld [vmem:[%s14772_s6 + $0x1b0] sm:$0xff]  ;;  %v4452_v26 = vld [vmem:[%s14772_s6 + $0x1b8] sm:$0xff] }
 0x687   : > { %v3801_v43 = vpop.xlane.xlu1 %3800  ;;  %v3798_v46 = vpop.xlane.xlu0 %3797  ;;  %v12271_v30 = vpack.c.bf16 %v4702_v63, %v4701_v27  ;;  %v3925_v12 = vmax.f32 %v15366_v16, %v3443_v44  ;;  %v3922_v2 = vmax.f32 %v15367_v40, %v3441_v47  ;;  %v15369_v39 = vld [vmem:[#allocation135_spill] sm:$0xff]  ;;  %v3561_v25 = vld [vmem:[#allocation2 + $0x1e8] sm:$0xff]  ;;  %v3560_v63 = vld [vmem:[#allocation2 + $0x1e0] sm:$0xff]  ;;  %v3449_v47 = vsel %vm3243_vm3, %v15373_v60, -inf }
 0x688   : > { %v4069_v57 = vmax.f32 %v3557_v5, %v3801_v43  ;;  %v4068_v42 = vmax.f32 %v3556_v13, %v3798_v46  ;;  %6749 = vmatpush1.bf16.msra.mxu0 %v12251_v15  ;;  %v4703_v7 = vmax.f32 %v4575_v33, 0.0  ;;  %v4704_v4 = vmax.f32 %v4576_v35, 0.0  ;;  %v15370_v62 = vld [vmem:[#allocation137_spill] sm:$0xff]  ;;  %v15376_v60 = vld [vmem:[#allocation155_spill] sm:$0xff] }
 0x689   : > { %6750 = vmatprep.subr.bf16.mxu0 %v9984_v56  ;;  %v4321_v34 = vld [vmem:[#allocation2 + $0x1a0] sm:$0xff]  ;;  %v4322_v1 = vld [vmem:[#allocation2 + $0x1a8] sm:$0xff]  ;;  %v3445_v21 = vsel %vm3243_vm3, %v15369_v39, -inf  ;;  %v3931_v31 = vmax.f32 %v15370_v62, %v3447_v55 }
 0x68a   : > { %4198 = vst.msk [vmem:[#allocation2 + $0x1c8] sm:$0xff] %vm4140_vm4, %v4069_v57  ;;  %4197 = vst.msk [vmem:[#allocation2 + $0x1c0] sm:$0xff] %vm4140_vm4, %v4068_v42  ;;  %v4577_v49 = vadd.f32 %v4449_v32, %v4321_v34  ;;  %v4578_v14 = vadd.f32 %v4450_v24, %v4322_v1  ;;  %3920 = vmax.xlane.f32.xlu1 %v3919_v54  ;;  %3917 = vmax.xlane.f32.xlu0 %v3916_v22  ;;  %v15371_v35 = vld [vmem:[#allocation133_spill] sm:$0xff]  ;;  %v15372_v22 = vld [vmem:[#allocation147_spill] sm:$0xff] }
 0x68b   : > { %v3807_v8 = vpop.xlane.xlu1 %3806  ;;  %v3804_v45 = vpop.xlane.xlu0 %3803  ;;  %v12291_v18 = vpack.c.bf16 %v4704_v4, %v4703_v7  ;;  %v3928_v48 = vmax.f32 %v15371_v35, %v3445_v21  ;;  %v3451_v50 = vsel %vm3243_vm3, %v15372_v22, -inf  ;;  %v4453_v32 = vld [vmem:[%s14772_s6 + $0x1c0] sm:$0xff]  ;;  %v4454_v24 = vld [vmem:[%s14772_s6 + $0x1c8] sm:$0xff]  ;;  %v3567_v22 = vld [vmem:[#allocation2 + $0x218] sm:$0xff] }
 0x68c   : > { %v4071_v6 = vmax.f32 %v3559_v23, %v3807_v8  ;;  %v4070_v28 = vmax.f32 %v3558_v53, %v3804_v45  ;;  %6751 = vmatpush1.bf16.msra.mxu0 %v12271_v30  ;;  %v4705_v5 = vmax.f32 %v4577_v49, 0.0  ;;  %v4706_v27 = vmax.f32 %v4578_v14, 0.0  ;;  %v3563_v23 = vld [vmem:[#allocation2 + $0x1f8] sm:$0xff]  ;;  %v3562_v53 = vld [vmem:[#allocation2 + $0x1f0] sm:$0xff]  ;;  %v15374_v16 = vld [vmem:[#allocation145_spill] sm:$0xff] }
 0x68d   : > { %6752 = vmatprep.subr.bf16.mxu0 %v9984_v56  ;;  %v4323_v13 = vld [vmem:[#allocation2 + $0x1b0] sm:$0xff]  ;;  %v4324_v9 = vld [vmem:[#allocation2 + $0x1b8] sm:$0xff]  ;;  %v15375_v40 = vld [vmem:[#allocation141_spill] sm:$0xff] }
 0x68e   : > { %4200 = vst.msk [vmem:[#allocation2 + $0x1d8] sm:$0xff] %vm4140_vm4, %v4071_v6  ;;  %4199 = vst.msk [vmem:[#allocation2 + $0x1d0] sm:$0xff] %vm4140_vm4, %v4070_v28  ;;  %v4579_v54 = vadd.f32 %v4451_v10, %v4323_v13  ;;  %v4580_v33 = vadd.f32 %v4452_v26, %v4324_v9  ;;  %3926 = vmax.xlane.f32.xlu1 %v3925_v12  ;;  %3923 = vmax.xlane.f32.xlu0 %v3922_v2  ;;  %v4455_v45 = vld [vmem:[%s14772_s6 + $0x1d0] sm:$0xff]  ;;  %v4456_v10 = vld [vmem:[%s14772_s6 + $0x1d8] sm:$0xff] }
 0x68f   : > { %v3813_v44 = vpop.xlane.xlu1 %3812  ;;  %v3810_v43 = vpop.xlane.xlu0 %3809  ;;  %v12311_v46 = vpack.c.bf16 %v4706_v27, %v4705_v5  ;;  %v3937_v12 = vmax.f32 %v15374_v16, %v3451_v50  ;;  %v3934_v2 = vmax.f32 %v15375_v40, %v3449_v47  ;;  %v3565_v21 = vld [vmem:[#allocation2 + $0x208] sm:$0xff]  ;;  %v3455_v47 = vsel %vm3243_vm3, %v15376_v60, -inf }
 0x690   : > { %v4073_v57 = vmax.f32 %v3561_v25, %v3813_v44  ;;  %v4072_v42 = vmax.f32 %v3560_v63, %v3810_v43  ;;  %6753 = vmatpush1.bf16.msra.mxu0 %v12291_v18  ;;  %v4707_v7 = vmax.f32 %v4579_v54, 0.0  ;;  %v4708_v4 = vmax.f32 %v4580_v33, 0.0  ;;  %v3564_v25 = vld [vmem:[#allocation2 + $0x200] sm:$0xff]  ;;  %v4458_v33 = vld [vmem:[%s14772_s6 + $0x1e8] sm:$0xff]  ;;  %v3566_v43 = vld [vmem:[#allocation2 + $0x210] sm:$0xff] }
 0x691   : > { %6754 = vmatprep.subr.bf16.mxu0 %v9984_v56  ;;  %v4325_v34 = vld [vmem:[#allocation2 + $0x1c0] sm:$0xff]  ;;  %v4326_v1 = vld [vmem:[#allocation2 + $0x1c8] sm:$0xff] }
 0x692   : > { %4202 = vst.msk [vmem:[#allocation2 + $0x1e8] sm:$0xff] %vm4140_vm4, %v4073_v57  ;;  %4201 = vst.msk [vmem:[#allocation2 + $0x1e0] sm:$0xff] %vm4140_vm4, %v4072_v42  ;;  %v4581_v49 = vadd.f32 %v4453_v32, %v4325_v34  ;;  %v4582_v14 = vadd.f32 %v4454_v24, %v4326_v1  ;;  %3932 = vmax.xlane.f32.xlu1 %v3931_v31  ;;  %3929 = vmax.xlane.f32.xlu0 %v3928_v48  ;;  %v4457_v54 = vld [vmem:[%s14772_s6 + $0x1e0] sm:$0xff]  ;;  %v15377_v57 = vld [vmem:[#allocation151_spill] sm:$0xff] }
 0x693   : > { %v3819_v61 = vpop.xlane.xlu1 %3818  ;;  %v3816_v55 = vpop.xlane.xlu0 %3815  ;;  %v12328_v8 = vpack.c.bf16 %v4708_v4, %v4707_v7  ;;  %v3453_v42 = vsel %vm3243_vm3, %v15377_v57, -inf  ;;  %v15378_v4 = vld [vmem:[#allocation153_spill] sm:$0xff] }
 0x694   : > { %v4075_v26 = vmax.f32 %v3563_v23, %v3819_v61  ;;  %v4074_v39 = vmax.f32 %v3562_v53, %v3816_v55  ;;  %6755 = vmatpush1.bf16.msra.mxu0 %v12311_v46  ;;  %v4709_v6 = vmax.f32 %v4581_v49, 0.0  ;;  %v4710_v28 = vmax.f32 %v4582_v14, 0.0  ;;  %v4460_v49 = vld [vmem:[%s14772_s6 + $0x1f8] sm:$0xff]  ;;  %v15379_v14 = vld [vmem:[#allocation149_spill] sm:$0xff] }
 0x695   : > { %6756 = vmatprep.subr.bf16.mxu0 %v9984_v56  ;;  %v4327_v5 = vld [vmem:[#allocation2 + $0x1d0] sm:$0xff]  ;;  %v4328_v27 = vld [vmem:[#allocation2 + $0x1d8] sm:$0xff]  ;;  %v3943_v53 = vmax.f32 %v15378_v4, %v3455_v47  ;;  %v3940_v40 = vmax.f32 %v15379_v14, %v3453_v42  ;;  %v3569_v55 = vld [vmem:[#allocation2 + $0x228] sm:$0xff] }
 0x696   : > { %4204 = vst.msk [vmem:[#allocation2 + $0x1f8] sm:$0xff] %vm4140_vm4, %v4075_v26  ;;  %4203 = vst.msk [vmem:[#allocation2 + $0x1f0] sm:$0xff] %vm4140_vm4, %v4074_v39  ;;  %v4583_v63 = vadd.f32 %v4455_v45, %v4327_v5  ;;  %v4584_v13 = vadd.f32 %v4456_v10, %v4328_v27  ;;  %3938 = vmax.xlane.f32.xlu1 %v3937_v12  ;;  %3935 = vmax.xlane.f32.xlu0 %v3934_v2  ;;  %v4459_v12 = vld [vmem:[%s14772_s6 + $0x1f0] sm:$0xff]  ;;  %v3568_v26 = vld [vmem:[#allocation2 + $0x220] sm:$0xff] }
 0x697   : > { %v3825_v9 = vpop.xlane.xlu1 %3824  ;;  %v3822_v62 = vpop.xlane.xlu0 %3821  ;;  %v12340_v31 = vpack.c.bf16 %v4710_v28, %v4709_v6  ;;  %v3573_v60 = vld [vmem:[#allocation2 + $0x248] sm:$0xff]  ;;  %v4463_v42 = vld [vmem:[%s14772_s6 + $0x210] sm:$0xff]  ;;  %v3572_v14 = vld [vmem:[#allocation2 + $0x240] sm:$0xff] }
 0x698   : > { %v4077_v35 = vmax.f32 %v3565_v21, %v3825_v9  ;;  %v4076_v48 = vmax.f32 %v3564_v25, %v3822_v62  ;;  %6757 = vmatpush1.bf16.msra.mxu0 %v12328_v8  ;;  %v4711_v50 = vmax.f32 %v4583_v63, 0.0  ;;  %v4712_v44 = vmax.f32 %v4584_v13, 0.0  ;;  %v4461_v63 = vld [vmem:[%s14772_s6 + $0x200] sm:$0xff]  ;;  %v4462_v13 = vld [vmem:[%s14772_s6 + $0x208] sm:$0xff] }
 0x699   : > { %6758 = vmatprep.subr.bf16.mxu0 %v9984_v56  ;;  %v4329_v32 = vld [vmem:[#allocation2 + $0x1e0] sm:$0xff]  ;;  %v4330_v24 = vld [vmem:[#allocation2 + $0x1e8] sm:$0xff] }
 0x69a   : > { %4206 = vst.msk [vmem:[#allocation2 + $0x208] sm:$0xff] %vm4140_vm4, %v4077_v35  ;;  %4205 = vst.msk [vmem:[#allocation2 + $0x200] sm:$0xff] %vm4140_vm4, %v4076_v48  ;;  %v4585_v23 = vadd.f32 %v4457_v54, %v4329_v32  ;;  %v4586_v7 = vadd.f32 %v4458_v33, %v4330_v24  ;;  %v12359_v16 = vpack.c.bf16 %v4712_v44, %v4711_v50  ;;  %3944 = vmax.xlane.f32.xlu1 %v3943_v53  ;;  %v3571_v54 = vld [vmem:[#allocation2 + $0x238] sm:$0xff]  ;;  %v3570_v48 = vld [vmem:[#allocation2 + $0x230] sm:$0xff] }
 0x69b   : > { %v3831_v34 = vpop.xlane.xlu1 %3830  ;;  %v3828_v1 = vpop.xlane.xlu0 %3827  ;;  %3941 = vmax.xlane.f32.xlu0 %v3940_v40  ;;  %v12389_v57 = vld [vmem:[%s14773_s7 + $0x48] sm:$0xff] }
 0x69c   : > { %v4079_v2 = vmax.f32 %v3567_v22, %v3831_v34  ;;  %v4078_v61 = vmax.f32 %v3566_v43, %v3828_v1  ;;  %6759 = vmatpush1.bf16.msra.mxu0 %v12340_v31  ;;  %v4713_v45 = vmax.f32 %v4585_v23, 0.0  ;;  %v4714_v10 = vmax.f32 %v4586_v7, 0.0  ;;  %v4464_v23 = vld [vmem:[%s14772_s6 + $0x218] sm:$0xff]  ;;  %v12401_v53 = vld [vmem:[%s14773_s7 + $0x68] sm:$0xff] }
 0x69d   : > { %6760 = vmatprep.subr.bf16.mxu0 %v9984_v56  ;;  %v4331_v39 = vld [vmem:[#allocation2 + $0x1f0] sm:$0xff]  ;;  %v4332_v21 = vld [vmem:[#allocation2 + $0x1f8] sm:$0xff] }
 0x69e   : > { %4208 = vst.msk [vmem:[#allocation2 + $0x218] sm:$0xff] %vm4140_vm4, %v4079_v2  ;;  %4207 = vst.msk [vmem:[#allocation2 + $0x210] sm:$0xff] %vm4140_vm4, %v4078_v61  ;;  %v4587_v6 = vadd.f32 %v4459_v12, %v4331_v39  ;;  %v4588_v28 = vadd.f32 %v4460_v49, %v4332_v21  ;;  %v12372_v27 = vpack.c.bf16 %v4714_v10, %v4713_v45  ;;  %v12406_v12 = vld [vmem:[%s14773_s7] sm:$0xff] }
 0x69f   : > { %v3837_v25 = vpop.xlane.xlu1 %3836  ;;  %v3834_v5 = vpop.xlane.xlu0 %3833  ;;  %v12411_v49 = vld [vmem:[%s14773_s7 + $0x20] sm:$0xff]  ;;  %v8716_v21 = vcombine.high %v12389_v57, %v12401_v53 }
 0x6a0   : > { %v4081_v9 = vmax.f32 %v3569_v55, %v3837_v25  ;;  %v4080_v62 = vmax.f32 %v3568_v26, %v3834_v5  ;;  %6761 = vmatpush1.bf16.msra.mxu0 %v12359_v16  ;;  %v4715_v33 = vmax.f32 %v4587_v6, 0.0  ;;  %v4716_v35 = vmax.f32 %v4588_v28, 0.0  ;;  %v4465_v28 = vld [vmem:[%s14772_s6 + $0x220] sm:$0xff]  ;;  %v4466_v25 = vld [vmem:[%s14772_s6 + $0x228] sm:$0xff] }
 0x6a1   : > { %6762 = vmatprep.subr.bf16.mxu0 %v9984_v56  ;;  %v4333_v22 = vld [vmem:[#allocation2 + $0x200] sm:$0xff]  ;;  %v4334_v50 = vld [vmem:[#allocation2 + $0x208] sm:$0xff]  ;;  %v8705_v61 = vcombine.low %v12406_v12, %v12411_v49  ;;  %v8706_v55 = vcombine.high %v12406_v12, %v12411_v49 }
 0x6a2   : > { %4210 = vst.msk [vmem:[#allocation2 + $0x228] sm:$0xff] %vm4140_vm4, %v4081_v9  ;;  %4209 = vst.msk [vmem:[#allocation2 + $0x220] sm:$0xff] %vm4140_vm4, %v4080_v62  ;;  %v4589_v44 = vadd.f32 %v4461_v63, %v4333_v22  ;;  %v4590_v43 = vadd.f32 %v4462_v13, %v4334_v50  ;;  %v12384_v47 = vpack.c.bf16 %v4716_v35, %v4715_v33  ;;  %v3575_v13 = vld [vmem:[#allocation2 + $0x258] sm:$0xff]  ;;  %v13040_v12 = vld [vmem:[%s14773_s7 + $0xa0] sm:$0xff] }
 0x6a3   : > { %v3843_v32 = vpop.xlane.xlu1 %3842  ;;  %v3840_v24 = vpop.xlane.xlu0 %3839  ;;  %6477 = vmatprep.mubr.bf16.mxu1 %v8706_v55  ;;  %v15381_v50 = vld [vmem:[#allocation159_spill] sm:$0xff] }
 0x6a4   : > { %v4083_v7 = vmax.f32 %v3571_v54, %v3843_v32  ;;  %v4082_v4 = vmax.f32 %v3570_v48, %v3840_v24  ;;  %6763 = vmatpush1.bf16.msra.mxu0 %v12372_v27  ;;  %v4717_v34 = vmax.f32 %v4589_v44, 0.0  ;;  %v4718_v1 = vmax.f32 %v4590_v43, 0.0  ;;  %v3574_v54 = vld [vmem:[#allocation2 + $0x250] sm:$0xff]  ;;  %v15380_v48 = vld [vmem:[#allocation163_spill] sm:$0xff]  ;;  %v15382_v24 = vld [vmem:[#allocation161_spill] sm:$0xff] }
 0x6a5   : > { %6764 = vmatprep.subr.bf16.mxu0 %v9984_v56  ;;  %v4335_v40 = vld [vmem:[#allocation2 + $0x210] sm:$0xff]  ;;  %v4336_v2 = vld [vmem:[#allocation2 + $0x218] sm:$0xff]  ;;  %v3459_v22 = vsel %vm3243_vm3, %v15380_v48, -inf  ;;  %v3457_v44 = vsel %vm3243_vm3, %v15381_v50, -inf }
 0x6a6   : > { %4212 = vst.msk [vmem:[#allocation2 + $0x238] sm:$0xff] %vm4140_vm4, %v4083_v7  ;;  %4211 = vst.msk [vmem:[#allocation2 + $0x230] sm:$0xff] %vm4140_vm4, %v4082_v4  ;;  %v4591_v45 = vadd.f32 %v4463_v42, %v4335_v40  ;;  %v4592_v10 = vadd.f32 %v4464_v23, %v4336_v2  ;;  %v5069_v6 = vpack.c.bf16 %v4718_v1, %v4717_v34  ;;  %v4467_v34 = vld [vmem:[%s14772_s6 + $0x230] sm:$0xff]  ;;  %v4468_v1 = vld [vmem:[%s14772_s6 + $0x238] sm:$0xff] }
 0x6a7   : > { %v3849_v26 = vpop.xlane.xlu1 %3848  ;;  %v3846_v39 = vpop.xlane.xlu0 %3845  ;;  %v15383_v23 = vcombine.low %v11957_v11, %v11962_v17  ;;  %v12452_v11 = vld [vmem:[%s14773_s7 + $0x88] sm:$0xff] }
 0x6a8   : > { %v4085_v5 = vmax.f32 %v3573_v60, %v3849_v26  ;;  %v4084_v63 = vmax.f32 %v3572_v14, %v3846_v39  ;;  %6765 = vmatpush1.bf16.msra.mxu0 %v12384_v47  ;;  %v4719_v9 = vmax.f32 %v4591_v45, 0.0  ;;  %v4720_v62 = vmax.f32 %v4592_v10, 0.0  ;;  %v15384_v14 = vld [vmem:[#allocation157_spill] sm:$0xff]  ;;  %v3576_v39 = vld [vmem:[#allocation2 + $0x260] sm:$0xff] }
 0x6a9   : > { %7023 = vmatprep.subr.bf16.mxu0 %v9984_v56  ;;  %v4337_v33 = vld [vmem:[#allocation2 + $0x220] sm:$0xff]  ;;  %v4338_v35 = vld [vmem:[#allocation2 + $0x228] sm:$0xff]  ;;  %v3949_v60 = vmax.f32 %v15382_v24, %v3459_v22  ;;  %v3946_v40 = vmax.f32 %v15384_v14, %v3457_v44  ;;  %v3579_v22 = vld [vmem:[#allocation2 + $0x278] sm:$0xff] }
 0x6aa   : > { %4214 = vst.msk [vmem:[#allocation2 + $0x248] sm:$0xff] %vm4140_vm4, %v4085_v5  ;;  %4213 = vst.msk [vmem:[#allocation2 + $0x240] sm:$0xff] %vm4140_vm4, %v4084_v63  ;;  %v4593_v43 = vadd.f32 %v4465_v28, %v4337_v33  ;;  %v4594_v32 = vadd.f32 %v4466_v25, %v4338_v35  ;;  %v5070_v4 = vpack.c.bf16 %v4720_v62, %v4719_v9  ;;  %v3577_v45 = vld [vmem:[#allocation2 + $0x268] sm:$0xff] }
 0x6ab   : > { %v3855_v42 = vpop.xlane.xlu1 %3854  ;;  %6767 = vmatmul.mubr.bf16.vlgmr.msra.gmra.mrb[0].mxu0 %v15383_v23  ;;  %v3852_v7 = vpop.xlane.xlu0 %3851  ;;  %v12457_v17 = vld [vmem:[%s14773_s7 + $0xa8] sm:$0xff]  ;;  %3950 = vmax.xlane.f32.xlu1 %v3949_v60 }
 0x6ac   : > { %v4087_v2 = vmax.f32 %v3575_v13, %v3855_v42  ;;  %v4086_v55 = vmax.f32 %v3574_v54, %v3852_v7  ;;  %6774 = vmatprep.mubr.bf16.mxu0 %v8716_v21  ;;  %7024 = vmatpush1.bf16.msra.mxu0 %v5069_v6  ;;  %v4721_v10 = vmax.f32 %v4593_v43, 0.0  ;;  %v4722_v26 = vmax.f32 %v4594_v32, 0.0  ;;  %v4469_v54 = vld [vmem:[%s14772_s6 + $0x240] sm:$0xff]  ;;  %v4470_v33 = vld [vmem:[%s14772_s6 + $0x248] sm:$0xff]  ;;  %v3578_v43 = vld [vmem:[#allocation2 + $0x270] sm:$0xff] }
 0x6ad   : > { %7025 = vmatprep.subr.bf16.mxu0 %v9984_v56  ;;  %v4339_v28 = vld [vmem:[#allocation2 + $0x230] sm:$0xff]  ;;  %v4340_v25 = vld [vmem:[#allocation2 + $0x238] sm:$0xff]  ;;  %3947 = vmax.xlane.f32.xlu0 %v3946_v40  ;;  %v8715_v6 = vcombine.low %v12389_v57, %v12401_v53  ;;  %v8724_v9 = vcombine.high %v12452_v11, %v12457_v17  ;;  %v3581_v14 = vld [vmem:[#allocation2 + $0x288] sm:$0xff] }
 0x6ae   : > { %4216 = vst.msk [vmem:[#allocation2 + $0x258] sm:$0xff] %vm4140_vm4, %v4087_v2  ;;  %4215 = vst.msk [vmem:[#allocation2 + $0x250] sm:$0xff] %vm4140_vm4, %v4086_v55  ;;  %v4595_v21 = vadd.f32 %v4467_v34, %v4339_v28  ;;  %v4596_v5 = vadd.f32 %v4468_v1, %v4340_v25  ;;  %v5071_v62 = vpack.c.bf16 %v4722_v26, %v4721_v10  ;;  %v4471_v7 = vld [vmem:[%s14772_s6 + $0x250] sm:$0xff]  ;;  %v12484_v40 = vld [vmem:[%s14773_s7 + $0xc8] sm:$0xff] }
 0x6af   : > { %v3861_v63 = vpop.xlane.xlu1 %3860  ;;  %v3858_v13 = vpop.xlane.xlu0 %3857  ;;  %v12489_v2 = vld [vmem:[%s14773_s7 + $0xe8] sm:$0xff]  ;;  %v3580_v10 = vld [vmem:[#allocation2 + $0x280] sm:$0xff] }
 0x6b0   : > { %v4089_v35 = vmax.f32 %v3577_v45, %v3861_v63  ;;  %v4088_v48 = vmax.f32 %v3576_v39, %v3858_v13  ;;  %7026 = vmatpush1.bf16.msra.mxu0 %v5070_v4  ;;  %v4723_v50 = vmax.f32 %v4595_v21, 0.0  ;;  %v4724_v44 = vmax.f32 %v4596_v5, 0.0  ;;  %v4472_v4 = vld [vmem:[%s14772_s6 + $0x258] sm:$0xff] }
 0x6b1   : > { %7027 = vmatprep.subr.bf16.mxu0 %v9984_v56  ;;  %v4341_v57 = vld [vmem:[#allocation2 + $0x240] sm:$0xff]  ;;  %v4342_v53 = vld [vmem:[#allocation2 + $0x248] sm:$0xff]  ;;  %v8723_v63 = vcombine.low %v12452_v11, %v12457_v17  ;;  %v8732_v13 = vcombine.high %v12484_v40, %v12489_v2 }
 0x6b2   : > { %4218 = vst.msk [vmem:[#allocation2 + $0x268] sm:$0xff] %vm4140_vm4, %v4089_v35  ;;  %4217 = vst.msk [vmem:[#allocation2 + $0x260] sm:$0xff] %vm4140_vm4, %v4088_v48  ;;  %v4597_v32 = vadd.f32 %v4469_v54, %v4341_v57  ;;  %v4598_v24 = vadd.f32 %v4470_v33, %v4342_v53  ;;  %v5072_v23 = vpack.c.bf16 %v4724_v44, %v4723_v50  ;;  %v3583_v35 = vld [vmem:[#allocation2 + $0x298] sm:$0xff]  ;;  %v3582_v50 = vld [vmem:[#allocation2 + $0x290] sm:$0xff] }
 0x6b3   : > { %v3867_v60 = vpop.xlane.xlu1 %3866  ;;  %6775 = vmatmul.mubr.bf16.gmra.mrb[4].mxu0 %v8715_v6  ;;  %v3864_v42 = vpop.xlane.xlu0 %3863  ;;  %v15385_v44 = vld [vmem:[#allocation171_spill] sm:$0xff] }
 0x6b4   : > { %v4091_v34 = vmax.f32 %v3579_v22, %v3867_v60  ;;  %v4090_v1 = vmax.f32 %v3578_v43, %v3864_v42  ;;  %6782 = vmatprep.mubr.bf16.mxu0 %v8724_v9  ;;  %7028 = vmatpush1.bf16.msra.mxu0 %v5071_v62  ;;  %v4725_v55 = vmax.f32 %v4597_v32, 0.0  ;;  %v4726_v45 = vmax.f32 %v4598_v24, 0.0  ;;  %v4473_v9 = vld [vmem:[%s14772_s6 + $0x260] sm:$0xff]  ;;  %v4474_v62 = vld [vmem:[%s14772_s6 + $0x268] sm:$0xff]  ;;  %v15386_v57 = vld [vmem:[#allocation167_spill] sm:$0xff] }
 0x6b5   : > { %7029 = vmatprep.subr.bf16.mxu0 %v9984_v56  ;;  %v4343_v26 = vld [vmem:[#allocation2 + $0x250] sm:$0xff]  ;;  %v4344_v39 = vld [vmem:[#allocation2 + $0x258] sm:$0xff]  ;;  %v3463_v43 = vsel %vm3243_vm3, %v15385_v44, -inf  ;;  %v3461_v53 = vsel %vm3243_vm3, %v15386_v57, -inf  ;;  %v15387_v60 = vld [vmem:[#allocation169_spill] sm:$0xff] }
 0x6b6   : > { %4220 = vst.msk [vmem:[#allocation2 + $0x278] sm:$0xff] %vm4140_vm4, %v4091_v34  ;;  %4219 = vst.msk [vmem:[#allocation2 + $0x270] sm:$0xff] %vm4140_vm4, %v4090_v1  ;;  %v4599_v28 = vadd.f32 %v4471_v7, %v4343_v26  ;;  %v4600_v25 = vadd.f32 %v4472_v4, %v4344_v39  ;;  %v5073_v6 = vpack.c.bf16 %v4726_v45, %v4725_v55  ;;  %v4475_v34 = vld [vmem:[%s14772_s6 + $0x270] sm:$0xff]  ;;  %v4476_v1 = vld [vmem:[%s14772_s6 + $0x278] sm:$0xff] }
 0x6b7   : > { %v3873_v21 = vpop.xlane.xlu1 %3872  ;;  %v3870_v5 = vpop.xlane.xlu0 %3869  ;;  %v3955_v42 = vmax.f32 %v15387_v60, %v3463_v43  ;;  %v3585_v26 = vld [vmem:[#allocation2 + $0x2a8] sm:$0xff]  ;;  %v3587_v44 = vld [vmem:[#allocation2 + $0x2b8] sm:$0xff] }
 0x6b8   : > { %v4093_v54 = vmax.f32 %v3581_v14, %v3873_v21  ;;  %v4092_v33 = vmax.f32 %v3580_v10, %v3870_v5  ;;  %7030 = vmatpush1.bf16.msra.mxu0 %v5072_v23  ;;  %v4727_v48 = vmax.f32 %v4599_v28, 0.0  ;;  %v4728_v22 = vmax.f32 %v4600_v25, 0.0  ;;  %v15388_v14 = vld [vmem:[#allocation165_spill] sm:$0xff]  ;;  %v3584_v5 = vld [vmem:[#allocation2 + $0x2a0] sm:$0xff] }
 0x6b9   : > { %7031 = vmatprep.subr.bf16.mxu0 %v9984_v56  ;;  %v4345_v11 = vld [vmem:[#allocation2 + $0x260] sm:$0xff]  ;;  %v4346_v17 = vld [vmem:[#allocation2 + $0x268] sm:$0xff]  ;;  %v3952_v55 = vmax.f32 %v15388_v14, %v3461_v53  ;;  %3956 = vmax.xlane.f32.xlu1 %v3955_v42  ;;  %v3586_v53 = vld [vmem:[#allocation2 + $0x2b0] sm:$0xff] }
 0x6ba   : > { %4222 = vst.msk [vmem:[#allocation2 + $0x288] sm:$0xff] %vm4140_vm4, %v4093_v54  ;;  %4221 = vst.msk [vmem:[#allocation2 + $0x280] sm:$0xff] %vm4140_vm4, %v4092_v33  ;;  %v4601_v32 = vadd.f32 %v4473_v9, %v4345_v11  ;;  %v4602_v24 = vadd.f32 %v4474_v62, %v4346_v17  ;;  %v5074_v4 = vpack.c.bf16 %v4728_v22, %v4727_v48  ;;  %v12524_v39 = vld [vmem:[%s14773_s7 + $0x108] sm:$0xff]  ;;  %v4477_v22 = vld [vmem:[%s14772_s6 + $0x280] sm:$0xff] }
 0x6bb   : > { %v3879_v23 = vpop.xlane.xlu1 %3878  ;;  %6783 = vmatmul.mubr.bf16.gmra.mrb[8].mxu0 %v8723_v63  ;;  %v3876_v7 = vpop.xlane.xlu0 %3875  ;;  %v12529_v28 = vld [vmem:[%s14773_s7 + $0x128] sm:$0xff]  ;;  %3953 = vmax.xlane.f32.xlu0 %v3952_v55 }
 0x6bc   : > { %v4095_v45 = vmax.f32 %v3583_v35, %v3879_v23  ;;  %v4094_v10 = vmax.f32 %v3582_v50, %v3876_v7  ;;  %6790 = vmatprep.mubr.bf16.mxu0 %v8732_v13  ;;  %7032 = vmatpush1.bf16.msra.mxu0 %v5073_v6  ;;  %v4729_v25 = vmax.f32 %v4601_v32, 0.0  ;;  %v4730_v21 = vmax.f32 %v4602_v24, 0.0  ;;  %v4478_v50 = vld [vmem:[%s14772_s6 + $0x288] sm:$0xff]  ;;  %v4479_v7 = vld [vmem:[%s14772_s6 + $0x290] sm:$0xff] }
 0x6bd   : > { %7033 = vmatprep.subr.bf16.mxu0 %v9984_v56  ;;  %v4347_v63 = vld [vmem:[#allocation2 + $0x270] sm:$0xff]  ;;  %v4348_v9 = vld [vmem:[#allocation2 + $0x278] sm:$0xff]  ;;  %v8731_v6 = vcombine.low %v12484_v40, %v12489_v2  ;;  %v8740_v35 = vcombine.high %v12524_v39, %v12529_v28  ;;  %v3589_v14 = vld [vmem:[#allocation2 + $0x2c8] sm:$0xff] }
 0x6be   : > { %4224 = vst.msk [vmem:[#allocation2 + $0x298] sm:$0xff] %vm4140_vm4, %v4095_v45  ;;  %4223 = vst.msk [vmem:[#allocation2 + $0x290] sm:$0xff] %vm4140_vm4, %v4094_v10  ;;  %v4603_v13 = vadd.f32 %v4475_v34, %v4347_v63  ;;  %v4604_v62 = vadd.f32 %v4476_v1, %v4348_v9  ;;  %v5075_v48 = vpack.c.bf16 %v4730_v21, %v4729_v25  ;;  %v12556_v55 = vld [vmem:[%s14773_s7 + $0x148] sm:$0xff]  ;;  %v3588_v25 = vld [vmem:[#allocation2 + $0x2c0] sm:$0xff] }
 0x6bf   : > { %v3885_v54 = vpop.xlane.xlu1 %3884  ;;  %v3882_v33 = vpop.xlane.xlu0 %3881  ;;  %v12561_v45 = vld [vmem:[%s14773_s7 + $0x168] sm:$0xff] }
 0x6c0   : > { %v4097_v11 = vmax.f32 %v3585_v26, %v3885_v54  ;;  %v4096_v17 = vmax.f32 %v3584_v5, %v3882_v33  ;;  %7034 = vmatpush1.bf16.msra.mxu0 %v5074_v4  ;;  %v4731_v43 = vmax.f32 %v4603_v13, 0.0  ;;  %v4732_v57 = vmax.f32 %v4604_v62, 0.0  ;;  %v4480_v4 = vld [vmem:[%s14772_s6 + $0x298] sm:$0xff] }
 0x6c1   : > { %7035 = vmatprep.subr.bf16.mxu0 %v9984_v56  ;;  %v4349_v40 = vld [vmem:[#allocation2 + $0x280] sm:$0xff]  ;;  %v4350_v2 = vld [vmem:[#allocation2 + $0x288] sm:$0xff]  ;;  %v8739_v54 = vcombine.low %v12524_v39, %v12529_v28  ;;  %v8748_v33 = vcombine.high %v12556_v55, %v12561_v45 }
 0x6c2   : > { %4226 = vst.msk [vmem:[#allocation2 + $0x2a8] sm:$0xff] %vm4140_vm4, %v4097_v11  ;;  %4225 = vst.msk [vmem:[#allocation2 + $0x2a0] sm:$0xff] %vm4140_vm4, %v4096_v17  ;;  %v4605_v32 = vadd.f32 %v4477_v22, %v4349_v40  ;;  %v4606_v24 = vadd.f32 %v4478_v50, %v4350_v2  ;;  %v5076_v23 = vpack.c.bf16 %v4732_v57, %v4731_v43  ;;  %v3591_v11 = vld [vmem:[#allocation2 + $0x2d8] sm:$0xff]  ;;  %v3590_v43 = vld [vmem:[#allocation2 + $0x2d0] sm:$0xff] }
 0x6c3   : > { %v3891_v60 = vpop.xlane.xlu1 %3890  ;;  %6791 = vmatmul.mubr.bf16.gmra.mrb[12].mxu0 %v8731_v6  ;;  %v3888_v42 = vpop.xlane.xlu0 %3887  ;;  %v15389_v57 = vld [vmem:[#allocation179_spill] sm:$0xff] }
 0x6c4   : > { %v4099_v34 = vmax.f32 %v3587_v44, %v3891_v60  ;;  %v4098_v1 = vmax.f32 %v3586_v53, %v3888_v42  ;;  %6798 = vmatprep.mubr.bf16.mxu0 %v8740_v35  ;;  %7036 = vmatpush1.bf16.msra.mxu0 %v5075_v48  ;;  %v4733_v10 = vmax.f32 %v4605_v32, 0.0  ;;  %v4734_v26 = vmax.f32 %v4606_v24, 0.0  ;;  %v4481_v35 = vld [vmem:[%s14772_s6 + $0x2a0] sm:$0xff]  ;;  %v4482_v48 = vld [vmem:[%s14772_s6 + $0x2a8] sm:$0xff]  ;;  %v15390_v40 = vld [vmem:[#allocation175_spill] sm:$0xff] }
 0x6c5   : > { %7037 = vmatprep.subr.bf16.mxu0 %v9984_v56  ;;  %v4351_v21 = vld [vmem:[#allocation2 + $0x290] sm:$0xff]  ;;  %v4352_v5 = vld [vmem:[#allocation2 + $0x298] sm:$0xff]  ;;  %v3467_v53 = vsel %vm3243_vm3, %v15389_v57, -inf  ;;  %v3465_v2 = vsel %vm3243_vm3, %v15390_v40, -inf  ;;  %v15391_v60 = vld [vmem:[#allocation177_spill] sm:$0xff] }
 0x6c6   : > { %4228 = vst.msk [vmem:[#allocation2 + $0x2b8] sm:$0xff] %vm4140_vm4, %v4099_v34  ;;  %4227 = vst.msk [vmem:[#allocation2 + $0x2b0] sm:$0xff] %vm4140_vm4, %v4098_v1  ;;  %v4607_v63 = vadd.f32 %v4479_v7, %v4351_v21  ;;  %v4608_v9 = vadd.f32 %v4480_v4, %v4352_v5  ;;  %v5077_v6 = vpack.c.bf16 %v4734_v26, %v4733_v10  ;;  %v4483_v34 = vld [vmem:[%s14772_s6 + $0x2b0] sm:$0xff]  ;;  %v4484_v1 = vld [vmem:[%s14772_s6 + $0x2b8] sm:$0xff] }
 0x6c7   : > { %v3897_v13 = vpop.xlane.xlu1 %3896  ;;  %v3894_v62 = vpop.xlane.xlu0 %3893  ;;  %v3961_v42 = vmax.f32 %v15391_v60, %v3467_v53  ;;  %v3593_v21 = vld [vmem:[#allocation2 + $0x2e8] sm:$0xff]  ;;  %v3595_v57 = vld [vmem:[#allocation2 + $0x2f8] sm:$0xff] }
 0x6c8   : > { %v4101_v22 = vmax.f32 %v3589_v14, %v3897_v13  ;;  %v4100_v50 = vmax.f32 %v3588_v25, %v3894_v62  ;;  %7038 = vmatpush1.bf16.msra.mxu0 %v5076_v23  ;;  %v4735_v17 = vmax.f32 %v4607_v63, 0.0  ;;  %v4736_v44 = vmax.f32 %v4608_v9, 0.0  ;;  %v15392_v14 = vld [vmem:[#allocation173_spill] sm:$0xff]  ;;  %v3592_v62 = vld [vmem:[#allocation2 + $0x2e0] sm:$0xff] }
 0x6c9   : > { %7039 = vmatprep.subr.bf16.mxu0 %v9984_v56  ;;  %v4353_v39 = vld [vmem:[#allocation2 + $0x2a0] sm:$0xff]  ;;  %v4354_v28 = vld [vmem:[#allocation2 + $0x2a8] sm:$0xff]  ;;  %v3958_v10 = vmax.f32 %v15392_v14, %v3465_v2  ;;  %3962 = vmax.xlane.f32.xlu1 %v3961_v42  ;;  %v3594_v2 = vld [vmem:[#allocation2 + $0x2f0] sm:$0xff] }
 0x6ca   : > { %4230 = vst.msk [vmem:[#allocation2 + $0x2c8] sm:$0xff] %vm4140_vm4, %v4101_v22  ;;  %4229 = vst.msk [vmem:[#allocation2 + $0x2c0] sm:$0xff] %vm4140_vm4, %v4100_v50  ;;  %v4609_v32 = vadd.f32 %v4481_v35, %v4353_v39  ;;  %v4610_v24 = vadd.f32 %v4482_v48, %v4354_v28  ;;  %v5078_v4 = vpack.c.bf16 %v4736_v44, %v4735_v17  ;;  %v12596_v5 = vld [vmem:[%s14773_s7 + $0x188] sm:$0xff]  ;;  %v4485_v44 = vld [vmem:[%s14772_s6 + $0x2c0] sm:$0xff] }
 0x6cb   : > { %v3903_v23 = vpop.xlane.xlu1 %3902  ;;  %6799 = vmatmul.mubr.bf16.gmra.mrb[16].mxu0 %v8739_v54  ;;  %v3900_v7 = vpop.xlane.xlu0 %3899  ;;  %v12601_v63 = vld [vmem:[%s14773_s7 + $0x1a8] sm:$0xff]  ;;  %3959 = vmax.xlane.f32.xlu0 %v3958_v10 }
 0x6cc   : > { %v4103_v26 = vmax.f32 %v3591_v11, %v3903_v23  ;;  %v4102_v25 = vmax.f32 %v3590_v43, %v3900_v7  ;;  %6806 = vmatprep.mubr.bf16.mxu0 %v8748_v33  ;;  %7040 = vmatpush1.bf16.msra.mxu0 %v5077_v6  ;;  %v4737_v9 = vmax.f32 %v4609_v32, 0.0  ;;  %v4738_v13 = vmax.f32 %v4610_v24, 0.0  ;;  %v4486_v43 = vld [vmem:[%s14772_s6 + $0x2c8] sm:$0xff]  ;;  %v4487_v7 = vld [vmem:[%s14772_s6 + $0x2d0] sm:$0xff] }
 0x6cd   : > { %7041 = vmatprep.subr.bf16.mxu0 %v9984_v56  ;;  %v4355_v54 = vld [vmem:[#allocation2 + $0x2b0] sm:$0xff]  ;;  %v4356_v35 = vld [vmem:[#allocation2 + $0x2b8] sm:$0xff]  ;;  %v8747_v6 = vcombine.low %v12556_v55, %v12561_v45  ;;  %v8756_v11 = vcombine.high %v12596_v5, %v12601_v63  ;;  %v3501_v14 = vld [vmem:[#allocation2 + $0x8] sm:$0xff] }
 0x6ce   : > { %4232 = vst.msk [vmem:[#allocation2 + $0x2d8] sm:$0xff] %vm4140_vm4, %v4103_v26  ;;  %4231 = vst.msk [vmem:[#allocation2 + $0x2d0] sm:$0xff] %vm4140_vm4, %v4102_v25  ;;  %v4611_v33 = vadd.f32 %v4483_v34, %v4355_v54  ;;  %v4612_v48 = vadd.f32 %v4484_v1, %v4356_v35  ;;  %v5079_v17 = vpack.c.bf16 %v4738_v13, %v4737_v9  ;;  %v12628_v10 = vld [vmem:[%s14773_s7 + $0x1c8] sm:$0xff]  ;;  %v3500_v9 = vld [vmem:[#allocation2] sm:$0xff] }
 0x6cf   : > { %v3909_v22 = vpop.xlane.xlu1 %3908  ;;  %v3906_v50 = vpop.xlane.xlu0 %3905  ;;  %v12633_v26 = vld [vmem:[%s14773_s7 + $0x1e8] sm:$0xff] }
 0x6d0   : > { %v4105_v39 = vmax.f32 %v3593_v21, %v3909_v22  ;;  %v4104_v28 = vmax.f32 %v3592_v62, %v3906_v50  ;;  %7042 = vmatpush1.bf16.msra.mxu0 %v5078_v4  ;;  %v4739_v53 = vmax.f32 %v4611_v33, 0.0  ;;  %v4740_v40 = vmax.f32 %v4612_v48, 0.0  ;;  %v4488_v4 = vld [vmem:[%s14772_s6 + $0x2d8] sm:$0xff] }
 0x6d1   : > { %7043 = vmatprep.subr.bf16.mxu0 %v9984_v56  ;;  %v4357_v55 = vld [vmem:[#allocation2 + $0x2c0] sm:$0xff]  ;;  %v4358_v45 = vld [vmem:[#allocation2 + $0x2c8] sm:$0xff]  ;;  %v8755_v22 = vcombine.low %v12596_v5, %v12601_v63  ;;  %v8764_v50 = vcombine.high %v12628_v10, %v12633_v26 }
 0x6d2   : > { %4234 = vst.msk [vmem:[#allocation2 + $0x2e8] sm:$0xff] %vm4140_vm4, %v4105_v39  ;;  %4233 = vst.msk [vmem:[#allocation2 + $0x2e0] sm:$0xff] %vm4140_vm4, %v4104_v28  ;;  %v4613_v32 = vadd.f32 %v4485_v44, %v4357_v55  ;;  %v4614_v24 = vadd.f32 %v4486_v43, %v4358_v45  ;;  %v5080_v23 = vpack.c.bf16 %v4740_v40, %v4739_v53  ;;  %v3503_v39 = vld [vmem:[#allocation2 + $0x18] sm:$0xff]  ;;  %v3502_v53 = vld [vmem:[#allocation2 + $0x10] sm:$0xff] }
 0x6d3   : > { %v3915_v60 = vpop.xlane.xlu1 %3914  ;;  %6807 = vmatmul.mubr.bf16.gmra.mrb[20].mxu0 %v8747_v6  ;;  %v3912_v42 = vpop.xlane.xlu0 %3911  ;;  %v15393_v40 = vld [vmem:[#allocation187_spill] sm:$0xff] }
 0x6d4   : > { %v4107_v34 = vmax.f32 %v3595_v57, %v3915_v60  ;;  %v4106_v1 = vmax.f32 %v3594_v2, %v3912_v42  ;;  %6814 = vmatprep.mubr.bf16.mxu0 %v8756_v11  ;;  %7044 = vmatpush1.bf16.msra.mxu0 %v5079_v17  ;;  %v4741_v25 = vmax.f32 %v4613_v32, 0.0  ;;  %v4742_v21 = vmax.f32 %v4614_v24, 0.0  ;;  %v4489_v11 = vld [vmem:[%s14772_s6 + $0x2e0] sm:$0xff]  ;;  %v4490_v17 = vld [vmem:[%s14772_s6 + $0x2e8] sm:$0xff]  ;;  %v15394_v55 = vld [vmem:[#allocation183_spill] sm:$0xff] }
 0x6d5   : > { %7045 = vmatprep.subr.bf16.mxu0 %v9984_v56  ;;  %v4359_v13 = vld [vmem:[#allocation2 + $0x2d0] sm:$0xff]  ;;  %v4360_v62 = vld [vmem:[#allocation2 + $0x2d8] sm:$0xff]  ;;  %v3471_v2 = vsel %vm3243_vm3, %v15393_v40, -inf  ;;  %v3469_v45 = vsel %vm3243_vm3, %v15394_v55, -inf  ;;  %v15395_v60 = vld [vmem:[#allocation185_spill] sm:$0xff] }
 0x6d6   : > { %4236 = vst.msk [vmem:[#allocation2 + $0x2f8] sm:$0xff] %vm4140_vm4, %v4107_v34  ;;  %4235 = vst.msk [vmem:[#allocation2 + $0x2f0] sm:$0xff] %vm4140_vm4, %v4106_v1  ;;  %v4615_v54 = vadd.f32 %v4487_v7, %v4359_v13  ;;  %v4616_v35 = vadd.f32 %v4488_v4, %v4360_v62  ;;  %v5081_v6 = vpack.c.bf16 %v4742_v21, %v4741_v25  ;;  %v4491_v34 = vld [vmem:[%s14772_s6 + $0x2f0] sm:$0xff]  ;;  %v4492_v1 = vld [vmem:[%s14772_s6 + $0x2f8] sm:$0xff] }
 0x6d7   : > { %v3633_v33 = vpop.xlane.xlu1 %3632  ;;  %v3630_v48 = vpop.xlane.xlu0 %3629  ;;  %v3967_v42 = vmax.f32 %v15395_v60, %v3471_v2  ;;  %v3505_v13 = vld [vmem:[#allocation2 + $0x28] sm:$0xff]  ;;  %v3507_v40 = vld [vmem:[#allocation2 + $0x38] sm:$0xff] }
 0x6d8   : > { %v4013_v44 = vmax.f32 %v3501_v14, %v3633_v33  ;;  %v4012_v43 = vmax.f32 %v3500_v9, %v3630_v48  ;;  %7046 = vmatpush1.bf16.msra.mxu0 %v5080_v23  ;;  %v4743_v28 = vmax.f32 %v4615_v54, 0.0  ;;  %v4744_v57 = vmax.f32 %v4616_v35, 0.0  ;;  %v15396_v14 = vld [vmem:[#allocation181_spill] sm:$0xff]  ;;  %v3504_v48 = vld [vmem:[#allocation2 + $0x20] sm:$0xff] }
 0x6d9   : > { %7047 = vmatprep.subr.bf16.mxu0 %v9984_v56  ;;  %v4361_v5 = vld [vmem:[#allocation2 + $0x2e0] sm:$0xff]  ;;  %v4362_v63 = vld [vmem:[#allocation2 + $0x2e8] sm:$0xff]  ;;  %v3964_v25 = vmax.f32 %v15396_v14, %v3469_v45  ;;  %3968 = vmax.xlane.f32.xlu1 %v3967_v42  ;;  %v3506_v45 = vld [vmem:[#allocation2 + $0x30] sm:$0xff] }
 0x6da   : > { %4142 = vst.msk [vmem:[#allocation2 + $0x8] sm:$0xff] %vm4140_vm4, %v4013_v44  ;;  %4141 = vst.msk [vmem:[#allocation2] sm:$0xff] %vm4140_vm4, %v4012_v43  ;;  %v4617_v32 = vadd.f32 %v4489_v11, %v4361_v5  ;;  %v4618_v24 = vadd.f32 %v4490_v17, %v4362_v63  ;;  %v5082_v4 = vpack.c.bf16 %v4744_v57, %v4743_v28  ;;  %v12668_v62 = vld [vmem:[%s14773_s7 + $0x208] sm:$0xff] }
 0x6db   : > { %6815 = vmatmul.mubr.bf16.gmra.mrb[24].mxu0 %v8755_v22  ;;  %v3639_v23 = vpop.xlane.xlu1 %3638  ;;  %v3636_v7 = vpop.xlane.xlu0 %3635  ;;  %v12673_v54 = vld [vmem:[%s14773_s7 + $0x228] sm:$0xff]  ;;  %3965 = vmax.xlane.f32.xlu0 %v3964_v25 }
 0x6dc   : > { %v4015_v21 = vmax.f32 %v3503_v39, %v3639_v23  ;;  %v4014_v9 = vmax.f32 %v3502_v53, %v3636_v7  ;;  %6822 = vmatprep.mubr.bf16.mxu0 %v8764_v50  ;;  %7048 = vmatpush1.bf16.msra.mxu0 %v5081_v6  ;;  %v4745_v35 = vmax.f32 %v4617_v32, 0.0  ;;  %v4746_v33 = vmax.f32 %v4618_v24, 0.0  ;;  %v4397_v39 = vld [vmem:[%s14772_s6] sm:$0xff]  ;;  %v4398_v28 = vld [vmem:[%s14772_s6 + $0x8] sm:$0xff]  ;;  %v4399_v23 = vld [vmem:[%s14772_s6 + $0x10] sm:$0xff] }
 0x6dd   : > { %7049 = vmatprep.subr.bf16.mxu0 %v9984_v56  ;;  %v4363_v22 = vld [vmem:[#allocation2 + $0x2f0] sm:$0xff]  ;;  %v4364_v11 = vld [vmem:[#allocation2 + $0x2f8] sm:$0xff]  ;;  %v8763_v6 = vcombine.low %v12628_v10, %v12633_v26  ;;  %v8772_v57 = vcombine.high %v12668_v62, %v12673_v54  ;;  %v3509_v14 = vld [vmem:[#allocation2 + $0x48] sm:$0xff] }
 0x6de   : > { %4144 = vst.msk [vmem:[#allocation2 + $0x18] sm:$0xff] %vm4140_vm4, %v4015_v21  ;;  %4143 = vst.msk [vmem:[#allocation2 + $0x10] sm:$0xff] %vm4140_vm4, %v4014_v9  ;;  %v4619_v50 = vadd.f32 %v4491_v34, %v4363_v22  ;;  %v4620_v17 = vadd.f32 %v4492_v1, %v4364_v11  ;;  %v5083_v53 = vpack.c.bf16 %v4746_v33, %v4745_v35  ;;  %v4400_v7 = vld [vmem:[%s14772_s6 + $0x18] sm:$0xff]  ;;  %v12700_v9 = vld [vmem:[%s14773_s7 + $0x248] sm:$0xff] }
 0x6df   : > { %v3645_v44 = vpop.xlane.xlu1 %3644  ;;  %v3642_v43 = vpop.xlane.xlu0 %3641  ;;  %v3508_v35 = vld [vmem:[#allocation2 + $0x40] sm:$0xff]  ;;  %v15397_v22 = vld [vmem:[#allocation195_spill] sm:$0xff] }
 0x6e0   : > { %v4017_v5 = vmax.f32 %v3505_v13, %v3645_v44  ;;  %v4016_v63 = vmax.f32 %v3504_v48, %v3642_v43  ;;  %7050 = vmatpush1.bf16.msra.mxu0 %v5082_v4  ;;  %v4747_v2 = vmax.f32 %v4619_v50, 0.0  ;;  %v4748_v55 = vmax.f32 %v4620_v17, 0.0  ;;  %v12705_v13 = vld [vmem:[%s14773_s7 + $0x268] sm:$0xff]  ;;  %v15398_v50 = vld [vmem:[#allocation191_spill] sm:$0xff] }
 0x6e1   : > { %v4269_v10 = vld [vmem:[#allocation2] sm:$0xff]  ;;  %v4270_v26 = vld [vmem:[#allocation2 + $0x8] sm:$0xff]  ;;  %7051 = vmatprep.subr.bf16.mxu0 %v9984_v56  ;;  %v3475_v11 = vsel %vm3243_vm3, %v15397_v22, -inf  ;;  %v3473_v17 = vsel %vm3243_vm3, %v15398_v50, -inf }
 0x6e2   : > { %4146 = vst.msk [vmem:[#allocation2 + $0x28] sm:$0xff] %vm4140_vm4, %v4017_v5  ;;  %4145 = vst.msk [vmem:[#allocation2 + $0x20] sm:$0xff] %vm4140_vm4, %v4016_v63  ;;  %v4525_v32 = vadd.f32 %v4397_v39, %v4269_v10  ;;  %v4526_v24 = vadd.f32 %v4398_v28, %v4270_v26  ;;  %v5084_v4 = vpack.c.bf16 %v4748_v55, %v4747_v2  ;;  %v4402_v5 = vld [vmem:[%s14772_s6 + $0x28] sm:$0xff] }
 0x6e3   : > { %6823 = vmatmul.mubr.bf16.gmra.mrb[28].mxu0 %v8763_v6  ;;  %v3651_v60 = vpop.xlane.xlu1 %3650  ;;  %v3648_v42 = vpop.xlane.xlu0 %3647  ;;  %v8780_v63 = vcombine.high %v12700_v9, %v12705_v13  ;;  %v15400_v55 = vld [vmem:[#allocation189_spill] sm:$0xff] }
 0x6e4   : > { %v4019_v34 = vmax.f32 %v3507_v40, %v3651_v60  ;;  %v4018_v1 = vmax.f32 %v3506_v45, %v3648_v42  ;;  %v4653_v25 = vmax.f32 %v4525_v32, 0.0  ;;  %v4654_v21 = vmax.f32 %v4526_v24, 0.0  ;;  %6830 = vmatprep.mubr.bf16.mxu0 %v8772_v57  ;;  %7052 = vmatpush1.bf16.msra.mxu0 %v5083_v53  ;;  %v4401_v53 = vld [vmem:[%s14772_s6 + $0x20] sm:$0xff]  ;;  %v15399_v40 = vld [vmem:[#allocation193_spill] sm:$0xff]  ;;  %v3511_v32 = vld [vmem:[#allocation2 + $0x58] sm:$0xff] }
 0x6e5   : > { %v4271_v33 = vld [vmem:[#allocation2 + $0x10] sm:$0xff]  ;;  %v4272_v48 = vld [vmem:[#allocation2 + $0x18] sm:$0xff]  ;;  %7053 = vmatprep.subr.bf16.mxu0 %v9984_v56  ;;  %v8771_v57 = vcombine.low %v12668_v62, %v12673_v54  ;;  %v3973_v2 = vmax.f32 %v15399_v40, %v3475_v11  ;;  %v3970_v45 = vmax.f32 %v15400_v55, %v3473_v17  ;;  %v12741_v11 = vld [vmem:[%s14773_s7 + $0x288] sm:$0xff] }
 0x6e6   : > { %4148 = vst.msk [vmem:[#allocation2 + $0x38] sm:$0xff] %vm4140_vm4, %v4019_v34  ;;  %4147 = vst.msk [vmem:[#allocation2 + $0x30] sm:$0xff] %vm4140_vm4, %v4018_v1  ;;  %v5037_v44 = vpack.c.bf16 %v4654_v21, %v4653_v25  ;;  %v4527_v43 = vadd.f32 %v4399_v23, %v4271_v33  ;;  %v4528_v6 = vadd.f32 %v4400_v7, %v4272_v48  ;;  %v3510_v24 = vld [vmem:[#allocation2 + $0x50] sm:$0xff]  ;;  %v4404_v25 = vld [vmem:[%s14772_s6 + $0x38] sm:$0xff] }
 0x6e7   : > { %v3657_v39 = vpop.xlane.xlu1 %3656  ;;  %v3654_v28 = vpop.xlane.xlu0 %3653  ;;  %3974 = vmax.xlane.f32.xlu1 %v3973_v2  ;;  %3971 = vmax.xlane.f32.xlu0 %v3970_v45  ;;  %v3513_v33 = vld [vmem:[#allocation2 + $0x68] sm:$0xff]  ;;  %v3512_v17 = vld [vmem:[#allocation2 + $0x60] sm:$0xff] }
 0x6e8   : > { %v4021_v10 = vmax.f32 %v3509_v14, %v3657_v39  ;;  %v4020_v26 = vmax.f32 %v3508_v35, %v3654_v28  ;;  %6446 = vmatpush1.bf16.msra.mxu1 %v5037_v44  ;;  %v4655_v62 = vmax.f32 %v4527_v43, 0.0  ;;  %v4656_v54 = vmax.f32 %v4528_v6, 0.0  ;;  %7054 = vmatpush1.bf16.msra.mxu0 %v5084_v4  ;;  %v4403_v4 = vld [vmem:[%s14772_s6 + $0x30] sm:$0xff]  ;;  %v12746_v50 = vld [vmem:[%s14773_s7 + $0x2a8] sm:$0xff] }
 0x6e9   : > { %6447 = vmatprep.subr.bf16.mxu1 %v9984_v56  ;;  %v4273_v60 = vld [vmem:[#allocation2 + $0x20] sm:$0xff]  ;;  %v4274_v42 = vld [vmem:[#allocation2 + $0x28] sm:$0xff]  ;;  %7312 = vmatprep.subr.bf16.mxu0 %v9984_v56  ;;  %v8788_v2 = vcombine.high %v12741_v11, %v12746_v50 }
 0x6ea   : > { %4150 = vst.msk [vmem:[#allocation2 + $0x48] sm:$0xff] %vm4140_vm4, %v4021_v10  ;;  %4149 = vst.msk [vmem:[#allocation2 + $0x40] sm:$0xff] %vm4140_vm4, %v4020_v26  ;;  %v5038_v23 = vpack.c.bf16 %v4656_v54, %v4655_v62  ;;  %v4529_v7 = vadd.f32 %v4401_v53, %v4273_v60  ;;  %v4530_v34 = vadd.f32 %v4402_v5, %v4274_v42  ;;  %v4406_v40 = vld [vmem:[%s14772_s6 + $0x48] sm:$0xff]  ;;  %v3515_v10 = vld [vmem:[#allocation2 + $0x78] sm:$0xff] }
 0x6eb   : > { %6831 = vmatmul.mubr.bf16.gmra.mrb[32].mxu0 %v8771_v57  ;;  %v3663_v1 = vpop.xlane.xlu1 %3662  ;;  %v3660_v14 = vpop.xlane.xlu0 %3659  ;;  %v8779_v5 = vcombine.low %v12700_v9, %v12705_v13  ;;  %v3514_v9 = vld [vmem:[#allocation2 + $0x70] sm:$0xff] }
 0x6ec   : > { %v4023_v21 = vmax.f32 %v3511_v32, %v3663_v1  ;;  %v4022_v35 = vmax.f32 %v3510_v24, %v3660_v14  ;;  %6448 = vmatpush1.bf16.msra.mxu1 %v5038_v23  ;;  %v4657_v48 = vmax.f32 %v4529_v7, 0.0  ;;  %v4658_v22 = vmax.f32 %v4530_v34, 0.0  ;;  %6838 = vmatprep.mubr.bf16.mxu0 %v8780_v63  ;;  %v4405_v63 = vld [vmem:[%s14772_s6 + $0x40] sm:$0xff]  ;;  %v4407_v7 = vld [vmem:[%s14772_s6 + $0x50] sm:$0xff]  ;;  %v4408_v34 = vld [vmem:[%s14772_s6 + $0x58] sm:$0xff] }
 0x6ed   : > { %6449 = vmatprep.subr.bf16.mxu1 %v9984_v56  ;;  %v4275_v44 = vld [vmem:[#allocation2 + $0x30] sm:$0xff]  ;;  %v4276_v43 = vld [vmem:[#allocation2 + $0x38] sm:$0xff] }
 0x6ee   : > { %4152 = vst.msk [vmem:[#allocation2 + $0x58] sm:$0xff] %vm4140_vm4, %v4023_v21  ;;  %4151 = vst.msk [vmem:[#allocation2 + $0x50] sm:$0xff] %vm4140_vm4, %v4022_v35  ;;  %v5039_v6 = vpack.c.bf16 %v4658_v22, %v4657_v48  ;;  %v4531_v39 = vadd.f32 %v4403_v4, %v4275_v44  ;;  %v4532_v28 = vadd.f32 %v4404_v25, %v4276_v43  ;;  %v3517_v4 = vld [vmem:[#allocation2 + $0x88] sm:$0xff]  ;;  %v3516_v48 = vld [vmem:[#allocation2 + $0x80] sm:$0xff] }
 0x6ef   : > { %v3669_v57 = vpop.xlane.xlu1 %3668  ;;  %v3666_v53 = vpop.xlane.xlu0 %3665  ;;  %v12773_v35 = vld [vmem:[%s14773_s7 + $0x2c8] sm:$0xff]  ;;  %v15401_v44 = vld [vmem:[#allocation200_spill] sm:$0xff] }
 0x6f0   : > { %v4025_v55 = vmax.f32 %v3513_v33, %v3669_v57  ;;  %v4024_v45 = vmax.f32 %v3512_v17, %v3666_v53  ;;  %6450 = vmatpush1.bf16.msra.mxu1 %v5039_v6  ;;  %v4659_v26 = vmax.f32 %v4531_v39, 0.0  ;;  %v4660_v32 = vmax.f32 %v4532_v28, 0.0  ;;  %v12778_v33 = vld [vmem:[%s14773_s7 + $0x2e8] sm:$0xff]  ;;  %v15402_v6 = vld [vmem:[#allocation198_spill] sm:$0xff] }
 0x6f1   : > { %6451 = vmatprep.subr.bf16.mxu1 %v9984_v56  ;;  %v4277_v13 = vld [vmem:[#allocation2 + $0x40] sm:$0xff]  ;;  %v4278_v62 = vld [vmem:[#allocation2 + $0x48] sm:$0xff]  ;;  %v3479_v43 = vsel %vm3243_vm3, %v15401_v44, -inf  ;;  %v3477_v39 = vsel %vm3243_vm3, %v15402_v6, -inf }
 0x6f2   : > { %4154 = vst.msk [vmem:[#allocation2 + $0x68] sm:$0xff] %vm4140_vm4, %v4025_v55  ;;  %4153 = vst.msk [vmem:[#allocation2 + $0x60] sm:$0xff] %vm4140_vm4, %v4024_v45  ;;  %v5040_v54 = vpack.c.bf16 %v4660_v32, %v4659_v26  ;;  %v4533_v24 = vadd.f32 %v4405_v63, %v4277_v13  ;;  %v4534_v60 = vadd.f32 %v4406_v40, %v4278_v62  ;;  %v4409_v45 = vld [vmem:[%s14772_s6 + $0x60] sm:$0xff]  ;;  %v15404_v32 = vld [vmem:[#allocation197_spill] sm:$0xff] }
 0x6f3   : > { %6839 = vmatmul.mubr.bf16.gmra.mrb[36].mxu0 %v8779_v5  ;;  %v3675_v42 = vpop.xlane.xlu1 %3674  ;;  %v3672_v23 = vpop.xlane.xlu0 %3671  ;;  %v15403_v5 = vld [vmem:[#allocation199_spill] sm:$0xff]  ;;  %v8787_v55 = vcombine.low %v12741_v11, %v12746_v50  ;;  %v8796_v26 = vcombine.high %v12773_v35, %v12778_v33  ;;  %v3518_v11 = vld [vmem:[#allocation2 + $0x90] sm:$0xff]  ;;  %v12818_v6 = vld [vmem:[%s14773_s7 + $0x328] sm:$0xff] }
 0x6f4   : > { %v4027_v1 = vmax.f32 %v3515_v10, %v3675_v42  ;;  %v4026_v14 = vmax.f32 %v3514_v9, %v3672_v23  ;;  %6452 = vmatpush1.bf16.msra.mxu1 %v5040_v54  ;;  %v4661_v25 = vmax.f32 %v4533_v24, 0.0  ;;  %v4662_v21 = vmax.f32 %v4534_v60, 0.0  ;;  %6846 = vmatprep.mubr.bf16.mxu0 %v8788_v2  ;;  %v4410_v10 = vld [vmem:[%s14772_s6 + $0x68] sm:$0xff]  ;;  %v3519_v54 = vld [vmem:[#allocation2 + $0x98] sm:$0xff] }
 0x6f5   : > { %6453 = vmatprep.subr.bf16.mxu1 %v9984_v56  ;;  %v4279_v22 = vld [vmem:[#allocation2 + $0x50] sm:$0xff]  ;;  %v4280_v17 = vld [vmem:[#allocation2 + $0x58] sm:$0xff]  ;;  %v3979_v63 = vmax.f32 %v15403_v5, %v3479_v43  ;;  %v3976_v9 = vmax.f32 %v15404_v32, %v3477_v39  ;;  %v12813_v43 = vld [vmem:[%s14773_s7 + $0x308] sm:$0xff] }
 0x6f6   : > { %4156 = vst.msk [vmem:[#allocation2 + $0x78] sm:$0xff] %vm4140_vm4, %v4027_v1  ;;  %4155 = vst.msk [vmem:[#allocation2 + $0x70] sm:$0xff] %vm4140_vm4, %v4026_v14  ;;  %v5041_v28 = vpack.c.bf16 %v4662_v21, %v4661_v25  ;;  %v4535_v57 = vadd.f32 %v4407_v7, %v4279_v22  ;;  %v4536_v53 = vadd.f32 %v4408_v34, %v4280_v17  ;;  %v4412_v25 = vld [vmem:[%s14772_s6 + $0x78] sm:$0xff]  ;;  %v3521_v22 = vld [vmem:[#allocation2 + $0xa8] sm:$0xff] }
 0x6f7   : > { %v3681_v40 = vpop.xlane.xlu1 %3680  ;;  %v3678_v2 = vpop.xlane.xlu0 %3677  ;;  %3980 = vmax.xlane.f32.xlu1 %v3979_v63  ;;  %3977 = vmax.xlane.f32.xlu0 %v3976_v9  ;;  %v3520_v39 = vld [vmem:[#allocation2 + $0xa0] sm:$0xff]  ;;  %v15406_v63 = vld [vmem:[#allocation202_spill] sm:$0xff] }
 0x6f8   : > { %v4029_v13 = vmax.f32 %v3517_v4, %v3681_v40  ;;  %v4028_v62 = vmax.f32 %v3516_v48, %v3678_v2  ;;  %6454 = vmatpush1.bf16.msra.mxu1 %v5041_v28  ;;  %v4663_v24 = vmax.f32 %v4535_v57, 0.0  ;;  %v4664_v60 = vmax.f32 %v4536_v53, 0.0  ;;  %v4411_v4 = vld [vmem:[%s14772_s6 + $0x70] sm:$0xff]  ;;  %v15405_v53 = vld [vmem:[#allocation204_spill] sm:$0xff] }
 0x6f9   : > { %6455 = vmatprep.subr.bf16.mxu1 %v9984_v56  ;;  %v4281_v50 = vld [vmem:[#allocation2 + $0x60] sm:$0xff]  ;;  %v4282_v42 = vld [vmem:[#allocation2 + $0x68] sm:$0xff]  ;;  %v3483_v5 = vsel %vm3243_vm3, %v15405_v53, -inf  ;;  %v3481_v40 = vsel %vm3243_vm3, %v15406_v63, -inf }
 0x6fa   : > { %4158 = vst.msk [vmem:[#allocation2 + $0x88] sm:$0xff] %vm4140_vm4, %v4029_v13  ;;  %4157 = vst.msk [vmem:[#allocation2 + $0x80] sm:$0xff] %vm4140_vm4, %v4028_v62  ;;  %v5042_v23 = vpack.c.bf16 %v4664_v60, %v4663_v24  ;;  %v4537_v7 = vadd.f32 %v4409_v45, %v4281_v50  ;;  %v4538_v34 = vadd.f32 %v4410_v10, %v4282_v42  ;;  %v15407_v10 = vld [vmem:[#allocation203_spill] sm:$0xff]  ;;  %v4413_v62 = vld [vmem:[%s14772_s6 + $0x80] sm:$0xff] }
 0x6fb   : > { %6847 = vmatmul.mubr.bf16.gmra.mrb[40].mxu0 %v8787_v55  ;;  %v3687_v1 = vpop.xlane.xlu1 %3686  ;;  %v3684_v14 = vpop.xlane.xlu0 %3683  ;;  %v8795_v13 = vcombine.low %v12773_v35, %v12778_v33  ;;  %v8804_v24 = vcombine.high %v12813_v43, %v12818_v6  ;;  %v15408_v60 = vld [vmem:[#allocation201_spill] sm:$0xff]  ;;  %v3522_v35 = vld [vmem:[#allocation2 + $0xb0] sm:$0xff] }
 0x6fc   : > { %v4031_v21 = vmax.f32 %v3519_v54, %v3687_v1  ;;  %v4030_v48 = vmax.f32 %v3518_v11, %v3684_v14  ;;  %6456 = vmatpush1.bf16.msra.mxu1 %v5042_v23  ;;  %v4665_v17 = vmax.f32 %v4537_v7, 0.0  ;;  %v4666_v44 = vmax.f32 %v4538_v34, 0.0  ;;  %6854 = vmatprep.mubr.bf16.mxu0 %v8796_v26  ;;  %v4414_v54 = vld [vmem:[%s14772_s6 + $0x88] sm:$0xff]  ;;  %v3523_v23 = vld [vmem:[#allocation2 + $0xb8] sm:$0xff] }
 0x6fd   : > { %6457 = vmatprep.subr.bf16.mxu1 %v9984_v56  ;;  %v4283_v28 = vld [vmem:[#allocation2 + $0x70] sm:$0xff]  ;;  %v4284_v57 = vld [vmem:[#allocation2 + $0x78] sm:$0xff]  ;;  %v3985_v26 = vmax.f32 %v15407_v10, %v3483_v5  ;;  %v3982_v11 = vmax.f32 %v15408_v60, %v3481_v40  ;;  %v3525_v63 = vld [vmem:[#allocation2 + $0xc8] sm:$0xff] }
 0x6fe   : > { %4160 = vst.msk [vmem:[#allocation2 + $0x98] sm:$0xff] %vm4140_vm4, %v4031_v21  ;;  %4159 = vst.msk [vmem:[#allocation2 + $0x90] sm:$0xff] %vm4140_vm4, %v4030_v48  ;;  %v5043_v2 = vpack.c.bf16 %v4666_v44, %v4665_v17  ;;  %v4539_v55 = vadd.f32 %v4411_v4, %v4283_v28  ;;  %v4540_v45 = vadd.f32 %v4412_v25, %v4284_v57  ;;  %v4416_v17 = vld [vmem:[%s14772_s6 + $0x98] sm:$0xff]  ;;  %v15409_v44 = vld [vmem:[#allocation208_spill] sm:$0xff] }
 0x6ff   : > { %v3693_v32 = vpop.xlane.xlu1 %3692  ;;  %v3690_v9 = vpop.xlane.xlu0 %3689  ;;  %3986 = vmax.xlane.f32.xlu1 %v3985_v26  ;;  %3983 = vmax.xlane.f32.xlu0 %v3982_v11  ;;  %v15410_v28 = vld [vmem:[#allocation206_spill] sm:$0xff]  ;;  %v3524_v10 = vld [vmem:[#allocation2 + $0xc0] sm:$0xff] }
 0x700   : > { %v4033_v50 = vmax.f32 %v3521_v22, %v3693_v32  ;;  %v4032_v42 = vmax.f32 %v3520_v39, %v3690_v9  ;;  %6458 = vmatpush1.bf16.msra.mxu1 %v5043_v2  ;;  %v4667_v7 = vmax.f32 %v4539_v55, 0.0  ;;  %v4668_v34 = vmax.f32 %v4540_v45, 0.0  ;;  %v4415_v22 = vld [vmem:[%s14772_s6 + $0x90] sm:$0xff]  ;;  %v12859_v55 = vld [vmem:[%s14773_s7 + $0x348] sm:$0xff]  ;;  %v15411_v9 = vld [vmem:[#allocation207_spill] sm:$0xff] }
 0x701   : > { %6459 = vmatprep.subr.bf16.mxu1 %v9984_v56  ;;  %v4285_v33 = vld [vmem:[#allocation2 + $0x80] sm:$0xff]  ;;  %v4286_v1 = vld [vmem:[#allocation2 + $0x88] sm:$0xff]  ;;  %v3487_v39 = vsel %vm3243_vm3, %v15409_v44, -inf  ;;  %v3485_v57 = vsel %vm3243_vm3, %v15410_v28, -inf }
 0x702   : > { %4162 = vst.msk [vmem:[#allocation2 + $0xa8] sm:$0xff] %vm4140_vm4, %v4033_v50  ;;  %4161 = vst.msk [vmem:[#allocation2 + $0xa0] sm:$0xff] %vm4140_vm4, %v4032_v42  ;;  %v5044_v14 = vpack.c.bf16 %v4668_v34, %v4667_v7  ;;  %v4541_v4 = vadd.f32 %v4413_v62, %v4285_v33  ;;  %v4542_v25 = vadd.f32 %v4414_v54, %v4286_v1  ;;  %v12864_v45 = vld [vmem:[%s14773_s7 + $0x368] sm:$0xff]  ;;  %v4417_v34 = vld [vmem:[%s14772_s6 + $0xa0] sm:$0xff]  ;;  %v3489_v1 = vsel %vm3243_vm3, %v11334_v51, -inf }
 0x703   : > { %6855 = vmatmul.mubr.bf16.gmra.mrb[44].mxu0 %v8795_v13  ;;  %v3699_v21 = vpop.xlane.xlu1 %3698  ;;  %v3696_v48 = vpop.xlane.xlu0 %3695  ;;  %v3991_v13 = vmax.f32 %v15411_v9, %v3487_v39  ;;  %v15412_v62 = vld [vmem:[#allocation205_spill] sm:$0xff]  ;;  %v8803_v7 = vcombine.low %v12813_v43, %v12818_v6 }
 0x704   : > { %v4035_v53 = vmax.f32 %v3523_v23, %v3699_v21  ;;  %v4034_v5 = vmax.f32 %v3522_v35, %v3696_v48  ;;  %6460 = vmatpush1.bf16.msra.mxu1 %v5044_v14  ;;  %v4669_v40 = vmax.f32 %v4541_v4, 0.0  ;;  %v4670_v2 = vmax.f32 %v4542_v25, 0.0  ;;  %6862 = vmatprep.mubr.bf16.mxu0 %v8804_v24  ;;  %v3527_v14 = vld [vmem:[#allocation2 + $0xd8] sm:$0xff]  ;;  %v3526_v21 = vld [vmem:[#allocation2 + $0xd0] sm:$0xff] }
 0x705   : > { %6461 = vmatprep.subr.bf16.mxu1 %v9984_v56  ;;  %v4287_v26 = vld [vmem:[#allocation2 + $0x90] sm:$0xff]  ;;  %v4288_v32 = vld [vmem:[#allocation2 + $0x98] sm:$0xff]  ;;  %v3988_v54 = vmax.f32 %v15412_v62, %v3485_v57  ;;  %v3491_v24 = vsel %vm3243_vm3, %v11338_v52, -inf  ;;  %v4418_v52 = vld [vmem:[%s14772_s6 + $0xa8] sm:$0xff]  ;;  %v8812_v35 = vcombine.high %v12859_v55, %v12864_v45  ;;  %3992 = vmax.xlane.f32.xlu1 %v3991_v13 }
 0x706   : > { %4164 = vst.msk [vmem:[#allocation2 + $0xb8] sm:$0xff] %vm4140_vm4, %v4035_v53  ;;  %4163 = vst.msk [vmem:[#allocation2 + $0xb0] sm:$0xff] %vm4140_vm4, %v4034_v5  ;;  %v5045_v60 = vpack.c.bf16 %v4670_v2, %v4669_v40  ;;  %v4543_v11 = vadd.f32 %v4415_v22, %v4287_v26  ;;  %v4544_v50 = vadd.f32 %v4416_v17, %v4288_v32  ;;  %v15413_v17 = vld [vmem:[#allocation209_spill] sm:$0xff]  ;;  %v4419_v53 = vld [vmem:[%s14772_s6 + $0xb0] sm:$0xff] }
 0x707   : > { %v3705_v42 = vpop.xlane.xlu1 %3704  ;;  %v3702_v23 = vpop.xlane.xlu0 %3701  ;;  %3989 = vmax.xlane.f32.xlu0 %v3988_v54  ;;  %v3997_v33 = vmax.f32 %v11336_v38, %v3491_v24  ;;  %v3994_v44 = vmax.f32 %v15413_v17, %v3489_v1  ;;  %v4420_v5 = vld [vmem:[%s14772_s6 + $0xb8] sm:$0xff]  ;;  %v3529_v32 = vld [vmem:[#allocation2 + $0xe8] sm:$0xff]  ;;  %v3528_v54 = vld [vmem:[#allocation2 + $0xe0] sm:$0xff] }
 0x708   : > { %v4037_v43 = vmax.f32 %v3525_v63, %v3705_v42  ;;  %v4036_v6 = vmax.f32 %v3524_v10, %v3702_v23  ;;  %6462 = vmatpush1.bf16.msra.mxu1 %v5045_v60  ;;  %v4671_v4 = vmax.f32 %v4543_v11, 0.0  ;;  %v4672_v25 = vmax.f32 %v4544_v50, 0.0  ;;  %v15414_v40 = vld [vmem:[#allocation211_spill] sm:$0xff]  ;;  %v12907_v62 = vld [vmem:[%s14773_s7 + $0x388] sm:$0xff]  ;;  %v15415_v50 = vld [vmem:[#allocation210_spill] sm:$0xff] }
 0x709   : > { %6463 = vmatprep.subr.bf16.mxu1 %v9984_v56  ;;  %v4289_v48 = vld [vmem:[#allocation2 + $0xa0] sm:$0xff]  ;;  %v4290_v22 = vld [vmem:[#allocation2 + $0xa8] sm:$0xff]  ;;  %3998 = vmax.xlane.f32.xlu1 %v3997_v33  ;;  %v3495_v63 = vsel %vm3243_vm3, %v11346_v59, -inf  ;;  %v3493_v2 = vsel %vm3243_vm3, %v15414_v40, -inf  ;;  %v15416_v23 = vld [vmem:[#allocation215_spill] sm:$0xff] }
 0x70a   : > { %4166 = vst.msk [vmem:[#allocation2 + $0xc8] sm:$0xff] %vm4140_vm4, %v4037_v43  ;;  %4165 = vst.msk [vmem:[#allocation2 + $0xc0] sm:$0xff] %vm4140_vm4, %v4036_v6  ;;  %v5046_v38 = vpack.c.bf16 %v4672_v25, %v4671_v4  ;;  %v4545_v39 = vadd.f32 %v4417_v34, %v4289_v48  ;;  %v4546_v51 = vadd.f32 %v4418_v52, %v4290_v22  ;;  %v12912_v59 = vld [vmem:[%s14773_s7 + $0x3a8] sm:$0xff]  ;;  %v15417_v4 = vld [vmem:[#allocation214_spill] sm:$0xff] }
 0x70b   : > { %6863 = vmatmul.mubr.bf16.gmra.mrb[48].mxu0 %v8803_v7  ;;  %v3711_v28 = vpop.xlane.xlu1 %3710  ;;  %v3708_v57 = vpop.xlane.xlu0 %3707  ;;  %3995 = vmax.xlane.f32.xlu0 %v3994_v44  ;;  %v4003_v11 = vmax.f32 %v11344_v41, %v3495_v63  ;;  %v4000_v42 = vmax.f32 %v15415_v50, %v3493_v2  ;;  %v3499_v7 = vsel %vm3243_vm3, %v15416_v23, -inf  ;;  %v8811_v43 = vcombine.low %v12859_v55, %v12864_v45  ;;  %v4421_v41 = vld [vmem:[%s14772_s6 + $0xc0] sm:$0xff]  ;;  %v4422_v6 = vld [vmem:[%s14772_s6 + $0xc8] sm:$0xff]  ;;  %v3531_v45 = vld [vmem:[#allocation2 + $0xf8] sm:$0xff] }
 0x70c   : > { %v4039_v10 = vmax.f32 %v3527_v14, %v3711_v28  ;;  %v4038_v26 = vmax.f32 %v3526_v21, %v3708_v57  ;;  %6464 = vmatpush1.bf16.msra.mxu1 %v5046_v38  ;;  %v4673_v9 = vmax.f32 %v4545_v39, 0.0  ;;  %v4674_v13 = vmax.f32 %v4546_v51, 0.0  ;;  %6870 = vmatprep.mubr.bf16.mxu0 %v8812_v35  ;;  %v15418_v21 = vld [vmem:[#allocation213_spill] sm:$0xff]  ;;  %v3530_v38 = vld [vmem:[#allocation2 + $0xf0] sm:$0xff]  ;;  %v15419_v28 = vld [vmem:[#allocation212_spill] sm:$0xff] }
 0x70d   : > { %6465 = vmatprep.subr.bf16.mxu1 %v9984_v56  ;;  %v4291_v24 = vld [vmem:[#allocation2 + $0xb0] sm:$0xff]  ;;  %v4292_v60 = vld [vmem:[#allocation2 + $0xb8] sm:$0xff]  ;;  %v8820_v14 = vcombine.high %v12907_v62, %v12912_v59  ;;  %4004 = vmax.xlane.f32.xlu1 %v4003_v11  ;;  %v4009_v25 = vmax.f32 %v15417_v4, %v3499_v7  ;;  %v3497_v48 = vsel %vm3243_vm3, %v15418_v21, -inf }
 0x70e   : > { %4168 = vst.msk [vmem:[#allocation2 + $0xd8] sm:$0xff] %vm4140_vm4, %v4039_v10  ;;  %4167 = vst.msk [vmem:[#allocation2 + $0xd0] sm:$0xff] %vm4140_vm4, %v4038_v26  ;;  %v5047_v34 = vpack.c.bf16 %v4674_v13, %v4673_v9  ;;  %v4547_v52 = vadd.f32 %v4419_v53, %v4291_v24  ;;  %v4548_v35 = vadd.f32 %v4420_v5, %v4292_v60  ;;  %v4423_v2 = vld [vmem:[%s14772_s6 + $0xd0] sm:$0xff]  ;;  %v4424_v10 = vld [vmem:[%s14772_s6 + $0xd8] sm:$0xff] }
 0x70f   : > { %v3717_v33 = vpop.xlane.xlu1 %3716  ;;  %v3714_v1 = vpop.xlane.xlu0 %3713  ;;  %4001 = vmax.xlane.f32.xlu0 %v4000_v42  ;;  %v4006_v57 = vmax.f32 %v15419_v28, %v3497_v48  ;;  %v12954_v24 = vld [vmem:[%s14773_s7 + $0x3e8] sm:$0xff]  ;;  %v3596_v42 = vld [vmem:[#allocation2 + $0x300] sm:$0xff]  ;;  %v3599_v21 = vld [vmem:[#allocation2 + $0x318] sm:$0xff] }
 0x710   : > { %v4041_v22 = vmax.f32 %v3529_v32, %v3717_v33  ;;  %v4040_v55 = vmax.f32 %v3528_v54, %v3714_v1  ;;  %6466 = vmatpush1.bf16.msra.mxu1 %v5047_v34  ;;  %v4675_v17 = vmax.f32 %v4547_v52, 0.0  ;;  %v4676_v44 = vmax.f32 %v4548_v35, 0.0  ;;  %v12949_v54 = vld [vmem:[%s14773_s7 + $0x3c8] sm:$0xff]  ;;  %v4425_v35 = vld [vmem:[%s14772_s6 + $0xe0] sm:$0xff]  ;;  %v3598_v48 = vld [vmem:[#allocation2 + $0x310] sm:$0xff] }
 0x711   : > { %6467 = vmatprep.subr.bf16.mxu1 %v9984_v56  ;;  %v4293_v39 = vld [vmem:[#allocation2 + $0xc0] sm:$0xff]  ;;  %v4294_v51 = vld [vmem:[#allocation2 + $0xc8] sm:$0xff]  ;;  %4010 = vmax.xlane.f32.xlu1 %v4009_v25  ;;  %v8819_v52 = vcombine.low %v12907_v62, %v12912_v59  ;;  %v8828_v1 = vcombine.high %v12949_v54, %v12954_v24 }
 0x712   : > { %4170 = vst.msk [vmem:[#allocation2 + $0xe8] sm:$0xff] %vm4140_vm4, %v4041_v22  ;;  %4169 = vst.msk [vmem:[#allocation2 + $0xe0] sm:$0xff] %vm4140_vm4, %v4040_v55  ;;  %v5048_v0 = vpack.c.bf16 %v4676_v44, %v4675_v17  ;;  %v4549_v53 = vadd.f32 %v4421_v41, %v4293_v39  ;;  %v4550_v5 = vadd.f32 %v4422_v6, %v4294_v51  ;;  %v3597_v60 = vld [vmem:[#allocation2 + $0x308] sm:$0xff]  ;;  %v4427_v17 = vld [vmem:[%s14772_s6 + $0xf0] sm:$0xff] }
 0x713   : > { %6871 = vmatmul.mubr.bf16.gmra.mrb[52].mxu0 %v8811_v43  ;;  %v3723_v63 = vpop.xlane.xlu1 %3722  ;;  %v3720_v40 = vpop.xlane.xlu0 %3719  ;;  %4007 = vmax.xlane.f32.xlu0 %v4006_v57  ;;  %v4426_v33 = vld [vmem:[%s14772_s6 + $0xe8] sm:$0xff]  ;;  %v4428_v44 = vld [vmem:[%s14772_s6 + $0xf8] sm:$0xff] }
 0x714   : > { %v4043_v26 = vmax.f32 %v3531_v45, %v3723_v63  ;;  %v4042_v32 = vmax.f32 %v3530_v38, %v3720_v40  ;;  %6468 = vmatpush1.bf16.msra.mxu1 %v5048_v0  ;;  %v4677_v9 = vmax.f32 %v4549_v53, 0.0  ;;  %v4678_v13 = vmax.f32 %v4550_v5, 0.0  ;;  %6878 = vmatprep.mubr.bf16.mxu0 %v8820_v14  ;;  %v12981_v57 = vld [vmem:[%s14773_s7 + $0x408] sm:$0xff] }
 0x715   : > { %6469 = vmatprep.subr.bf16.mxu1 %v9984_v56  ;;  %v4295_v11 = vld [vmem:[#allocation2 + $0xd0] sm:$0xff]  ;;  %v4296_v50 = vld [vmem:[#allocation2 + $0xd8] sm:$0xff]  ;;  %v12986_v0 = vld [vmem:[%s14773_s7 + $0x428] sm:$0xff] }
 0x716   : > { %4172 = vst.msk [vmem:[#allocation2 + $0xf8] sm:$0xff] %vm4140_vm4, %v4043_v26  ;;  %4171 = vst.msk [vmem:[#allocation2 + $0xf0] sm:$0xff] %vm4140_vm4, %v4042_v32  ;;  %v5049_v23 = vpack.c.bf16 %v4678_v13, %v4677_v9  ;;  %v4551_v7 = vadd.f32 %v4423_v2, %v4295_v11  ;;  %v4552_v34 = vadd.f32 %v4424_v10, %v4296_v50  ;;  %v3601_v63 = vld [vmem:[#allocation2 + $0x328] sm:$0xff]  ;;  %v3600_v10 = vld [vmem:[#allocation2 + $0x320] sm:$0xff] }
 0x717   : > { %v3921_v43 = vpop.xlane.xlu1 %3920  ;;  %v3918_v41 = vpop.xlane.xlu0 %3917  ;;  %v8827_v13 = vcombine.low %v12949_v54, %v12954_v24  ;;  %v4793_v54 = vld [vmem:[%s14773_s7 + $0x60] sm:$0xff]  ;;  %v3603_v24 = vld [vmem:[#allocation2 + $0x338] sm:$0xff] }
 0x718   : > { %6470 = vmatpush1.bf16.msra.mxu1 %v5049_v23  ;;  %v4679_v6 = vmax.f32 %v4551_v7, 0.0  ;;  %v4680_v14 = vmax.f32 %v4552_v34, 0.0  ;;  %v4109_v4 = vmax.f32 %v3597_v60, %v3921_v43  ;;  %v4108_v25 = vmax.f32 %v3596_v42, %v3918_v41  ;;  %v12998_v7 = vld [vmem:[%s14773_s7 + $0x40] sm:$0xff] }
 0x719   : > { %6471 = vmatprep.subr.bf16.mxu1 %v9984_v56  ;;  %v4297_v62 = vld [vmem:[#allocation2 + $0xe0] sm:$0xff]  ;;  %v4298_v59 = vld [vmem:[#allocation2 + $0xe8] sm:$0xff]  ;;  %v8836_v60 = vcombine.high %v12981_v57, %v12986_v0  ;;  %v8714_v41 = vcombine.high %v12998_v7, %v4793_v54 }
 0x71a   : > { %v5050_v22 = vpack.c.bf16 %v4680_v14, %v4679_v6  ;;  %v4553_v55 = vadd.f32 %v4425_v35, %v4297_v62  ;;  %v4554_v45 = vadd.f32 %v4426_v33, %v4298_v59  ;;  %4238 = vst.msk [vmem:[#allocation2 + $0x308] sm:$0xff] %vm4140_vm4, %v4109_v4  ;;  %4237 = vst.msk [vmem:[#allocation2 + $0x300] sm:$0xff] %vm4140_vm4, %v4108_v25  ;;  %v3602_v35 = vld [vmem:[#allocation2 + $0x330] sm:$0xff] }
 0x71b   : > { %6879 = vmatmul.mubr.bf16.gmra.mrb[56].mxu0 %v8819_v52  ;;  %v3927_v38 = vpop.xlane.xlu1 %3926  ;;  %v3924_v39 = vpop.xlane.xlu0 %3923  ;;  %v13011_v4 = vld [vmem:[%s14773_s7 + $0x10] sm:$0xff] }
 0x71c   : > { %6472 = vmatpush1.bf16.msra.mxu1 %v5050_v22  ;;  %v4681_v51 = vmax.f32 %v4553_v55, 0.0  ;;  %v4682_v28 = vmax.f32 %v4554_v45, 0.0  ;;  %6886 = vmatprep.mubr.bf16.mxu0 %v8828_v1  ;;  %v4111_v53 = vmax.f32 %v3599_v21, %v3927_v38  ;;  %v4110_v5 = vmax.f32 %v3598_v48, %v3924_v39  ;;  %v4787_v25 = vld [vmem:[%s14773_s7 + $0x30] sm:$0xff]  ;;  %v4493_v21 = vld [vmem:[%s14772_s6 + $0x300] sm:$0xff]  ;;  %v4494_v48 = vld [vmem:[%s14772_s6 + $0x308] sm:$0xff] }
 0x71d   : > { %6473 = vmatprep.subr.bf16.mxu1 %v9984_v56  ;;  %v4299_v40 = vld [vmem:[#allocation2 + $0xf0] sm:$0xff]  ;;  %v4300_v2 = vld [vmem:[#allocation2 + $0xf8] sm:$0xff]  ;;  %v8835_v22 = vcombine.low %v12981_v57, %v12986_v0  ;;  %v3605_v55 = vld [vmem:[#allocation2 + $0x348] sm:$0xff]  ;;  %v8710_v45 = vcombine.high %v13011_v4, %v4787_v25 }
 0x71e   : > { %v5051_v26 = vpack.c.bf16 %v4682_v28, %v4681_v51  ;;  %v4555_v32 = vadd.f32 %v4427_v17, %v4299_v40  ;;  %v4556_v9 = vadd.f32 %v4428_v44, %v4300_v2  ;;  %4240 = vst.msk [vmem:[#allocation2 + $0x318] sm:$0xff] %vm4140_vm4, %v4111_v53  ;;  %4239 = vst.msk [vmem:[#allocation2 + $0x310] sm:$0xff] %vm4140_vm4, %v4110_v5  ;;  %v3604_v17 = vld [vmem:[#allocation2 + $0x340] sm:$0xff]  ;;  %v4496_v28 = vld [vmem:[%s14772_s6 + $0x318] sm:$0xff] }
 0x71f   : > { %v3933_v11 = vpop.xlane.xlu1 %3932  ;;  %v3930_v50 = vpop.xlane.xlu0 %3929  ;;  %v13035_v44 = vld [vmem:[%s14773_s7 + $0x80] sm:$0xff]  ;;  %v8713_v53 = vcombine.low %v12998_v7, %v4793_v54  ;;  %v13058_v40 = vld [vmem:[%s14773_s7 + $0x70] sm:$0xff] }
 0x720   : > { %6474 = vmatpush1.bf16.msra.mxu1 %v5051_v26  ;;  %v4683_v42 = vmax.f32 %v4555_v32, 0.0  ;;  %v4684_v23 = vmax.f32 %v4556_v9, 0.0  ;;  %v4113_v34 = vmax.f32 %v3601_v63, %v3933_v11  ;;  %v4112_v52 = vmax.f32 %v3600_v10, %v3930_v50  ;;  %v13053_v63 = vld [vmem:[%s14773_s7 + $0x50] sm:$0xff]  ;;  %v4497_v10 = vld [vmem:[%s14772_s6 + $0x320] sm:$0xff]  ;;  %v4498_v11 = vld [vmem:[%s14772_s6 + $0x328] sm:$0xff] }
 0x721   : > { %6475 = vmatprep.subr.bf16.mxu1 %v9984_v56  ;;  %v4365_v62 = vld [vmem:[#allocation2 + $0x300] sm:$0xff]  ;;  %v4366_v59 = vld [vmem:[#allocation2 + $0x308] sm:$0xff]  ;;  %v8722_v2 = vcombine.high %v13035_v44, %v13040_v12  ;;  %v8709_v50 = vcombine.low %v13011_v4, %v4787_v25  ;;  %v4799_v25 = vld [vmem:[%s14773_s7 + $0x90] sm:$0xff] }
 0x722   : > { %v5052_v33 = vpack.c.bf16 %v4684_v23, %v4683_v42  ;;  %4242 = vst.msk [vmem:[#allocation2 + $0x328] sm:$0xff] %vm4140_vm4, %v4113_v34  ;;  %4241 = vst.msk [vmem:[#allocation2 + $0x320] sm:$0xff] %vm4140_vm4, %v4112_v52  ;;  %v4621_v49 = vadd.f32 %v4493_v21, %v4365_v62  ;;  %v8718_v42 = vcombine.high %v13053_v63, %v13058_v40  ;;  %v13079_v34 = vld [vmem:[%s14773_s7 + $0xc0] sm:$0xff]  ;;  %v4803_v21 = vld [vmem:[%s14773_s7 + $0xb0] sm:$0xff] }
 0x723   : > { %6887 = vmatmul.mubr.bf16.gmra.mrb[60].mxu0 %v8827_v13  ;;  %v3939_v1 = vpop.xlane.xlu1 %3938  ;;  %v3936_v43 = vpop.xlane.xlu0 %3935  ;;  %v13084_v52 = vld [vmem:[%s14773_s7 + $0xe0] sm:$0xff] }
 0x724   : > { %6476 = vmatpush1.bf16.msra.mxu1 %v5052_v33  ;;  %6894 = vmatprep.mubr.bf16.mxu0 %v8836_v60  ;;  %v4115_v6 = vmax.f32 %v3603_v24, %v3939_v1  ;;  %v4114_v14 = vmax.f32 %v3602_v35, %v3936_v43  ;;  %v4499_v35 = vld [vmem:[%s14772_s6 + $0x330] sm:$0xff]  ;;  %v4500_v43 = vld [vmem:[%s14772_s6 + $0x338] sm:$0xff] }
 0x725   : > { %9292 = vmatprep.subr.bf16.mxu1 %v9984_v56  ;;  %v4367_v39 = vld [vmem:[#allocation2 + $0x310] sm:$0xff]  ;;  %v4368_v51 = vld [vmem:[#allocation2 + $0x318] sm:$0xff] }
 0x726   : > { %4244 = vst.msk [vmem:[#allocation2 + $0x338] sm:$0xff] %vm4140_vm4, %v4115_v6  ;;  %4243 = vst.msk [vmem:[#allocation2 + $0x330] sm:$0xff] %vm4140_vm4, %v4114_v14  ;;  %v4624_v9 = vadd.f32 %v4496_v28, %v4368_v51  ;;  %v8730_v6 = vcombine.high %v13079_v34, %v13084_v52  ;;  %v3606_v51 = vld [vmem:[#allocation2 + $0x350] sm:$0xff] }
 0x727   : > { %6478 = vmatmul.mubr.bf16.vlgmr.msra.gmra.mrb[0].mxu1 %v8705_v61  ;;  %v4622_v61 = vadd.f32 %v4494_v48, %v4366_v59  ;;  %v3945_v38 = vpop.xlane.xlu1 %3944 }
 0x728   : > { %9308 = vmatpush1.bf16.msra.mxu1 %v12132_v19  ;;  %6485 = vmatprep.mubr.bf16.mxu1 %v8714_v41  ;;  %v4495_v19 = vld [vmem:[%s14772_s6 + $0x310] sm:$0xff]  ;;  %v4117_v57 = vmax.f32 %v3605_v55, %v3945_v38  ;;  %v3942_v0 = vpop.xlane.xlu0 %3941  ;;  %v4752_v24 = vmax.f32 %v4624_v9, 0.0  ;;  %v8721_v41 = vcombine.low %v13035_v44, %v13040_v12  ;;  %v4501_v55 = vld [vmem:[%s14772_s6 + $0x340] sm:$0xff]  ;;  %v8726_v44 = vcombine.high %v4799_v25, %v4803_v21 }
 0x729   : > { %9293 = vmatprep.subr.bf16.mxu1 %v9984_v56  ;;  %v4116_v5 = vmax.f32 %v3604_v17, %v3942_v0  ;;  %v4750_v26 = vmax.f32 %v4622_v61, 0.0  ;;  %v4623_v32 = vadd.f32 %v4495_v19, %v4367_v39  ;;  %v4369_v13 = vld [vmem:[#allocation2 + $0x320] sm:$0xff]  ;;  %v4370_v60 = vld [vmem:[#allocation2 + $0x328] sm:$0xff]  ;;  %v8717_v17 = vcombine.low %v13053_v63, %v13058_v40 }
 0x72a   : > { %4246 = vst.msk [vmem:[#allocation2 + $0x348] sm:$0xff] %vm4140_vm4, %v4117_v57  ;;  %v4625_v23 = vadd.f32 %v4497_v10, %v4369_v13  ;;  %v4626_v7 = vadd.f32 %v4498_v11, %v4370_v60  ;;  %v4813_v61 = vld [vmem:[%s14773_s7 + $0x100] sm:$0xff]  ;;  %v8729_v0 = vcombine.low %v13079_v34, %v13084_v52  ;;  %v4811_v10 = vld [vmem:[%s14773_s7 + $0xf0] sm:$0xff] }
 0x72b   : > { %6895 = vmatmul.mubr.bf16.gmra.mrb[64].mxu0 %v8835_v22  ;;  %4245 = vst.msk [vmem:[#allocation2 + $0x340] sm:$0xff] %vm4140_vm4, %v4116_v5  ;;  %v4817_v19 = vld [vmem:[%s14773_s7 + $0x120] sm:$0xff]  ;;  %v4815_v34 = vld [vmem:[%s14773_s7 + $0x110] sm:$0xff] }
 0x72c   : > { %9309 = vmatpush1.bf16.msra.mxu1 %v12146_v3  ;;  %7055 = vmatprep.mubr.bf16.mxu0 %v8710_v45  ;;  %v4749_v3 = vmax.f32 %v4621_v49, 0.0  ;;  %v4753_v14 = vmax.f32 %v4625_v23, 0.0  ;;  %v4754_v4 = vmax.f32 %v4626_v7, 0.0  ;;  %v4502_v45 = vld [vmem:[%s14772_s6 + $0x348] sm:$0xff]  ;;  %v3607_v49 = vld [vmem:[#allocation2 + $0x358] sm:$0xff]  ;;  %v8738_v63 = vcombine.high %v4813_v61, %v4817_v19  ;;  %v4821_v13 = vld [vmem:[%s14773_s7 + $0x140] sm:$0xff] }
 0x72d   : > { %9294 = vmatprep.subr.bf16.mxu1 %v9984_v56  ;;  %v4371_v33 = vld [vmem:[#allocation2 + $0x330] sm:$0xff]  ;;  %v4372_v1 = vld [vmem:[#allocation2 + $0x338] sm:$0xff]  ;;  %v4825_v60 = vld [vmem:[%s14773_s7 + $0x160] sm:$0xff] }
 0x72e   : > { %v5085_v54 = vpack.c.bf16 %v4750_v26, %v4749_v3  ;;  %v4627_v59 = vadd.f32 %v4499_v35, %v4371_v33  ;;  %v5087_v12 = vpack.c.bf16 %v4754_v4, %v4753_v14  ;;  %v4504_v7 = vld [vmem:[%s14772_s6 + $0x358] sm:$0xff]  ;;  %v4819_v52 = vld [vmem:[%s14773_s7 + $0x130] sm:$0xff]  ;;  %v3608_v14 = vld [vmem:[#allocation2 + $0x360] sm:$0xff] }
 0x72f   : > { %6486 = vmatmul.mubr.bf16.gmra.mrb[4].mxu1 %v8713_v53  ;;  %v8742_v33 = vcombine.high %v4815_v34, %v4819_v52 }
 0x730   : > { %9310 = vmatpush1.bf16.msra.mxu1 %v12151_v58  ;;  %6493 = vmatprep.mubr.bf16.mxu1 %v8722_v2  ;;  %v4751_v58 = vmax.f32 %v4623_v32, 0.0  ;;  %v4755_v38 = vmax.f32 %v4627_v59, 0.0  ;;  %v4807_v2 = vld [vmem:[%s14773_s7 + $0xd0] sm:$0xff] }
 0x731   : > { %9295 = vmatprep.subr.bf16.mxu1 %v9984_v56  ;;  %v4374_v48 = vld [vmem:[#allocation2 + $0x348] sm:$0xff]  ;;  %v8734_v9 = vcombine.high %v4807_v2, %v4811_v10 }
 0x732   : > { %v5086_v62 = vpack.c.bf16 %v4752_v24, %v4751_v58  ;;  %v4373_v22 = vld [vmem:[#allocation2 + $0x340] sm:$0xff]  ;;  %v8733_v24 = vcombine.low %v4807_v2, %v4811_v10 }
 0x733   : > { %7056 = vmatmul.mubr.bf16.vlgmr.msra.gmra.mrb[0].mxu0 %v8709_v50  ;;  %v4629_v28 = vadd.f32 %v4501_v55, %v4373_v22  ;;  %v8737_v50 = vcombine.low %v4813_v61, %v4817_v19  ;;  %v4827_v22 = vld [vmem:[%s14773_s7 + $0x170] sm:$0xff]  ;;  %v4506_v61 = vld [vmem:[%s14772_s6 + $0x368] sm:$0xff] }
 0x734   : > { %9311 = vmatpush1.bf16.msra.mxu1 %v12171_v37  ;;  %7063 = vmatprep.mubr.bf16.mxu0 %v8718_v42  ;;  %v4628_v37 = vadd.f32 %v4500_v43, %v4372_v1  ;;  %v8746_v42 = vcombine.high %v4821_v13, %v4825_v60  ;;  %v3609_v1 = vld [vmem:[#allocation2 + $0x368] sm:$0xff]  ;;  %v4831_v19 = vld [vmem:[%s14773_s7 + $0x190] sm:$0xff] }
 0x735   : > { %9296 = vmatprep.subr.bf16.mxu1 %v9984_v56  ;;  %7313 = vmatpush1.bf16.msra.mxu0 %v5085_v54  ;;  %v4757_v26 = vmax.f32 %v4629_v28, 0.0 }
 0x736   : > { %7314 = vmatprep.subr.bf16.mxu0 %v9984_v56  ;;  %v4756_v39 = vmax.f32 %v4628_v37, 0.0 }
 0x737   : > { %6494 = vmatmul.mubr.bf16.gmra.mrb[8].mxu1 %v8721_v41  ;;  %v4829_v41 = vld [vmem:[%s14773_s7 + $0x180] sm:$0xff] }
 0x738   : > { %9312 = vmatpush1.bf16.msra.mxu1 %v12191_v29  ;;  %6501 = vmatprep.mubr.bf16.mxu1 %v8730_v6  ;;  %v4630_v29 = vadd.f32 %v4502_v45, %v4374_v48  ;;  %v3951_v57 = vpop.xlane.xlu1 %3950  ;;  %v5088_v3 = vpack.c.bf16 %v4756_v39, %v4755_v38  ;;  %v4833_v6 = vld [vmem:[%s14773_s7 + $0x1a0] sm:$0xff]  ;;  %v4823_v48 = vld [vmem:[%s14773_s7 + $0x150] sm:$0xff] }
 0x739   : > { %9297 = vmatprep.subr.bf16.mxu1 %v9984_v56  ;;  %7315 = vmatpush1.bf16.msra.mxu0 %v5086_v62  ;;  %v4119_v53 = vmax.f32 %v3607_v49, %v3951_v57  ;;  %v8754_v59 = vcombine.high %v4829_v41, %v4833_v6  ;;  %v8750_v55 = vcombine.high %v4823_v48, %v4827_v22  ;;  %v4837_v45 = vld [vmem:[%s14773_s7 + $0x1c0] sm:$0xff]  ;;  %v4835_v38 = vld [vmem:[%s14773_s7 + $0x1b0] sm:$0xff] }
 0x73a   : > { %7316 = vmatprep.subr.bf16.mxu0 %v9984_v56  ;;  %v3948_v5 = vpop.xlane.xlu0 %3947  ;;  %v4758_v32 = vmax.f32 %v4630_v29, 0.0  ;;  %v8749_v28 = vcombine.low %v4823_v48, %v4827_v22  ;;  %v8758_v57 = vcombine.high %v4831_v19, %v4835_v38  ;;  %v4859_v48 = vld [vmem:[%s14773_s7 + $0x270] sm:$0xff] }
 0x73b   : > { %7064 = vmatmul.mubr.bf16.gmra.mrb[4].mxu0 %v8717_v17  ;;  %v4118_v40 = vmax.f32 %v3606_v51, %v3948_v5  ;;  %4248 = vst.msk [vmem:[#allocation2 + $0x358] sm:$0xff] %vm4140_vm4, %v4119_v53  ;;  %v4841_v17 = vld [vmem:[%s14773_s7 + $0x1e0] sm:$0xff] }
 0x73c   : > { %9313 = vmatpush1.bf16.msra.mxu1 %v12211_v20  ;;  %7071 = vmatprep.mubr.bf16.mxu0 %v8726_v44  ;;  %v8725_v20 = vcombine.low %v4799_v25, %v4803_v21  ;;  %v5089_v11 = vpack.c.bf16 %v4758_v32, %v4757_v26  ;;  %v8745_v21 = vcombine.low %v4821_v13, %v4825_v60  ;;  %v4845_v5 = vld [vmem:[%s14773_s7 + $0x200] sm:$0xff]  ;;  %v4843_v13 = vld [vmem:[%s14773_s7 + $0x1f0] sm:$0xff] }
 0x73d   : > { %9298 = vmatprep.subr.bf16.mxu1 %v9984_v56  ;;  %7317 = vmatpush1.bf16.msra.mxu0 %v5087_v12  ;;  %4247 = vst.msk [vmem:[#allocation2 + $0x350] sm:$0xff] %vm4140_vm4, %v4118_v40  ;;  %v8753_v44 = vcombine.low %v4829_v41, %v4833_v6  ;;  %v4505_v12 = vld [vmem:[%s14772_s6 + $0x360] sm:$0xff]  ;;  %v3610_v40 = vld [vmem:[#allocation2 + $0x370] sm:$0xff] }
 0x73e   : > { %7318 = vmatprep.subr.bf16.mxu0 %v9984_v56  ;;  %v4865_v41 = vld [vmem:[%s14773_s7 + $0x2a0] sm:$0xff] }
 0x73f   : > { %6502 = vmatmul.mubr.bf16.gmra.mrb[12].mxu1 %v8729_v0  ;;  %v3611_v0 = vld [vmem:[#allocation2 + $0x378] sm:$0xff]  ;;  %v3612_v6 = vld [vmem:[#allocation2 + $0x380] sm:$0xff] }
 0x740   : > { %9314 = vmatpush1.bf16.msra.mxu1 %v12231_v36  ;;  %6509 = vmatprep.mubr.bf16.mxu1 %v8738_v63  ;;  %v4503_v36 = vld [vmem:[%s14772_s6 + $0x350] sm:$0xff]  ;;  %v4849_v63 = vld [vmem:[%s14773_s7 + $0x220] sm:$0xff] }
 0x741   : > { %9299 = vmatprep.subr.bf16.mxu1 %v9984_v56  ;;  %7319 = vmatpush1.bf16.msra.mxu0 %v5088_v3  ;;  %v8761_v3 = vcombine.low %v4837_v45, %v4841_v17  ;;  %v8770_v32 = vcombine.high %v4845_v5, %v4849_v63 }
 0x742   : > { %7320 = vmatprep.subr.bf16.mxu0 %v9984_v56  ;;  %v4376_v23 = vld [vmem:[#allocation2 + $0x358] sm:$0xff] }
 0x743   : > { %7072 = vmatmul.mubr.bf16.gmra.mrb[8].mxu0 %v8725_v20 }
 0x744   : > { %9315 = vmatpush1.bf16.msra.mxu1 %v12251_v15  ;;  %7079 = vmatprep.mubr.bf16.mxu0 %v8734_v9  ;;  %v4375_v54 = vld [vmem:[#allocation2 + $0x350] sm:$0xff]  ;;  %v4632_v15 = vadd.f32 %v4504_v7, %v4376_v23  ;;  %v4508_v7 = vld [vmem:[%s14772_s6 + $0x378] sm:$0xff] }
 0x745   : > { %9300 = vmatprep.subr.bf16.mxu1 %v9984_v56  ;;  %7321 = vmatpush1.bf16.msra.mxu0 %v5089_v11  ;;  %v4631_v58 = vadd.f32 %v4503_v36, %v4375_v54  ;;  %v4839_v9 = vld [vmem:[%s14773_s7 + $0x1d0] sm:$0xff]  ;;  %v4853_v11 = vld [vmem:[%s14773_s7 + $0x240] sm:$0xff]  ;;  %v8769_v36 = vcombine.low %v4845_v5, %v4849_v63 }
 0x746   : > { %7322 = vmatprep.subr.bf16.mxu0 %v9984_v56  ;;  %v4760_v35 = vmax.f32 %v4632_v15, 0.0  ;;  %v3957_v4 = vpop.xlane.xlu1 %3956  ;;  %v8766_v60 = vcombine.high %v4839_v9, %v4843_v13 }
 0x747   : > { %6510 = vmatmul.mubr.bf16.gmra.mrb[16].mxu1 %v8737_v50  ;;  %v4759_v43 = vmax.f32 %v4631_v58, 0.0  ;;  %v4857_v50 = vld [vmem:[%s14773_s7 + $0x260] sm:$0xff] }
 0x748   : > { %9316 = vmatpush1.bf16.msra.mxu1 %v12271_v30  ;;  %6517 = vmatprep.mubr.bf16.mxu1 %v8746_v42  ;;  %v4121_v30 = vmax.f32 %v3609_v1, %v3957_v4  ;;  %v3954_v62 = vpop.xlane.xlu0 %3953  ;;  %v4507_v42 = vld [vmem:[%s14772_s6 + $0x370] sm:$0xff] }
 0x749   : > { %9301 = vmatprep.subr.bf16.mxu1 %v9984_v56  ;;  %v5090_v25 = vpack.c.bf16 %v4760_v35, %v4759_v43  ;;  %v4120_v37 = vmax.f32 %v3608_v14, %v3954_v62  ;;  %v4861_v43 = vld [vmem:[%s14773_s7 + $0x280] sm:$0xff] }
 0x74a   : > { %4250 = vst.msk [vmem:[#allocation2 + $0x368] sm:$0xff] %vm4140_vm4, %v4121_v30  ;;  %v8786_v62 = vcombine.high %v4861_v43, %v4865_v41 }
 0x74b   : > { %7080 = vmatmul.mubr.bf16.gmra.mrb[12].mxu0 %v8733_v24  ;;  %4249 = vst.msk [vmem:[#allocation2 + $0x360] sm:$0xff] %vm4140_vm4, %v4120_v37  ;;  %v8765_v24 = vcombine.low %v4839_v9, %v4843_v13  ;;  %v4855_v37 = vld [vmem:[%s14773_s7 + $0x250] sm:$0xff] }
 0x74c   : > { %9317 = vmatpush1.bf16.msra.mxu1 %v12291_v18  ;;  %7087 = vmatprep.mubr.bf16.mxu0 %v8742_v33  ;;  %v8741_v18 = vcombine.low %v4815_v34, %v4819_v52  ;;  %v4847_v34 = vld [vmem:[%s14773_s7 + $0x210] sm:$0xff]  ;;  %v3613_v33 = vld [vmem:[#allocation2 + $0x388] sm:$0xff] }
 0x74d   : > { %9302 = vmatprep.subr.bf16.mxu1 %v9984_v56  ;;  %7323 = vmatpush1.bf16.msra.mxu0 %v5090_v25  ;;  %v4851_v52 = vld [vmem:[%s14773_s7 + $0x230] sm:$0xff]  ;;  %v8777_v25 = vcombine.low %v4853_v11, %v4857_v50 }
 0x74e   : > { %7324 = vmatprep.subr.bf16.mxu0 %v9984_v56  ;;  %v8774_v35 = vcombine.high %v4847_v34, %v4851_v52  ;;  %v8773_v22 = vcombine.low %v4847_v34, %v4851_v52  ;;  %v4875_v9 = vld [vmem:[%s14773_s7 + $0x2f0] sm:$0xff]  ;;  %v4512_v52 = vld [vmem:[%s14772_s6 + $0x398] sm:$0xff] }
 0x74f   : > { %6518 = vmatmul.mubr.bf16.gmra.mrb[20].mxu1 %v8745_v21  ;;  %v4511_v34 = vld [vmem:[%s14772_s6 + $0x390] sm:$0xff] }
 0x750   : > { %9318 = vmatpush1.bf16.msra.mxu1 %v12311_v46  ;;  %6525 = vmatprep.mubr.bf16.mxu1 %v8754_v59  ;;  %v8762_v46 = vcombine.high %v4837_v45, %v4841_v17  ;;  %v4873_v45 = vld [vmem:[%s14773_s7 + $0x2e0] sm:$0xff]  ;;  %v4863_v17 = vld [vmem:[%s14773_s7 + $0x290] sm:$0xff] }
 0x751   : > { %9303 = vmatprep.subr.bf16.mxu1 %v9984_v56  ;;  %v4378_v49 = vld [vmem:[#allocation2 + $0x368] sm:$0xff] }
 0x752   : > { %v4377_v39 = vld [vmem:[#allocation2 + $0x360] sm:$0xff]  ;;  %v4634_v51 = vadd.f32 %v4506_v61, %v4378_v49  ;;  %v3615_v49 = vld [vmem:[#allocation2 + $0x398] sm:$0xff] }
 0x753   : > { %7088 = vmatmul.mubr.bf16.gmra.mrb[16].mxu0 %v8741_v18  ;;  %v8782_v18 = vcombine.high %v4855_v37, %v4859_v48 }
 0x754   : > { %9319 = vmatpush1.bf16.msra.mxu1 %v12328_v8  ;;  %7095 = vmatprep.mubr.bf16.mxu0 %v8750_v55  ;;  %v4633_v8 = vadd.f32 %v4505_v12, %v4377_v39  ;;  %v4762_v29 = vmax.f32 %v4634_v51, 0.0  ;;  %v4869_v55 = vld [vmem:[%s14773_s7 + $0x2c0] sm:$0xff]  ;;  %v3614_v39 = vld [vmem:[#allocation2 + $0x390] sm:$0xff] }
 0x755   : > { %9304 = vmatprep.subr.bf16.mxu1 %v9984_v56  ;;  %v4509_v12 = vld [vmem:[%s14772_s6 + $0x380] sm:$0xff] }
 0x756   : > { %v4761_v53 = vmax.f32 %v4633_v8, 0.0  ;;  %v3963_v2 = vpop.xlane.xlu1 %3962 }
 0x757   : > { %6526 = vmatmul.mubr.bf16.gmra.mrb[24].mxu1 %v8753_v44  ;;  %v8785_v44 = vcombine.low %v4861_v43, %v4865_v41 }
 0x758   : > { %9320 = vmatpush1.bf16.msra.mxu1 %v12340_v31  ;;  %6533 = vmatprep.mubr.bf16.mxu1 %v8762_v46  ;;  %v5091_v10 = vpack.c.bf16 %v4762_v29, %v4761_v53  ;;  %v4123_v31 = vmax.f32 %v3611_v0, %v3963_v2  ;;  %v3960_v26 = vpop.xlane.xlu0 %3959  ;;  %v8794_v46 = vcombine.high %v4869_v55, %v4873_v45 }
 0x759   : > { %9305 = vmatprep.subr.bf16.mxu1 %v9984_v56  ;;  %v4122_v20 = vmax.f32 %v3610_v40, %v3960_v26  ;;  %v8793_v26 = vcombine.low %v4869_v55, %v4873_v45 }
 0x75a   : > { %4252 = vst.msk [vmem:[#allocation2 + $0x378] sm:$0xff] %vm4140_vm4, %v4123_v31  ;;  %7325 = vmatpush1.bf16.msra.mxu0 %v5091_v10  ;;  %v4877_v10 = vld [vmem:[%s14773_s7 + $0x300] sm:$0xff] }
 0x75b   : > { %7096 = vmatmul.mubr.bf16.gmra.mrb[20].mxu0 %v8749_v28  ;;  %4251 = vst.msk [vmem:[#allocation2 + $0x370] sm:$0xff] %vm4140_vm4, %v4122_v20  ;;  %7326 = vmatprep.subr.bf16.mxu0 %v9984_v56  ;;  %v4871_v20 = vld [vmem:[%s14773_s7 + $0x2d0] sm:$0xff] }
 0x75c   : > { %9321 = vmatpush1.bf16.msra.mxu1 %v12359_v16  ;;  %7103 = vmatprep.mubr.bf16.mxu0 %v8758_v57  ;;  %v8757_v16 = vcombine.low %v4831_v19, %v4835_v38  ;;  %v4510_v19 = vld [vmem:[%s14772_s6 + $0x388] sm:$0xff]  ;;  %v4867_v38 = vld [vmem:[%s14773_s7 + $0x2b0] sm:$0xff]  ;;  %v8781_v57 = vcombine.low %v4855_v37, %v4859_v48 }
 0x75d   : > { %9306 = vmatprep.subr.bf16.mxu1 %v9984_v56  ;;  %v8790_v63 = vcombine.high %v4863_v17, %v4867_v38  ;;  %v8789_v13 = vcombine.low %v4863_v17, %v4867_v38  ;;  %v3618_v37 = vld [vmem:[#allocation2 + $0x3b0] sm:$0xff]  ;;  %v3620_v38 = vld [vmem:[#allocation2 + $0x3c0] sm:$0xff] }
 0x75e   : > { %v4887_v48 = vld [vmem:[%s14773_s7 + $0x350] sm:$0xff] }
 0x75f   : > { %6534 = vmatmul.mubr.bf16.gmra.mrb[28].mxu1 %v8761_v3  ;;  %v4881_v3 = vld [vmem:[%s14773_s7 + $0x320] sm:$0xff] }
 0x760   : > { %9322 = vmatpush1.bf16.msra.mxu1 %v12372_v27  ;;  %6541 = vmatprep.mubr.bf16.mxu1 %v8770_v32  ;;  %v8778_v27 = vcombine.high %v4853_v11, %v4857_v50  ;;  %v8802_v32 = vcombine.high %v4877_v10, %v4881_v3  ;;  %v4889_v11 = vld [vmem:[%s14773_s7 + $0x360] sm:$0xff]  ;;  %v8801_v50 = vcombine.low %v4877_v10, %v4881_v3 }
 0x761   : > { %9307 = vmatprep.subr.bf16.mxu1 %v9984_v56  ;;  %v4380_v23 = vld [vmem:[#allocation2 + $0x378] sm:$0xff] }
 0x762   : > { %v4379_v54 = vld [vmem:[#allocation2 + $0x370] sm:$0xff]  ;;  %v4636_v15 = vadd.f32 %v4508_v7, %v4380_v23 }
 0x763   : > { %7104 = vmatmul.mubr.bf16.gmra.mrb[24].mxu0 %v8757_v16  ;;  %v4635_v58 = vadd.f32 %v4507_v42, %v4379_v54  ;;  %v8798_v16 = vcombine.high %v4871_v20, %v4875_v9  ;;  %v3616_v42 = vld [vmem:[#allocation2 + $0x3a0] sm:$0xff]  ;;  %v4879_v54 = vld [vmem:[%s14773_s7 + $0x310] sm:$0xff] }
 0x764   : > { %9323 = vmatpush1.bf16.msra.mxu1 %v12384_v47  ;;  %7111 = vmatprep.mubr.bf16.mxu0 %v8766_v60  ;;  %v4764_v47 = vmax.f32 %v4636_v15, 0.0  ;;  %v4885_v60 = vld [vmem:[%s14773_s7 + $0x340] sm:$0xff]  ;;  %v4883_v15 = vld [vmem:[%s14773_s7 + $0x330] sm:$0xff] }
 0x765   : > { %v4763_v1 = vmax.f32 %v4635_v58, 0.0  ;;  %v8810_v23 = vcombine.high %v4885_v60, %v4889_v11  ;;  %v8805_v17 = vcombine.low %v4879_v54, %v4883_v15 }
 0x766   : > { %v3969_v14 = vpop.xlane.xlu1 %3968 }
 0x767   : > { %6542 = vmatmul.mubr.bf16.gmra.mrb[32].mxu1 %v8769_v36  ;;  %v5092_v4 = vpack.c.bf16 %v4764_v47, %v4763_v1  ;;  %v4125_v21 = vmax.f32 %v3613_v33, %v3969_v14  ;;  %v3617_v36 = vld [vmem:[#allocation2 + $0x3a8] sm:$0xff]  ;;  %v8797_v1 = vcombine.low %v4871_v20, %v4875_v9  ;;  %v8806_v14 = vcombine.high %v4879_v54, %v4883_v15  ;;  %v13363_v20 = vld [vmem:[%s14773_s7 + $0x420] sm:$0xff] }
 0x768   : > { %6549 = vmatprep.mubr.bf16.mxu1 %v8778_v27  ;;  %v3966_v30 = vpop.xlane.xlu0 %3965  ;;  %v3625_v15 = vld [vmem:[#allocation2 + $0x3e8] sm:$0xff] }
 0x769   : > { %v4124_v59 = vmax.f32 %v3612_v6, %v3966_v30  ;;  %7327 = vmatpush1.bf16.msra.mxu0 %v5092_v4  ;;  %4254 = vst.msk [vmem:[#allocation2 + $0x388] sm:$0xff] %vm4140_vm4, %v4125_v21  ;;  %v4893_v4 = vld [vmem:[%s14773_s7 + $0x380] sm:$0xff]  ;;  %v8809_v30 = vcombine.low %v4885_v60, %v4889_v11 }
 0x76a   : > { %7328 = vmatprep.subr.bf16.mxu0 %v9984_v56 }
 0x76b   : > { %7112 = vmatmul.mubr.bf16.gmra.mrb[28].mxu0 %v8765_v24  ;;  %4253 = vst.msk [vmem:[#allocation2 + $0x380] sm:$0xff] %vm4140_vm4, %v4124_v59 }
 0x76c   : > { %7119 = vmatprep.mubr.bf16.mxu0 %v8774_v35 }
 0x76f   : > { %6550 = vmatmul.mubr.bf16.gmra.mrb[36].mxu1 %v8777_v25  ;;  %v4897_v25 = vld [vmem:[%s14773_s7 + $0x3a0] sm:$0xff] }
 0x770   : > { %6557 = vmatprep.mubr.bf16.mxu1 %v8786_v62  ;;  %v4382_v61 = vld [vmem:[#allocation2 + $0x388] sm:$0xff]  ;;  %v3619_v62 = vld [vmem:[#allocation2 + $0x3b8] sm:$0xff]  ;;  %v8818_v59 = vcombine.high %v4893_v4, %v4897_v25 }
 0x771   : > { %v4638_v8 = vadd.f32 %v4510_v19, %v4382_v61  ;;  %v8817_v61 = vcombine.low %v4893_v4, %v4897_v25  ;;  %v3621_v19 = vld [vmem:[#allocation2 + $0x3c8] sm:$0xff] }
 0x772   : > { %v4381_v51 = vld [vmem:[#allocation2 + $0x380] sm:$0xff]  ;;  %v4518_v4 = vld [vmem:[%s14772_s6 + $0x3c8] sm:$0xff] }
 0x773   : > { %7120 = vmatmul.mubr.bf16.gmra.mrb[32].mxu0 %v8773_v22  ;;  %v4637_v29 = vadd.f32 %v4509_v12, %v4381_v51  ;;  %v4766_v5 = vmax.f32 %v4638_v8, 0.0  ;;  %v4891_v22 = vld [vmem:[%s14773_s7 + $0x370] sm:$0xff] }
 0x774   : > { %7127 = vmatprep.mubr.bf16.mxu0 %v8782_v18  ;;  %v3975_v28 = vpop.xlane.xlu1 %3974  ;;  %v3972_v53 = vpop.xlane.xlu0 %3971  ;;  %v8814_v12 = vcombine.high %v4887_v48, %v4891_v22 }
 0x775   : > { %v4127_v0 = vmax.f32 %v3615_v49, %v3975_v28  ;;  %v4126_v40 = vmax.f32 %v3614_v39, %v3972_v53  ;;  %v4765_v2 = vmax.f32 %v4637_v29, 0.0  ;;  %v13330_v49 = vld [vmem:[%s14773_s7 + $0x3e0] sm:$0xff]  ;;  %v13336_v39 = vld [vmem:[%s14773_s7 + $0x390] sm:$0xff] }
 0x777   : > { %6558 = vmatmul.mubr.bf16.gmra.mrb[40].mxu1 %v8785_v44  ;;  %4256 = vst.msk [vmem:[#allocation2 + $0x398] sm:$0xff] %vm4140_vm4, %v4127_v0  ;;  %4255 = vst.msk [vmem:[#allocation2 + $0x390] sm:$0xff] %vm4140_vm4, %v4126_v40  ;;  %v5093_v31 = vpack.c.bf16 %v4766_v5, %v4765_v2  ;;  %v13343_v0 = vld [vmem:[%s14773_s7 + $0x3b0] sm:$0xff]  ;;  %v4514_v40 = vld [vmem:[%s14772_s6 + $0x3a8] sm:$0xff] }
 0x778   : > { %6565 = vmatprep.mubr.bf16.mxu1 %v8794_v46  ;;  %v13325_v46 = vld [vmem:[%s14773_s7 + $0x3c0] sm:$0xff]  ;;  %v3623_v2 = vld [vmem:[#allocation2 + $0x3d8] sm:$0xff]  ;;  %v8821_v25 = vcombine.low %v13336_v39, %v13343_v0 }
 0x779   : > { %7329 = vmatpush1.bf16.msra.mxu0 %v5093_v31  ;;  %v8826_v51 = vcombine.high %v13325_v46, %v13330_v49  ;;  %v8813_v31 = vcombine.low %v4887_v48, %v4891_v22 }
 0x77a   : > { %7330 = vmatprep.subr.bf16.mxu0 %v9984_v56 }
 0x77b   : > { %7128 = vmatmul.mubr.bf16.gmra.mrb[36].mxu0 %v8781_v57 }
 0x77c   : > { %7135 = vmatprep.mubr.bf16.mxu0 %v8790_v63  ;;  %v4513_v63 = vld [vmem:[%s14772_s6 + $0x3a0] sm:$0xff] }
 0x77e   : > { %v4383_v27 = vld [vmem:[#allocation2 + $0x390] sm:$0xff]  ;;  %v4384_v7 = vld [vmem:[#allocation2 + $0x398] sm:$0xff] }
 0x77f   : > { %6566 = vmatmul.mubr.bf16.gmra.mrb[44].mxu1 %v8793_v26  ;;  %v4639_v24 = vadd.f32 %v4511_v34, %v4383_v27  ;;  %v4640_v47 = vadd.f32 %v4512_v52, %v4384_v7  ;;  %v8822_v26 = vcombine.high %v13336_v39, %v13343_v0  ;;  %v4516_v7 = vld [vmem:[%s14772_s6 + $0x3b8] sm:$0xff]  ;;  %v8825_v52 = vcombine.low %v13325_v46, %v13330_v49 }
 0x780   : > { %6573 = vmatprep.mubr.bf16.mxu1 %v8802_v32  ;;  %v13358_v32 = vld [vmem:[%s14773_s7 + $0x400] sm:$0xff] }
 0x781   : > { %v4767_v41 = vmax.f32 %v4639_v24, 0.0  ;;  %v4768_v6 = vmax.f32 %v4640_v47, 0.0  ;;  %v13377_v24 = vld [vmem:[%s14773_s7 + $0x3d0] sm:$0xff]  ;;  %v8834_v47 = vcombine.high %v13358_v32, %v13363_v20 }
 0x783   : > { %7136 = vmatmul.mubr.bf16.gmra.mrb[40].mxu0 %v8789_v13  ;;  %v5094_v21 = vpack.c.bf16 %v4768_v6, %v4767_v41  ;;  %v3622_v13 = vld [vmem:[#allocation2 + $0x3d0] sm:$0xff] }
 0x784   : > { %7143 = vmatprep.mubr.bf16.mxu0 %v8798_v16  ;;  %v3981_v58 = vpop.xlane.xlu1 %3980  ;;  %v3978_v33 = vpop.xlane.xlu0 %3977 }
 0x785   : > { %v4129_v35 = vmax.f32 %v3617_v36, %v3981_v58  ;;  %v4128_v43 = vmax.f32 %v3616_v42, %v3978_v33  ;;  %7331 = vmatpush1.bf16.msra.mxu0 %v5094_v21  ;;  %v4515_v42 = vld [vmem:[%s14772_s6 + $0x3b0] sm:$0xff]  ;;  %v3624_v33 = vld [vmem:[#allocation2 + $0x3e0] sm:$0xff] }
 0x786   : > { %7332 = vmatprep.subr.bf16.mxu0 %v9984_v56 }
 0x787   : > { %6574 = vmatmul.mubr.bf16.gmra.mrb[48].mxu1 %v8801_v50  ;;  %4258 = vst.msk [vmem:[#allocation2 + $0x3a8] sm:$0xff] %vm4140_vm4, %v4129_v35  ;;  %4257 = vst.msk [vmem:[#allocation2 + $0x3a0] sm:$0xff] %vm4140_vm4, %v4128_v43  ;;  %v13384_v43 = vld [vmem:[%s14773_s7 + $0x3f0] sm:$0xff] }
 0x788   : > { %6581 = vmatprep.mubr.bf16.mxu1 %v8810_v23 }
 0x78b   : > { %7144 = vmatmul.mubr.bf16.gmra.mrb[44].mxu0 %v8797_v1 }
 0x78c   : > { %7151 = vmatprep.mubr.bf16.mxu0 %v8806_v14  ;;  %v3987_v18 = vpop.xlane.xlu1 %3986  ;;  %v3984_v45 = vpop.xlane.xlu0 %3983  ;;  %v4517_v14 = vld [vmem:[%s14772_s6 + $0x3c0] sm:$0xff] }
 0x78d   : > { %v4131_v55 = vmax.f32 %v3619_v62, %v3987_v18  ;;  %v4130_v44 = vmax.f32 %v3618_v37, %v3984_v45 }
 0x78e   : > { %v4385_v29 = vld [vmem:[#allocation2 + $0x3a0] sm:$0xff]  ;;  %v4386_v57 = vld [vmem:[#allocation2 + $0x3a8] sm:$0xff] }
 0x78f   : > { %6582 = vmatmul.mubr.bf16.gmra.mrb[52].mxu1 %v8809_v30  ;;  %4260 = vst.msk [vmem:[#allocation2 + $0x3b8] sm:$0xff] %vm4140_vm4, %v4131_v55  ;;  %4259 = vst.msk [vmem:[#allocation2 + $0x3b0] sm:$0xff] %vm4140_vm4, %v4130_v44  ;;  %v4641_v10 = vadd.f32 %v4513_v63, %v4385_v29  ;;  %v4642_v3 = vadd.f32 %v4514_v40, %v4386_v57  ;;  %v3627_v30 = vld [vmem:[#allocation2 + $0x3f8] sm:$0xff]  ;;  %v8830_v55 = vcombine.high %v13377_v24, %v13384_v43  ;;  %v4917_v44 = vld [vmem:[%s14773_s7 + $0x440] sm:$0xff] }
 0x790   : > { %6589 = vmatprep.mubr.bf16.mxu1 %v8818_v59  ;;  %v4915_v63 = vld [vmem:[%s14773_s7 + $0x430] sm:$0xff] }
 0x791   : > { %v4769_v16 = vmax.f32 %v4641_v10, 0.0  ;;  %v4770_v60 = vmax.f32 %v4642_v3, 0.0 }
 0x792   : > { %v3993_v8 = vpop.xlane.xlu1 %3992 }
 0x793   : > { %7152 = vmatmul.mubr.bf16.gmra.mrb[48].mxu0 %v8805_v17  ;;  %v4133_v53 = vmax.f32 %v3621_v19, %v3993_v8  ;;  %v5095_v23 = vpack.c.bf16 %v4770_v60, %v4769_v16  ;;  %v3626_v17 = vld [vmem:[#allocation2 + $0x3f0] sm:$0xff]  ;;  %v4520_v19 = vld [vmem:[%s14772_s6 + $0x3d8] sm:$0xff]  ;;  %v8833_v8 = vcombine.low %v13358_v32, %v13363_v20  ;;  %v4925_v16 = vld [vmem:[%s14773_s7 + $0x480] sm:$0xff] }
 0x794   : > { %7159 = vmatprep.mubr.bf16.mxu0 %v8814_v12  ;;  %v3990_v28 = vpop.xlane.xlu0 %3989  ;;  %v4921_v12 = vld [vmem:[%s14773_s7 + $0x460] sm:$0xff] }
 0x795   : > { %v4132_v5 = vmax.f32 %v3620_v38, %v3990_v28  ;;  %4262 = vst.msk [vmem:[#allocation2 + $0x3c8] sm:$0xff] %vm4140_vm4, %v4133_v53  ;;  %7333 = vmatpush1.bf16.msra.mxu0 %v5095_v23  ;;  %v8842_v57 = vcombine.high %v4917_v44, %v4921_v12  ;;  %v4929_v60 = vld [vmem:[%s14773_s7 + $0x4a0] sm:$0xff]  ;;  %v4523_v23 = vld [vmem:[%s14772_s6 + $0x3f0] sm:$0xff] }
 0x796   : > { %v3999_v9 = vpop.xlane.xlu1 %3998  ;;  %v4387_v50 = vld [vmem:[#allocation2 + $0x3b0] sm:$0xff]  ;;  %v4388_v36 = vld [vmem:[#allocation2 + $0x3b8] sm:$0xff]  ;;  %7334 = vmatprep.subr.bf16.mxu0 %v9984_v56 }
 0x797   : > { %6590 = vmatmul.mubr.bf16.gmra.mrb[56].mxu1 %v8817_v61  ;;  %4261 = vst.msk [vmem:[#allocation2 + $0x3c0] sm:$0xff] %vm4140_vm4, %v4132_v5  ;;  %v4135_v11 = vmax.f32 %v3623_v2, %v3999_v9  ;;  %v4643_v34 = vadd.f32 %v4515_v42, %v4387_v50  ;;  %v4644_v58 = vadd.f32 %v4516_v7, %v4388_v36  ;;  %v4911_v5 = vld [vmem:[%s14773_s7 + $0x410] sm:$0xff]  ;;  %v4522_v2 = vld [vmem:[%s14772_s6 + $0x3e8] sm:$0xff]  ;;  %v4524_v42 = vld [vmem:[%s14772_s6 + $0x3f8] sm:$0xff] }
 0x798   : > { %6597 = vmatprep.mubr.bf16.mxu1 %v8826_v51  ;;  %v3996_v27 = vpop.xlane.xlu0 %3995  ;;  %v4519_v51 = vld [vmem:[%s14772_s6 + $0x3d0] sm:$0xff]  ;;  %v8838_v9 = vcombine.high %v4911_v5, %v4915_v63  ;;  %v8841_v7 = vcombine.low %v4917_v44, %v4921_v12  ;;  %v4949_v12 = vld [vmem:[%s14773_s7 + $0x540] sm:$0xff] }
 0x799   : > { %4264 = vst.msk [vmem:[#allocation2 + $0x3d8] sm:$0xff] %vm4140_vm4, %v4135_v11  ;;  %v4134_v54 = vmax.f32 %v3622_v13, %v3996_v27  ;;  %v4771_v1 = vmax.f32 %v4643_v34, 0.0  ;;  %v4772_v6 = vmax.f32 %v4644_v58, 0.0  ;;  %v4919_v58 = vld [vmem:[%s14773_s7 + $0x450] sm:$0xff] }
 0x79a   : > { %v4005_v35 = vpop.xlane.xlu1 %4004 }
 0x79b   : > { %7160 = vmatmul.mubr.bf16.gmra.mrb[52].mxu0 %v8813_v31  ;;  %4263 = vst.msk [vmem:[#allocation2 + $0x3d0] sm:$0xff] %vm4140_vm4, %v4134_v54  ;;  %v4137_v41 = vmax.f32 %v3625_v15, %v4005_v35  ;;  %v5096_v48 = vpack.c.bf16 %v4772_v6, %v4771_v1  ;;  %v4521_v31 = vld [vmem:[%s14772_s6 + $0x3e0] sm:$0xff]  ;;  %v8850_v54 = vcombine.high %v4925_v16, %v4929_v60 }
 0x79c   : > { %7167 = vmatprep.mubr.bf16.mxu0 %v8822_v26  ;;  %v4002_v21 = vpop.xlane.xlu0 %4001  ;;  %v4390_v59 = vld [vmem:[#allocation2 + $0x3c8] sm:$0xff]  ;;  %v8829_v26 = vcombine.low %v13377_v24, %v13384_v43  ;;  %v4923_v24 = vld [vmem:[%s14773_s7 + $0x470] sm:$0xff]  ;;  %v8837_v1 = vcombine.low %v4911_v5, %v4915_v63  ;;  %v4933_v6 = vld [vmem:[%s14773_s7 + $0x4c0] sm:$0xff] }
 0x79d   : > { %4266 = vst.msk [vmem:[#allocation2 + $0x3e8] sm:$0xff] %vm4140_vm4, %v4137_v41  ;;  %v4136_v37 = vmax.f32 %v3624_v33, %v4002_v21  ;;  %v4646_v18 = vadd.f32 %v4518_v4, %v4390_v59  ;;  %7335 = vmatpush1.bf16.msra.mxu0 %v5096_v48  ;;  %v8846_v41 = vcombine.high %v4919_v58, %v4923_v24  ;;  %v4945_v48 = vld [vmem:[%s14773_s7 + $0x520] sm:$0xff] }
 0x79e   : > { %v4389_v62 = vld [vmem:[#allocation2 + $0x3c0] sm:$0xff]  ;;  %v4011_v45 = vpop.xlane.xlu1 %4010  ;;  %7336 = vmatprep.subr.bf16.mxu0 %v9984_v56  ;;  %v8845_v59 = vcombine.low %v4919_v58, %v4923_v24 }
 0x79f   : > { %6598 = vmatmul.mubr.bf16.gmra.mrb[60].mxu1 %v8825_v52  ;;  %v4645_v22 = vadd.f32 %v4517_v14, %v4389_v62  ;;  %4265 = vst.msk [vmem:[#allocation2 + $0x3e0] sm:$0xff] %vm4140_vm4, %v4136_v37  ;;  %v4139_v46 = vmax.f32 %v3627_v30, %v4011_v45  ;;  %v4774_v61 = vmax.f32 %v4646_v18, 0.0  ;;  %v4937_v14 = vld [vmem:[%s14773_s7 + $0x4e0] sm:$0xff]  ;;  %v4927_v30 = vld [vmem:[%s14773_s7 + $0x490] sm:$0xff] }
 0x7a0   : > { %6605 = vmatprep.mubr.bf16.mxu1 %v8834_v47  ;;  %v4008_v38 = vpop.xlane.xlu0 %4007  ;;  %v4392_v39 = vld [vmem:[#allocation2 + $0x3d8] sm:$0xff]  ;;  %v8858_v21 = vcombine.high %v4933_v6, %v4937_v14  ;;  %v4931_v62 = vld [vmem:[%s14773_s7 + $0x4b0] sm:$0xff]  ;;  %v4989_v24 = vld [vmem:[%s14773_s7 + $0x680] sm:$0xff] }
 0x7a1   : > { %v4773_v49 = vmax.f32 %v4645_v22, 0.0  ;;  %4268 = vst.msk [vmem:[#allocation2 + $0x3f8] sm:$0xff] %vm4140_vm4, %v4139_v46  ;;  %v4138_v28 = vmax.f32 %v3626_v17, %v4008_v38  ;;  %v4648_v53 = vadd.f32 %v4520_v19, %v4392_v39  ;;  %v8854_v37 = vcombine.high %v4927_v30, %v4931_v62  ;;  %v4939_v45 = vld [vmem:[%s14773_s7 + $0x4f0] sm:$0xff]  ;;  %v4953_v46 = vld [vmem:[%s14773_s7 + $0x560] sm:$0xff] }
 0x7a2   : > { %v4391_v0 = vld [vmem:[#allocation2 + $0x3d0] sm:$0xff]  ;;  %v8857_v22 = vcombine.low %v4933_v6, %v4937_v14  ;;  %v8853_v17 = vcombine.low %v4927_v30, %v4931_v62  ;;  %v4997_v14 = vld [vmem:[%s14773_s7 + $0x6c0] sm:$0xff] }
 0x7a3   : > { %7168 = vmatmul.mubr.bf16.gmra.mrb[56].mxu0 %v8821_v25  ;;  %v5097_v29 = vpack.c.bf16 %v4774_v61, %v4773_v49  ;;  %4267 = vst.msk [vmem:[#allocation2 + $0x3f0] sm:$0xff] %vm4140_vm4, %v4138_v28  ;;  %v4647_v40 = vadd.f32 %v4519_v51, %v4391_v0  ;;  %v4776_v10 = vmax.f32 %v4648_v53, 0.0  ;;  %v8849_v25 = vcombine.low %v4925_v16, %v4929_v60  ;;  %v4943_v19 = vld [vmem:[%s14773_s7 + $0x510] sm:$0xff]  ;;  %v4961_v28 = vld [vmem:[%s14773_s7 + $0x5a0] sm:$0xff] }
 0x7a4   : > { %7175 = vmatprep.mubr.bf16.mxu0 %v8830_v55  ;;  %v4394_v3 = vld [vmem:[#allocation2 + $0x3e8] sm:$0xff]  ;;  %v4935_v55 = vld [vmem:[%s14773_s7 + $0x4d0] sm:$0xff]  ;;  %v8874_v61 = vcombine.high %v4949_v12, %v4953_v46 }
 0x7a5   : > { %7337 = vmatpush1.bf16.msra.mxu0 %v5097_v29  ;;  %v4775_v32 = vmax.f32 %v4647_v40, 0.0  ;;  %v4650_v20 = vadd.f32 %v4522_v2, %v4394_v3  ;;  %v8862_v44 = vcombine.high %v4935_v55, %v4939_v45  ;;  %v4947_v38 = vld [vmem:[%s14773_s7 + $0x530] sm:$0xff]  ;;  %v8861_v39 = vcombine.low %v4935_v55, %v4939_v45  ;;  %v4965_v40 = vld [vmem:[%s14773_s7 + $0x5c0] sm:$0xff] }
 0x7a6   : > { %7338 = vmatprep.subr.bf16.mxu0 %v9984_v56  ;;  %v4393_v13 = vld [vmem:[#allocation2 + $0x3e0] sm:$0xff]  ;;  %v8870_v51 = vcombine.high %v4943_v19, %v4947_v38  ;;  %v8873_v29 = vcombine.low %v4949_v12, %v4953_v46  ;;  %v4951_v0 = vld [vmem:[%s14773_s7 + $0x550] sm:$0xff]  ;;  %v8869_v5 = vcombine.low %v4943_v19, %v4947_v38 }
 0x7a7   : > { %6606 = vmatmul.mubr.bf16.gmra.mrb[64].mxu1 %v8833_v8  ;;  %v5098_v11 = vpack.c.bf16 %v4776_v10, %v4775_v32  ;;  %v4649_v50 = vadd.f32 %v4521_v31, %v4393_v13  ;;  %v4778_v36 = vmax.f32 %v4650_v20, 0.0  ;;  %v4957_v8 = vld [vmem:[%s14773_s7 + $0x580] sm:$0xff]  ;;  %v4955_v53 = vld [vmem:[%s14773_s7 + $0x570] sm:$0xff] }
 0x7a8   : > { %6613 = vmatprep.mubr.bf16.mxu1 %v8842_v57  ;;  %v4396_v27 = vld [vmem:[#allocation2 + $0x3f8] sm:$0xff]  ;;  %v8882_v57 = vcombine.high %v4957_v8, %v4961_v28  ;;  %v8878_v63 = vcombine.high %v4951_v0, %v4955_v53  ;;  %v4969_v2 = vld [vmem:[%s14773_s7 + $0x5e0] sm:$0xff]  ;;  %v8881_v10 = vcombine.low %v4957_v8, %v4961_v28  ;;  %v4959_v31 = vld [vmem:[%s14773_s7 + $0x590] sm:$0xff]  ;;  %v8877_v32 = vcombine.low %v4951_v0, %v4955_v53 }
 0x7a9   : > { %v4777_v34 = vmax.f32 %v4649_v50, 0.0  ;;  %v4652_v52 = vadd.f32 %v4524_v42, %v4396_v27  ;;  %7339 = vmatpush1.bf16.msra.mxu0 %v5098_v11  ;;  %v8890_v3 = vcombine.high %v4965_v40, %v4969_v2  ;;  %v4977_v13 = vld [vmem:[%s14773_s7 + $0x620] sm:$0xff]  ;;  %v8889_v16 = vcombine.low %v4965_v40, %v4969_v2  ;;  %v4967_v11 = vld [vmem:[%s14773_s7 + $0x5d0] sm:$0xff] }
 0x7aa   : > { %v4395_v15 = vld [vmem:[#allocation2 + $0x3f0] sm:$0xff]  ;;  %7340 = vmatprep.subr.bf16.mxu0 %v9984_v56  ;;  %v4981_v27 = vld [vmem:[%s14773_s7 + $0x640] sm:$0xff] }
 0x7ab   : > { %7176 = vmatmul.mubr.bf16.gmra.mrb[60].mxu0 %v8829_v26  ;;  %v5099_v47 = vpack.c.bf16 %v4778_v36, %v4777_v34  ;;  %v4651_v35 = vadd.f32 %v4523_v23, %v4395_v15  ;;  %v4780_v33 = vmax.f32 %v4652_v52, 0.0  ;;  %v4963_v26 = vld [vmem:[%s14773_s7 + $0x5b0] sm:$0xff]  ;;  %v4985_v23 = vld [vmem:[%s14773_s7 + $0x660] sm:$0xff] }
 0x7ac   : > { %7183 = vmatprep.mubr.bf16.mxu0 %v8838_v9  ;;  %v8886_v20 = vcombine.high %v4959_v31, %v4963_v26  ;;  %v4973_v9 = vld [vmem:[%s14773_s7 + $0x600] sm:$0xff]  ;;  %v4971_v50 = vld [vmem:[%s14773_s7 + $0x5f0] sm:$0xff]  ;;  %v8885_v36 = vcombine.low %v4959_v31, %v4963_v26  ;;  %v8906_v34 = vcombine.high %v4981_v27, %v4985_v23 }
 0x7ad   : > { %v4779_v43 = vmax.f32 %v4651_v35, 0.0  ;;  %7341 = vmatpush1.bf16.msra.mxu0 %v5099_v47  ;;  %v8898_v60 = vcombine.high %v4973_v9, %v4977_v13  ;;  %v8894_v42 = vcombine.high %v4967_v11, %v4971_v50  ;;  %v4975_v52 = vld [vmem:[%s14773_s7 + $0x610] sm:$0xff]  ;;  %v8893_v15 = vcombine.low %v4967_v11, %v4971_v50  ;;  %v4993_v47 = vld [vmem:[%s14773_s7 + $0x6a0] sm:$0xff] }
 0x7ae   : > { %7342 = vmatprep.subr.bf16.mxu0 %v9984_v56  ;;  %v4941_v56 = vld [vmem:[%s14773_s7 + $0x500] sm:$0xff]  ;;  %v8905_v35 = vcombine.low %v4981_v27, %v4985_v23  ;;  %v4991_v30 = vld [vmem:[%s14773_s7 + $0x690] sm:$0xff] }
 0x7af   : > { %6614 = vmatmul.mubr.bf16.gmra.mrb[68].mxu1 %v8841_v7  ;;  %v5100_v4 = vpack.c.bf16 %v4780_v33, %v4779_v43  ;;  %v8866_v18 = vcombine.high %v4941_v56, %v4945_v48  ;;  %v8865_v49 = vcombine.low %v4941_v56, %v4945_v48  ;;  %v8897_v7 = vcombine.low %v4973_v9, %v4977_v13  ;;  %v4987_v43 = vld [vmem:[%s14773_s7 + $0x670] sm:$0xff]  ;;  %v5005_v56 = vld [vmem:[%s14773_s7 + $0x700] sm:$0xff] }
 0x7b0   : > { %6621 = vmatprep.mubr.bf16.mxu1 %v8850_v54  ;;  %v4979_v54 = vld [vmem:[%s14773_s7 + $0x630] sm:$0xff]  ;;  %v8914_v33 = vcombine.high %v4989_v24, %v4993_v47  ;;  %v5009_v48 = vld [vmem:[%s14773_s7 + $0x720] sm:$0xff] }
 0x7b1   : > { %7343 = vmatpush1.bf16.msra.mxu0 %v5100_v4  ;;  %v8902_v58 = vcombine.high %v4975_v52, %v4979_v54  ;;  %v5001_v4 = vld [vmem:[%s14773_s7 + $0x6e0] sm:$0xff]  ;;  %v4995_v62 = vld [vmem:[%s14773_s7 + $0x6b0] sm:$0xff] }
 0x7b2   : > { %v4999_v55 = vld [vmem:[%s14773_s7 + $0x6d0] sm:$0xff]  ;;  %v5013_v12 = vld [vmem:[%s14773_s7 + $0x740] sm:$0xff] }
 0x7b3   : > { %7184 = vmatmul.mubr.bf16.gmra.mrb[64].mxu0 %v8837_v1  ;;  %v4983_v1 = vld [vmem:[%s14773_s7 + $0x650] sm:$0xff]  ;;  %v5017_v46 = vld [vmem:[%s14773_s7 + $0x760] sm:$0xff] }
 0x7b4   : > { %7191 = vmatprep.mubr.bf16.mxu0 %v8846_v41  ;;  %v8901_v41 = vcombine.low %v4975_v52, %v4979_v54  ;;  %v8910_v6 = vcombine.high %v4983_v1, %v4987_v43  ;;  %v5003_v45 = vld [vmem:[%s14773_s7 + $0x6f0] sm:$0xff]  ;;  %v8938_v19 = vcombine.high %v5013_v12, %v5017_v46  ;;  %v5021_v0 = vld [vmem:[%s14773_s7 + $0x780] sm:$0xff]  ;;  %v4918_v52 = vld [vmem:[%s14773_s7 + $0x448] sm:$0xff] }
 0x7b5   : > { %v5025_v53 = vld [vmem:[%s14773_s7 + $0x7a0] sm:$0xff]  ;;  %v4922_v54 = vld [vmem:[%s14773_s7 + $0x468] sm:$0xff] }
 0x7b6   : > { %v8946_v40 = vcombine.high %v5021_v0, %v5025_v53  ;;  %v5029_v9 = vld [vmem:[%s14773_s7 + $0x7c0] sm:$0xff] }
 0x7b7   : > { %6622 = vmatmul.mubr.bf16.gmra.mrb[72].mxu1 %v8849_v25  ;;  %v8913_v25 = vcombine.low %v4989_v24, %v4993_v47  ;;  %v5033_v13 = vld [vmem:[%s14773_s7 + $0x7e0] sm:$0xff]  ;;  %v8844_v24 = vcombine.high %v4918_v52, %v4922_v54 }
 0x7b8   : > { %6629 = vmatprep.mubr.bf16.mxu1 %v8858_v21  ;;  %v8922_v21 = vcombine.high %v4997_v14, %v5001_v4  ;;  %v8954_v11 = vcombine.high %v5029_v9, %v5033_v13 }
 0x7bb   : > { %7192 = vmatmul.mubr.bf16.gmra.mrb[68].mxu0 %v8845_v59  ;;  %v8909_v59 = vcombine.low %v4983_v1, %v4987_v43 }
 0x7bc   : > { %7199 = vmatprep.mubr.bf16.mxu0 %v8854_v37  ;;  %v8918_v37 = vcombine.high %v4991_v30, %v4995_v62 }
 0x7bf   : > { %6630 = vmatmul.mubr.bf16.gmra.mrb[76].mxu1 %v8857_v22  ;;  %v8921_v22 = vcombine.low %v4997_v14, %v5001_v4  ;;  %v4926_v14 = vld [vmem:[%s14773_s7 + $0x488] sm:$0xff] }
 0x7c0   : > { %6637 = vmatprep.mubr.bf16.mxu1 %v8866_v18  ;;  %v8930_v18 = vcombine.high %v5005_v56, %v5009_v48  ;;  %v4930_v4 = vld [vmem:[%s14773_s7 + $0x4a8] sm:$0xff] }
 0x7c3   : > { %7200 = vmatmul.mubr.bf16.gmra.mrb[72].mxu0 %v8853_v17  ;;  %v8917_v17 = vcombine.low %v4991_v30, %v4995_v62  ;;  %v8852_v30 = vcombine.high %v4926_v14, %v4930_v4 }
 0x7c4   : > { %7207 = vmatprep.mubr.bf16.mxu0 %v8862_v44  ;;  %v8926_v44 = vcombine.high %v4999_v55, %v5003_v45 }
 0x7c7   : > { %6638 = vmatmul.mubr.bf16.gmra.mrb[80].mxu1 %v8865_v49  ;;  %v8929_v49 = vcombine.low %v5005_v56, %v5009_v48 }
 0x7c8   : > { %6645 = vmatprep.mubr.bf16.mxu1 %v8874_v61 }
 0x7cb   : > { %7208 = vmatmul.mubr.bf16.gmra.mrb[76].mxu0 %v8861_v39  ;;  %v5007_v39 = vld [vmem:[%s14773_s7 + $0x710] sm:$0xff] }
 0x7cc   : > { %7215 = vmatprep.mubr.bf16.mxu0 %v8870_v51  ;;  %v5011_v51 = vld [vmem:[%s14773_s7 + $0x730] sm:$0xff] }
 0x7cf   : > { %6646 = vmatmul.mubr.bf16.gmra.mrb[84].mxu1 %v8873_v29  ;;  %v8925_v29 = vcombine.low %v4999_v55, %v5003_v45  ;;  %v4934_v55 = vld [vmem:[%s14773_s7 + $0x4c8] sm:$0xff] }
 0x7d0   : > { %6653 = vmatprep.mubr.bf16.mxu1 %v8882_v57  ;;  %v8934_v57 = vcombine.high %v5007_v39, %v5011_v51  ;;  %v4938_v45 = vld [vmem:[%s14773_s7 + $0x4e8] sm:$0xff] }
 0x7d3   : > { %7216 = vmatmul.mubr.bf16.gmra.mrb[80].mxu0 %v8869_v5  ;;  %v8937_v5 = vcombine.low %v5013_v12, %v5017_v46  ;;  %v8860_v12 = vcombine.high %v4934_v55, %v4938_v45 }
 0x7d4   : > { %7223 = vmatprep.mubr.bf16.mxu0 %v8878_v63 }
 0x7d7   : > { %6654 = vmatmul.mubr.bf16.gmra.mrb[88].mxu1 %v8881_v10  ;;  %v5015_v10 = vld [vmem:[%s14773_s7 + $0x750] sm:$0xff] }
 0x7d8   : > { %6661 = vmatprep.mubr.bf16.mxu1 %v8890_v3  ;;  %v5019_v3 = vld [vmem:[%s14773_s7 + $0x770] sm:$0xff] }
 0x7db   : > { %7224 = vmatmul.mubr.bf16.gmra.mrb[84].mxu0 %v8877_v32  ;;  %v8933_v32 = vcombine.low %v5007_v39, %v5011_v51 }
 0x7dc   : > { %7231 = vmatprep.mubr.bf16.mxu0 %v8886_v20  ;;  %v8942_v20 = vcombine.high %v5015_v10, %v5019_v3 }
 0x7df   : > { %6662 = vmatmul.mubr.bf16.gmra.mrb[92].mxu1 %v8889_v16  ;;  %v8945_v16 = vcombine.low %v5021_v0, %v5025_v53  ;;  %v8859_v0 = vcombine.low %v4934_v55, %v4938_v45  ;;  %v4824_v55 = vld [vmem:[%s14773_s7 + $0x158] sm:$0xff] }
 0x7e0   : > { %6669 = vmatprep.mubr.bf16.mxu1 %v8898_v60  ;;  %v4828_v45 = vld [vmem:[%s14773_s7 + $0x178] sm:$0xff] }
 0x7e3   : > { %7232 = vmatmul.mubr.bf16.gmra.mrb[88].mxu0 %v8885_v36  ;;  %v5023_v36 = vld [vmem:[%s14773_s7 + $0x790] sm:$0xff] }
 0x7e4   : > { %7239 = vmatprep.mubr.bf16.mxu0 %v8894_v42  ;;  %v5027_v42 = vld [vmem:[%s14773_s7 + $0x7b0] sm:$0xff] }
 0x7e7   : > { %6670 = vmatmul.mubr.bf16.gmra.mrb[96].mxu1 %v8897_v7  ;;  %v8941_v7 = vcombine.low %v5015_v10, %v5019_v3  ;;  %v4804_v10 = vld [vmem:[%s14773_s7 + $0xb8] sm:$0xff] }
 0x7e8   : > { %6677 = vmatprep.mubr.bf16.mxu1 %v8906_v34  ;;  %v8950_v34 = vcombine.high %v5023_v36, %v5027_v42 }
 0x7eb   : > { %7240 = vmatmul.mubr.bf16.gmra.mrb[92].mxu0 %v8893_v15  ;;  %v8953_v15 = vcombine.low %v5029_v9, %v5033_v13  ;;  %v4950_v9 = vld [vmem:[%s14773_s7 + $0x548] sm:$0xff] }
 0x7ec   : > { %7247 = vmatprep.mubr.bf16.mxu0 %v8902_v58  ;;  %v4954_v13 = vld [vmem:[%s14773_s7 + $0x568] sm:$0xff] }
 0x7ef   : > { %6678 = vmatmul.mubr.bf16.gmra.mrb[100].mxu1 %v8905_v35  ;;  %v5031_v35 = vld [vmem:[%s14773_s7 + $0x7d0] sm:$0xff] }
 0x7f0   : > { %6685 = vmatprep.mubr.bf16.mxu1 %v8914_v33  ;;  %v5035_v33 = vld [vmem:[%s14773_s7 + $0x7f0] sm:$0xff] }
 0x7f3   : > { %7248 = vmatmul.mubr.bf16.gmra.mrb[96].mxu0 %v8901_v41  ;;  %v8949_v41 = vcombine.low %v5023_v36, %v5027_v42  ;;  %v4808_v42 = vld [vmem:[%s14773_s7 + $0xd8] sm:$0xff] }
 0x7f4   : > { %7255 = vmatprep.mubr.bf16.mxu0 %v8910_v6  ;;  %v8958_v6 = vcombine.high %v5031_v35, %v5035_v33 }
 0x7f7   : > { %6686 = vmatmul.mubr.bf16.gmra.mrb[104].mxu1 %v8913_v25  ;;  %v8843_v25 = vcombine.low %v4918_v52, %v4922_v54 }
 0x7f8   : > { %6693 = vmatprep.mubr.bf16.mxu1 %v8922_v21 }
 0x7fa   : > { %v13578_v61 = vpop.f32.mrb[0].mxu1 }
 0x7fb   : > { %7256 = vmatmul.mubr.bf16.gmra.mrb[100].mxu0 %v8909_v59  ;;  %v6481_v38 = vpop.f32.mrb[1].mxu1  ;;  %v4784_v59 = vld [vmem:[%s14773_s7 + $0x18] sm:$0xff] }
 0x7fc   : > { %7263 = vmatprep.mubr.bf16.mxu0 %v8918_v37  ;;  %v13586_v8 = vpop.f32.mrb[2].mxu1  ;;  %v4788_v37 = vld [vmem:[%s14773_s7 + $0x38] sm:$0xff] }
 0x7fd   : > { %v6484_v28 = vpop.f32.mrb[3].mxu1  ;;  %v8711_v51 = vcombine.low %v4784_v59, %v4788_v37 }
 0x7ff   : > { %6694 = vmatmul.mubr.bf16.gmra.mrb[108].mxu1 %v8921_v22  ;;  %v8957_v22 = vcombine.low %v5031_v35, %v5035_v33 }
 0x800   : > { %6701 = vmatprep.mubr.bf16.mxu1 %v8930_v18  ;;  %v8712_v18 = vcombine.high %v4784_v59, %v4788_v37  ;;  %v4970_v59 = vld [vmem:[%s14773_s7 + $0x5e8] sm:$0xff] }
 0x802   : > { %v13594_v63 = vpop.f32.mrb[4].mxu1 }
 0x803   : > { %7264 = vmatmul.mubr.bf16.gmra.mrb[104].mxu0 %v8917_v17  ;;  %v6489_v2 = vpop.f32.mrb[5].mxu1  ;;  %v8851_v17 = vcombine.low %v4926_v14, %v4930_v4 }
 0x804   : > { %7271 = vmatprep.mubr.bf16.mxu0 %v8926_v44  ;;  %v13602_v31 = vpop.f32.mrb[6].mxu1  ;;  %v4800_v2 = vld [vmem:[%s14773_s7 + $0x98] sm:$0xff] }
 0x805   : > { %v6492_v26 = vpop.f32.mrb[7].mxu1  ;;  %v8727_v52 = vcombine.low %v4800_v2, %v4804_v10 }
 0x807   : > { %6702 = vmatmul.mubr.bf16.gmra.mrb[112].mxu1 %v8929_v49  ;;  %v4792_v49 = vld [vmem:[%s14773_s7 + $0x58] sm:$0xff] }
 0x808   : > { %6709 = vmatprep.mubr.bf16.mxu1 %v8938_v19  ;;  %v4796_v19 = vld [vmem:[%s14773_s7 + $0x78] sm:$0xff] }
 0x809   : > { %v8720_v28 = vcombine.high %v4792_v49, %v4796_v19 }
 0x80a   : > { %v13610_v60 = vpop.f32.mrb[8].mxu1 }
 0x80b   : > { %7272 = vmatmul.mubr.bf16.gmra.mrb[108].mxu0 %v8925_v29  ;;  %v6497_v50 = vpop.f32.mrb[9].mxu1  ;;  %v4942_v29 = vld [vmem:[%s14773_s7 + $0x508] sm:$0xff] }
 0x80c   : > { %7279 = vmatprep.mubr.bf16.mxu0 %v8934_v57  ;;  %v13618_v27 = vpop.f32.mrb[10].mxu1  ;;  %v4946_v57 = vld [vmem:[%s14773_s7 + $0x528] sm:$0xff]  ;;  %v8876_v50 = vcombine.high %v4950_v9, %v4954_v13 }
 0x80d   : > { %v6500_v23 = vpop.f32.mrb[11].mxu1 }
 0x80e   : > { %v4812_v23 = vld [vmem:[%s14773_s7 + $0xf8] sm:$0xff] }
 0x80f   : > { %6710 = vmatmul.mubr.bf16.gmra.mrb[116].mxu1 %v8937_v5  ;;  %v8868_v5 = vcombine.high %v4942_v29, %v4946_v57  ;;  %v8736_v54 = vcombine.high %v4808_v42, %v4812_v23 }
 0x810   : > { %6717 = vmatprep.mubr.bf16.mxu1 %v8946_v40 }
 0x812   : > { %v13626_v58 = vpop.f32.mrb[12].mxu1 }
 0x813   : > { %7280 = vmatmul.mubr.bf16.gmra.mrb[112].mxu0 %v8933_v32  ;;  %v6505_v47 = vpop.f32.mrb[13].mxu1  ;;  %v8719_v32 = vcombine.low %v4792_v49, %v4796_v19  ;;  %v8752_v49 = vcombine.high %v4824_v55, %v4828_v45  ;;  %v4974_v19 = vld [vmem:[%s14773_s7 + $0x608] sm:$0xff] }
 0x814   : > { %7287 = vmatprep.mubr.bf16.mxu0 %v8942_v20  ;;  %v13634_v1 = vpop.f32.mrb[14].mxu1  ;;  %v8728_v20 = vcombine.high %v4800_v2, %v4804_v10  ;;  %v8875_v47 = vcombine.low %v4950_v9, %v4954_v13  ;;  %v8751_v10 = vcombine.low %v4824_v55, %v4828_v45 }
 0x815   : > { %v6508_v43 = vpop.f32.mrb[15].mxu1 }
 0x817   : > { %6718 = vmatmul.mubr.bf16.gmra.mrb[120].mxu1 %v8945_v16  ;;  %v8867_v16 = vcombine.low %v4942_v29, %v4946_v57 }
 0x818   : > { %6725 = vmatprep.mubr.bf16.mxu1 %v8954_v11 }
 0x81a   : > { %v13642_v21 = vpop.f32.mrb[16].mxu1 }
 0x81b   : > { %7288 = vmatmul.mubr.bf16.gmra.mrb[116].mxu0 %v8941_v7  ;;  %v6513_v62 = vpop.f32.mrb[17].mxu1 }
 0x81c   : > { %7295 = vmatprep.mubr.bf16.mxu0 %v8950_v34  ;;  %v13650_v56 = vpop.f32.mrb[18].mxu1  ;;  %v4966_v62 = vld [vmem:[%s14773_s7 + $0x5c8] sm:$0xff] }
 0x81d   : > { %v6516_v48 = vpop.f32.mrb[19].mxu1 }
 0x81f   : > { %6726 = vmatmul.mubr.bf16.gmra.mrb[124].mxu1 %v8953_v15  ;;  %v4958_v15 = vld [vmem:[%s14773_s7 + $0x588] sm:$0xff] }
 0x820   : > { %6902 = vmatprep.mubr.bf16.mxu1 %v8844_v24  ;;  %v4962_v24 = vld [vmem:[%s14773_s7 + $0x5a8] sm:$0xff] }
 0x821   : > { %v8884_v33 = vcombine.high %v4958_v15, %v4962_v24  ;;  %v8883_v37 = vcombine.low %v4958_v15, %v4962_v24  ;;  %v4990_v15 = vld [vmem:[%s14773_s7 + $0x688] sm:$0xff] }
 0x822   : > { %v13658_v44 = vpop.f32.mrb[20].mxu1  ;;  %v4994_v24 = vld [vmem:[%s14773_s7 + $0x6a8] sm:$0xff] }
 0x823   : > { %7296 = vmatmul.mubr.bf16.gmra.mrb[120].mxu0 %v8949_v41  ;;  %v6521_v46 = vpop.f32.mrb[21].mxu1  ;;  %v4816_v41 = vld [vmem:[%s14773_s7 + $0x118] sm:$0xff] }
 0x824   : > { %7303 = vmatprep.mubr.bf16.mxu0 %v8958_v6  ;;  %v13666_v38 = vpop.f32.mrb[22].mxu1  ;;  %v4820_v6 = vld [vmem:[%s14773_s7 + $0x138] sm:$0xff] }
 0x825   : > { %v6524_v39 = vpop.f32.mrb[23].mxu1  ;;  %v8743_v46 = vcombine.low %v4816_v41, %v4820_v6 }
 0x826   : > { %v4978_v39 = vld [vmem:[%s14773_s7 + $0x628] sm:$0xff] }
 0x827   : > { %6903 = vmatmul.mubr.bf16.vlgmr.msra.gmra.mrb[68].mxu1 %v8843_v25  ;;  %v8735_v25 = vcombine.low %v4808_v42, %v4812_v23  ;;  %v8900_v29 = vcombine.high %v4974_v19, %v4978_v39  ;;  %v8899_v9 = vcombine.low %v4974_v19, %v4978_v39  ;;  %v4844_v42 = vld [vmem:[%s14773_s7 + $0x1f8] sm:$0xff] }
 0x828   : > { %6910 = vmatprep.mubr.bf16.mxu1 %v8852_v30  ;;  %v8744_v30 = vcombine.high %v4816_v41, %v4820_v6  ;;  %v4848_v6 = vld [vmem:[%s14773_s7 + $0x218] sm:$0xff] }
 0x82a   : > { %v13674_v53 = vpop.f32.mrb[24].mxu1 }
 0x82b   : > { %7304 = vmatmul.mubr.bf16.gmra.mrb[124].mxu0 %v8957_v22  ;;  %v6529_v40 = vpop.f32.mrb[25].mxu1  ;;  %v8892_v22 = vcombine.high %v4966_v62, %v4970_v59 }
 0x82c   : > { %7344 = vmatprep.mubr.bf16.mxu0 %v8712_v18  ;;  %v13682_v3 = vpop.f32.mrb[26].mxu1 }
 0x82d   : > { %v6532_v26 = vpop.f32.mrb[27].mxu1 }
 0x82f   : > { %6911 = vmatmul.mubr.bf16.gmra.mrb[72].mxu1 %v8851_v17 }
 0x830   : > { %6918 = vmatprep.mubr.bf16.mxu1 %v8860_v12 }
 0x832   : > { %v13690_v11 = vpop.f32.mrb[28].mxu1 }
 0x833   : > { %7345 = vmatmul.mubr.bf16.vlgmr.msra.gmra.mrb[0].mxu0 %v8711_v51  ;;  %v6537_v36 = vpop.f32.mrb[29].mxu1  ;;  %v8891_v51 = vcombine.low %v4966_v62, %v4970_v59 }
 0x834   : > { %7352 = vmatprep.mubr.bf16.mxu0 %v8720_v28  ;;  %v13698_v7 = vpop.f32.mrb[30].mxu1  ;;  %v4840_v36 = vld [vmem:[%s14773_s7 + $0x1d8] sm:$0xff] }
 0x835   : > { %v6540_v34 = vpop.f32.mrb[31].mxu1  ;;  %v8767_v62 = vcombine.low %v4840_v36, %v4844_v42 }
 0x837   : > { %6919 = vmatmul.mubr.bf16.gmra.mrb[76].mxu1 %v8859_v0  ;;  %v4832_v0 = vld [vmem:[%s14773_s7 + $0x198] sm:$0xff] }
 0x838   : > { %6926 = vmatprep.mubr.bf16.mxu1 %v8868_v5  ;;  %v4836_v5 = vld [vmem:[%s14773_s7 + $0x1b8] sm:$0xff] }
 0x839   : > { %v8760_v26 = vcombine.high %v4832_v0, %v4836_v5 }
 0x83a   : > { %v13706_v35 = vpop.f32.mrb[32].mxu1 }
 0x83b   : > { %7353 = vmatmul.mubr.bf16.gmra.mrb[4].mxu0 %v8719_v32  ;;  %v6545_v43 = vpop.f32.mrb[33].mxu1  ;;  %v4982_v32 = vld [vmem:[%s14773_s7 + $0x648] sm:$0xff] }
 0x83c   : > { %7360 = vmatprep.mubr.bf16.mxu0 %v8728_v20  ;;  %v13714_v14 = vpop.f32.mrb[34].mxu1  ;;  %v4986_v20 = vld [vmem:[%s14773_s7 + $0x668] sm:$0xff]  ;;  %v8916_v43 = vcombine.high %v4990_v15, %v4994_v24 }
 0x83d   : > { %v6548_v4 = vpop.f32.mrb[35].mxu1 }
 0x83e   : > { %v4852_v4 = vld [vmem:[%s14773_s7 + $0x238] sm:$0xff] }
 0x83f   : > { %6927 = vmatmul.mubr.bf16.gmra.mrb[80].mxu1 %v8867_v16  ;;  %v8908_v16 = vcombine.high %v4982_v32, %v4986_v20  ;;  %v8776_v59 = vcombine.high %v4848_v6, %v4852_v4 }
 0x840   : > { %6934 = vmatprep.mubr.bf16.mxu1 %v8876_v50 }
 0x842   : > { %v13722_v48 = vpop.f32.mrb[36].mxu1 }
 0x843   : > { %7361 = vmatmul.mubr.bf16.gmra.mrb[8].mxu0 %v8727_v52  ;;  %v6553_v18 = vpop.f32.mrb[37].mxu1  ;;  %v8759_v52 = vcombine.low %v4832_v0, %v4836_v5  ;;  %v5010_v0 = vld [vmem:[%s14773_s7 + $0x728] sm:$0xff] }
 0x844   : > { %7368 = vmatprep.mubr.bf16.mxu0 %v8736_v54  ;;  %v13730_v17 = vpop.f32.mrb[38].mxu1  ;;  %v8768_v54 = vcombine.high %v4840_v36, %v4844_v42  ;;  %v8915_v18 = vcombine.low %v4990_v15, %v4994_v24  ;;  %v5014_v42 = vld [vmem:[%s14773_s7 + $0x748] sm:$0xff] }
 0x845   : > { %v6556_v12 = vpop.f32.mrb[39].mxu1 }
 0x847   : > { %6935 = vmatmul.mubr.bf16.gmra.mrb[84].mxu1 %v8875_v47  ;;  %v8907_v47 = vcombine.low %v4982_v32, %v4986_v20  ;;  %v4864_v32 = vld [vmem:[%s14773_s7 + $0x298] sm:$0xff] }
 0x848   : > { %6942 = vmatprep.mubr.bf16.mxu1 %v8884_v33  ;;  %v4868_v20 = vld [vmem:[%s14773_s7 + $0x2b8] sm:$0xff] }
 0x849   : > { %v8792_v36 = vcombine.high %v4864_v32, %v4868_v20 }
 0x84a   : > { %v13738_v28 = vpop.f32.mrb[40].mxu1 }
 0x84b   : > { %7369 = vmatmul.mubr.bf16.gmra.mrb[12].mxu0 %v8735_v25  ;;  %v6561_v57 = vpop.f32.mrb[41].mxu1 }
 0x84c   : > { %7376 = vmatprep.mubr.bf16.mxu0 %v8744_v30  ;;  %v13746_v40 = vpop.f32.mrb[42].mxu1  ;;  %v5006_v57 = vld [vmem:[%s14773_s7 + $0x708] sm:$0xff] }
 0x84d   : > { %v6564_v2 = vpop.f32.mrb[43].mxu1 }
 0x84f   : > { %6943 = vmatmul.mubr.bf16.gmra.mrb[88].mxu1 %v8883_v37  ;;  %v4998_v37 = vld [vmem:[%s14773_s7 + $0x6c8] sm:$0xff] }
 0x850   : > { %6950 = vmatprep.mubr.bf16.mxu1 %v8892_v22  ;;  %v5002_v22 = vld [vmem:[%s14773_s7 + $0x6e8] sm:$0xff] }
 0x851   : > { %v8924_v45 = vcombine.high %v4998_v37, %v5002_v22  ;;  %v8923_v5 = vcombine.low %v4998_v37, %v5002_v22 }
 0x852   : > { %v13754_v13 = vpop.f32.mrb[44].mxu1 }
 0x853   : > { %7377 = vmatmul.mubr.bf16.gmra.mrb[16].mxu0 %v8743_v46  ;;  %v6569_v50 = vpop.f32.mrb[45].mxu1  ;;  %v4856_v46 = vld [vmem:[%s14773_s7 + $0x258] sm:$0xff] }
 0x854   : > { %7384 = vmatprep.mubr.bf16.mxu0 %v8752_v49  ;;  %v13762_v23 = vpop.f32.mrb[46].mxu1  ;;  %v4860_v49 = vld [vmem:[%s14773_s7 + $0x278] sm:$0xff] }
 0x855   : > { %v6572_v34 = vpop.f32.mrb[47].mxu1  ;;  %v8783_v50 = vcombine.low %v4856_v46, %v4860_v49 }
 0x856   : > { %v5018_v34 = vld [vmem:[%s14773_s7 + $0x768] sm:$0xff] }
 0x857   : > { %6951 = vmatmul.mubr.bf16.gmra.mrb[92].mxu1 %v8891_v51  ;;  %v8775_v51 = vcombine.low %v4848_v6, %v4852_v4  ;;  %v8940_v15 = vcombine.high %v5014_v42, %v5018_v34  ;;  %v8791_v4 = vcombine.low %v4864_v32, %v4868_v20  ;;  %v8939_v37 = vcombine.low %v5014_v42, %v5018_v34  ;;  %v4892_v32 = vld [vmem:[%s14773_s7 + $0x378] sm:$0xff] }
 0x858   : > { %6958 = vmatprep.mubr.bf16.mxu1 %v8900_v29  ;;  %v8784_v29 = vcombine.high %v4856_v46, %v4860_v49  ;;  %v5030_v49 = vld [vmem:[%s14773_s7 + $0x7c8] sm:$0xff]  ;;  %v4900_v42 = vld [vmem:[%s14773_s7 + $0x3b8] sm:$0xff] }
 0x85a   : > { %v13770_v33 = vpop.f32.mrb[48].mxu1 }
 0x85b   : > { %7385 = vmatmul.mubr.bf16.gmra.mrb[20].mxu0 %v8751_v10  ;;  %v6577_v41 = vpop.f32.mrb[49].mxu1  ;;  %v8932_v10 = vcombine.high %v5006_v57, %v5010_v0 }
 0x85c   : > { %7392 = vmatprep.mubr.bf16.mxu0 %v8760_v26  ;;  %v13778_v25 = vpop.f32.mrb[50].mxu1 }
 0x85d   : > { %v6580_v30 = vpop.f32.mrb[51].mxu1 }
 0x85f   : > { %6959 = vmatmul.mubr.bf16.gmra.mrb[96].mxu1 %v8899_v9 }
 0x860   : > { %6966 = vmatprep.mubr.bf16.mxu1 %v8908_v16 }
 0x862   : > { %v13786_v55 = vpop.f32.mrb[52].mxu1 }
 0x863   : > { %7393 = vmatmul.mubr.bf16.gmra.mrb[24].mxu0 %v8759_v52  ;;  %v6585_v12 = vpop.f32.mrb[53].mxu1  ;;  %v8931_v52 = vcombine.low %v5006_v57, %v5010_v0 }
 0x864   : > { %7400 = vmatprep.mubr.bf16.mxu0 %v8768_v54  ;;  %v13794_v19 = vpop.f32.mrb[54].mxu1 }
 0x865   : > { %v6588_v39 = vpop.f32.mrb[55].mxu1 }
 0x866   : > { %v5034_v39 = vld [vmem:[%s14773_s7 + $0x7e8] sm:$0xff] }
 0x867   : > { %6967 = vmatmul.mubr.bf16.gmra.mrb[100].mxu1 %v8907_v47  ;;  %v4872_v47 = vld [vmem:[%s14773_s7 + $0x2d8] sm:$0xff] }
 0x868   : > { %6974 = vmatprep.mubr.bf16.mxu1 %v8916_v43  ;;  %v4876_v43 = vld [vmem:[%s14773_s7 + $0x2f8] sm:$0xff] }
 0x869   : > { %v8800_v30 = vcombine.high %v4872_v47, %v4876_v43  ;;  %v8799_v12 = vcombine.low %v4872_v47, %v4876_v43 }
 0x86a   : > { %v13802_v2 = vpop.f32.mrb[56].mxu1 }
 0x86b   : > { %7401 = vmatmul.mubr.bf16.gmra.mrb[28].mxu0 %v8767_v62  ;;  %v6593_v26 = vpop.f32.mrb[57].mxu1  ;;  %v5022_v62 = vld [vmem:[%s14773_s7 + $0x788] sm:$0xff] }
 0x86c   : > { %7408 = vmatprep.mubr.bf16.mxu0 %v8776_v59  ;;  %v13810_v9 = vpop.f32.mrb[58].mxu1  ;;  %v5026_v59 = vld [vmem:[%s14773_s7 + $0x7a8] sm:$0xff]  ;;  %v4888_v26 = vld [vmem:[%s14773_s7 + $0x358] sm:$0xff] }
 0x86d   : > { %v6596_v16 = vpop.f32.mrb[59].mxu1  ;;  %v8948_v22 = vcombine.high %v5022_v62, %v5026_v59  ;;  %v8947_v57 = vcombine.low %v5022_v62, %v5026_v59  ;;  %v8815_v34 = vcombine.low %v4888_v26, %v4892_v32  ;;  %v4920_v59 = vld [vmem:[%s14773_s7 + $0x458] sm:$0xff] }
 0x86e   : > { %v8816_v16 = vcombine.high %v4888_v26, %v4892_v32  ;;  %v4948_v26 = vld [vmem:[%s14773_s7 + $0x538] sm:$0xff] }
 0x86f   : > { %6975 = vmatmul.mubr.bf16.gmra.mrb[104].mxu1 %v8915_v18  ;;  %v4880_v18 = vld [vmem:[%s14773_s7 + $0x318] sm:$0xff] }
 0x870   : > { %6982 = vmatprep.mubr.bf16.mxu1 %v8924_v45  ;;  %v4884_v45 = vld [vmem:[%s14773_s7 + $0x338] sm:$0xff] }
 0x871   : > { %v8808_v46 = vcombine.high %v4880_v18, %v4884_v45  ;;  %v8807_v20 = vcombine.low %v4880_v18, %v4884_v45  ;;  %v4928_v45 = vld [vmem:[%s14773_s7 + $0x498] sm:$0xff] }
 0x872   : > { %v13818_v54 = vpop.f32.mrb[60].mxu1 }
 0x873   : > { %7409 = vmatmul.mubr.bf16.gmra.mrb[32].mxu0 %v8775_v51  ;;  %v6601_v24 = vpop.f32.mrb[61].mxu1 }
 0x874   : > { %7416 = vmatprep.mubr.bf16.mxu0 %v8784_v29  ;;  %v13826_v41 = vpop.f32.mrb[62].mxu1  ;;  %v4908_v24 = vld [vmem:[%s14773_s7 + $0x3f8] sm:$0xff] }
 0x875   : > { %v6604_v6 = vpop.f32.mrb[63].mxu1 }
 0x876   : > { %v4912_v6 = vld [vmem:[%s14773_s7 + $0x418] sm:$0xff] }
 0x877   : > { %6983 = vmatmul.mubr.bf16.gmra.mrb[108].mxu1 %v8923_v5  ;;  %v8956_v5 = vcombine.high %v5030_v49, %v5034_v39 }
 0x878   : > { %6990 = vmatprep.mubr.bf16.mxu1 %v8932_v10 }
 0x87a   : > { %v13846_v51 = vpop.f32.mrb[64].mxu1 }
 0x87b   : > { %7417 = vmatmul.mubr.bf16.gmra.mrb[36].mxu0 %v8783_v50  ;;  %v6609_v29 = vpop.f32.mrb[65].mxu1  ;;  %v8955_v50 = vcombine.low %v5030_v49, %v5034_v39  ;;  %v4936_v39 = vld [vmem:[%s14773_s7 + $0x4d8] sm:$0xff] }
 0x87c   : > { %7424 = vmatprep.mubr.bf16.mxu0 %v8792_v36  ;;  %v13848_v0 = vpop.f32.mrb[66].mxu1  ;;  %v4896_v36 = vld [vmem:[%s14773_s7 + $0x398] sm:$0xff] }
 0x87d   : > { %v6612_v10 = vpop.f32.mrb[67].mxu1  ;;  %v8823_v47 = vcombine.low %v4896_v36, %v4900_v42  ;;  %v4940_v29 = vld [vmem:[%s14773_s7 + $0x4f8] sm:$0xff] }
 0x87e   : > { %v4944_v10 = vld [vmem:[%s14773_s7 + $0x518] sm:$0xff]  ;;  %v8863_v32 = vcombine.low %v4936_v39, %v4940_v29 }
 0x87f   : > { %6991 = vmatmul.mubr.bf16.gmra.mrb[112].mxu1 %v8931_v52  ;;  %v8824_v52 = vcombine.high %v4896_v36, %v4900_v42  ;;  %v8871_v36 = vcombine.low %v4944_v10, %v4948_v26 }
 0x880   : > { %6998 = vmatprep.mubr.bf16.mxu1 %v8940_v15  ;;  %v4904_v15 = vld [vmem:[%s14773_s7 + $0x3d8] sm:$0xff] }
 0x881   : > { %v8832_v43 = vcombine.high %v4904_v15, %v4908_v24 }
 0x883   : > { %7425 = vmatmul.mubr.bf16.gmra.mrb[40].mxu0 %v8791_v4  ;;  %v4916_v4 = vld [vmem:[%s14773_s7 + $0x438] sm:$0xff] }
 0x884   : > { %7432 = vmatprep.mubr.bf16.mxu0 %v8800_v30  ;;  %v8831_v30 = vcombine.low %v4904_v15, %v4908_v24  ;;  %v8840_v62 = vcombine.high %v4912_v6, %v4916_v4 }
 0x887   : > { %6999 = vmatmul.mubr.bf16.gmra.mrb[116].mxu1 %v8939_v37  ;;  %v4924_v37 = vld [vmem:[%s14773_s7 + $0x478] sm:$0xff] }
 0x888   : > { %7006 = vmatprep.mubr.bf16.mxu1 %v8948_v22  ;;  %v8839_v22 = vcombine.low %v4912_v6, %v4916_v4  ;;  %v8848_v18 = vcombine.high %v4920_v59, %v4924_v37 }
 0x88b   : > { %7433 = vmatmul.mubr.bf16.gmra.mrb[44].mxu0 %v8799_v12  ;;  %v4932_v12 = vld [vmem:[%s14773_s7 + $0x4b8] sm:$0xff] }
 0x88c   : > { %7440 = vmatprep.mubr.bf16.mxu0 %v8808_v46  ;;  %v8847_v46 = vcombine.low %v4920_v59, %v4924_v37  ;;  %v8856_v49 = vcombine.high %v4928_v45, %v4932_v12 }
 0x88f   : > { %7007 = vmatmul.mubr.bf16.gmra.mrb[120].mxu1 %v8947_v57  ;;  %v8855_v57 = vcombine.low %v4928_v45, %v4932_v12 }
 0x890   : > { %7014 = vmatprep.mubr.bf16.mxu1 %v8956_v5  ;;  %v8864_v5 = vcombine.high %v4936_v39, %v4940_v29 }
 0x893   : > { %7441 = vmatmul.mubr.bf16.gmra.mrb[48].mxu0 %v8807_v20  ;;  %v8872_v20 = vcombine.high %v4944_v10, %v4948_v26  ;;  %v5000_v26 = vld [vmem:[%s14773_s7 + $0x6d8] sm:$0xff] }
 0x894   : > { %7448 = vmatprep.mubr.bf16.mxu0 %v8816_v16  ;;  %v4952_v16 = vld [vmem:[%s14773_s7 + $0x558] sm:$0xff] }
 0x897   : > { %7015 = vmatmul.mubr.bf16.gmra.mrb[124].mxu1 %v8955_v50  ;;  %v4956_v50 = vld [vmem:[%s14773_s7 + $0x578] sm:$0xff] }
 0x898   : > { %v8880_v42 = vcombine.high %v4952_v16, %v4956_v50  ;;  %v8879_v15 = vcombine.low %v4952_v16, %v4956_v50 }
 0x89b   : > { %7449 = vmatmul.mubr.bf16.gmra.mrb[52].mxu0 %v8815_v34  ;;  %v4960_v34 = vld [vmem:[%s14773_s7 + $0x598] sm:$0xff] }
 0x89c   : > { %7456 = vmatprep.mubr.bf16.mxu0 %v8824_v52  ;;  %v4964_v52 = vld [vmem:[%s14773_s7 + $0x5b8] sm:$0xff] }
 0x89d   : > { %v8888_v24 = vcombine.high %v4960_v34, %v4964_v52  ;;  %v8887_v6 = vcombine.low %v4960_v34, %v4964_v52  ;;  %v5102_v52 = vld [vmem:[%s14774_s8 + $0x8] sm:$0xff] }
 0x8a3   : > { %7457 = vmatmul.mubr.bf16.gmra.mrb[56].mxu0 %v8823_v47  ;;  %v4968_v47 = vld [vmem:[%s14773_s7 + $0x5d8] sm:$0xff] }
 0x8a4   : > { %7464 = vmatprep.mubr.bf16.mxu0 %v8832_v43  ;;  %v4972_v43 = vld [vmem:[%s14773_s7 + $0x5f8] sm:$0xff] }
 0x8a5   : > { %v8896_v4 = vcombine.high %v4968_v47, %v4972_v43  ;;  %v8895_v59 = vcombine.low %v4968_v47, %v4972_v43  ;;  %v5008_v47 = vld [vmem:[%s14773_s7 + $0x718] sm:$0xff] }
 0x8a6   : > { %v5012_v43 = vld [vmem:[%s14773_s7 + $0x738] sm:$0xff] }
 0x8ab   : > { %7465 = vmatmul.mubr.bf16.gmra.mrb[60].mxu0 %v8831_v30  ;;  %v4976_v30 = vld [vmem:[%s14773_s7 + $0x618] sm:$0xff] }
 0x8ac   : > { %7472 = vmatprep.mubr.bf16.mxu0 %v8840_v62  ;;  %v4980_v62 = vld [vmem:[%s14773_s7 + $0x638] sm:$0xff] }
 0x8ad   : > { %v8904_v37 = vcombine.high %v4976_v30, %v4980_v62  ;;  %v8903_v45 = vcombine.low %v4976_v30, %v4980_v62 }
 0x8b3   : > { %7473 = vmatmul.mubr.bf16.gmra.mrb[64].mxu0 %v8839_v22  ;;  %v4984_v22 = vld [vmem:[%s14773_s7 + $0x658] sm:$0xff] }
 0x8b4   : > { %7480 = vmatprep.mubr.bf16.mxu0 %v8848_v18  ;;  %v4988_v18 = vld [vmem:[%s14773_s7 + $0x678] sm:$0xff] }
 0x8b5   : > { %v8912_v12 = vcombine.high %v4984_v22, %v4988_v18  ;;  %v8911_v39 = vcombine.low %v4984_v22, %v4988_v18  ;;  %v8936_v18 = vcombine.high %v5008_v47, %v5012_v43 }
 0x8bb   : > { %7481 = vmatmul.mubr.bf16.gmra.mrb[68].mxu0 %v8847_v46  ;;  %v4992_v46 = vld [vmem:[%s14773_s7 + $0x698] sm:$0xff] }
 0x8bc   : > { %7488 = vmatprep.mubr.bf16.mxu0 %v8856_v49  ;;  %v4996_v49 = vld [vmem:[%s14773_s7 + $0x6b8] sm:$0xff] }
 0x8bd   : > { %v8920_v29 = vcombine.high %v4992_v46, %v4996_v49  ;;  %v8919_v16 = vcombine.low %v4992_v46, %v4996_v49  ;;  %v5103_v46 = vld [vmem:[%s14774_s8 + $0x10] sm:$0xff] }
 0x8c3   : > { %7489 = vmatmul.mubr.bf16.gmra.mrb[72].mxu0 %v8855_v57 }
 0x8c4   : > { %7496 = vmatprep.mubr.bf16.mxu0 %v8864_v5 }
 0x8cb   : > { %7497 = vmatmul.mubr.bf16.gmra.mrb[76].mxu0 %v8863_v32  ;;  %v5004_v32 = vld [vmem:[%s14773_s7 + $0x6f8] sm:$0xff] }
 0x8cc   : > { %7504 = vmatprep.mubr.bf16.mxu0 %v8872_v20  ;;  %v8928_v50 = vcombine.high %v5000_v26, %v5004_v32 }
 0x8d3   : > { %7505 = vmatmul.mubr.bf16.gmra.mrb[80].mxu0 %v8871_v36  ;;  %v5101_v36 = vld [vmem:[%s14774_s8] sm:$0xff] }
 0x8d4   : > { %7512 = vmatprep.mubr.bf16.mxu0 %v8880_v42 }
 0x8db   : > { %7513 = vmatmul.mubr.bf16.gmra.mrb[84].mxu0 %v8879_v15 }
 0x8dc   : > { %7520 = vmatprep.mubr.bf16.mxu0 %v8888_v24  ;;  %v6480_v24 = vadd.f32 %v13578_v61, %v5101_v36  ;;  %v9843_v61 = vld [vmem:[%s14775_s9 + $0x4] ss:$16 sps:$4 sm:$0xff]  }
 0x8dd   : > { %8145 = vmatprep.mubr.bf16.mxu1 %v9843_v61 }
 0x8e3   : > { %7521 = vmatmul.mubr.bf16.gmra.mrb[88].mxu0 %v8887_v6 }
 0x8e4   : > { %7528 = vmatprep.mubr.bf16.mxu0 %v8896_v4 }
 0x8eb   : > { %7529 = vmatmul.mubr.bf16.gmra.mrb[92].mxu0 %v8895_v59  ;;  %v6483_v59 = vadd.f32 %v13586_v8, %v5102_v52 }
 0x8ec   : > { %7536 = vmatprep.mubr.bf16.mxu0 %v8904_v37  ;;  %v8927_v37 = vcombine.low %v5000_v26, %v5004_v32  ;;  %v6488_v32 = vadd.f32 %v13594_v63, %v5103_v46  ;;  %v5024_v46 = vld [vmem:[%s14773_s7 + $0x798] sm:$0xff] }
 0x8f3   : > { %7537 = vmatmul.mubr.bf16.gmra.mrb[96].mxu0 %v8903_v45 }
 0x8f4   : > { %7544 = vmatprep.mubr.bf16.mxu0 %v8912_v12 }
 0x8fa   : > { %v13934_v57 = vpop.f32.mrb[68].mxu1 }
 0x8fb   : > { %7545 = vmatmul.mubr.bf16.gmra.mrb[100].mxu0 %v8911_v39  ;;  %v6906_v5 = vpop.f32.mrb[69].mxu1 }
 0x8fc   : > { %7552 = vmatprep.mubr.bf16.mxu0 %v8920_v29  ;;  %v13936_v10 = vpop.f32.mrb[70].mxu1  ;;  %v5104_v5 = vld [vmem:[%s14774_s8 + $0x18] sm:$0xff] }
 0x8fd   : > { %v6909_v20 = vpop.f32.mrb[71].mxu1  ;;  %v6491_v52 = vadd.f32 %v13602_v31, %v5104_v5  ;;  %v5106_v31 = vld [vmem:[%s14774_s8 + $0x28] sm:$0xff] }
 0x8fe   : > { %v6499_v5 = vadd.f32 %v13618_v27, %v5106_v31  ;;  %v5108_v27 = vld [vmem:[%s14774_s8 + $0x38] sm:$0xff] }
 0x902   : > { %v13947_v42 = vpop.f32.mrb[72].mxu1 }
 0x903   : > { %7553 = vmatmul.mubr.bf16.gmra.mrb[104].mxu0 %v8919_v16  ;;  %v6914_v34 = vpop.f32.mrb[73].mxu1  ;;  %v5016_v16 = vld [vmem:[%s14773_s7 + $0x758] sm:$0xff] }
 0x904   : > { %7560 = vmatprep.mubr.bf16.mxu0 %v8928_v50  ;;  %v13952_v15 = vpop.f32.mrb[74].mxu1  ;;  %v5020_v50 = vld [vmem:[%s14773_s7 + $0x778] sm:$0xff] }
 0x905   : > { %v6917_v6 = vpop.f32.mrb[75].mxu1 }
 0x906   : > { %v7346_v4 = vpop.f32.mrb[0].mxu0 }
 0x907   : > { %v9325_v30 = vadd.f32 %v7346_v4, %v6480_v24  ;;  %v7348_v62 = vpop.f32.mrb[1].mxu0  ;;  %v8935_v4 = vcombine.low %v5008_v47, %v5012_v43 }
 0x908   : > { %v7349_v22 = vpop.f32.mrb[2].mxu0  ;;  %v8944_v62 = vcombine.high %v5016_v16, %v5020_v50 }
 0x909   : > { %v9327_v45 = vadd.f32 %v7349_v22, %v6483_v59  ;;  %v7351_v12 = vpop.f32.mrb[3].mxu0  ;;  %v7601_v39 = vmax.f32 %v9325_v30, 0.0 }
 0x90a   : > { %v13968_v49 = vpop.f32.mrb[76].mxu1 }
 0x90b   : > { %v7602_v29 = vmax.f32 %v9327_v45, 0.0  ;;  %7561 = vmatmul.mubr.bf16.gmra.mrb[108].mxu0 %v8927_v37  ;;  %v6922_v8 = vpop.f32.mrb[77].mxu1  ;;  %v5105_v37 = vld [vmem:[%s14774_s8 + $0x20] sm:$0xff] }
 0x90c   : > { %7568 = vmatprep.mubr.bf16.mxu0 %v8936_v18  ;;  %v13973_v26 = vpop.f32.mrb[78].mxu1  ;;  %v6496_v43 = vadd.f32 %v13610_v60, %v5105_v37 }
 0x90d   : > { %v13976_v20 = vpack.c.bf16 %v7602_v29, %v7601_v39  ;;  %v6925_v36 = vpop.f32.mrb[79].mxu1  ;;  %v5028_v39 = vld [vmem:[%s14773_s7 + $0x7b8] sm:$0xff] }
 0x90e   : > { %v7354_v34 = vpop.f32.mrb[4].mxu0 }
 0x90f   : > { %v9329_v24 = vadd.f32 %v7354_v34, %v6488_v32  ;;  %v7356_v6 = vpop.f32.mrb[5].mxu0  ;;  %v8943_v34 = vcombine.low %v5016_v16, %v5020_v50 }
 0x910   : > { %v7357_v30 = vpop.f32.mrb[6].mxu0 }
 0x911   : > { %v9331_v63 = vadd.f32 %v7357_v30, %v6491_v52  ;;  %v7359_v59 = vpop.f32.mrb[7].mxu0  ;;  %v7603_v18 = vmax.f32 %v9329_v24, 0.0  ;;  %v8952_v24 = vcombine.high %v5024_v46, %v5028_v39 }
 0x912   : > { %v13988_v22 = vpop.f32.mrb[80].mxu1 }
 0x913   : > { %v7604_v61 = vmax.f32 %v9331_v63, 0.0  ;;  %7569 = vmatmul.mubr.bf16.gmra.mrb[112].mxu0 %v8935_v4  ;;  %v6930_v45 = vpop.f32.mrb[81].mxu1  ;;  %v5107_v4 = vld [vmem:[%s14774_s8 + $0x30] sm:$0xff] }
 0x914   : > { %7576 = vmatprep.mubr.bf16.mxu0 %v8944_v62  ;;  %v13993_v47 = vpop.f32.mrb[82].mxu1  ;;  %v6504_v50 = vadd.f32 %v13626_v58, %v5107_v4 }
 0x915   : > { %v13996_v12 = vpack.c.bf16 %v7604_v61, %v7603_v18  ;;  %v6933_v29 = vpop.f32.mrb[83].mxu1  ;;  %v5032_v18 = vld [vmem:[%s14773_s7 + $0x7d8] sm:$0xff] }
 0x916   : > { %v7362_v8 = vpop.f32.mrb[8].mxu0  ;;  %v5036_v61 = vld [vmem:[%s14773_s7 + $0x7f8] sm:$0xff] }
 0x917   : > { %v9333_v32 = vadd.f32 %v7362_v8, %v6496_v43  ;;  %v7364_v36 = vpop.f32.mrb[9].mxu0  ;;  %v6507_v43 = vadd.f32 %v13634_v1, %v5108_v27  ;;  %v5110_v1 = vld [vmem:[%s14774_s8 + $0x48] sm:$0xff] }
 0x918   : > { %v7365_v52 = vpop.f32.mrb[10].mxu0  ;;  %v8960_v36 = vcombine.high %v5032_v18, %v5036_v61  ;;  %v6515_v27 = vadd.f32 %v13650_v56, %v5110_v1  ;;  %v5112_v56 = vld [vmem:[%s14774_s8 + $0x58] sm:$0xff] }
 0x919   : > { %v9335_v60 = vadd.f32 %v7365_v52, %v6499_v5  ;;  %v7367_v6 = vpop.f32.mrb[11].mxu0  ;;  %v7605_v62 = vmax.f32 %v9333_v32, 0.0  ;;  %v8951_v5 = vcombine.low %v5024_v46, %v5028_v39  ;;  %v5109_v52 = vld [vmem:[%s14774_s8 + $0x40] sm:$0xff] }
 0x91a   : > { %v14008_v30 = vpop.f32.mrb[84].mxu1  ;;  %v6512_v39 = vadd.f32 %v13642_v21, %v5109_v52 }
 0x91b   : > { %v7606_v63 = vmax.f32 %v9335_v60, 0.0  ;;  %7577 = vmatmul.mubr.bf16.gmra.mrb[116].mxu0 %v8943_v34  ;;  %v6938_v59 = vpop.f32.mrb[85].mxu1 }
 0x91c   : > { %7584 = vmatprep.mubr.bf16.mxu0 %v8952_v24  ;;  %v14013_v16 = vpop.f32.mrb[86].mxu1 }
 0x91d   : > { %v14016_v37 = vpack.c.bf16 %v7606_v63, %v7605_v62  ;;  %v6941_v45 = vpop.f32.mrb[87].mxu1 }
 0x91e   : > { %v7370_v31 = vpop.f32.mrb[12].mxu0 }
 0x91f   : > { %v9337_v29 = vadd.f32 %v7370_v31, %v6504_v50  ;;  %v7372_v8 = vpop.f32.mrb[13].mxu0  ;;  %v8959_v31 = vcombine.low %v5032_v18, %v5036_v61 }
 0x920   : > { %v7373_v32 = vpop.f32.mrb[14].mxu0 }
 0x921   : > { %v9339_v58 = vadd.f32 %v7373_v32, %v6507_v43  ;;  %v7375_v34 = vpop.f32.mrb[15].mxu0  ;;  %v7607_v60 = vmax.f32 %v9337_v29, 0.0 }
 0x922   : > { %v14028_v24 = vpop.f32.mrb[88].mxu1 }
 0x923   : > { %v7608_v6 = vmax.f32 %v9339_v58, 0.0  ;;  %7585 = vmatmul.mubr.bf16.gmra.mrb[120].mxu0 %v8951_v5  ;;  %v6946_v4 = vpop.f32.mrb[89].mxu1  ;;  %v5111_v5 = vld [vmem:[%s14774_s8 + $0x50] sm:$0xff] }
 0x924   : > { %7592 = vmatprep.mubr.bf16.mxu0 %v8960_v36  ;;  %v14033_v46 = vpop.f32.mrb[90].mxu1  ;;  %v6520_v18 = vadd.f32 %v13658_v44, %v5111_v5 }
 0x925   : > { %v14036_v62 = vpack.c.bf16 %v7608_v6, %v7607_v60  ;;  %v6949_v63 = vpop.f32.mrb[91].mxu1  ;;  %v6523_v6 = vadd.f32 %v13666_v38, %v5112_v56 }
 0x926   : > { %v7378_v59 = vpop.f32.mrb[16].mxu0 }
 0x927   : > { %v9341_v50 = vadd.f32 %v7378_v59, %v6512_v39  ;;  %v7380_v45 = vpop.f32.mrb[17].mxu0 }
 0x928   : > { %v7381_v43 = vpop.f32.mrb[18].mxu0 }
 0x929   : > { %v9343_v29 = vadd.f32 %v7381_v43, %v6515_v27  ;;  %v7383_v8 = vpop.f32.mrb[19].mxu0  ;;  %v7609_v36 = vmax.f32 %v9341_v50, 0.0  ;;  %v5113_v27 = vld [vmem:[%s14774_s8 + $0x60] sm:$0xff]  ;;  %v5114_v43 = vld [vmem:[%s14774_s8 + $0x68] sm:$0xff] }
 0x92a   : > { %v14042_v32 = vpop.f32.mrb[92].mxu1  ;;  %v6528_v38 = vadd.f32 %v13674_v53, %v5113_v27 }
 0x92b   : > { %v7610_v21 = vmax.f32 %v9343_v29, 0.0  ;;  %7593 = vmatmul.mubr.bf16.gmra.mrb[124].mxu0 %v8959_v31  ;;  %v6954_v58 = vpop.f32.mrb[93].mxu1 }
 0x92c   : > { %v14047_v34 = vpop.f32.mrb[94].mxu1 }
 0x92d   : > { %v14050_v61 = vpack.c.bf16 %v7610_v21, %v7609_v36  ;;  %v6957_v52 = vpop.f32.mrb[95].mxu1  ;;  %v6531_v21 = vadd.f32 %v13682_v3, %v5114_v43 }
 0x92e   : > { %v7386_v60 = vpop.f32.mrb[20].mxu0 }
 0x92f   : > { %v9345_v4 = vadd.f32 %v7386_v60, %v6520_v18  ;;  %v7388_v1 = vpop.f32.mrb[21].mxu0 }
 0x930   : > { %v7389_v39 = vpop.f32.mrb[22].mxu0 }
 0x931   : > { %v9347_v63 = vadd.f32 %v7389_v39, %v6523_v6  ;;  %v7391_v59 = vpop.f32.mrb[23].mxu0  ;;  %v7611_v45 = vmax.f32 %v9345_v4, 0.0  ;;  %v5115_v6 = vld [vmem:[%s14774_s8 + $0x70] sm:$0xff] }
 0x932   : > { %v14056_v50 = vpop.f32.mrb[96].mxu1  ;;  %v6536_v3 = vadd.f32 %v13690_v11, %v5115_v6 }
 0x933   : > { %v7612_v31 = vmax.f32 %v9347_v63, 0.0  ;;  %v6962_v44 = vpop.f32.mrb[97].mxu1  ;;  %v5116_v63 = vld [vmem:[%s14774_s8 + $0x78] sm:$0xff] }
 0x934   : > { %v14061_v29 = vpop.f32.mrb[98].mxu1  ;;  %v6539_v44 = vadd.f32 %v13698_v7, %v5116_v63 }
 0x935   : > { %v14064_v8 = vpack.c.bf16 %v7612_v31, %v7611_v45  ;;  %v6965_v5 = vpop.f32.mrb[99].mxu1 }
 0x936   : > { %v7394_v36 = vpop.f32.mrb[24].mxu0 }
 0x937   : > { %v9349_v58 = vadd.f32 %v7394_v36, %v6528_v38  ;;  %v7396_v56 = vpop.f32.mrb[25].mxu0 }
 0x938   : > { %v7397_v18 = vpop.f32.mrb[26].mxu0 }
 0x939   : > { %v9351_v52 = vadd.f32 %v7397_v18, %v6531_v21  ;;  %v7399_v60 = vpop.f32.mrb[27].mxu0  ;;  %v7613_v1 = vmax.f32 %v9349_v58, 0.0  ;;  %v5117_v58 = vld [vmem:[%s14774_s8 + $0x80] sm:$0xff] }
 0x93a   : > { %v14070_v4 = vpop.f32.mrb[100].mxu1  ;;  %v5118_v60 = vld [vmem:[%s14774_s8 + $0x88] sm:$0xff]  ;;  %v6544_v7 = vadd.f32 %v13706_v35, %v5117_v58  ;;  %v5120_v58 = vld [vmem:[%s14774_s8 + $0x98] sm:$0xff] }
 0x93b   : > { %v7614_v39 = vmax.f32 %v9351_v52, 0.0  ;;  %v6970_v53 = vpop.f32.mrb[101].mxu1  ;;  %v6547_v63 = vadd.f32 %v13714_v14, %v5118_v60 }
 0x93c   : > { %v14075_v59 = vpop.f32.mrb[102].mxu1 }
 0x93d   : > { %v14078_v27 = vpack.c.bf16 %v7614_v39, %v7613_v1  ;;  %v6973_v45 = vpop.f32.mrb[103].mxu1 }
 0x93e   : > { %v7402_v31 = vpop.f32.mrb[28].mxu0 }
 0x93f   : > { %v9353_v43 = vadd.f32 %v7402_v31, %v6536_v3  ;;  %v7404_v38 = vpop.f32.mrb[29].mxu0 }
 0x940   : > { %v7405_v5 = vpop.f32.mrb[30].mxu0  ;;  %v5119_v38 = vld [vmem:[%s14774_s8 + $0x90] sm:$0xff] }
 0x941   : > { %v9355_v36 = vadd.f32 %v7405_v5, %v6539_v44  ;;  %v7407_v21 = vpop.f32.mrb[31].mxu0  ;;  %v7615_v18 = vmax.f32 %v9353_v43, 0.0  ;;  %v6552_v14 = vadd.f32 %v13722_v48, %v5119_v38 }
 0x942   : > { %v14084_v56 = vpop.f32.mrb[104].mxu1 }
 0x943   : > { %v7616_v52 = vmax.f32 %v9355_v36, 0.0  ;;  %v6978_v11 = vpop.f32.mrb[105].mxu1 }
 0x944   : > { %v14089_v6 = vpop.f32.mrb[106].mxu1 }
 0x945   : > { %v14092_v1 = vpack.c.bf16 %v7616_v52, %v7615_v18  ;;  %v6981_v39 = vpop.f32.mrb[107].mxu1 }
 0x946   : > { %v7410_v53 = vpop.f32.mrb[32].mxu0 }
 0x947   : > { %v9357_v3 = vadd.f32 %v7410_v53, %v6544_v7  ;;  %v7412_v45 = vpop.f32.mrb[33].mxu0  ;;  %v6555_v7 = vadd.f32 %v13730_v17, %v5120_v58  ;;  %v5122_v17 = vld [vmem:[%s14774_s8 + $0xa8] sm:$0xff] }
 0x948   : > { %v7413_v31 = vpop.f32.mrb[34].mxu0 }
 0x949   : > { %v9359_v44 = vadd.f32 %v7413_v31, %v6547_v63  ;;  %v7415_v43 = vpop.f32.mrb[35].mxu0  ;;  %v7617_v36 = vmax.f32 %v9357_v3, 0.0  ;;  %v5121_v31 = vld [vmem:[%s14774_s8 + $0xa0] sm:$0xff] }
 0x94a   : > { %v14098_v5 = vpop.f32.mrb[108].mxu1 }
 0x94b   : > { %v7618_v21 = vmax.f32 %v9359_v44, 0.0  ;;  %v6986_v35 = vpop.f32.mrb[109].mxu1 }
 0x94c   : > { %v14103_v18 = vpop.f32.mrb[110].mxu1 }
 0x94d   : > { %v7737_v52 = vpack.c.bf16 %v7618_v21, %v7617_v36  ;;  %v6989_v11 = vpop.f32.mrb[111].mxu1  ;;  %v6560_v21 = vadd.f32 %v13738_v28, %v5121_v31 }
 0x94e   : > { %v7418_v60 = vpop.f32.mrb[36].mxu0 }
 0x94f   : > { %v9361_v39 = vadd.f32 %v7418_v60, %v6552_v14  ;;  %v7420_v53 = vpop.f32.mrb[37].mxu0  ;;  %9030 = vmatprep.subr.bf16.mxu1 %v7737_v52  ;;  %v6563_v14 = vadd.f32 %v13746_v40, %v5122_v17  ;;  %v5124_v40 = vld [vmem:[%s14774_s8 + $0xb8] sm:$0xff] }
 0x950   : > { %v7421_v63 = vpop.f32.mrb[38].mxu0  ;;  %9031 = vmatpush3.bf16.msra.mxu1 %v13976_v20  ;;  %v5123_v53 = vld [vmem:[%s14774_s8 + $0xb0] sm:$0xff]  ;;  %v6571_v17 = vadd.f32 %v13762_v23, %v5124_v40  ;;  %v5126_v23 = vld [vmem:[%s14774_s8 + $0xc8] sm:$0xff] }
 0x951   : > { %v9363_v3 = vadd.f32 %v7421_v63, %v6555_v7  ;;  %v7423_v45 = vpop.f32.mrb[39].mxu0  ;;  %v7619_v48 = vmax.f32 %v9361_v39, 0.0 }
 0x952   : > { %v14111_v44 = vpop.f32.mrb[112].mxu1 }
 0x953   : > { %v7620_v43 = vmax.f32 %v9363_v3, 0.0  ;;  %v6994_v38 = vpop.f32.mrb[113].mxu1 }
 0x954   : > { %v14116_v36 = vpop.f32.mrb[114].mxu1 }
 0x955   : > { %v7738_v20 = vpack.c.bf16 %v7620_v43, %v7619_v48  ;;  %v6997_v35 = vpop.f32.mrb[115].mxu1  ;;  %v6568_v48 = vadd.f32 %v13754_v13, %v5123_v53 }
 0x956   : > { %v7426_v58 = vpop.f32.mrb[40].mxu0 }
 0x957   : > { %v9365_v52 = vadd.f32 %v7426_v58, %v6560_v21  ;;  %v7428_v11 = vpop.f32.mrb[41].mxu0  ;;  %9032 = vmatprep.subr.bf16.mxu1 %v7738_v20 }
 0x958   : > { %v7429_v60 = vpop.f32.mrb[42].mxu0  ;;  %9033 = vmatpush3.bf16.msra.mxu1 %v13996_v12 }
 0x959   : > { %v9367_v7 = vadd.f32 %v7429_v60, %v6563_v14  ;;  %v7431_v39 = vpop.f32.mrb[43].mxu0  ;;  %v7621_v28 = vmax.f32 %v9365_v52, 0.0  ;;  %v5125_v52 = vld [vmem:[%s14774_s8 + $0xc0] sm:$0xff] }
 0x95a   : > { %v14124_v63 = vpop.f32.mrb[116].mxu1  ;;  %v6576_v53 = vadd.f32 %v13770_v33, %v5125_v52 }
 0x95b   : > { %v7622_v3 = vmax.f32 %v9367_v7, 0.0  ;;  %v7002_v45 = vpop.f32.mrb[117].mxu1 }
 0x95c   : > { %v14129_v31 = vpop.f32.mrb[118].mxu1  ;;  %v6579_v45 = vadd.f32 %v13778_v25, %v5126_v23  ;;  %v5128_v25 = vld [vmem:[%s14774_s8 + $0xd8] sm:$0xff] }
 0x95d   : > { %v7739_v12 = vpack.c.bf16 %v7622_v3, %v7621_v28  ;;  %v7005_v43 = vpop.f32.mrb[119].mxu1 }
 0x95e   : > { %v7434_v38 = vpop.f32.mrb[44].mxu0 }
 0x95f   : > { %v9369_v21 = vadd.f32 %v7434_v38, %v6568_v48  ;;  %v7436_v20 = vpop.f32.mrb[45].mxu0  ;;  %9034 = vmatprep.subr.bf16.mxu1 %v7739_v12 }
 0x960   : > { %v7437_v35 = vpop.f32.mrb[46].mxu0  ;;  %9035 = vmatpush3.bf16.msra.mxu1 %v14016_v37 }
 0x961   : > { %v9371_v58 = vadd.f32 %v7437_v35, %v6571_v17  ;;  %v7439_v14 = vpop.f32.mrb[47].mxu0  ;;  %v7623_v13 = vmax.f32 %v9369_v21, 0.0  ;;  %v5127_v17 = vld [vmem:[%s14774_s8 + $0xd0] sm:$0xff] }
 0x962   : > { %v14137_v11 = vpop.f32.mrb[120].mxu1  ;;  %v6584_v14 = vadd.f32 %v13786_v55, %v5127_v17  ;;  %v5130_v55 = vld [vmem:[%s14774_s8 + $0xe8] sm:$0xff] }
 0x963   : > { %v7624_v60 = vmax.f32 %v9371_v58, 0.0  ;;  %v7010_v7 = vpop.f32.mrb[121].mxu1 }
 0x964   : > { %v14142_v39 = vpop.f32.mrb[122].mxu1 }
 0x965   : > { %v7740_v37 = vpack.c.bf16 %v7624_v60, %v7623_v13  ;;  %v7013_v28 = vpop.f32.mrb[123].mxu1  ;;  %v6587_v60 = vadd.f32 %v13794_v19, %v5128_v25 }
 0x966   : > { %v7442_v3 = vpop.f32.mrb[48].mxu0 }
 0x967   : > { %v9373_v40 = vadd.f32 %v7442_v3, %v6576_v53  ;;  %v7444_v48 = vpop.f32.mrb[49].mxu0  ;;  %9036 = vmatprep.subr.bf16.mxu1 %v7740_v37  ;;  %v5129_v3 = vld [vmem:[%s14774_s8 + $0xe0] sm:$0xff] }
 0x968   : > { %v7445_v12 = vpop.f32.mrb[50].mxu0  ;;  %9037 = vmatpush3.bf16.msra.mxu1 %v14036_v62  ;;  %v6592_v19 = vadd.f32 %v13802_v2, %v5129_v3  ;;  %v5132_v2 = vld [vmem:[%s14774_s8 + $0xf8] sm:$0xff] }
 0x969   : > { %v9375_v43 = vadd.f32 %v7445_v12, %v6579_v45  ;;  %v7447_v38 = vpop.f32.mrb[51].mxu0  ;;  %v7625_v33 = vmax.f32 %v9373_v40, 0.0 }
 0x96a   : > { %v14150_v21 = vpop.f32.mrb[124].mxu1 }
 0x96b   : > { %v7626_v20 = vmax.f32 %v9375_v43, 0.0  ;;  %v7018_v35 = vpop.f32.mrb[125].mxu1  ;;  %v6595_v43 = vadd.f32 %v13810_v9, %v5130_v55 }
 0x96c   : > { %v14155_v58 = vpop.f32.mrb[126].mxu1  ;;  %v5131_v35 = vld [vmem:[%s14774_s8 + $0xf0] sm:$0xff] }
 0x96d   : > { %v7741_v62 = vpack.c.bf16 %v7626_v20, %v7625_v33  ;;  %v7021_v52 = vpop.f32.mrb[127].mxu1  ;;  %v6600_v9 = vadd.f32 %v13818_v54, %v5131_v35  ;;  %v5134_v54 = vld [vmem:[%s14774_s8 + $0x108] sm:$0xff] }
 0x96e   : > { %v7450_v13 = vpop.f32.mrb[52].mxu0  ;;  %v6611_v55 = vadd.f32 %v13848_v0, %v5134_v54  ;;  %v5135_v0 = vld [vmem:[%s14774_s8 + $0x110] sm:$0xff] }
 0x96f   : > { %v9377_v7 = vadd.f32 %v7450_v13, %v6584_v14  ;;  %v7452_v23 = vpop.f32.mrb[53].mxu0  ;;  %9038 = vmatprep.subr.bf16.mxu1 %v7741_v62  ;;  %v6603_v13 = vadd.f32 %v13826_v41, %v5132_v2 }
 0x970   : > { %v7453_v53 = vpop.f32.mrb[54].mxu0  ;;  %9039 = vmatpush3.bf16.msra.mxu1 %v14050_v61 }
 0x971   : > { %v9379_v37 = vadd.f32 %v7453_v53, %v6587_v60  ;;  %v7455_v28 = vpop.f32.mrb[55].mxu0  ;;  %v7627_v45 = vmax.f32 %v9377_v7, 0.0 }
 0x973   : > { %v7628_v40 = vmax.f32 %v9379_v37, 0.0  ;;  %v5133_v37 = vld [vmem:[%s14774_s8 + $0x100] sm:$0xff] }
 0x974   : > { %v6608_v41 = vadd.f32 %v13846_v51, %v5133_v37 }
 0x975   : > { %v7742_v48 = vpack.c.bf16 %v7628_v40, %v7627_v45 }
 0x976   : > { %v7458_v12 = vpop.f32.mrb[56].mxu0 }
 0x977   : > { %v9381_v38 = vadd.f32 %v7458_v12, %v6592_v19  ;;  %v7460_v61 = vpop.f32.mrb[57].mxu0  ;;  %9040 = vmatprep.subr.bf16.mxu1 %v7742_v48  ;;  %v9841_v48 = vld [vmem:[%s14775_s9] ss:$16 sps:$4 sm:$0xff]  }
 0x978   : > { %v7461_v17 = vpop.f32.mrb[58].mxu0  ;;  %9041 = vmatpush3.bf16.msra.mxu1 %v14064_v8 }
 0x979   : > { %v9383_v33 = vadd.f32 %v7461_v17, %v6595_v43  ;;  %v7463_v20 = vpop.f32.mrb[59].mxu0  ;;  %v7629_v25 = vmax.f32 %v9381_v38, 0.0  ;;  %v9844_v43 = vld [vmem:[%s14775_s9 + $0x24] ss:$16 sps:$4 sm:$0xff]  }
 0x97b   : > { %v7630_v14 = vmax.f32 %v9383_v33, 0.0  ;;  %v5136_v33 = vld [vmem:[%s14774_s8 + $0x118] sm:$0xff] }
 0x97d   : > { %v7743_v62 = vpack.c.bf16 %v7630_v14, %v7629_v25  ;;  %v9394_v25 = vadd.f32 %v13936_v10, %v5136_v33  ;;  %v5138_v10 = vld [vmem:[%s14774_s8 + $0x128] sm:$0xff] }
 0x97e   : > { %v7466_v52 = vpop.f32.mrb[60].mxu0 }
 0x97f   : > { %v9385_v60 = vadd.f32 %v7466_v52, %v6600_v9  ;;  %v7468_v8 = vpop.f32.mrb[61].mxu0  ;;  %9042 = vmatprep.subr.bf16.mxu1 %v7743_v62  ;;  %v9846_v9 = vld [vmem:[%s14775_s9 + $0x20] ss:$16 sps:$4 sm:$0xff]   ;;  %v9847_v52 = vld [vmem:[%s14775_s9 + $0x44] ss:$16 sps:$4 sm:$0xff]  }
 0x980   : > { %v7469_v7 = vpop.f32.mrb[62].mxu0  ;;  %9043 = vmatpush3.bf16.msra.mxu1 %v14078_v27 }
 0x981   : > { %v9387_v23 = vadd.f32 %v7469_v7, %v6603_v13  ;;  %v7471_v53 = vpop.f32.mrb[63].mxu0  ;;  %v7631_v28 = vmax.f32 %v9385_v60, 0.0 }
 0x983   : > { %v7632_v3 = vmax.f32 %v9387_v23, 0.0 }
 0x985   : > { %v7744_v45 = vpack.c.bf16 %v7632_v3, %v7631_v28  ;;  %v9398_v28 = vadd.f32 %v13952_v15, %v5138_v10  ;;  %v5140_v15 = vld [vmem:[%s14774_s8 + $0x138] sm:$0xff]  ;;  %v9856_v10 = vld [vmem:[%s14775_s9 + $0xa4] ss:$16 sps:$4 sm:$0xff]  }
 0x986   : > { %v7474_v40 = vpop.f32.mrb[64].mxu0 }
 0x987   : > { %v9389_v19 = vadd.f32 %v7474_v40, %v6608_v41  ;;  %v7476_v27 = vpop.f32.mrb[65].mxu0  ;;  %9044 = vmatprep.subr.bf16.mxu1 %v7744_v45  ;;  %v9849_v41 = vld [vmem:[%s14775_s9 + $0x40] ss:$16 sps:$4 sm:$0xff]   ;;  %v9850_v40 = vld [vmem:[%s14775_s9 + $0x64] ss:$16 sps:$4 sm:$0xff]  }
 0x988   : > { %v7477_v12 = vpop.f32.mrb[66].mxu0  ;;  %9045 = vmatpush3.bf16.msra.mxu1 %v14092_v1  ;;  %v9392_v1 = vadd.f32 %v13934_v57, %v5135_v0  ;;  %v5137_v57 = vld [vmem:[%s14774_s8 + $0x120] sm:$0xff] }
 0x989   : > { %v9391_v38 = vadd.f32 %v7477_v12, %v6611_v55  ;;  %v7479_v51 = vpop.f32.mrb[67].mxu0  ;;  %v7633_v61 = vmax.f32 %v9389_v19, 0.0  ;;  %v9396_v23 = vadd.f32 %v13947_v42, %v5137_v57  ;;  %v5139_v42 = vld [vmem:[%s14774_s8 + $0x130] sm:$0xff] }
 0x98a   : > { %v9400_v12 = vadd.f32 %v13968_v49, %v5139_v42  ;;  %v9402_v51 = vadd.f32 %v13973_v26, %v5140_v15  ;;  %v5141_v49 = vld [vmem:[%s14774_s8 + $0x140] sm:$0xff]  ;;  %v5142_v26 = vld [vmem:[%s14774_s8 + $0x148] sm:$0xff] }
 0x98b   : > { %v7634_v17 = vmax.f32 %v9391_v38, 0.0  ;;  %8146 = vmatmul.mubr.bf16.vlgmr.msra.gmra.mrb[128].mxu1 %v9841_v48  ;;  %v9858_v42 = vld [vmem:[%s14775_s9 + $0xa0] ss:$16 sps:$4 sm:$0xff]  }
 0x98c   : > { %8153 = vmatprep.mubr.bf16.mxu1 %v9844_v43 }
 0x98d   : > { %v14200_v20 = vpack.c.bf16 %v7634_v17, %v7633_v61  ;;  %v9852_v17 = vld [vmem:[%s14775_s9 + $0x60] ss:$16 sps:$4 sm:$0xff]  }
 0x98e   : > { %v7482_v35 = vpop.f32.mrb[68].mxu0 }
 0x98f   : > { %v9393_v14 = vadd.f32 %v9392_v1, %v7482_v35  ;;  %v7484_v2 = vpop.f32.mrb[69].mxu0  ;;  %v9853_v1 = vld [vmem:[%s14775_s9 + $0x84] ss:$16 sps:$4 sm:$0xff]  }
 0x990   : > { %v7485_v62 = vpop.f32.mrb[70].mxu0 }
 0x991   : > { %v9395_v13 = vadd.f32 %v9394_v25, %v7485_v62  ;;  %v7487_v60 = vpop.f32.mrb[71].mxu0  ;;  %v7635_v8 = vmax.f32 %v9393_v14, 0.0 }
 0x993   : > { %v7636_v7 = vmax.f32 %v9395_v13, 0.0  ;;  %8154 = vmatmul.mubr.bf16.gmra.mrb[132].mxu1 %v9846_v9  ;;  %v9404_v9 = vadd.f32 %v13988_v22, %v5141_v49  ;;  %v9406_v13 = vadd.f32 %v13993_v47, %v5142_v26  ;;  %v5143_v22 = vld [vmem:[%s14774_s8 + $0x150] sm:$0xff]  ;;  %v5144_v47 = vld [vmem:[%s14774_s8 + $0x158] sm:$0xff] }
 0x994   : > { %8161 = vmatprep.mubr.bf16.mxu1 %v9847_v52 }
 0x995   : > { %v14216_v53 = vpack.c.bf16 %v7636_v7, %v7635_v8  ;;  %v9855_v8 = vld [vmem:[%s14775_s9 + $0x80] ss:$16 sps:$4 sm:$0xff]  }
 0x996   : > { %v7490_v37 = vpop.f32.mrb[72].mxu0 }
 0x997   : > { %v9397_v3 = vadd.f32 %v9396_v23, %v7490_v37  ;;  %v7492_v54 = vpop.f32.mrb[73].mxu0 }
 0x998   : > { %v7493_v45 = vpop.f32.mrb[74].mxu0  ;;  %v9408_v54 = vadd.f32 %v14008_v30, %v5143_v22  ;;  %v5145_v30 = vld [vmem:[%s14774_s8 + $0x160] sm:$0xff] }
 0x999   : > { %v9399_v55 = vadd.f32 %v9398_v28, %v7493_v45  ;;  %v7495_v19 = vpop.f32.mrb[75].mxu0  ;;  %v7637_v27 = vmax.f32 %v9397_v3, 0.0  ;;  %v9865_v22 = vld [vmem:[%s14775_s9 + $0x104] ss:$16 sps:$4 sm:$0xff]  }
 0x99b   : > { %v7638_v48 = vmax.f32 %v9399_v55, 0.0  ;;  %8162 = vmatmul.mubr.bf16.gmra.mrb[136].mxu1 %v9849_v41 }
 0x99c   : > { %8169 = vmatprep.mubr.bf16.mxu1 %v9850_v40  ;;  %v9410_v40 = vadd.f32 %v14013_v16, %v5144_v47  ;;  %v5146_v16 = vld [vmem:[%s14774_s8 + $0x168] sm:$0xff] }
 0x99d   : > { %v14232_v43 = vpack.c.bf16 %v7638_v48, %v7637_v27  ;;  %v9859_v48 = vld [vmem:[%s14775_s9 + $0xc4] ss:$16 sps:$4 sm:$0xff]  }
 0x99e   : > { %v7498_v38 = vpop.f32.mrb[76].mxu0 }
 0x99f   : > { %v9401_v0 = vadd.f32 %v9400_v12, %v7498_v38  ;;  %v7500_v61 = vpop.f32.mrb[77].mxu0 }
 0x9a0   : > { %v7501_v33 = vpop.f32.mrb[78].mxu0 }
 0x9a1   : > { %v9403_v35 = vadd.f32 %v9402_v51, %v7501_v33  ;;  %v7503_v25 = vpop.f32.mrb[79].mxu0  ;;  %v7639_v14 = vmax.f32 %v9401_v0, 0.0  ;;  %v9412_v0 = vadd.f32 %v14028_v24, %v5145_v30  ;;  %v9414_v33 = vadd.f32 %v14033_v46, %v5146_v16  ;;  %v5147_v24 = vld [vmem:[%s14774_s8 + $0x170] sm:$0xff]  ;;  %v5148_v46 = vld [vmem:[%s14774_s8 + $0x178] sm:$0xff] }
 0x9a2   : > { %v9861_v25 = vld [vmem:[%s14775_s9 + $0xc0] ss:$16 sps:$4 sm:$0xff]  }
 0x9a3   : > { %v7640_v2 = vmax.f32 %v9403_v35, 0.0  ;;  %8170 = vmatmul.mubr.bf16.gmra.mrb[140].mxu1 %v9852_v17 }
 0x9a4   : > { %8177 = vmatprep.mubr.bf16.mxu1 %v9853_v1 }
 0x9a5   : > { %v14248_v62 = vpack.c.bf16 %v7640_v2, %v7639_v14  ;;  %v9862_v14 = vld [vmem:[%s14775_s9 + $0xe4] ss:$16 sps:$4 sm:$0xff]  }
 0x9a6   : > { %v7506_v52 = vpop.f32.mrb[80].mxu0 }
 0x9a7   : > { %v9405_v60 = vadd.f32 %v9404_v9, %v7506_v52  ;;  %v7508_v57 = vpop.f32.mrb[81].mxu0 }
 0x9a8   : > { %v7509_v7 = vpop.f32.mrb[82].mxu0 }
 0x9a9   : > { %v9407_v23 = vadd.f32 %v9406_v13, %v7509_v7  ;;  %v7511_v37 = vpop.f32.mrb[83].mxu0  ;;  %v7641_v28 = vmax.f32 %v9405_v60, 0.0  ;;  %v9416_v13 = vadd.f32 %v14042_v32, %v5147_v24  ;;  %v5149_v32 = vld [vmem:[%s14774_s8 + $0x180] sm:$0xff] }
 0x9ab   : > { %v7642_v3 = vmax.f32 %v9407_v23, 0.0  ;;  %8178 = vmatmul.mubr.bf16.gmra.mrb[144].mxu1 %v9855_v8  ;;  %v9418_v8 = vadd.f32 %v14047_v34, %v5148_v46  ;;  %v9864_v23 = vld [vmem:[%s14775_s9 + $0xe0] ss:$16 sps:$4 sm:$0xff]   ;;  %v5150_v34 = vld [vmem:[%s14774_s8 + $0x188] sm:$0xff] }
 0x9ac   : > { %8185 = vmatprep.mubr.bf16.mxu1 %v9856_v10 }
 0x9ad   : > { %v14264_v41 = vpack.c.bf16 %v7642_v3, %v7641_v28 }
 0x9ae   : > { %v7514_v45 = vpop.f32.mrb[84].mxu0 }
 0x9af   : > { %v9409_v55 = vadd.f32 %v9408_v54, %v7514_v45  ;;  %v7516_v19 = vpop.f32.mrb[85].mxu0  ;;  %v9420_v45 = vadd.f32 %v14056_v50, %v5149_v32  ;;  %v5151_v50 = vld [vmem:[%s14774_s8 + $0x190] sm:$0xff]  ;;  %v5156_v32 = vld [vmem:[%s14774_s8 + $0x1b8] sm:$0xff] }
 0x9b0   : > { %v7517_v27 = vpop.f32.mrb[86].mxu0  ;;  %v9422_v19 = vadd.f32 %v14061_v29, %v5150_v34  ;;  %v5152_v29 = vld [vmem:[%s14774_s8 + $0x198] sm:$0xff]  ;;  %v9434_v34 = vadd.f32 %v14103_v18, %v5156_v32  ;;  %v5157_v18 = vld [vmem:[%s14774_s8 + $0x1c0] sm:$0xff] }
 0x9b1   : > { %v9411_v15 = vadd.f32 %v9410_v40, %v7517_v27  ;;  %v7519_v12 = vpop.f32.mrb[87].mxu0  ;;  %v7643_v38 = vmax.f32 %v9409_v55, 0.0 }
 0x9b2   : > { %v9868_v12 = vld [vmem:[%s14775_s9 + $0x124] ss:$16 sps:$4 sm:$0xff]  }
 0x9b3   : > { %v7644_v51 = vmax.f32 %v9411_v15, 0.0  ;;  %8186 = vmatmul.mubr.bf16.gmra.mrb[148].mxu1 %v9858_v42 }
 0x9b4   : > { %8193 = vmatprep.mubr.bf16.mxu1 %v9859_v48  ;;  %v9867_v48 = vld [vmem:[%s14775_s9 + $0x100] ss:$16 sps:$4 sm:$0xff]  }
 0x9b5   : > { %v14280_v61 = vpack.c.bf16 %v7644_v51, %v7643_v38 }
 0x9b6   : > { %v7522_v17 = vpop.f32.mrb[88].mxu0 }
 0x9b7   : > { %v9413_v1 = vadd.f32 %v9412_v0, %v7522_v17  ;;  %v7524_v35 = vpop.f32.mrb[89].mxu0  ;;  %v9424_v0 = vadd.f32 %v14070_v4, %v5151_v50 }
 0x9b8   : > { %v7525_v49 = vpop.f32.mrb[90].mxu0 }
 0x9b9   : > { %v9415_v2 = vadd.f32 %v9414_v33, %v7525_v49  ;;  %v7527_v26 = vpop.f32.mrb[91].mxu0  ;;  %v7645_v9 = vmax.f32 %v9413_v1, 0.0  ;;  %v9426_v1 = vadd.f32 %v14075_v59, %v5152_v29  ;;  %v9870_v49 = vld [vmem:[%s14775_s9 + $0x120] ss:$16 sps:$4 sm:$0xff]  }
 0x9ba   : > { %v5153_v59 = vld [vmem:[%s14774_s8 + $0x1a0] sm:$0xff] }
 0x9bb   : > { %v7646_v52 = vmax.f32 %v9415_v2, 0.0  ;;  %8194 = vmatmul.mubr.bf16.gmra.mrb[152].mxu1 %v9861_v25  ;;  %v9871_v2 = vld [vmem:[%s14775_s9 + $0x144] ss:$16 sps:$4 sm:$0xff]  }
 0x9bc   : > { %8201 = vmatprep.mubr.bf16.mxu1 %v9862_v14 }
 0x9bd   : > { %v14296_v60 = vpack.c.bf16 %v7646_v52, %v7645_v9  ;;  %v5154_v52 = vld [vmem:[%s14774_s8 + $0x1a8] sm:$0xff] }
 0x9be   : > { %v7530_v57 = vpop.f32.mrb[92].mxu0 }
 0x9bf   : > { %v9417_v7 = vadd.f32 %v9416_v13, %v7530_v57  ;;  %v7532_v10 = vpop.f32.mrb[93].mxu0  ;;  %v9430_v57 = vadd.f32 %v14089_v6, %v5154_v52  ;;  %v5155_v6 = vld [vmem:[%s14774_s8 + $0x1b0] sm:$0xff] }
 0x9c0   : > { %v7533_v37 = vpop.f32.mrb[94].mxu0  ;;  %v9873_v10 = vld [vmem:[%s14775_s9 + $0x140] ss:$16 sps:$4 sm:$0xff]   ;;  %v9883_v52 = vld [vmem:[%s14775_s9 + $0x1c4] ss:$16 sps:$4 sm:$0xff]  }
 0x9c1   : > { %v9419_v28 = vadd.f32 %v9418_v8, %v7533_v37  ;;  %v7535_v3 = vpop.f32.mrb[95].mxu0  ;;  %v7647_v47 = vmax.f32 %v9417_v7, 0.0  ;;  %v9874_v37 = vld [vmem:[%s14775_s9 + $0x164] ss:$16 sps:$4 sm:$0xff]  }
 0x9c3   : > { %v7648_v54 = vmax.f32 %v9419_v28, 0.0  ;;  %8202 = vmatmul.mubr.bf16.gmra.mrb[156].mxu1 %v9864_v23 }
 0x9c4   : > { %8209 = vmatprep.mubr.bf16.mxu1 %v9865_v22 }
 0x9c5   : > { %v14312_v40 = vpack.c.bf16 %v7648_v54, %v7647_v47 }
 0x9c6   : > { %v7538_v55 = vpop.f32.mrb[96].mxu0 }
 0x9c7   : > { %v9421_v42 = vadd.f32 %v9420_v45, %v7538_v55  ;;  %v7540_v27 = vpop.f32.mrb[97].mxu0 }
 0x9c8   : > { %v7541_v15 = vpop.f32.mrb[98].mxu0  ;;  %v9877_v27 = vld [vmem:[%s14775_s9 + $0x184] ss:$16 sps:$4 sm:$0xff]  }
 0x9c9   : > { %v9423_v30 = vadd.f32 %v9422_v19, %v7541_v15  ;;  %v7543_v38 = vpop.f32.mrb[99].mxu0  ;;  %v7649_v51 = vmax.f32 %v9421_v42, 0.0  ;;  %v9876_v19 = vld [vmem:[%s14775_s9 + $0x160] ss:$16 sps:$4 sm:$0xff]  }
 0x9cb   : > { %v7650_v16 = vmax.f32 %v9423_v30, 0.0  ;;  %8210 = vmatmul.mubr.bf16.gmra.mrb[160].mxu1 %v9867_v48  ;;  %v5158_v30 = vld [vmem:[%s14774_s8 + $0x1c8] sm:$0xff] }
 0x9cc   : > { %8217 = vmatprep.mubr.bf16.mxu1 %v9868_v12 }
 0x9cd   : > { %v7753_v17 = vpack.c.bf16 %v7650_v16, %v7649_v51  ;;  %v9438_v51 = vadd.f32 %v14116_v36, %v5158_v30  ;;  %v5159_v36 = vld [vmem:[%s14774_s8 + $0x1d0] sm:$0xff]  ;;  %v9895_v30 = vld [vmem:[%s14775_s9 + $0x4c] ss:$16 sps:$4 sm:$0xff]  }
 0x9ce   : > { %v7546_v33 = vpop.f32.mrb[100].mxu0 }
 0x9cf   : > { %v9425_v35 = vadd.f32 %v9424_v0, %v7546_v33  ;;  %v7548_v25 = vpop.f32.mrb[101].mxu0  ;;  %9142 = vmatprep.subr.bf16.mxu1 %v7753_v17  ;;  %v9879_v0 = vld [vmem:[%s14775_s9 + $0x180] ss:$16 sps:$4 sm:$0xff]   ;;  %v9880_v33 = vld [vmem:[%s14775_s9 + $0x1a4] ss:$16 sps:$4 sm:$0xff]  }
 0x9d0   : > { %v7549_v14 = vpop.f32.mrb[102].mxu0  ;;  %9143 = vmatpush3.bf16.msra.mxu1 %v14200_v20  ;;  %v9428_v20 = vadd.f32 %v14084_v56, %v5153_v59 }
 0x9d1   : > { %v9427_v26 = vadd.f32 %v9426_v1, %v7549_v14  ;;  %v7551_v4 = vpop.f32.mrb[103].mxu0  ;;  %v7651_v24 = vmax.f32 %v9425_v35, 0.0 }
 0x9d3   : > { %v7652_v9 = vmax.f32 %v9427_v26, 0.0  ;;  %8218 = vmatmul.mubr.bf16.gmra.mrb[164].mxu1 %v9870_v49  ;;  %v5160_v49 = vld [vmem:[%s14774_s8 + $0x1d8] sm:$0xff] }
 0x9d4   : > { %8225 = vmatprep.mubr.bf16.mxu1 %v9871_v2  ;;  %v9442_v26 = vadd.f32 %v14129_v31, %v5160_v49  ;;  %v5161_v31 = vld [vmem:[%s14774_s8 + $0x1e0] sm:$0xff]  ;;  %v9919_v49 = vld [vmem:[%s14775_s9 + $0x14c] ss:$16 sps:$4 sm:$0xff]  }
 0x9d5   : > { %v7754_v46 = vpack.c.bf16 %v7652_v9, %v7651_v24  ;;  %v9882_v24 = vld [vmem:[%s14775_s9 + $0x1a0] ss:$16 sps:$4 sm:$0xff]  }
 0x9d6   : > { %v7554_v13 = vpop.f32.mrb[104].mxu0 }
 0x9d7   : > { %v9429_v8 = vadd.f32 %v9428_v20, %v7554_v13  ;;  %v7556_v7 = vpop.f32.mrb[105].mxu0  ;;  %9144 = vmatprep.subr.bf16.mxu1 %v7754_v46 }
 0x9d8   : > { %v7557_v23 = vpop.f32.mrb[106].mxu0  ;;  %9145 = vmatpush3.bf16.msra.mxu1 %v14216_v53  ;;  %v9432_v53 = vadd.f32 %v14098_v5, %v5155_v6  ;;  %v9886_v6 = vld [vmem:[%s14775_s9 + $0x1e4] ss:$16 sps:$4 sm:$0xff]  }
 0x9d9   : > { %v9431_v22 = vadd.f32 %v9430_v57, %v7557_v23  ;;  %v7559_v56 = vpop.f32.mrb[107].mxu0  ;;  %v7653_v28 = vmax.f32 %v9429_v8, 0.0  ;;  %v5162_v57 = vld [vmem:[%s14774_s8 + $0x1e8] sm:$0xff] }
 0x9db   : > { %v7654_v3 = vmax.f32 %v9431_v22, 0.0  ;;  %8226 = vmatmul.mubr.bf16.gmra.mrb[168].mxu1 %v9873_v10  ;;  %v9446_v10 = vadd.f32 %v14142_v39, %v5162_v57  ;;  %v9885_v22 = vld [vmem:[%s14775_s9 + $0x1c0] ss:$16 sps:$4 sm:$0xff]  }
 0x9dc   : > { %8233 = vmatprep.mubr.bf16.mxu1 %v9874_v37  ;;  %v5163_v39 = vld [vmem:[%s14774_s8 + $0x1f0] sm:$0xff] }
 0x9dd   : > { %v7755_v47 = vpack.c.bf16 %v7654_v3, %v7653_v28 }
 0x9de   : > { %v7562_v54 = vpop.f32.mrb[108].mxu0 }
 0x9df   : > { %v9433_v45 = vadd.f32 %v9432_v53, %v7562_v54  ;;  %v7564_v55 = vpop.f32.mrb[109].mxu0  ;;  %9146 = vmatprep.subr.bf16.mxu1 %v7755_v47  ;;  %v5164_v53 = vld [vmem:[%s14774_s8 + $0x1f8] sm:$0xff] }
 0x9e0   : > { %v7565_v42 = vpop.f32.mrb[110].mxu0  ;;  %9147 = vmatpush3.bf16.msra.mxu1 %v14232_v43  ;;  %v9436_v43 = vadd.f32 %v14111_v44, %v5157_v18 }
 0x9e1   : > { %v9435_v48 = vadd.f32 %v9434_v34, %v7565_v42  ;;  %v7567_v5 = vpop.f32.mrb[111].mxu0  ;;  %v7655_v15 = vmax.f32 %v9433_v45, 0.0  ;;  %v9450_v34 = vadd.f32 %v14155_v58, %v5164_v53 }
 0x9e3   : > { %v7656_v12 = vmax.f32 %v9435_v48, 0.0  ;;  %8234 = vmatmul.mubr.bf16.gmra.mrb[172].mxu1 %v9876_v19  ;;  %v9888_v19 = vld [vmem:[%s14775_s9 + $0x1e0] ss:$16 sps:$4 sm:$0xff]  }
 0x9e4   : > { %8241 = vmatprep.mubr.bf16.mxu1 %v9877_v27  ;;  %v9891_v27 = vld [vmem:[%s14775_s9 + $0xc] ss:$16 sps:$4 sm:$0xff]  }
 0x9e5   : > { %v7756_v38 = vpack.c.bf16 %v7656_v12, %v7655_v15  ;;  %v9889_v15 = vld [vmem:[%s14775_s9 + $0x8] ss:$16 sps:$4 sm:$0xff]  }
 0x9e6   : > { %v7570_v50 = vpop.f32.mrb[112].mxu0  ;;  %v9894_v12 = vld [vmem:[%s14775_s9 + $0x28] ss:$16 sps:$4 sm:$0xff]  }
 0x9e7   : > { %v9437_v16 = vadd.f32 %v9436_v43, %v7570_v50  ;;  %v7572_v29 = vpop.f32.mrb[113].mxu0  ;;  %9148 = vmatprep.subr.bf16.mxu1 %v7756_v38  ;;  %v9898_v43 = vld [vmem:[%s14775_s9 + $0x6c] ss:$16 sps:$4 sm:$0xff]   ;;  %v9900_v38 = vld [vmem:[%s14775_s9 + $0x68] ss:$16 sps:$4 sm:$0xff]  }
 0x9e8   : > { %v7573_v17 = vpop.f32.mrb[114].mxu0  ;;  %9149 = vmatpush3.bf16.msra.mxu1 %v14248_v62  ;;  %v9440_v62 = vadd.f32 %v14124_v63, %v5159_v36  ;;  %v9901_v50 = vld [vmem:[%s14775_s9 + $0x8c] ss:$16 sps:$4 sm:$0xff]   ;;  %v9906_v29 = vld [vmem:[%s14775_s9 + $0xa8] ss:$16 sps:$4 sm:$0xff]  }
 0x9e9   : > { %v9439_v1 = vadd.f32 %v9438_v51, %v7573_v17  ;;  %v7575_v44 = vpop.f32.mrb[115].mxu0  ;;  %v7657_v35 = vmax.f32 %v9437_v16, 0.0  ;;  %v9903_v51 = vld [vmem:[%s14775_s9 + $0x88] ss:$16 sps:$4 sm:$0xff]   ;;  %v9904_v16 = vld [vmem:[%s14775_s9 + $0xac] ss:$16 sps:$4 sm:$0xff]  }
 0x9ea   : > { %v9909_v17 = vld [vmem:[%s14775_s9 + $0xc8] ss:$16 sps:$4 sm:$0xff]   ;;  %v9913_v44 = vld [vmem:[%s14775_s9 + $0x10c] ss:$16 sps:$4 sm:$0xff]  }
 0x9eb   : > { %v7658_v25 = vmax.f32 %v9439_v1, 0.0  ;;  %8242 = vmatmul.mubr.bf16.gmra.mrb[176].mxu1 %v9879_v0  ;;  %v9907_v0 = vld [vmem:[%s14775_s9 + $0xcc] ss:$16 sps:$4 sm:$0xff]   ;;  %v9912_v1 = vld [vmem:[%s14775_s9 + $0xe8] ss:$16 sps:$4 sm:$0xff]  }
 0x9ec   : > { %8249 = vmatprep.mubr.bf16.mxu1 %v9880_v33  ;;  %v9910_v33 = vld [vmem:[%s14775_s9 + $0xec] ss:$16 sps:$4 sm:$0xff]   ;;  %v9915_v36 = vld [vmem:[%s14775_s9 + $0x108] ss:$16 sps:$4 sm:$0xff]  }
 0x9ed   : > { %v7757_v14 = vpack.c.bf16 %v7658_v25, %v7657_v35  ;;  %v9916_v35 = vld [vmem:[%s14775_s9 + $0x12c] ss:$16 sps:$4 sm:$0xff]   ;;  %v9918_v25 = vld [vmem:[%s14775_s9 + $0x128] ss:$16 sps:$4 sm:$0xff]  }
 0x9ee   : > { %v7578_v2 = vpop.f32.mrb[116].mxu0 }
 0x9ef   : > { %v9441_v4 = vadd.f32 %v9440_v62, %v7578_v2  ;;  %v7580_v59 = vpop.f32.mrb[117].mxu0  ;;  %9150 = vmatprep.subr.bf16.mxu1 %v7757_v14  ;;  %v9921_v62 = vld [vmem:[%s14775_s9 + $0x148] ss:$16 sps:$4 sm:$0xff]   ;;  %v9922_v14 = vld [vmem:[%s14775_s9 + $0x16c] ss:$16 sps:$4 sm:$0xff]  }
 0x9f0   : > { %v7581_v9 = vpop.f32.mrb[118].mxu0  ;;  %9151 = vmatpush3.bf16.msra.mxu1 %v14264_v41  ;;  %v9444_v41 = vadd.f32 %v14137_v11, %v5161_v31 }
 0x9f1   : > { %v9443_v20 = vadd.f32 %v9442_v26, %v7581_v9  ;;  %v7583_v63 = vpop.f32.mrb[119].mxu0  ;;  %v7659_v46 = vmax.f32 %v9441_v4, 0.0  ;;  %v9924_v4 = vld [vmem:[%s14775_s9 + $0x168] ss:$16 sps:$4 sm:$0xff]   ;;  %v9925_v9 = vld [vmem:[%s14775_s9 + $0x18c] ss:$16 sps:$4 sm:$0xff]  }
 0x9f3   : > { %v7660_v13 = vmax.f32 %v9443_v20, 0.0  ;;  %8250 = vmatmul.mubr.bf16.gmra.mrb[180].mxu1 %v9882_v24 }
 0x9f4   : > { %8257 = vmatprep.mubr.bf16.mxu1 %v9883_v52 }
 0x9f5   : > { %v7758_v8 = vpack.c.bf16 %v7660_v13, %v7659_v46  ;;  %v9927_v46 = vld [vmem:[%s14775_s9 + $0x188] ss:$16 sps:$4 sm:$0xff]  }
 0x9f6   : > { %v7586_v7 = vpop.f32.mrb[120].mxu0 }
 0x9f7   : > { %v9445_v23 = vadd.f32 %v9444_v41, %v7586_v7  ;;  %v7588_v37 = vpop.f32.mrb[121].mxu0  ;;  %9152 = vmatprep.subr.bf16.mxu1 %v7758_v8  ;;  %v9928_v41 = vld [vmem:[%s14775_s9 + $0x1ac] ss:$16 sps:$4 sm:$0xff]  }
 0x9f8   : > { %v7589_v56 = vpop.f32.mrb[122].mxu0  ;;  %9153 = vmatpush3.bf16.msra.mxu1 %v14280_v61  ;;  %v9448_v61 = vadd.f32 %v14150_v21, %v5163_v39  ;;  %v9930_v37 = vld [vmem:[%s14775_s9 + $0x1a8] ss:$16 sps:$4 sm:$0xff]  }
 0x9f9   : > { %v9447_v28 = vadd.f32 %v9446_v10, %v7589_v56  ;;  %v7591_v11 = vpop.f32.mrb[123].mxu0  ;;  %v7661_v3 = vmax.f32 %v9445_v23, 0.0 }
 0x9fb   : > { %v7662_v32 = vmax.f32 %v9447_v28, 0.0  ;;  %8258 = vmatmul.mubr.bf16.gmra.mrb[184].mxu1 %v9885_v22 }
 0x9fc   : > { %8265 = vmatprep.mubr.bf16.mxu1 %v9886_v6  ;;  %v9931_v6 = vld [vmem:[%s14775_s9 + $0x1cc] ss:$16 sps:$4 sm:$0xff]  }
 0x9fd   : > { %v7759_v47 = vpack.c.bf16 %v7662_v32, %v7661_v3  ;;  %v9933_v32 = vld [vmem:[%s14775_s9 + $0x1c8] ss:$16 sps:$4 sm:$0xff]  }
 0x9fe   : > { %v7594_v54 = vpop.f32.mrb[124].mxu0 }
 0x9ff   : > { %v9449_v45 = vadd.f32 %v9448_v61, %v7594_v54  ;;  %v7596_v55 = vpop.f32.mrb[125].mxu0  ;;  %9154 = vmatprep.subr.bf16.mxu1 %v7759_v47  ;;  %v9934_v47 = vld [vmem:[%s14775_s9 + $0x1ec] ss:$16 sps:$4 sm:$0xff]  }
 0xa00   : > { %v7597_v42 = vpop.f32.mrb[126].mxu0  ;;  %9155 = vmatpush3.bf16.msra.mxu1 %v14296_v60  ;;  %v9892_v60 = vld [vmem:[%s14775_s9 + $0x2c] ss:$16 sps:$4 sm:$0xff]  }
 0xa01   : > { %v9451_v48 = vadd.f32 %v9450_v34, %v7597_v42  ;;  %v7599_v21 = vpop.f32.mrb[127].mxu0  ;;  %v7663_v5 = vmax.f32 %v9449_v45, 0.0 }
 0xa03   : > { %v7664_v18 = vmax.f32 %v9451_v48, 0.0  ;;  %8266 = vmatmul.mubr.bf16.gmra.mrb[188].mxu1 %v9888_v19  ;;  %v9936_v19 = vld [vmem:[%s14775_s9 + $0x1e8] ss:$16 sps:$4 sm:$0xff]  }
 0xa04   : > { %8306 = vmatprep.mubr.bf16.mxu1 %v9891_v27 }
 0xa05   : > { %v7760_v58 = vpack.c.bf16 %v7664_v18, %v7663_v5 }
 0xa07   : > { %9156 = vmatprep.subr.bf16.mxu1 %v7760_v58 }
 0xa08   : > { %9157 = vmatpush3.bf16.msra.mxu1 %v14312_v40  ;;  %v9897_v40 = vld [vmem:[%s14775_s9 + $0x48] ss:$16 sps:$4 sm:$0xff]  }
 0xa0b   : > { %8307 = vmatmul.mubr.bf16.vlgmr.msra.gmra.mrb[192].mxu1 %v9889_v15 }
 0xa0c   : > { %8314 = vmatprep.mubr.bf16.mxu1 %v9892_v60 }
 0xa13   : > { %8315 = vmatmul.mubr.bf16.gmra.mrb[196].mxu1 %v9894_v12 }
 0xa14   : > { %8322 = vmatprep.mubr.bf16.mxu1 %v9895_v30 }
 0xa1b   : > { %8323 = vmatmul.mubr.bf16.gmra.mrb[200].mxu1 %v9897_v40 }
 0xa1c   : > { %8330 = vmatprep.mubr.bf16.mxu1 %v9898_v43 }
 0xa23   : > { %8331 = vmatmul.mubr.bf16.gmra.mrb[204].mxu1 %v9900_v38 }
 0xa24   : > { %8338 = vmatprep.mubr.bf16.mxu1 %v9901_v50 }
 0xa2b   : > { %8339 = vmatmul.mubr.bf16.gmra.mrb[208].mxu1 %v9903_v51 }
 0xa2c   : > { %8346 = vmatprep.mubr.bf16.mxu1 %v9904_v16 }
 0xa33   : > { %8347 = vmatmul.mubr.bf16.gmra.mrb[212].mxu1 %v9906_v29 }
 0xa34   : > { %8354 = vmatprep.mubr.bf16.mxu1 %v9907_v0 }
 0xa3b   : > { %8355 = vmatmul.mubr.bf16.gmra.mrb[216].mxu1 %v9909_v17 }
 0xa3c   : > { %8362 = vmatprep.mubr.bf16.mxu1 %v9910_v33 }
 0xa43   : > { %8363 = vmatmul.mubr.bf16.gmra.mrb[220].mxu1 %v9912_v1 }
 0xa44   : > { %8370 = vmatprep.mubr.bf16.mxu1 %v9913_v44 }
 0xa4b   : > { %8371 = vmatmul.mubr.bf16.gmra.mrb[224].mxu1 %v9915_v36 }
 0xa4c   : > { %8378 = vmatprep.mubr.bf16.mxu1 %v9916_v35 }
 0xa53   : > { %8379 = vmatmul.mubr.bf16.gmra.mrb[228].mxu1 %v9918_v25 }
 0xa54   : > { %8386 = vmatprep.mubr.bf16.mxu1 %v9919_v49 }
 0xa5b   : > { %8387 = vmatmul.mubr.bf16.gmra.mrb[232].mxu1 %v9921_v62 }
 0xa5c   : > { %8394 = vmatprep.mubr.bf16.mxu1 %v9922_v14 }
 0xa5e   : > { %v9046_v2 = vpop.f32.mrb[128].mxu1 }
 0xa5f   : > { %v9047_v26 = vpop.f32.mrb[129].mxu1 }
 0xa60   : > { %v14496_v59 = vadd.f32 %v9047_v26, %v9046_v2  ;;  %v9049_v24 = vpop.f32.mrb[130].mxu1 }
 0xa61   : > { %v9050_v52 = vpop.f32.mrb[131].mxu1 }
 0xa62   : > { %v14501_v20 = vadd.f32 %v9050_v52, %v9049_v24 }
 0xa63   : > { %8395 = vmatmul.mubr.bf16.gmra.mrb[236].mxu1 %v9924_v4 }
 0xa64   : > { %8402 = vmatprep.mubr.bf16.mxu1 %v9925_v9 }
 0xa66   : > { %v9052_v63 = vpop.f32.mrb[132].mxu1 }
 0xa67   : > { %v9053_v31 = vpop.f32.mrb[133].mxu1 }
 0xa68   : > { %v14506_v13 = vadd.f32 %v9053_v31, %v9052_v63  ;;  %v9055_v57 = vpop.f32.mrb[134].mxu1 }
 0xa69   : > { %v9056_v8 = vpop.f32.mrb[135].mxu1 }
 0xa6a   : > { %v14511_v7 = vadd.f32 %v9056_v8, %v9055_v57 }
 0xa6b   : > { %8403 = vmatmul.mubr.bf16.gmra.mrb[240].mxu1 %v9927_v46 }
 0xa6c   : > { %8410 = vmatprep.mubr.bf16.mxu1 %v9928_v41 }
 0xa6e   : > { %v9058_v10 = vpop.f32.mrb[136].mxu1 }
 0xa6f   : > { %v9059_v23 = vpop.f32.mrb[137].mxu1 }
 0xa70   : > { %v14516_v22 = vadd.f32 %v9059_v23, %v9058_v10  ;;  %v9061_v56 = vpop.f32.mrb[138].mxu1 }
 0xa71   : > { %v9062_v28 = vpop.f32.mrb[139].mxu1 }
 0xa72   : > { %v14521_v11 = vadd.f32 %v9062_v28, %v9061_v56 }
 0xa73   : > { %8411 = vmatmul.mubr.bf16.gmra.mrb[244].mxu1 %v9930_v37 }
 0xa74   : > { %8418 = vmatprep.mubr.bf16.mxu1 %v9931_v6 }
 0xa76   : > { %v9064_v39 = vpop.f32.mrb[140].mxu1 }
 0xa77   : > { %v9065_v3 = vpop.f32.mrb[141].mxu1 }
 0xa78   : > { %v14526_v53 = vadd.f32 %v9065_v3, %v9064_v39  ;;  %v9067_v61 = vpop.f32.mrb[142].mxu1 }
 0xa79   : > { %v9068_v54 = vpop.f32.mrb[143].mxu1 }
 0xa7a   : > { %v14531_v34 = vadd.f32 %v9068_v54, %v9067_v61 }
 0xa7b   : > { %8419 = vmatmul.mubr.bf16.gmra.mrb[248].mxu1 %v9933_v32 }
 0xa7c   : > { %8426 = vmatprep.mubr.bf16.mxu1 %v9934_v47 }
 0xa7e   : > { %v9070_v45 = vpop.f32.mrb[144].mxu1 }
 0xa7f   : > { %v9071_v55 = vpop.f32.mrb[145].mxu1 }
 0xa80   : > { %v14536_v42 = vadd.f32 %v9071_v55, %v9070_v45  ;;  %v9073_v27 = vpop.f32.mrb[146].mxu1 }
 0xa81   : > { %v9074_v48 = vpop.f32.mrb[147].mxu1 }
 0xa82   : > { %v14538_v21 = vadd.f32 %v9074_v48, %v9073_v27 }
 0xa83   : > { %8427 = vmatmul.mubr.bf16.gmra.mrb[252].mxu1 %v9936_v19 }
 0xa86   : > { %v9076_v5 = vpop.f32.mrb[148].mxu1 }
 0xa87   : > { %v9077_v18 = vpop.f32.mrb[149].mxu1 }
 0xa88   : > { %v14540_v58 = vadd.f32 %v9077_v18, %v9076_v5  ;;  %v9079_v15 = vpop.f32.mrb[150].mxu1 }
 0xa89   : > { %v9080_v60 = vpop.f32.mrb[151].mxu1 }
 0xa8a   : > { %v14542_v12 = vadd.f32 %v9080_v60, %v9079_v15 }
 0xa8e   : > { %v9082_v30 = vpop.f32.mrb[152].mxu1 }
 0xa8f   : > { %v9083_v40 = vpop.f32.mrb[153].mxu1 }
 0xa90   : > { %v14544_v43 = vadd.f32 %v9083_v40, %v9082_v30  ;;  %v9085_v38 = vpop.f32.mrb[154].mxu1 }
 0xa91   : > { %v9086_v50 = vpop.f32.mrb[155].mxu1 }
 0xa92   : > { %v14546_v51 = vadd.f32 %v9086_v50, %v9085_v38 }
 0xa96   : > { %v9088_v16 = vpop.f32.mrb[156].mxu1 }
 0xa97   : > { %v9089_v29 = vpop.f32.mrb[157].mxu1 }
 0xa98   : > { %v14548_v0 = vadd.f32 %v9089_v29, %v9088_v16  ;;  %v9091_v17 = vpop.f32.mrb[158].mxu1 }
 0xa99   : > { %v9092_v33 = vpop.f32.mrb[159].mxu1 }
 0xa9a   : > { %v14550_v1 = vadd.f32 %v9092_v33, %v9091_v17 }
 0xa9e   : > { %v9094_v44 = vpop.f32.mrb[160].mxu1 }
 0xa9f   : > { %v9095_v36 = vpop.f32.mrb[161].mxu1 }
 0xaa0   : > { %v14552_v35 = vadd.f32 %v9095_v36, %v9094_v44  ;;  %v9097_v25 = vpop.f32.mrb[162].mxu1  ;;  %v7761_v44 = vld [vmem:[%s14776_s10] sm:$0xff] }
 0xaa1   : > { %v9098_v49 = vpop.f32.mrb[163].mxu1 }
 0xaa2   : > { %v14554_v62 = vadd.f32 %v9098_v49, %v9097_v25  ;;  %v7762_v25 = vld [vmem:[%s14776_s10 + $0x8] sm:$0xff] }
 0xaa6   : > { %v9100_v14 = vpop.f32.mrb[164].mxu1 }
 0xaa7   : > { %v9101_v2 = vpop.f32.mrb[165].mxu1 }
 0xaa8   : > { %v14556_v26 = vadd.f32 %v9101_v2, %v9100_v14  ;;  %v9103_v4 = vpop.f32.mrb[166].mxu1  ;;  %v8148_v14 = vadd.f32 %v14496_v59, %v7761_v44 }
 0xaa9   : > { %v9104_v24 = vpop.f32.mrb[167].mxu1 }
 0xaaa   : > { %v14558_v9 = vadd.f32 %v9104_v24, %v9103_v4 }
 0xaae   : > { %v9106_v52 = vpop.f32.mrb[168].mxu1 }
 0xaaf   : > { %v9107_v63 = vpop.f32.mrb[169].mxu1 }
 0xab0   : > { %v14560_v31 = vadd.f32 %v9107_v63, %v9106_v52  ;;  %v9109_v46 = vpop.f32.mrb[170].mxu1  ;;  %v8151_v52 = vadd.f32 %v14501_v20, %v7762_v25 }
 0xab1   : > { %v9110_v57 = vpop.f32.mrb[171].mxu1 }
 0xab2   : > { %v14562_v41 = vadd.f32 %v9110_v57, %v9109_v46  ;;  %v9939_v57 = vld [vmem:[%s14777_s11 + $0x4] ss:$8 sps:$4 sm:$0x1f]  }
 0xab3   : > { %8529 = vmatprep.mubr.bf16.mxu1 %v9939_v57 }
 0xab6   : > { %v9112_v8 = vpop.f32.mrb[172].mxu1 }
 0xab7   : > { %v9113_v10 = vpop.f32.mrb[173].mxu1 }
 0xab8   : > { %v14564_v23 = vadd.f32 %v9113_v10, %v9112_v8  ;;  %v9115_v37 = vpop.f32.mrb[174].mxu1  ;;  %v7763_v10 = vld [vmem:[%s14776_s10 + $0x10] sm:$0xff] }
 0xab9   : > { %v9116_v56 = vpop.f32.mrb[175].mxu1 }
 0xaba   : > { %v14566_v6 = vadd.f32 %v9116_v56, %v9115_v37 }
 0xabe   : > { %v9118_v28 = vpop.f32.mrb[176].mxu1 }
 0xabf   : > { %v9119_v39 = vpop.f32.mrb[177].mxu1 }
 0xac0   : > { %v14568_v3 = vadd.f32 %v9119_v39, %v9118_v28  ;;  %v9121_v32 = vpop.f32.mrb[178].mxu1  ;;  %v7764_v28 = vld [vmem:[%s14776_s10 + $0x18] sm:$0xff]  ;;  %v8156_v39 = vadd.f32 %v14506_v13, %v7763_v10  ;;  %v7766_v13 = vld [vmem:[%s14776_s10 + $0x28] sm:$0xff] }
 0xac1   : > { %v9122_v61 = vpop.f32.mrb[179].mxu1 }
 0xac2   : > { %v14570_v47 = vadd.f32 %v9122_v61, %v9121_v32 }
 0xac6   : > { %v9124_v54 = vpop.f32.mrb[180].mxu1 }
 0xac7   : > { %v9125_v45 = vpop.f32.mrb[181].mxu1 }
 0xac8   : > { %v14572_v55 = vadd.f32 %v9125_v45, %v9124_v54  ;;  %v9127_v19 = vpop.f32.mrb[182].mxu1 }
 0xac9   : > { %v9128_v27 = vpop.f32.mrb[183].mxu1 }
 0xaca   : > { %v14574_v48 = vadd.f32 %v9128_v27, %v9127_v19  ;;  %v8159_v19 = vadd.f32 %v14511_v7, %v7764_v28 }
 0xace   : > { %v9130_v5 = vpop.f32.mrb[184].mxu1 }
 0xacf   : > { %v9131_v18 = vpop.f32.mrb[185].mxu1 }
 0xad0   : > { %v14576_v15 = vadd.f32 %v9131_v18, %v9130_v5  ;;  %v9133_v60 = vpop.f32.mrb[186].mxu1 }
 0xad1   : > { %v9134_v30 = vpop.f32.mrb[187].mxu1 }
 0xad2   : > { %v14578_v40 = vadd.f32 %v9134_v30, %v9133_v60  ;;  %v7765_v60 = vld [vmem:[%s14776_s10 + $0x20] sm:$0xff] }
 0xad6   : > { %v9136_v38 = vpop.f32.mrb[188].mxu1 }
 0xad7   : > { %v9137_v50 = vpop.f32.mrb[189].mxu1 }
 0xad8   : > { %v14580_v16 = vadd.f32 %v9137_v50, %v9136_v38  ;;  %v9139_v29 = vpop.f32.mrb[190].mxu1 }
 0xad9   : > { %v9140_v17 = vpop.f32.mrb[191].mxu1 }
 0xada   : > { %v14582_v33 = vadd.f32 %v9140_v17, %v9139_v29  ;;  %v8164_v17 = vadd.f32 %v14516_v22, %v7765_v60  ;;  %v7768_v22 = vld [vmem:[%s14776_s10 + $0x38] sm:$0xff] }
 0xade   : > { %v9158_v36 = vpop.f32.mrb[192].mxu1 }
 0xadf   : > { %v9159_v49 = vpop.f32.mrb[193].mxu1 }
 0xae0   : > { %v9160_v2 = vadd.f32 %v9159_v49, %v9158_v36  ;;  %v9161_v4 = vpop.f32.mrb[194].mxu1  ;;  %v8167_v49 = vadd.f32 %v14521_v11, %v7766_v13 }
 0xae1   : > { %v9162_v24 = vpop.f32.mrb[195].mxu1 }
 0xae2   : > { %v8309_v63 = vadd.f32 %v9160_v2, %v8148_v14  ;;  %v9163_v46 = vadd.f32 %v9162_v24, %v9161_v4  ;;  %v7767_v24 = vld [vmem:[%s14776_s10 + $0x30] sm:$0xff] }
 0xae4   : > { %v8312_v8 = vadd.f32 %v9163_v46, %v8151_v52  ;;  %v8435_v37 = vmax.f32 %v8309_v63, 0.0 }
 0xae6   : > { %v8436_v56 = vmax.f32 %v8312_v8, 0.0  ;;  %v9164_v59 = vpop.f32.mrb[196].mxu1  ;;  %v8172_v8 = vadd.f32 %v14526_v53, %v7767_v24  ;;  %v7770_v53 = vld [vmem:[%s14776_s10 + $0x48] sm:$0xff] }
 0xae7   : > { %v9165_v20 = vpop.f32.mrb[197].mxu1 }
 0xae8   : > { %v14602_v32 = vpack.c.bf16 %v8436_v56, %v8435_v37  ;;  %v9166_v61 = vadd.f32 %v9165_v20, %v9164_v59  ;;  %v9167_v54 = vpop.f32.mrb[198].mxu1  ;;  %v8175_v59 = vadd.f32 %v14531_v34, %v7768_v22 }
 0xae9   : > { %v9168_v45 = vpop.f32.mrb[199].mxu1 }
 0xaea   : > { %v8317_v27 = vadd.f32 %v9166_v61, %v8156_v39  ;;  %v9169_v5 = vadd.f32 %v9168_v45, %v9167_v54  ;;  %v7769_v61 = vld [vmem:[%s14776_s10 + $0x40] sm:$0xff] }
 0xaec   : > { %v8320_v18 = vadd.f32 %v9169_v5, %v8159_v19  ;;  %v8437_v30 = vmax.f32 %v8317_v27, 0.0  ;;  %v8180_v5 = vadd.f32 %v14536_v42, %v7769_v61  ;;  %v7772_v42 = vld [vmem:[%s14776_s10 + $0x58] sm:$0xff] }
 0xaee   : > { %v8438_v38 = vmax.f32 %v8320_v18, 0.0  ;;  %v9170_v50 = vpop.f32.mrb[200].mxu1 }
 0xaef   : > { %v9171_v29 = vpop.f32.mrb[201].mxu1 }
 0xaf0   : > { %v14612_v44 = vpack.c.bf16 %v8438_v38, %v8437_v30  ;;  %v9172_v7 = vadd.f32 %v9171_v29, %v9170_v50  ;;  %v9173_v36 = vpop.f32.mrb[202].mxu1  ;;  %v8183_v38 = vadd.f32 %v14538_v21, %v7770_v53  ;;  %v7775_v53 = vld [vmem:[%s14776_s10 + $0x70] sm:$0xff] }
 0xaf1   : > { %v9174_v25 = vpop.f32.mrb[203].mxu1 }
 0xaf2   : > { %v8325_v14 = vadd.f32 %v9172_v7, %v8164_v17  ;;  %v9175_v2 = vadd.f32 %v9174_v25, %v9173_v36  ;;  %v7771_v17 = vld [vmem:[%s14776_s10 + $0x50] sm:$0xff] }
 0xaf4   : > { %v8328_v4 = vadd.f32 %v9175_v2, %v8167_v49  ;;  %v8439_v52 = vmax.f32 %v8325_v14, 0.0  ;;  %v8188_v14 = vadd.f32 %v14540_v58, %v7771_v17  ;;  %v7774_v58 = vld [vmem:[%s14776_s10 + $0x68] sm:$0xff] }
 0xaf5   : > { %v8199_v61 = vadd.f32 %v14546_v51, %v7774_v58 }
 0xaf6   : > { %v8440_v63 = vmax.f32 %v8328_v4, 0.0  ;;  %v9176_v46 = vpop.f32.mrb[204].mxu1 }
 0xaf7   : > { %v9177_v57 = vpop.f32.mrb[205].mxu1 }
 0xaf8   : > { %v14622_v10 = vpack.c.bf16 %v8440_v63, %v8439_v52  ;;  %v9178_v11 = vadd.f32 %v9177_v57, %v9176_v46  ;;  %v9179_v37 = vpop.f32.mrb[206].mxu1  ;;  %v8191_v52 = vadd.f32 %v14542_v12, %v7772_v42  ;;  %v7773_v57 = vld [vmem:[%s14776_s10 + $0x60] sm:$0xff] }
 0xaf9   : > { %v9180_v56 = vpop.f32.mrb[207].mxu1 }
 0xafa   : > { %v8333_v28 = vadd.f32 %v9178_v11, %v8172_v8  ;;  %v9181_v20 = vadd.f32 %v9180_v56, %v9179_v37 }
 0xafc   : > { %v8336_v39 = vadd.f32 %v9181_v20, %v8175_v59  ;;  %v8441_v54 = vmax.f32 %v8333_v28, 0.0  ;;  %v8196_v59 = vadd.f32 %v14544_v43, %v7773_v57  ;;  %v7776_v43 = vld [vmem:[%s14776_s10 + $0x78] sm:$0xff] }
 0xafe   : > { %v8442_v45 = vmax.f32 %v8336_v39, 0.0  ;;  %v9182_v19 = vpop.f32.mrb[208].mxu1 }
 0xaff   : > { %v9183_v27 = vpop.f32.mrb[209].mxu1 }
 0xb00   : > { %v14632_v18 = vpack.c.bf16 %v8442_v45, %v8441_v54  ;;  %v9184_v34 = vadd.f32 %v9183_v27, %v9182_v19  ;;  %v9185_v60 = vpop.f32.mrb[210].mxu1 }
 0xb01   : > { %v9186_v30 = vpop.f32.mrb[211].mxu1 }
 0xb02   : > { %v8341_v50 = vadd.f32 %v9184_v34, %v8180_v5  ;;  %v9187_v13 = vadd.f32 %v9186_v30, %v9185_v60  ;;  %v8204_v30 = vadd.f32 %v14548_v0, %v7775_v53  ;;  %v7778_v0 = vld [vmem:[%s14776_s10 + $0x88] sm:$0xff] }
 0xb04   : > { %v8344_v29 = vadd.f32 %v9187_v13, %v8183_v38  ;;  %v8443_v7 = vmax.f32 %v8341_v50, 0.0 }
 0xb06   : > { %v8444_v36 = vmax.f32 %v8344_v29, 0.0  ;;  %v9188_v25 = vpop.f32.mrb[212].mxu1  ;;  %v8207_v29 = vadd.f32 %v14550_v1, %v7776_v43 }
 0xb07   : > { %v9189_v49 = vpop.f32.mrb[213].mxu1 }
 0xb08   : > { %v14642_v2 = vpack.c.bf16 %v8444_v36, %v8443_v7  ;;  %v9190_v21 = vadd.f32 %v9189_v49, %v9188_v25  ;;  %v9191_v4 = vpop.f32.mrb[214].mxu1  ;;  %v7777_v25 = vld [vmem:[%s14776_s10 + $0x80] sm:$0xff] }
 0xb09   : > { %v9192_v24 = vpop.f32.mrb[215].mxu1 }
 0xb0a   : > { %v8349_v63 = vadd.f32 %v9190_v21, %v8188_v14  ;;  %v9193_v46 = vadd.f32 %v9192_v24, %v9191_v4  ;;  %v8212_v4 = vadd.f32 %v14552_v35, %v7777_v25  ;;  %v7780_v35 = vld [vmem:[%s14776_s10 + $0x98] sm:$0xff] }
 0xb0c   : > { %v8352_v22 = vadd.f32 %v9193_v46, %v8191_v52  ;;  %v8445_v8 = vmax.f32 %v8349_v63, 0.0  ;;  %v8215_v46 = vadd.f32 %v14554_v62, %v7778_v0 }
 0xb0e   : > { %v8446_v11 = vmax.f32 %v8352_v22, 0.0  ;;  %v9194_v37 = vpop.f32.mrb[216].mxu1 }
 0xb0f   : > { %v9195_v56 = vpop.f32.mrb[217].mxu1 }
 0xb10   : > { %v14652_v28 = vpack.c.bf16 %v8446_v11, %v8445_v8  ;;  %v9196_v12 = vadd.f32 %v9195_v56, %v9194_v37  ;;  %v9197_v20 = vpop.f32.mrb[218].mxu1  ;;  %v7779_v11 = vld [vmem:[%s14776_s10 + $0x90] sm:$0xff] }
 0xb11   : > { %v9198_v39 = vpop.f32.mrb[219].mxu1 }
 0xb12   : > { %v8357_v54 = vadd.f32 %v9196_v12, %v8196_v59  ;;  %v9199_v45 = vadd.f32 %v9198_v39, %v9197_v20  ;;  %v8220_v12 = vadd.f32 %v14556_v26, %v7779_v11  ;;  %v7782_v26 = vld [vmem:[%s14776_s10 + $0xa8] sm:$0xff] }
 0xb14   : > { %v8360_v19 = vadd.f32 %v9199_v45, %v8199_v61  ;;  %v8447_v27 = vmax.f32 %v8357_v54, 0.0  ;;  %v8223_v54 = vadd.f32 %v14558_v9, %v7780_v35 }
 0xb16   : > { %v8448_v5 = vmax.f32 %v8360_v19, 0.0  ;;  %v9200_v34 = vpop.f32.mrb[220].mxu1 }
 0xb17   : > { %v9201_v60 = vpop.f32.mrb[221].mxu1 }
 0xb18   : > { %v14662_v38 = vpack.c.bf16 %v8448_v5, %v8447_v27  ;;  %v9202_v51 = vadd.f32 %v9201_v60, %v9200_v34  ;;  %v9203_v50 = vpop.f32.mrb[222].mxu1  ;;  %v7781_v27 = vld [vmem:[%s14776_s10 + $0xa0] sm:$0xff] }
 0xb19   : > { %v9204_v13 = vpop.f32.mrb[223].mxu1  ;;  %v8228_v9 = vadd.f32 %v14560_v31, %v7781_v27  ;;  %v7784_v31 = vld [vmem:[%s14776_s10 + $0xb8] sm:$0xff] }
 0xb1a   : > { %v8365_v17 = vadd.f32 %v9202_v51, %v8204_v30  ;;  %v9205_v7 = vadd.f32 %v9204_v13, %v9203_v50 }
 0xb1c   : > { %v8368_v36 = vadd.f32 %v9205_v7, %v8207_v29  ;;  %v8449_v42 = vmax.f32 %v8365_v17, 0.0 }
 0xb1e   : > { %v8450_v49 = vmax.f32 %v8368_v36, 0.0  ;;  %v9206_v14 = vpop.f32.mrb[224].mxu1  ;;  %v7783_v36 = vld [vmem:[%s14776_s10 + $0xb0] sm:$0xff] }
 0xb1f   : > { %v9207_v21 = vpop.f32.mrb[225].mxu1 }
 0xb20   : > { %v14672_v24 = vpack.c.bf16 %v8450_v49, %v8449_v42  ;;  %v9208_v1 = vadd.f32 %v9207_v21, %v9206_v14  ;;  %v9209_v52 = vpop.f32.mrb[226].mxu1 }
 0xb21   : > { %v9210_v63 = vpop.f32.mrb[227].mxu1 }
 0xb22   : > { %v8373_v22 = vadd.f32 %v9208_v1, %v8212_v4  ;;  %v9211_v57 = vadd.f32 %v9210_v63, %v9209_v52 }
 0xb24   : > { %v8376_v8 = vadd.f32 %v9211_v57, %v8215_v46  ;;  %v8451_v37 = vmax.f32 %v8373_v22, 0.0  ;;  %v7785_v22 = vld [vmem:[%s14776_s10 + $0xc0] sm:$0xff] }
 0xb26   : > { %v8452_v58 = vmax.f32 %v8376_v8, 0.0  ;;  %v9212_v56 = vpop.f32.mrb[228].mxu1 }
 0xb27   : > { %v9213_v59 = vpop.f32.mrb[229].mxu1 }
 0xb28   : > { %v9214_v20 = vadd.f32 %v9213_v59, %v9212_v56  ;;  %v9215_v39 = vpop.f32.mrb[230].mxu1  ;;  %v8477_v62 = vpack.c.bf16 %v8452_v58, %v8451_v37 }
 0xb29   : > { %v9216_v61 = vpop.f32.mrb[231].mxu1 }
 0xb2a   : > { %v8381_v45 = vadd.f32 %v9214_v20, %v8220_v12  ;;  %v9217_v19 = vadd.f32 %v9216_v61, %v9215_v39  ;;  %9254 = vmatprep.subr.bf16.mxu1 %v8477_v62  ;;  %v7787_v62 = vld [vmem:[%s14776_s10 + $0xd0] sm:$0xff] }
 0xb2b   : > { %9255 = vmatpush3.bf16.msra.mxu1 %v14602_v32  ;;  %v8231_v32 = vadd.f32 %v14562_v41, %v7782_v26  ;;  %v8236_v41 = vadd.f32 %v14564_v23, %v7783_v36  ;;  %v7786_v23 = vld [vmem:[%s14776_s10 + $0xc8] sm:$0xff] }
 0xb2c   : > { %v8384_v53 = vadd.f32 %v9217_v19, %v8223_v54  ;;  %v8453_v5 = vmax.f32 %v8381_v45, 0.0 }
 0xb2e   : > { %v8454_v34 = vmax.f32 %v8384_v53, 0.0  ;;  %v9218_v43 = vpop.f32.mrb[232].mxu1 }
 0xb2f   : > { %v9219_v60 = vpop.f32.mrb[233].mxu1 }
 0xb30   : > { %v9220_v30 = vadd.f32 %v9219_v60, %v9218_v43  ;;  %v9221_v51 = vpop.f32.mrb[234].mxu1  ;;  %v8478_v50 = vpack.c.bf16 %v8454_v34, %v8453_v5 }
 0xb31   : > { %v9222_v13 = vpop.f32.mrb[235].mxu1 }
 0xb32   : > { %v8389_v29 = vadd.f32 %v9220_v30, %v8228_v9  ;;  %v9223_v17 = vadd.f32 %v9222_v13, %v9221_v51  ;;  %9256 = vmatprep.subr.bf16.mxu1 %v8478_v50  ;;  %v7789_v9 = vld [vmem:[%s14776_s10 + $0xe0] sm:$0xff] }
 0xb33   : > { %9257 = vmatpush3.bf16.msra.mxu1 %v14612_v44  ;;  %v8239_v44 = vadd.f32 %v14566_v6, %v7784_v31  ;;  %v8244_v6 = vadd.f32 %v14568_v3, %v7785_v22  ;;  %v7788_v3 = vld [vmem:[%s14776_s10 + $0xd8] sm:$0xff] }
 0xb34   : > { %v8392_v7 = vadd.f32 %v9223_v17, %v8231_v32  ;;  %v8455_v25 = vmax.f32 %v8389_v29, 0.0 }
 0xb36   : > { %v8456_v42 = vmax.f32 %v8392_v7, 0.0  ;;  %v9224_v49 = vpop.f32.mrb[236].mxu1 }
 0xb37   : > { %v9225_v14 = vpop.f32.mrb[237].mxu1 }
 0xb38   : > { %v9226_v0 = vadd.f32 %v9225_v14, %v9224_v49  ;;  %v9227_v21 = vpop.f32.mrb[238].mxu1  ;;  %v8479_v4 = vpack.c.bf16 %v8456_v42, %v8455_v25  ;;  %v7791_v49 = vld [vmem:[%s14776_s10 + $0xf0] sm:$0xff] }
 0xb39   : > { %v9228_v1 = vpop.f32.mrb[239].mxu1 }
 0xb3a   : > { %v8397_v52 = vadd.f32 %v9226_v0, %v8236_v41  ;;  %v9229_v63 = vadd.f32 %v9228_v1, %v9227_v21  ;;  %9258 = vmatprep.subr.bf16.mxu1 %v8479_v4 }
 0xb3b   : > { %9259 = vmatpush3.bf16.msra.mxu1 %v14622_v10  ;;  %v8247_v10 = vadd.f32 %v14570_v47, %v7786_v23  ;;  %v8252_v47 = vadd.f32 %v14572_v55, %v7787_v62  ;;  %v7790_v55 = vld [vmem:[%s14776_s10 + $0xe8] sm:$0xff] }
 0xb3c   : > { %v8400_v46 = vadd.f32 %v9229_v63, %v8239_v44  ;;  %v8457_v57 = vmax.f32 %v8397_v52, 0.0 }
 0xb3e   : > { %v8458_v8 = vmax.f32 %v8400_v46, 0.0  ;;  %v9230_v11 = vpop.f32.mrb[240].mxu1 }
 0xb3f   : > { %v9231_v37 = vpop.f32.mrb[241].mxu1 }
 0xb40   : > { %v9232_v58 = vadd.f32 %v9231_v37, %v9230_v11  ;;  %v9233_v56 = vpop.f32.mrb[242].mxu1  ;;  %v8480_v35 = vpack.c.bf16 %v8458_v8, %v8457_v57  ;;  %v8485_v11 = vld [vmem:[%s14778_s12] sm:$0xff] }
 0xb41   : > { %v9234_v59 = vpop.f32.mrb[243].mxu1 }
 0xb42   : > { %v8405_v12 = vadd.f32 %v9232_v58, %v8244_v6  ;;  %v9235_v20 = vadd.f32 %v9234_v59, %v9233_v56  ;;  %9260 = vmatprep.subr.bf16.mxu1 %v8480_v35  ;;  %v8486_v6 = vld [vmem:[%s14778_s12 + $0x8] sm:$0x1] }
 0xb43   : > { %9261 = vmatpush3.bf16.msra.mxu1 %v14632_v18  ;;  %v8255_v18 = vadd.f32 %v14574_v48, %v7788_v3  ;;  %v8260_v48 = vadd.f32 %v14576_v15, %v7789_v9  ;;  %v7792_v15 = vld [vmem:[%s14776_s10 + $0xf8] sm:$0xff] }
 0xb44   : > { %v8408_v39 = vadd.f32 %v9235_v20, %v8247_v10  ;;  %v8459_v61 = vmax.f32 %v8405_v12, 0.0 }
 0xb46   : > { %v8460_v54 = vmax.f32 %v8408_v39, 0.0  ;;  %v9236_v45 = vpop.f32.mrb[244].mxu1 }
 0xb47   : > { %v9237_v19 = vpop.f32.mrb[245].mxu1 }
 0xb48   : > { %v9238_v53 = vadd.f32 %v9237_v19, %v9236_v45  ;;  %v9239_v27 = vpop.f32.mrb[246].mxu1  ;;  %v8481_v5 = vpack.c.bf16 %v8460_v54, %v8459_v61 }
 0xb49   : > { %v9240_v34 = vpop.f32.mrb[247].mxu1 }
 0xb4a   : > { %v8413_v43 = vadd.f32 %v9238_v53, %v8252_v47  ;;  %v9241_v26 = vadd.f32 %v9240_v34, %v9239_v27  ;;  %9262 = vmatprep.subr.bf16.mxu1 %v8481_v5 }
 0xb4b   : > { %9263 = vmatpush3.bf16.msra.mxu1 %v14642_v2  ;;  %v8263_v2 = vadd.f32 %v14578_v40, %v7790_v55  ;;  %v8268_v40 = vadd.f32 %v14580_v16, %v7791_v49  ;;  %v9937_v16 = vld [vmem:[%s14777_s11] ss:$8 sps:$4 sm:$0x1f]  }
 0xb4c   : > { %v8416_v60 = vadd.f32 %v9241_v26, %v8255_v18  ;;  %v8461_v30 = vmax.f32 %v8413_v43, 0.0 }
 0xb4e   : > { %v8462_v51 = vmax.f32 %v8416_v60, 0.0  ;;  %v9242_v50 = vpop.f32.mrb[248].mxu1 }
 0xb4f   : > { %v9243_v13 = vpop.f32.mrb[249].mxu1 }
 0xb50   : > { %v9244_v32 = vadd.f32 %v9243_v13, %v9242_v50  ;;  %v9245_v29 = vpop.f32.mrb[250].mxu1  ;;  %v8482_v17 = vpack.c.bf16 %v8462_v51, %v8461_v30 }
 0xb51   : > { %v9246_v7 = vpop.f32.mrb[251].mxu1 }
 0xb52   : > { %v8421_v36 = vadd.f32 %v9244_v32, %v8260_v48  ;;  %v9247_v25 = vadd.f32 %v9246_v7, %v9245_v29  ;;  %9264 = vmatprep.subr.bf16.mxu1 %v8482_v17 }
 0xb53   : > { %9265 = vmatpush3.bf16.msra.mxu1 %v14652_v28  ;;  %v8271_v28 = vadd.f32 %v14582_v33, %v7792_v15 }
 0xb54   : > { %v8424_v42 = vadd.f32 %v9247_v25, %v8263_v2  ;;  %v8463_v31 = vmax.f32 %v8421_v36, 0.0 }
 0xb56   : > { %v8464_v14 = vmax.f32 %v8424_v42, 0.0  ;;  %v9248_v41 = vpop.f32.mrb[252].mxu1 }
 0xb57   : > { %v9249_v0 = vpop.f32.mrb[253].mxu1 }
 0xb58   : > { %v9250_v21 = vadd.f32 %v9249_v0, %v9248_v41  ;;  %v9251_v4 = vpop.f32.mrb[254].mxu1  ;;  %v8483_v1 = vpack.c.bf16 %v8464_v14, %v8463_v31 }
 0xb59   : > { %v9252_v44 = vpop.f32.mrb[255].mxu1 }
 0xb5a   : > { %v8429_v52 = vadd.f32 %v9250_v21, %v8268_v40  ;;  %v9253_v63 = vadd.f32 %v9252_v44, %v9251_v4  ;;  %9266 = vmatprep.subr.bf16.mxu1 %v8483_v1 }
 0xb5b   : > { %9267 = vmatpush3.bf16.msra.mxu1 %v14662_v38 }
 0xb5c   : > { %v8432_v46 = vadd.f32 %v9253_v63, %v8271_v28  ;;  %v8465_v22 = vmax.f32 %v8429_v52, 0.0 }
 0xb5e   : > { %v8466_v57 = vmax.f32 %v8432_v46, 0.0 }
 0xb60   : > { %v8484_v8 = vpack.c.bf16 %v8466_v57, %v8465_v22 }
 0xb62   : > { %9268 = vmatprep.subr.bf16.mxu1 %v8484_v8 }
 0xb63   : > { %9269 = vmatpush3.bf16.msra.mxu1 %v14672_v24 }
 0xb66   : > { %8530 = vmatmul.mubr.bf16.vlgmr.msra.gmra.mrb[0].mxu1 %v9937_v16 }
 0xc39   : > { %v9270_v33 = vpop.f32.mrb[0].mxu1 }
 0xc3a   : > { %v9271_v38 = vpop.f32.mrb[1].mxu1 }
 0xc3b   : > { %v9272_v23 = vadd.f32 %v9271_v38, %v9270_v33  ;;  %v9273_v37 = vpop.f32.mrb[2].mxu1 }
 0xc3c   : > { %v9274_v58 = vpop.f32.mrb[3].mxu1 }
 0xc3d   : > { %v8532_v56 = vadd.f32 %v9272_v23, %v8485_v11  ;;  %v9275_v35 = vadd.f32 %v9274_v58, %v9273_v37 }
 0xc3f   : > { %8538 = vst.msk [vmem:[%s10091_s20] sm:$0xff] %vm4140_vm4, %v8532_v56  ;;  %v8535_v24 = vadd.f32 %v9275_v35, %v8486_v6 }
 0xc41   : > { %8540 = vst.msk [vmem:[%s10091_s20 + $0x8] sm:$0x1] %vm8539_vm5, %v8535_v24 }
 0xc42 PF: > { %s23_s29 = sadd.s32 1, %s9978_s29   ;;  %s15420_s22 = sld [smem:[#allocation3_spill]] }
 0xc43   : > { %p20_p10 = scmp.ge.s32.totalorder %s23_s29, 8   ;;  %s15421_s25 = smov %s9970_s27 }
 0xc44   : > { %s15422_s26 = smov %s9974_s28  ;;  %s15423_s27 = smov %s15426_s30 }
 0xc45   :  { %22 = sbr.rel (!%p20_p10) target bundleno = 3 (0x3), region = 114 }
 0xc48   : > { %s15424_s28 = smov %s15420_s22 }

</bundles_post_ra>
